<compile_context>
chip_gen: v6e
topology: v6e:2x2x1
jax: 0.10.0
libtpu: 0.0.40
codegen_flags: <defaults>
</compile_context>

<pallas_src>
import jax
import jax.numpy as jnp
import numpy as np
from jax.experimental import pallas as pl
from jax.experimental.pallas import tpu as pltpu

# ---- problem sizes (small, consistent with the module) -----------------------
N_PER_GRAPH = 16                       # nodes per graph
GRAPHS_PER_BLOCK = 8                   # graphs packed per grid step
NUM_BLOCKS = 2                         # grid length
TOTAL_GRAPHS = GRAPHS_PER_BLOCK * NUM_BLOCKS
BN = GRAPHS_PER_BLOCK * N_PER_GRAPH    # nodes per grid step = 128 (sublane friendly)

F_IN = 8                               # node feature dim (lazy -1 -> pick 8)
HEADS = 4                              # gat1 heads
HID = 4                                # gat1 out_channels per head
NH1 = HEADS * HID                      # 16
OUT = 32                               # gat2 out_channels (heads=1)
A_DIM = 8                              # action dimension
FC = 256                               # fc1 / fc2 width (lane-dense)


# ---- math shared by kernel and pure-JAX reference ----------------------------
def _mish(v):
    # Mish(x) = x * tanh(softplus(x)); logaddexp(x, 0) is a stable softplus.
    return v * jnp.tanh(jnp.logaddexp(v, 0.0))


def _recip_kernel(d):
    # EUP approximate reciprocal (free slot) + one Newton step -> ~f32 accuracy.
    r = pl.reciprocal(d, approx=True)
    return r * (2.0 - d * r)


def _recip_ref(d):
    return 1.0 / d


def _gat_attention(h, edge, a_cat, heads, fout, recip):
    """h: [n, heads*fout]; edge: [n, n] bool (edge j->i at [i, j], self-loops set);
    a_cat: [heads*fout, 2*heads] = [block_diag(att_dst) | block_diag(att_src)]."""
    n, nh = h.shape
    # fused attention projection: one matmul instead of two
    e = jnp.dot(h, a_cat, preferred_element_type=jnp.float32)      # [n, 2*heads]
    e_dst = e[:, :heads]                                           # [n, heads]
    e_src_t = e[:, heads:].T                                       # [heads, n]
    neg = jnp.float32(-1e30)
    col = jax.lax.broadcasted_iota(jnp.int32, (1, nh), 1)
    out = jnp.zeros((n, nh), jnp.float32)
    for hh in range(heads):
        # s[i, j] = att_dst.h_i + att_src.h_j  (edge j -> i)
        s = e_dst[:, hh:hh + 1] + e_src_t[hh:hh + 1, :]            # [n, n]
        s = jnp.where(s > 0, s, 0.2 * s)                           # LeakyReLU(0.2)
        s = jnp.where(edge, s, neg)                                # single mask
        s = s - jnp.max(s, axis=1, keepdims=True)                  # stable softmax
        p = jnp.exp(s)                                             # non-edges -> 0.0
        p = p * recip(jnp.sum(p, axis=1, keepdims=True))
        if heads == 1:
            out = jnp.dot(p, h, preferred_element_type=jnp.float32)
        else:
            m = jnp.logical_and(col >= hh * fout,
                                col < (hh + 1) * fout).astype(h.dtype)
            out = out + jnp.dot(p, h * m, preferred_element_type=jnp.float32)
    return out


def _forward_block(x, adj, pool, act, params, recip):
    """One block of GRAPHS_PER_BLOCK graphs: GFE + Q head."""
    (w1, a1, b1, w2, a2, b2,
     wf1x, wf1a, bf1, wf2, bf2, wf3, bf3) = params
    edge = adj > 0.0

    # GAT layer 1 (heads=4, hid=4) + Mish
    h1 = jnp.dot(x, w1, preferred_element_type=jnp.float32)            # [BN, 16]
    o1 = _mish(_gat_attention(h1, edge, a1, HEADS, HID, recip) + b1)

    # GAT layer 2 (heads=1, out=32) + Mish
    h2 = jnp.dot(o1, w2, preferred_element_type=jnp.float32)           # [BN, 32]
    o2 = _mish(_gat_attention(h2, edge, a2, 1, OUT, recip) + b2)

    # global_mean_pool: pool[g, i] = 1/|V_g| for nodes of graph g
    feat = jnp.dot(pool, o2, preferred_element_type=jnp.float32)       # [GB, 32]

    # Q head: fc1(cat([feat, a])) == feat @ W1f + a @ W1a + b1
    z = jnp.dot(feat, wf1x, preferred_element_type=jnp.float32)
    z = z + jnp.dot(act, wf1a, preferred_element_type=jnp.float32) + bf1
    z = _mish(z)                                                       # [GB, 256]
    z = _mish(jnp.dot(z, wf2, preferred_element_type=jnp.float32) + bf2)
    return jnp.dot(z, wf3, preferred_element_type=jnp.float32) + bf3   # [GB, 1]


# ---- Pallas kernel: one grid step = one block of graphs -----------------------
def qnet_kernel(x_ref, adj_ref, pool_ref, act_ref,
                w1_ref, a1_ref, b1_ref,
                w2_ref, a2_ref, b2_ref,
                wf1x_ref, wf1a_ref, bf1_ref,
                wf2_ref, bf2_ref, wf3_ref, bf3_ref,
                out_ref):
    params = (w1_ref[...], a1_ref[...], b1_ref[...],
              w2_ref[...], a2_ref[...], b2_ref[...],
              wf1x_ref[...], wf1a_ref[...], bf1_ref[...],
              wf2_ref[...], bf2_ref[...], wf3_ref[...], bf3_ref[...])
    out_ref[...] = _forward_block(x_ref[...], adj_ref[...], pool_ref[...],
                                  act_ref[...], params, _recip_kernel)


def qnetwork_forward(x, adj_blocks, pool_blocks, act, params):
    num_blocks = adj_blocks.shape[0]
    weight_spec = lambda p: pl.BlockSpec(p.shape, lambda b: (0, 0))     # grid-invariant
    in_specs = [
        pl.BlockSpec((BN, F_IN), lambda b: (b, 0)),                     # x nodes
        pl.BlockSpec((None, BN, BN), lambda b: (b, 0, 0)),              # block-diag adj
        pl.BlockSpec((None, GRAPHS_PER_BLOCK, BN), lambda b: (b, 0, 0)),# pooling matrix
        pl.BlockSpec((GRAPHS_PER_BLOCK, A_DIM), lambda b: (b, 0)),      # actions
    ] + [weight_spec(p) for p in params]
    return pl.pallas_call(
        qnet_kernel,
        grid=(num_blocks,),
        in_specs=in_specs,
        out_specs=pl.BlockSpec((GRAPHS_PER_BLOCK, 1), lambda b: (b, 0)),
        out_shape=jax.ShapeDtypeStruct((num_blocks * GRAPHS_PER_BLOCK, 1), jnp.float32),
        compiler_params=pltpu.CompilerParams(
            dimension_semantics=("parallel",)),      # shard blocks across v7x's 2 TCs
    )(x, adj_blocks, pool_blocks, act, *params)


qnetwork_forward_jit = jax.jit(qnetwork_forward)


# ---- pure-JAX reference (same math, run through XLA, not Pallas) --------------
@jax.jit
def reference(x, adj_blocks, pool_blocks, act, params):
    outs = []
    for b in range(NUM_BLOCKS):
        xb = x[b * BN:(b + 1) * BN]
        ab = act[b * GRAPHS_PER_BLOCK:(b + 1) * GRAPHS_PER_BLOCK]
        outs.append(_forward_block(xb, adj_blocks[b], pool_blocks[b], ab,
                                   params, _recip_ref))
    return jnp.concatenate(outs, axis=0)


# ---- deterministic parameter / input construction -----------------------------
def _glorot(key, shape):
    lim = (6.0 / (shape[0] + shape[1])) ** 0.5
    return jax.random.uniform(key, shape, jnp.float32, -lim, lim)


def _block_diag_att(att):
    """att: [heads, fout] per-head attention vector -> [heads*fout, heads]."""
    heads, fout = att.shape
    a = jnp.zeros((heads * fout, heads), jnp.float32)
    for h in range(heads):
        a = a.at[h * fout:(h + 1) * fout, h].set(att[h])
    return a


if __name__ == "__main__":
    key = jax.random.PRNGKey(0)
    ks = jax.random.split(key, 16)

    # node features for all graphs (TOTAL_GRAPHS graphs x N_PER_GRAPH nodes)
    x = jax.random.normal(ks[0], (TOTAL_GRAPHS * N_PER_GRAPH, F_IN), jnp.float32)
    # actions, one per graph (per Q-network sample)
    act = jax.random.normal(ks[1], (TOTAL_GRAPHS, A_DIM), jnp.float32)

    # per-graph edges: bidirectional ring + self-loops (GATConv add_self_loops=True)
    ring = np.zeros((N_PER_GRAPH, N_PER_GRAPH), np.float32)
    for i in range(N_PER_GRAPH):
        j = (i + 1) % N_PER_GRAPH
        ring[i, j] = 1.0
        ring[j, i] = 1.0
        ring[i, i] = 1.0
    # block-diagonal adjacency / mean-pool matrices per grid block
    adj_blk = np.kron(np.eye(GRAPHS_PER_BLOCK, dtype=np.float32), ring)        # [BN, BN]
    pool_blk = np.kron(np.eye(GRAPHS_PER_BLOCK, dtype=np.float32),
                       np.full((1, N_PER_GRAPH), 1.0 / N_PER_GRAPH, np.float32))  # [GB, BN]
    adj_blocks = jnp.asarray(np.stack([adj_blk] * NUM_BLOCKS))                 # [B, BN, BN]
    pool_blocks = jnp.asarray(np.stack([pool_blk] * NUM_BLOCKS))               # [B, GB, BN]

    # GATConv parameters (glorot weights, zero biases), fused [dst | src] attention
    w1 = _glorot(ks[2], (F_IN, NH1))                                           # lin1
    a1 = jnp.concatenate([_block_diag_att(_glorot(ks[3], (HEADS, HID))),       # att_dst
                          _block_diag_att(_glorot(ks[4], (HEADS, HID)))],      # att_src
                         axis=1)                                               # [16, 8]
    b1 = jnp.zeros((1, NH1), jnp.float32)
    w2 = _glorot(ks[5], (NH1, OUT))                                            # lin2
    a2 = jnp.concatenate([_block_diag_att(_glorot(ks[6], (1, OUT))),
                          _block_diag_att(_glorot(ks[7], (1, OUT)))], axis=1)  # [32, 2]
    b2 = jnp.zeros((1, OUT), jnp.float32)

    # Q head (fc1 split into feature / action parts to avoid an in-kernel concat)
    wf1x = _glorot(ks[8], (OUT, FC))
    wf1a = _glorot(ks[9], (A_DIM, FC))
    bf1 = jax.random.uniform(ks[10], (1, FC), jnp.float32, -0.05, 0.05)
    wf2 = _glorot(ks[11], (FC, FC))
    bf2 = jax.random.uniform(ks[12], (1, FC), jnp.float32, -0.05, 0.05)
    wf3 = _glorot(ks[13], (FC, 1))
    bf3 = jax.random.uniform(ks[14], (1, 1), jnp.float32, -0.05, 0.05)

    params = (w1, a1, b1, w2, a2, b2, wf1x, wf1a, bf1, wf2, bf2, wf3, bf3)

    out = jax.block_until_ready(
        qnetwork_forward_jit(x, adj_blocks, pool_blocks, act, params))
    ref = jax.block_until_ready(
        reference(x, adj_blocks, pool_blocks, act, params))

    assert out.shape == (TOTAL_GRAPHS, 1)
    max_err = float(jnp.max(jnp.abs(out - ref)))
    assert jnp.allclose(out, ref, atol=1e-3, rtol=1e-3), f"mismatch vs reference: {max_err}"

    print("KERNEL_OK")
</pallas_src>

<mosaic_0001>
module attributes {stable_mosaic.version = 11 : i64} {
  func.func @qnet_kernel(%arg0: i32, %arg1: memref<128x8xf32, #tpu.memory_space<vmem>>, %arg2: memref<1x128x128xf32, #tpu.memory_space<vmem>>, %arg3: memref<1x8x128xf32, #tpu.memory_space<vmem>>, %arg4: memref<8x8xf32, #tpu.memory_space<vmem>>, %arg5: memref<8x16xf32, #tpu.memory_space<vmem>>, %arg6: memref<16x8xf32, #tpu.memory_space<vmem>>, %arg7: memref<1x16xf32, #tpu.memory_space<vmem>>, %arg8: memref<16x32xf32, #tpu.memory_space<vmem>>, %arg9: memref<32x2xf32, #tpu.memory_space<vmem>>, %arg10: memref<1x32xf32, #tpu.memory_space<vmem>>, %arg11: memref<32x256xf32, #tpu.memory_space<vmem>>, %arg12: memref<8x256xf32, #tpu.memory_space<vmem>>, %arg13: memref<1x256xf32, #tpu.memory_space<vmem>>, %arg14: memref<256x256xf32, #tpu.memory_space<vmem>>, %arg15: memref<1x256xf32, #tpu.memory_space<vmem>>, %arg16: memref<256x1xf32, #tpu.memory_space<vmem>>, %arg17: memref<1x1xf32, #tpu.memory_space<vmem>>, %arg18: memref<8x1xf32, #tpu.memory_space<vmem>>) attributes {dimension_semantics = [#tpu.dimension_semantics<parallel>], iteration_bounds = array<i64: 2>, scalar_prefetch = 0 : i64, scratch_operands = 0 : i64, tpu.core_type = #tpu.core_type<tc>, window_params = [{transform_indices = @transform_0, window_bounds = array<i64: 128, 8>}, {transform_indices = @transform_1, window_bounds = array<i64: 1, 128, 128>}, {transform_indices = @transform_2, window_bounds = array<i64: 1, 8, 128>}, {transform_indices = @transform_3, window_bounds = array<i64: 8, 8>}, {pipeline_mode = #tpu.pipeline_mode<synchronous>, transform_indices = @transform_4, window_bounds = array<i64: 8, 16>}, {pipeline_mode = #tpu.pipeline_mode<synchronous>, transform_indices = @transform_5, window_bounds = array<i64: 16, 8>}, {pipeline_mode = #tpu.pipeline_mode<synchronous>, transform_indices = @transform_6, window_bounds = array<i64: 1, 16>}, {pipeline_mode = #tpu.pipeline_mode<synchronous>, transform_indices = @transform_7, window_bounds = array<i64: 16, 32>}, {pipeline_mode = #tpu.pipeline_mode<synchronous>, transform_indices = @transform_8, window_bounds = array<i64: 32, 2>}, {pipeline_mode = #tpu.pipeline_mode<synchronous>, transform_indices = @transform_9, window_bounds = array<i64: 1, 32>}, {pipeline_mode = #tpu.pipeline_mode<synchronous>, transform_indices = @transform_10, window_bounds = array<i64: 32, 256>}, {pipeline_mode = #tpu.pipeline_mode<synchronous>, transform_indices = @transform_11, window_bounds = array<i64: 8, 256>}, {pipeline_mode = #tpu.pipeline_mode<synchronous>, transform_indices = @transform_12, window_bounds = array<i64: 1, 256>}, {pipeline_mode = #tpu.pipeline_mode<synchronous>, transform_indices = @transform_13, window_bounds = array<i64: 256, 256>}, {pipeline_mode = #tpu.pipeline_mode<synchronous>, transform_indices = @transform_14, window_bounds = array<i64: 1, 256>}, {pipeline_mode = #tpu.pipeline_mode<synchronous>, transform_indices = @transform_15, window_bounds = array<i64: 256, 1>}, {pipeline_mode = #tpu.pipeline_mode<synchronous>, transform_indices = @transform_16, window_bounds = array<i64: 1, 1>}, {transform_indices = @transform_17, window_bounds = array<i64: 8, 1>}]} {
    %c0 = arith.constant 0 : index
    %c0_0 = arith.constant 0 : index
    %0 = vector.load %arg5[%c0, %c0_0] : memref<8x16xf32, #tpu.memory_space<vmem>>, vector<8x16xf32>
    %c0_1 = arith.constant 0 : index
    %c0_2 = arith.constant 0 : index
    %1 = vector.load %arg6[%c0_1, %c0_2] : memref<16x8xf32, #tpu.memory_space<vmem>>, vector<16x8xf32>
    %c0_3 = arith.constant 0 : index
    %c0_4 = arith.constant 0 : index
    %2 = vector.load %arg7[%c0_3, %c0_4] : memref<1x16xf32, #tpu.memory_space<vmem>>, vector<1x16xf32>
    %c0_5 = arith.constant 0 : index
    %c0_6 = arith.constant 0 : index
    %3 = vector.load %arg8[%c0_5, %c0_6] : memref<16x32xf32, #tpu.memory_space<vmem>>, vector<16x32xf32>
    %c0_7 = arith.constant 0 : index
    %c0_8 = arith.constant 0 : index
    %4 = vector.load %arg9[%c0_7, %c0_8] : memref<32x2xf32, #tpu.memory_space<vmem>>, vector<32x2xf32>
    %c0_9 = arith.constant 0 : index
    %c0_10 = arith.constant 0 : index
    %5 = vector.load %arg10[%c0_9, %c0_10] : memref<1x32xf32, #tpu.memory_space<vmem>>, vector<1x32xf32>
    %c0_11 = arith.constant 0 : index
    %c0_12 = arith.constant 0 : index
    %6 = vector.load %arg11[%c0_11, %c0_12] : memref<32x256xf32, #tpu.memory_space<vmem>>, vector<32x256xf32>
    %c0_13 = arith.constant 0 : index
    %c0_14 = arith.constant 0 : index
    %7 = vector.load %arg12[%c0_13, %c0_14] : memref<8x256xf32, #tpu.memory_space<vmem>>, vector<8x256xf32>
    %c0_15 = arith.constant 0 : index
    %c0_16 = arith.constant 0 : index
    %8 = vector.load %arg13[%c0_15, %c0_16] : memref<1x256xf32, #tpu.memory_space<vmem>>, vector<1x256xf32>
    %c0_17 = arith.constant 0 : index
    %c0_18 = arith.constant 0 : index
    %9 = vector.load %arg14[%c0_17, %c0_18] : memref<256x256xf32, #tpu.memory_space<vmem>>, vector<256x256xf32>
    %c0_19 = arith.constant 0 : index
    %c0_20 = arith.constant 0 : index
    %10 = vector.load %arg15[%c0_19, %c0_20] : memref<1x256xf32, #tpu.memory_space<vmem>>, vector<1x256xf32>
    %c0_21 = arith.constant 0 : index
    %c0_22 = arith.constant 0 : index
    %11 = vector.load %arg16[%c0_21, %c0_22] : memref<256x1xf32, #tpu.memory_space<vmem>>, vector<256x1xf32>
    %c0_23 = arith.constant 0 : index
    %c0_24 = arith.constant 0 : index
    %12 = vector.load %arg17[%c0_23, %c0_24] : memref<1x1xf32, #tpu.memory_space<vmem>>, vector<1x1xf32>
    %c0_25 = arith.constant 0 : index
    %c0_26 = arith.constant 0 : index
    %13 = vector.load %arg1[%c0_25, %c0_26] : memref<128x8xf32, #tpu.memory_space<vmem>>, vector<128x8xf32>
    %c0_27 = arith.constant 0 : index
    %c0_28 = arith.constant 0 : index
    %c0_29 = arith.constant 0 : index
    %14 = vector.load %arg2[%c0_27, %c0_28, %c0_29] : memref<1x128x128xf32, #tpu.memory_space<vmem>>, vector<1x128x128xf32>
    %15 = vector.shape_cast %14 : vector<1x128x128xf32> to vector<128x128xf32>
    %c0_30 = arith.constant 0 : index
    %c0_31 = arith.constant 0 : index
    %c0_32 = arith.constant 0 : index
    %16 = vector.load %arg3[%c0_30, %c0_31, %c0_32] : memref<1x8x128xf32, #tpu.memory_space<vmem>>, vector<1x8x128xf32>
    %17 = vector.shape_cast %16 : vector<1x8x128xf32> to vector<8x128xf32>
    %c0_33 = arith.constant 0 : index
    %c0_34 = arith.constant 0 : index
    %18 = vector.load %arg4[%c0_33, %c0_34] : memref<8x8xf32, #tpu.memory_space<vmem>>, vector<8x8xf32>
    %cst = arith.constant 0.000000e+00 : f32
    %19 = vector.broadcast %cst : f32 to vector<128x128xf32>
    %20 = arith.cmpf ogt, %15, %19 : vector<128x128xf32>
    %cst_35 = arith.constant dense<0.000000e+00> : vector<128x16xf32>
    %21 = tpu.matmul %13, %0, %cst_35 {dimension_numbers = #tpu.dot_dimension_numbers<[1], [0], [0], [1], [0, 0, 1, 1], [], []>} : vector<128x8xf32>, vector<8x16xf32>, vector<128x16xf32> -> vector<128x16xf32>
    %cst_36 = arith.constant dense<0.000000e+00> : vector<128x8xf32>
    %22 = tpu.matmul %21, %1, %cst_36 {dimension_numbers = #tpu.dot_dimension_numbers<[1], [0], [0], [1], [0, 0, 1, 1], [], []>} : vector<128x16xf32>, vector<16x8xf32>, vector<128x8xf32> -> vector<128x8xf32>
    %23 = vector.extract_strided_slice %22 {offsets = [0, 0], sizes = [128, 4], strides = [1, 1]} : vector<128x8xf32> to vector<128x4xf32>
    %24 = vector.extract_strided_slice %22 {offsets = [0, 4], sizes = [128, 4], strides = [1, 1]} : vector<128x8xf32> to vector<128x4xf32>
    %25 = tpu.transpose %24, [1, 0] : vector<128x4xf32> -> vector<4x128xf32>
    %26 = tpu.iota {dimensions = array<i32: 1>} : vector<1x16xi32>
    %cst_37 = arith.constant 0.000000e+00 : f32
    %27 = vector.broadcast %cst_37 : f32 to vector<128x16xf32>
    %28 = vector.extract_strided_slice %23 {offsets = [0, 0], sizes = [128, 1], strides = [1, 1]} : vector<128x4xf32> to vector<128x1xf32>
    %29 = vector.extract_strided_slice %25 {offsets = [0, 0], sizes = [1, 128], strides = [1, 1]} : vector<4x128xf32> to vector<1x128xf32>
    %30 = vector.broadcast %28 : vector<128x1xf32> to vector<128x128xf32>
    %31 = vector.broadcast %29 : vector<1x128xf32> to vector<128x128xf32>
    %32 = arith.addf %30, %31 : vector<128x128xf32>
    %cst_38 = arith.constant 0.000000e+00 : f32
    %33 = vector.broadcast %cst_38 : f32 to vector<128x128xf32>
    %34 = arith.cmpf ogt, %32, %33 : vector<128x128xf32>
    %cst_39 = arith.constant 2.000000e-01 : f32
    %35 = vector.broadcast %cst_39 : f32 to vector<128x128xf32>
    %36 = arith.mulf %35, %32 : vector<128x128xf32>
    %37 = arith.select %34, %32, %36 : vector<128x128xi1>, vector<128x128xf32>
    %cst_40 = arith.constant -1.000000e+30 : f32
    %38 = vector.broadcast %cst_40 : f32 to vector<128x128xf32>
    %39 = arith.select %20, %37, %38 : vector<128x128xi1>, vector<128x128xf32>
    %cst_41 = arith.constant dense<0xFF800000> : vector<128xf32>
    %40 = vector.multi_reduction <maximumf>, %39, %cst_41 [1] : vector<128x128xf32> to vector<128xf32>
    %41 = vector.shape_cast %40 : vector<128xf32> to vector<128x1xf32>
    %42 = vector.broadcast %41 : vector<128x1xf32> to vector<128x128xf32>
    %43 = arith.subf %39, %42 : vector<128x128xf32>
    %44 = math.exp %43 : vector<128x128xf32>
    %cst_42 = arith.constant dense<0.000000e+00> : vector<128xf32>
    %45 = vector.multi_reduction <add>, %44, %cst_42 [1] : vector<128x128xf32> to vector<128xf32>
    %46 = vector.shape_cast %45 : vector<128xf32> to vector<128x1xf32>
    %47 = tpu.reciprocal %46 {approx = true} : vector<128x1xf32> -> vector<128x1xf32>
    %48 = arith.mulf %46, %47 : vector<128x1xf32>
    %cst_43 = arith.constant 2.000000e+00 : f32
    %49 = vector.broadcast %cst_43 : f32 to vector<128x1xf32>
    %50 = arith.subf %49, %48 : vector<128x1xf32>
    %51 = arith.mulf %47, %50 : vector<128x1xf32>
    %52 = vector.broadcast %51 : vector<128x1xf32> to vector<128x128xf32>
    %53 = arith.mulf %44, %52 : vector<128x128xf32>
    %c0_i32 = arith.constant 0 : i32
    %54 = vector.broadcast %c0_i32 : i32 to vector<1x16xi32>
    %55 = arith.cmpi sge, %26, %54 : vector<1x16xi32>
    %c4_i32 = arith.constant 4 : i32
    %56 = vector.broadcast %c4_i32 : i32 to vector<1x16xi32>
    %57 = arith.cmpi slt, %26, %56 : vector<1x16xi32>
    %58 = arith.andi %55, %57 : vector<1x16xi1>
    %59 = arith.extui %58 : vector<1x16xi1> to vector<1x16xi32>
    %60 = arith.sitofp %59 : vector<1x16xi32> to vector<1x16xf32>
    %61 = vector.broadcast %60 : vector<1x16xf32> to vector<128x16xf32>
    %62 = arith.mulf %21, %61 : vector<128x16xf32>
    %cst_44 = arith.constant dense<0.000000e+00> : vector<128x16xf32>
    %63 = tpu.matmul %53, %62, %cst_44 {dimension_numbers = #tpu.dot_dimension_numbers<[1], [0], [0], [1], [0, 0, 1, 1], [], []>} : vector<128x128xf32>, vector<128x16xf32>, vector<128x16xf32> -> vector<128x16xf32>
    %64 = arith.addf %27, %63 : vector<128x16xf32>
    %65 = vector.extract_strided_slice %23 {offsets = [0, 1], sizes = [128, 1], strides = [1, 1]} : vector<128x4xf32> to vector<128x1xf32>
    %66 = vector.extract_strided_slice %25 {offsets = [1, 0], sizes = [1, 128], strides = [1, 1]} : vector<4x128xf32> to vector<1x128xf32>
    %67 = vector.broadcast %65 : vector<128x1xf32> to vector<128x128xf32>
    %68 = vector.broadcast %66 : vector<1x128xf32> to vector<128x128xf32>
    %69 = arith.addf %67, %68 : vector<128x128xf32>
    %cst_45 = arith.constant 0.000000e+00 : f32
    %70 = vector.broadcast %cst_45 : f32 to vector<128x128xf32>
    %71 = arith.cmpf ogt, %69, %70 : vector<128x128xf32>
    %cst_46 = arith.constant 2.000000e-01 : f32
    %72 = vector.broadcast %cst_46 : f32 to vector<128x128xf32>
    %73 = arith.mulf %72, %69 : vector<128x128xf32>
    %74 = arith.select %71, %69, %73 : vector<128x128xi1>, vector<128x128xf32>
    %cst_47 = arith.constant -1.000000e+30 : f32
    %75 = vector.broadcast %cst_47 : f32 to vector<128x128xf32>
    %76 = arith.select %20, %74, %75 : vector<128x128xi1>, vector<128x128xf32>
    %cst_48 = arith.constant dense<0xFF800000> : vector<128xf32>
    %77 = vector.multi_reduction <maximumf>, %76, %cst_48 [1] : vector<128x128xf32> to vector<128xf32>
    %78 = vector.shape_cast %77 : vector<128xf32> to vector<128x1xf32>
    %79 = vector.broadcast %78 : vector<128x1xf32> to vector<128x128xf32>
    %80 = arith.subf %76, %79 : vector<128x128xf32>
    %81 = math.exp %80 : vector<128x128xf32>
    %cst_49 = arith.constant dense<0.000000e+00> : vector<128xf32>
    %82 = vector.multi_reduction <add>, %81, %cst_49 [1] : vector<128x128xf32> to vector<128xf32>
    %83 = vector.shape_cast %82 : vector<128xf32> to vector<128x1xf32>
    %84 = tpu.reciprocal %83 {approx = true} : vector<128x1xf32> -> vector<128x1xf32>
    %85 = arith.mulf %83, %84 : vector<128x1xf32>
    %cst_50 = arith.constant 2.000000e+00 : f32
    %86 = vector.broadcast %cst_50 : f32 to vector<128x1xf32>
    %87 = arith.subf %86, %85 : vector<128x1xf32>
    %88 = arith.mulf %84, %87 : vector<128x1xf32>
    %89 = vector.broadcast %88 : vector<128x1xf32> to vector<128x128xf32>
    %90 = arith.mulf %81, %89 : vector<128x128xf32>
    %c4_i32_51 = arith.constant 4 : i32
    %91 = vector.broadcast %c4_i32_51 : i32 to vector<1x16xi32>
    %92 = arith.cmpi sge, %26, %91 : vector<1x16xi32>
    %c8_i32 = arith.constant 8 : i32
    %93 = vector.broadcast %c8_i32 : i32 to vector<1x16xi32>
    %94 = arith.cmpi slt, %26, %93 : vector<1x16xi32>
    %95 = arith.andi %92, %94 : vector<1x16xi1>
    %96 = arith.extui %95 : vector<1x16xi1> to vector<1x16xi32>
    %97 = arith.sitofp %96 : vector<1x16xi32> to vector<1x16xf32>
    %98 = vector.broadcast %97 : vector<1x16xf32> to vector<128x16xf32>
    %99 = arith.mulf %21, %98 : vector<128x16xf32>
    %cst_52 = arith.constant dense<0.000000e+00> : vector<128x16xf32>
    %100 = tpu.matmul %90, %99, %cst_52 {dimension_numbers = #tpu.dot_dimension_numbers<[1], [0], [0], [1], [0, 0, 1, 1], [], []>} : vector<128x128xf32>, vector<128x16xf32>, vector<128x16xf32> -> vector<128x16xf32>
    %101 = arith.addf %64, %100 : vector<128x16xf32>
    %102 = vector.extract_strided_slice %23 {offsets = [0, 2], sizes = [128, 1], strides = [1, 1]} : vector<128x4xf32> to vector<128x1xf32>
    %103 = vector.extract_strided_slice %25 {offsets = [2, 0], sizes = [1, 128], strides = [1, 1]} : vector<4x128xf32> to vector<1x128xf32>
    %104 = vector.broadcast %102 : vector<128x1xf32> to vector<128x128xf32>
    %105 = vector.broadcast %103 : vector<1x128xf32> to vector<128x128xf32>
    %106 = arith.addf %104, %105 : vector<128x128xf32>
    %cst_53 = arith.constant 0.000000e+00 : f32
    %107 = vector.broadcast %cst_53 : f32 to vector<128x128xf32>
    %108 = arith.cmpf ogt, %106, %107 : vector<128x128xf32>
    %cst_54 = arith.constant 2.000000e-01 : f32
    %109 = vector.broadcast %cst_54 : f32 to vector<128x128xf32>
    %110 = arith.mulf %109, %106 : vector<128x128xf32>
    %111 = arith.select %108, %106, %110 : vector<128x128xi1>, vector<128x128xf32>
    %cst_55 = arith.constant -1.000000e+30 : f32
    %112 = vector.broadcast %cst_55 : f32 to vector<128x128xf32>
    %113 = arith.select %20, %111, %112 : vector<128x128xi1>, vector<128x128xf32>
    %cst_56 = arith.constant dense<0xFF800000> : vector<128xf32>
    %114 = vector.multi_reduction <maximumf>, %113, %cst_56 [1] : vector<128x128xf32> to vector<128xf32>
    %115 = vector.shape_cast %114 : vector<128xf32> to vector<128x1xf32>
    %116 = vector.broadcast %115 : vector<128x1xf32> to vector<128x128xf32>
    %117 = arith.subf %113, %116 : vector<128x128xf32>
    %118 = math.exp %117 : vector<128x128xf32>
    %cst_57 = arith.constant dense<0.000000e+00> : vector<128xf32>
    %119 = vector.multi_reduction <add>, %118, %cst_57 [1] : vector<128x128xf32> to vector<128xf32>
    %120 = vector.shape_cast %119 : vector<128xf32> to vector<128x1xf32>
    %121 = tpu.reciprocal %120 {approx = true} : vector<128x1xf32> -> vector<128x1xf32>
    %122 = arith.mulf %120, %121 : vector<128x1xf32>
    %cst_58 = arith.constant 2.000000e+00 : f32
    %123 = vector.broadcast %cst_58 : f32 to vector<128x1xf32>
    %124 = arith.subf %123, %122 : vector<128x1xf32>
    %125 = arith.mulf %121, %124 : vector<128x1xf32>
    %126 = vector.broadcast %125 : vector<128x1xf32> to vector<128x128xf32>
    %127 = arith.mulf %118, %126 : vector<128x128xf32>
    %c8_i32_59 = arith.constant 8 : i32
    %128 = vector.broadcast %c8_i32_59 : i32 to vector<1x16xi32>
    %129 = arith.cmpi sge, %26, %128 : vector<1x16xi32>
    %c12_i32 = arith.constant 12 : i32
    %130 = vector.broadcast %c12_i32 : i32 to vector<1x16xi32>
    %131 = arith.cmpi slt, %26, %130 : vector<1x16xi32>
    %132 = arith.andi %129, %131 : vector<1x16xi1>
    %133 = arith.extui %132 : vector<1x16xi1> to vector<1x16xi32>
    %134 = arith.sitofp %133 : vector<1x16xi32> to vector<1x16xf32>
    %135 = vector.broadcast %134 : vector<1x16xf32> to vector<128x16xf32>
    %136 = arith.mulf %21, %135 : vector<128x16xf32>
    %cst_60 = arith.constant dense<0.000000e+00> : vector<128x16xf32>
    %137 = tpu.matmul %127, %136, %cst_60 {dimension_numbers = #tpu.dot_dimension_numbers<[1], [0], [0], [1], [0, 0, 1, 1], [], []>} : vector<128x128xf32>, vector<128x16xf32>, vector<128x16xf32> -> vector<128x16xf32>
    %138 = arith.addf %101, %137 : vector<128x16xf32>
    %139 = vector.extract_strided_slice %23 {offsets = [0, 3], sizes = [128, 1], strides = [1, 1]} : vector<128x4xf32> to vector<128x1xf32>
    %140 = vector.extract_strided_slice %25 {offsets = [3, 0], sizes = [1, 128], strides = [1, 1]} : vector<4x128xf32> to vector<1x128xf32>
    %141 = vector.broadcast %139 : vector<128x1xf32> to vector<128x128xf32>
    %142 = vector.broadcast %140 : vector<1x128xf32> to vector<128x128xf32>
    %143 = arith.addf %141, %142 : vector<128x128xf32>
    %cst_61 = arith.constant 0.000000e+00 : f32
    %144 = vector.broadcast %cst_61 : f32 to vector<128x128xf32>
    %145 = arith.cmpf ogt, %143, %144 : vector<128x128xf32>
    %cst_62 = arith.constant 2.000000e-01 : f32
    %146 = vector.broadcast %cst_62 : f32 to vector<128x128xf32>
    %147 = arith.mulf %146, %143 : vector<128x128xf32>
    %148 = arith.select %145, %143, %147 : vector<128x128xi1>, vector<128x128xf32>
    %cst_63 = arith.constant -1.000000e+30 : f32
    %149 = vector.broadcast %cst_63 : f32 to vector<128x128xf32>
    %150 = arith.select %20, %148, %149 : vector<128x128xi1>, vector<128x128xf32>
    %cst_64 = arith.constant dense<0xFF800000> : vector<128xf32>
    %151 = vector.multi_reduction <maximumf>, %150, %cst_64 [1] : vector<128x128xf32> to vector<128xf32>
    %152 = vector.shape_cast %151 : vector<128xf32> to vector<128x1xf32>
    %153 = vector.broadcast %152 : vector<128x1xf32> to vector<128x128xf32>
    %154 = arith.subf %150, %153 : vector<128x128xf32>
    %155 = math.exp %154 : vector<128x128xf32>
    %cst_65 = arith.constant dense<0.000000e+00> : vector<128xf32>
    %156 = vector.multi_reduction <add>, %155, %cst_65 [1] : vector<128x128xf32> to vector<128xf32>
    %157 = vector.shape_cast %156 : vector<128xf32> to vector<128x1xf32>
    %158 = tpu.reciprocal %157 {approx = true} : vector<128x1xf32> -> vector<128x1xf32>
    %159 = arith.mulf %157, %158 : vector<128x1xf32>
    %cst_66 = arith.constant 2.000000e+00 : f32
    %160 = vector.broadcast %cst_66 : f32 to vector<128x1xf32>
    %161 = arith.subf %160, %159 : vector<128x1xf32>
    %162 = arith.mulf %158, %161 : vector<128x1xf32>
    %163 = vector.broadcast %162 : vector<128x1xf32> to vector<128x128xf32>
    %164 = arith.mulf %155, %163 : vector<128x128xf32>
    %c12_i32_67 = arith.constant 12 : i32
    %165 = vector.broadcast %c12_i32_67 : i32 to vector<1x16xi32>
    %166 = arith.cmpi sge, %26, %165 : vector<1x16xi32>
    %c16_i32 = arith.constant 16 : i32
    %167 = vector.broadcast %c16_i32 : i32 to vector<1x16xi32>
    %168 = arith.cmpi slt, %26, %167 : vector<1x16xi32>
    %169 = arith.andi %166, %168 : vector<1x16xi1>
    %170 = arith.extui %169 : vector<1x16xi1> to vector<1x16xi32>
    %171 = arith.sitofp %170 : vector<1x16xi32> to vector<1x16xf32>
    %172 = vector.broadcast %171 : vector<1x16xf32> to vector<128x16xf32>
    %173 = arith.mulf %21, %172 : vector<128x16xf32>
    %cst_68 = arith.constant dense<0.000000e+00> : vector<128x16xf32>
    %174 = tpu.matmul %164, %173, %cst_68 {dimension_numbers = #tpu.dot_dimension_numbers<[1], [0], [0], [1], [0, 0, 1, 1], [], []>} : vector<128x128xf32>, vector<128x16xf32>, vector<128x16xf32> -> vector<128x16xf32>
    %175 = arith.addf %138, %174 : vector<128x16xf32>
    %176 = vector.broadcast %2 : vector<1x16xf32> to vector<128x16xf32>
    %177 = arith.addf %175, %176 : vector<128x16xf32>
    %cst_69 = arith.constant 0.000000e+00 : f32
    %178 = vector.broadcast %cst_69 : f32 to vector<128x16xf32>
    %179 = arith.maximumf %177, %178 : vector<128x16xf32>
    %180 = vector.broadcast %cst_69 : f32 to vector<128x16xf32>
    %181 = arith.subf %177, %180 : vector<128x16xf32>
    %182 = arith.cmpf one, %181, %181 : vector<128x16xf32>
    %183 = vector.broadcast %cst_69 : f32 to vector<128x16xf32>
    %184 = arith.addf %177, %183 : vector<128x16xf32>
    %185 = math.absf %181 : vector<128x16xf32>
    %cst_70 = arith.constant 0.000000e+00 : f32
    %186 = vector.broadcast %cst_70 : f32 to vector<128x16xf32>
    %187 = arith.subf %186, %185 : vector<128x16xf32>
    %188 = math.exp %187 : vector<128x16xf32>
    %189 = math.log1p %188 : vector<128x16xf32>
    %190 = arith.addf %179, %189 : vector<128x16xf32>
    %191 = arith.select %182, %184, %190 : vector<128x16xi1>, vector<128x16xf32>
    %192 = math.tanh %191 : vector<128x16xf32>
    %193 = arith.mulf %177, %192 : vector<128x16xf32>
    %cst_71 = arith.constant dense<0.000000e+00> : vector<128x32xf32>
    %194 = tpu.matmul %193, %3, %cst_71 {dimension_numbers = #tpu.dot_dimension_numbers<[1], [0], [0], [1], [0, 0, 1, 1], [], []>} : vector<128x16xf32>, vector<16x32xf32>, vector<128x32xf32> -> vector<128x32xf32>
    %cst_72 = arith.constant dense<0.000000e+00> : vector<128x2xf32>
    %195 = tpu.matmul %194, %4, %cst_72 {dimension_numbers = #tpu.dot_dimension_numbers<[1], [0], [0], [1], [0, 0, 1, 1], [], []>} : vector<128x32xf32>, vector<32x2xf32>, vector<128x2xf32> -> vector<128x2xf32>
    %196 = vector.extract_strided_slice %195 {offsets = [0, 0], sizes = [128, 1], strides = [1, 1]} : vector<128x2xf32> to vector<128x1xf32>
    %197 = vector.extract_strided_slice %195 {offsets = [0, 1], sizes = [128, 1], strides = [1, 1]} : vector<128x2xf32> to vector<128x1xf32>
    %198 = tpu.transpose %197, [1, 0] : vector<128x1xf32> -> vector<1x128xf32>
    %199 = vector.broadcast %196 : vector<128x1xf32> to vector<128x128xf32>
    %200 = vector.broadcast %198 : vector<1x128xf32> to vector<128x128xf32>
    %201 = arith.addf %199, %200 : vector<128x128xf32>
    %cst_73 = arith.constant 0.000000e+00 : f32
    %202 = vector.broadcast %cst_73 : f32 to vector<128x128xf32>
    %203 = arith.cmpf ogt, %201, %202 : vector<128x128xf32>
    %cst_74 = arith.constant 2.000000e-01 : f32
    %204 = vector.broadcast %cst_74 : f32 to vector<128x128xf32>
    %205 = arith.mulf %204, %201 : vector<128x128xf32>
    %206 = arith.select %203, %201, %205 : vector<128x128xi1>, vector<128x128xf32>
    %cst_75 = arith.constant -1.000000e+30 : f32
    %207 = vector.broadcast %cst_75 : f32 to vector<128x128xf32>
    %208 = arith.select %20, %206, %207 : vector<128x128xi1>, vector<128x128xf32>
    %cst_76 = arith.constant dense<0xFF800000> : vector<128xf32>
    %209 = vector.multi_reduction <maximumf>, %208, %cst_76 [1] : vector<128x128xf32> to vector<128xf32>
    %210 = vector.shape_cast %209 : vector<128xf32> to vector<128x1xf32>
    %211 = vector.broadcast %210 : vector<128x1xf32> to vector<128x128xf32>
    %212 = arith.subf %208, %211 : vector<128x128xf32>
    %213 = math.exp %212 : vector<128x128xf32>
    %cst_77 = arith.constant dense<0.000000e+00> : vector<128xf32>
    %214 = vector.multi_reduction <add>, %213, %cst_77 [1] : vector<128x128xf32> to vector<128xf32>
    %215 = vector.shape_cast %214 : vector<128xf32> to vector<128x1xf32>
    %216 = tpu.reciprocal %215 {approx = true} : vector<128x1xf32> -> vector<128x1xf32>
    %217 = arith.mulf %215, %216 : vector<128x1xf32>
    %cst_78 = arith.constant 2.000000e+00 : f32
    %218 = vector.broadcast %cst_78 : f32 to vector<128x1xf32>
    %219 = arith.subf %218, %217 : vector<128x1xf32>
    %220 = arith.mulf %216, %219 : vector<128x1xf32>
    %221 = vector.broadcast %220 : vector<128x1xf32> to vector<128x128xf32>
    %222 = arith.mulf %213, %221 : vector<128x128xf32>
    %cst_79 = arith.constant dense<0.000000e+00> : vector<128x32xf32>
    %223 = tpu.matmul %222, %194, %cst_79 {dimension_numbers = #tpu.dot_dimension_numbers<[1], [0], [0], [1], [0, 0, 1, 1], [], []>} : vector<128x128xf32>, vector<128x32xf32>, vector<128x32xf32> -> vector<128x32xf32>
    %224 = vector.broadcast %5 : vector<1x32xf32> to vector<128x32xf32>
    %225 = arith.addf %223, %224 : vector<128x32xf32>
    %cst_80 = arith.constant 0.000000e+00 : f32
    %226 = vector.broadcast %cst_80 : f32 to vector<128x32xf32>
    %227 = arith.maximumf %225, %226 : vector<128x32xf32>
    %228 = vector.broadcast %cst_80 : f32 to vector<128x32xf32>
    %229 = arith.subf %225, %228 : vector<128x32xf32>
    %230 = arith.cmpf one, %229, %229 : vector<128x32xf32>
    %231 = vector.broadcast %cst_80 : f32 to vector<128x32xf32>
    %232 = arith.addf %225, %231 : vector<128x32xf32>
    %233 = math.absf %229 : vector<128x32xf32>
    %cst_81 = arith.constant 0.000000e+00 : f32
    %234 = vector.broadcast %cst_81 : f32 to vector<128x32xf32>
    %235 = arith.subf %234, %233 : vector<128x32xf32>
    %236 = math.exp %235 : vector<128x32xf32>
    %237 = math.log1p %236 : vector<128x32xf32>
    %238 = arith.addf %227, %237 : vector<128x32xf32>
    %239 = arith.select %230, %232, %238 : vector<128x32xi1>, vector<128x32xf32>
    %240 = math.tanh %239 : vector<128x32xf32>
    %241 = arith.mulf %225, %240 : vector<128x32xf32>
    %cst_82 = arith.constant dense<0.000000e+00> : vector<8x32xf32>
    %242 = tpu.matmul %17, %241, %cst_82 {dimension_numbers = #tpu.dot_dimension_numbers<[1], [0], [0], [1], [0, 0, 1, 1], [], []>} : vector<8x128xf32>, vector<128x32xf32>, vector<8x32xf32> -> vector<8x32xf32>
    %cst_83 = arith.constant dense<0.000000e+00> : vector<8x256xf32>
    %243 = tpu.matmul %242, %6, %cst_83 {dimension_numbers = #tpu.dot_dimension_numbers<[1], [0], [0], [1], [0, 0, 1, 1], [], []>} : vector<8x32xf32>, vector<32x256xf32>, vector<8x256xf32> -> vector<8x256xf32>
    %cst_84 = arith.constant dense<0.000000e+00> : vector<8x256xf32>
    %244 = tpu.matmul %18, %7, %cst_84 {dimension_numbers = #tpu.dot_dimension_numbers<[1], [0], [0], [1], [0, 0, 1, 1], [], []>} : vector<8x8xf32>, vector<8x256xf32>, vector<8x256xf32> -> vector<8x256xf32>
    %245 = arith.addf %243, %244 : vector<8x256xf32>
    %246 = vector.broadcast %8 : vector<1x256xf32> to vector<8x256xf32>
    %247 = arith.addf %245, %246 : vector<8x256xf32>
    %cst_85 = arith.constant 0.000000e+00 : f32
    %248 = vector.broadcast %cst_85 : f32 to vector<8x256xf32>
    %249 = arith.maximumf %247, %248 : vector<8x256xf32>
    %250 = vector.broadcast %cst_85 : f32 to vector<8x256xf32>
    %251 = arith.subf %247, %250 : vector<8x256xf32>
    %252 = arith.cmpf one, %251, %251 : vector<8x256xf32>
    %253 = vector.broadcast %cst_85 : f32 to vector<8x256xf32>
    %254 = arith.addf %247, %253 : vector<8x256xf32>
    %255 = math.absf %251 : vector<8x256xf32>
    %cst_86 = arith.constant 0.000000e+00 : f32
    %256 = vector.broadcast %cst_86 : f32 to vector<8x256xf32>
    %257 = arith.subf %256, %255 : vector<8x256xf32>
    %258 = math.exp %257 : vector<8x256xf32>
    %259 = math.log1p %258 : vector<8x256xf32>
    %260 = arith.addf %249, %259 : vector<8x256xf32>
    %261 = arith.select %252, %254, %260 : vector<8x256xi1>, vector<8x256xf32>
    %262 = math.tanh %261 : vector<8x256xf32>
    %263 = arith.mulf %247, %262 : vector<8x256xf32>
    %cst_87 = arith.constant dense<0.000000e+00> : vector<8x256xf32>
    %264 = tpu.matmul %263, %9, %cst_87 {dimension_numbers = #tpu.dot_dimension_numbers<[1], [0], [0], [1], [0, 0, 1, 1], [], []>} : vector<8x256xf32>, vector<256x256xf32>, vector<8x256xf32> -> vector<8x256xf32>
    %265 = vector.broadcast %10 : vector<1x256xf32> to vector<8x256xf32>
    %266 = arith.addf %264, %265 : vector<8x256xf32>
    %cst_88 = arith.constant 0.000000e+00 : f32
    %267 = vector.broadcast %cst_88 : f32 to vector<8x256xf32>
    %268 = arith.maximumf %266, %267 : vector<8x256xf32>
    %269 = vector.broadcast %cst_88 : f32 to vector<8x256xf32>
    %270 = arith.subf %266, %269 : vector<8x256xf32>
    %271 = arith.cmpf one, %270, %270 : vector<8x256xf32>
    %272 = vector.broadcast %cst_88 : f32 to vector<8x256xf32>
    %273 = arith.addf %266, %272 : vector<8x256xf32>
    %274 = math.absf %270 : vector<8x256xf32>
    %cst_89 = arith.constant 0.000000e+00 : f32
    %275 = vector.broadcast %cst_89 : f32 to vector<8x256xf32>
    %276 = arith.subf %275, %274 : vector<8x256xf32>
    %277 = math.exp %276 : vector<8x256xf32>
    %278 = math.log1p %277 : vector<8x256xf32>
    %279 = arith.addf %268, %278 : vector<8x256xf32>
    %280 = arith.select %271, %273, %279 : vector<8x256xi1>, vector<8x256xf32>
    %281 = math.tanh %280 : vector<8x256xf32>
    %282 = arith.mulf %266, %281 : vector<8x256xf32>
    %cst_90 = arith.constant dense<0.000000e+00> : vector<8x1xf32>
    %283 = tpu.matmul %282, %11, %cst_90 {dimension_numbers = #tpu.dot_dimension_numbers<[1], [0], [0], [1], [0, 0, 1, 1], [], []>} : vector<8x256xf32>, vector<256x1xf32>, vector<8x1xf32> -> vector<8x1xf32>
    %284 = vector.broadcast %12 : vector<1x1xf32> to vector<8x1xf32>
    %285 = arith.addf %283, %284 : vector<8x1xf32>
    %c0_91 = arith.constant 0 : index
    %c0_92 = arith.constant 0 : index
    %286 = vector.load %arg18[%c0_91, %c0_92] : memref<8x1xf32, #tpu.memory_space<vmem>>, vector<8x1xf32>
    tpu.vector_store %arg18[%c0_91, %c0_92], %285 {strides = array<i32>} : memref<8x1xf32, #tpu.memory_space<vmem>>, vector<8x1xf32>,
    return
  }
  func.func @transform_0(%arg0: i32) -> (i32, i32) {
    %c0_i32 = arith.constant 0 : i32
    %c0_i32_0 = arith.constant 0 : i32
    return %arg0, %c0_i32 : i32, i32
  }
  func.func @transform_1(%arg0: i32) -> (i32, i32, i32) {
    %c0_i32 = arith.constant 0 : i32
    %c0_i32_0 = arith.constant 0 : i32
    %c0_i32_1 = arith.constant 0 : i32
    return %arg0, %c0_i32, %c0_i32_0 : i32, i32, i32
  }
  func.func @transform_2(%arg0: i32) -> (i32, i32, i32) {
    %c0_i32 = arith.constant 0 : i32
    %c0_i32_0 = arith.constant 0 : i32
    %c0_i32_1 = arith.constant 0 : i32
    return %arg0, %c0_i32, %c0_i32_0 : i32, i32, i32
  }
  func.func @transform_3(%arg0: i32) -> (i32, i32) {
    %c0_i32 = arith.constant 0 : i32
    %c0_i32_0 = arith.constant 0 : i32
    return %arg0, %c0_i32 : i32, i32
  }
  func.func @transform_4(%arg0: i32) -> (i32, i32) {
    %c0_i32 = arith.constant 0 : i32
    %c0_i32_0 = arith.constant 0 : i32
    %c0_i32_1 = arith.constant 0 : i32
    return %c0_i32, %c0_i32_0 : i32, i32
  }
  func.func @transform_5(%arg0: i32) -> (i32, i32) {
    %c0_i32 = arith.constant 0 : i32
    %c0_i32_0 = arith.constant 0 : i32
    %c0_i32_1 = arith.constant 0 : i32
    return %c0_i32, %c0_i32_0 : i32, i32
  }
  func.func @transform_6(%arg0: i32) -> (i32, i32) {
    %c0_i32 = arith.constant 0 : i32
    %c0_i32_0 = arith.constant 0 : i32
    %c0_i32_1 = arith.constant 0 : i32
    return %c0_i32, %c0_i32_0 : i32, i32
  }
  func.func @transform_7(%arg0: i32) -> (i32, i32) {
    %c0_i32 = arith.constant 0 : i32
    %c0_i32_0 = arith.constant 0 : i32
    %c0_i32_1 = arith.constant 0 : i32
    return %c0_i32, %c0_i32_0 : i32, i32
  }
  func.func @transform_8(%arg0: i32) -> (i32, i32) {
    %c0_i32 = arith.constant 0 : i32
    %c0_i32_0 = arith.constant 0 : i32
    %c0_i32_1 = arith.constant 0 : i32
    return %c0_i32, %c0_i32_0 : i32, i32
  }
  func.func @transform_9(%arg0: i32) -> (i32, i32) {
    %c0_i32 = arith.constant 0 : i32
    %c0_i32_0 = arith.constant 0 : i32
    %c0_i32_1 = arith.constant 0 : i32
    return %c0_i32, %c0_i32_0 : i32, i32
  }
  func.func @transform_10(%arg0: i32) -> (i32, i32) {
    %c0_i32 = arith.constant 0 : i32
    %c0_i32_0 = arith.constant 0 : i32
    %c0_i32_1 = arith.constant 0 : i32
    return %c0_i32, %c0_i32_0 : i32, i32
  }
  func.func @transform_11(%arg0: i32) -> (i32, i32) {
    %c0_i32 = arith.constant 0 : i32
    %c0_i32_0 = arith.constant 0 : i32
    %c0_i32_1 = arith.constant 0 : i32
    return %c0_i32, %c0_i32_0 : i32, i32
  }
  func.func @transform_12(%arg0: i32) -> (i32, i32) {
    %c0_i32 = arith.constant 0 : i32
    %c0_i32_0 = arith.constant 0 : i32
    %c0_i32_1 = arith.constant 0 : i32
    return %c0_i32, %c0_i32_0 : i32, i32
  }
  func.func @transform_13(%arg0: i32) -> (i32, i32) {
    %c0_i32 = arith.constant 0 : i32
    %c0_i32_0 = arith.constant 0 : i32
    %c0_i32_1 = arith.constant 0 : i32
    return %c0_i32, %c0_i32_0 : i32, i32
  }
  func.func @transform_14(%arg0: i32) -> (i32, i32) {
    %c0_i32 = arith.constant 0 : i32
    %c0_i32_0 = arith.constant 0 : i32
    %c0_i32_1 = arith.constant 0 : i32
    return %c0_i32, %c0_i32_0 : i32, i32
  }
  func.func @transform_15(%arg0: i32) -> (i32, i32) {
    %c0_i32 = arith.constant 0 : i32
    %c0_i32_0 = arith.constant 0 : i32
    %c0_i32_1 = arith.constant 0 : i32
    return %c0_i32, %c0_i32_0 : i32, i32
  }
  func.func @transform_16(%arg0: i32) -> (i32, i32) {
    %c0_i32 = arith.constant 0 : i32
    %c0_i32_0 = arith.constant 0 : i32
    %c0_i32_1 = arith.constant 0 : i32
    return %c0_i32, %c0_i32_0 : i32, i32
  }
  func.func @transform_17(%arg0: i32) -> (i32, i32) {
    %c0_i32 = arith.constant 0 : i32
    %c0_i32_0 = arith.constant 0 : i32
    return %arg0, %c0_i32 : i32, i32
  }
}

</mosaic_0001>

<bundles_post_ra>
// kernel: qnetwork_forward.1
= control target key start
LH: loop header
LB: loop body
LE: loop exit
PB: predicated region body
PF: predicated region fallthrough
CT: control target
= control target key end

     0   :  { %s10198_s0 = inlined_call_operand.vmem [shape: f32[256,8], index: 0, kind: input, shape index: {}]   ;;  %s10199_s1 = inlined_call_operand.hbm [shape: f32[2,128,128], index: 1, kind: input, shape index: {}]   ;;  %s10200_s2 = inlined_call_operand.vmem [shape: f32[2,8,128], index: 2, kind: input, shape index: {}]   ;;  %s10201_s3 = inlined_call_operand.vmem [shape: f32[16,8], index: 3, kind: input, shape index: {}]   ;;  %s10202_s4 = inlined_call_operand.vmem [shape: f32[8,16], index: 4, kind: input, shape index: {}]   ;;  %s10203_s5 = inlined_call_operand.vmem [shape: f32[16,8], index: 5, kind: input, shape index: {}]   ;;  %s10204_s6 = inlined_call_operand.vmem [shape: f32[1,16], index: 6, kind: input, shape index: {}]   ;;  %s10205_s7 = inlined_call_operand.vmem [shape: f32[16,32], index: 7, kind: input, shape index: {}]   ;;  %s10206_s8 = inlined_call_operand.vmem [shape: f32[32,2], index: 8, kind: input, shape index: {}]   ;;  %s10207_s9 = inlined_call_operand.hbm [shape: f32[1,32], index: 9, kind: input, shape index: {}]   ;;  %s10208_s10 = inlined_call_operand.vmem [shape: f32[32,256], index: 10, kind: input, shape index: {}]   ;;  %s10209_s11 = inlined_call_operand.vmem [shape: f32[8,256], index: 11, kind: input, shape index: {}]   ;;  %s10210_s12 = inlined_call_operand.vmem [shape: f32[1,256], index: 12, kind: input, shape index: {}]   ;;  %s10211_s13 = inlined_call_operand.vmem [shape: f32[256,256], index: 13, kind: input, shape index: {}]   ;;  %s10212_s14 = inlined_call_operand.vmem [shape: f32[1,256], index: 14, kind: input, shape index: {}]   ;;  %s10213_s15 = inlined_call_operand.vmem [shape: f32[256,1], index: 15, kind: input, shape index: {}]   ;;  %s10214_s16 = inlined_call_operand.<no memory space> [shape: f32[1,1], index: 16, kind: input, shape index: {}]   ;;  %s10215_s17 = inlined_call_operand.vmem [shape: f32[16,1], index: 17, kind: output, shape index: {}]  }
   0x1   :  { %10355 = sst [smem:[#allocation79_spill]] %s10198_s0  ;;  %v22_v0 = vstv %s10214_s16 }
   0x2   :  { %10356 = sst [smem:[#allocation80_spill]] %s10199_s1  ;;  %23 = vst [vmem:[#allocation2] sm:$0x1] %v22_v0 }
   0x3   :  { %10357 = sst [smem:[#allocation81_spill]] %s10210_s12 }
   0x4   :  { %10358 = sst [smem:[#allocation82_spill]] %s10212_s14 }
   0x5   :  { %10359 = sst [smem:[#allocation83_spill]] %s10213_s15 }
   0x6   :  { %10360 = sst [smem:[#allocation84_spill]] %s10215_s17 }
   0x7   :  { %24 = vsyncpa [#allocation4], 0 }
   0x8   :  { %26 = vsyncpa [#allocation4 + $0x1], 0 }
   0x9   :  { %27 = vsyncpa [#allocation6], 0  ;;  %s7231_s26 = smov 0   ;;  %s7233_s27 = smov 0  }
   0xa   :  { %s7235_s28 = smov 0   ;;  %s7237_s29 = smov 0  }
   0xb LB: > { %10361 = sst [smem:[#allocation9_spill]] %s7120_s28  ;;  %s7250_s16 = sadd.s32 4294967295, %s7124_s29   ;;  %s7124_s29 = sphi %s7237_s29, %s10693_s29   ;;  %s7120_s28 = sphi %s7235_s28, %s10695_s28   ;;  %s7116_s27 = sphi %s7233_s27, %s10697_s27   ;;  %s7112_s26 = sphi %s7231_s26, %s10696_s26  }
   0xc   : > { %s7253_s0 = sadd.s32 1, %s7124_s29   ;;  %s66_s18 = sadd.s32 1, %s7120_s28 }
   0xd   : > { %10362 = sst [smem:[#allocation10_spill]] %s7253_s0  ;;  %s63_s30 = ssub.s32 %s7124_s29, %s7253_s0 }
   0xe   : > { %p64_p0 = scmp.eq.s32.totalorder %s63_s30, 0  ;;  %p73_p1 = scmp.ne.s32.totalorder %s7120_s28, %s7116_s27 }
   0xf   : > { %p74_p2 = scmp.eq.s32.totalorder %s7124_s29, 0  ;;  %p79_p3 = scmp.ne.s32.totalorder %s7116_s27, %s7112_s26 }
  0x10   : > { %s7263_s19 = scalar_select %p64_p0, %s7120_s28, %s66_s18  }
  0x11   : > { %p7265_p4 = por %p74_p2, %p73_p1  ;;  %p10217_p5 = scmp.eq.s32.totalorder %s7250_s16, 0 }
  0x12   : > { %10363 = sst [smem:[#allocation11_spill]] %s7263_s19  ;;  %p5569_p6 = scmp.ge.s32.totalorder %s7124_s29, 1 }
  0x13   : > { %p441_p7 = scmp.lt.s32.totalorder %s7124_s29, 3  ;;  %p7274_p8 = por %p10217_p5, %p79_p3 }
  0x14   : > { %s7126_s22 = smov [#allocation5]   ;;  %p6388_p11 = scmp.lt.s32.totalorder %s7124_s29, 2 }
  0x15   : > { %s10365_s20 = scalar_select %p7274_p8, 1, 0 }
  0x16   : > { %p7278_p9 = pnand %p5569_p6, %p441_p7  ;;  %s469_s23 = sshll.u32 %s7126_s22, 4  ;;  %s470_s23 = int_to_ptr.vmem [resolvable:$true] %s469_s23 }
  0x17   : > { %s510_s24 = sand.u32 1, %s7120_s28   ;;  %p7294_p13 = pnand %p6388_p11, %p7265_p4 }
  0x18   : > { %s10366_s21 = scalar_select %p7278_p9, 1, 0 }
  0x19   : > { %p6379_p10 = pneg %p7278_p9  ;;  %s5572_s30 = sshll.u32 %s510_s24, 7 }
  0x1a   : > { %s7043_s18 = scalar_lea.vmem %s470_s23, 16  ;;  %s7050_s22 = scalar_lea.vmem %s470_s23, 32 }
  0x1b   : > { %p7288_p12 = pnand %p6379_p10, %p10217_p5  ;;  %p7044_p1 = scmp.ne.s32.totalorder %s470_s23, %s7043_s18 }
  0x1c   : > { %p7051_p6 = scmp.lt.s32.totalorder %s470_s23, %s470_s23  ;;  %p7052_p7 = scmp.lt.s32.totalorder %s7050_s22, %s7043_s18 }
  0x1d   : > { %p7034_p0 = pneg %p7288_p12 }
  0x1e   : > { %p7053_p10 = por %p7052_p7, %p7051_p6 }
  0x1f   : > { %p7046_p2 = pnand %p7044_p1, %p7034_p0 }
  0x21   : > { %p7047_p3 = pneg %p7046_p2 }
  0x23   : > { %p7054_p5 = pnand %p7053_p10, %p7047_p3 }
  0x25   : > { %7057 = shalt.err (!%p7054_p5)
}
  0x26   : > { %6382 = dma.hbm_to_vmem [thread:$0]  (!%p7288_p12), %s10207_s9, 16, %s470_s23, [#allocation6]  }
  0x27   : > { %s5658_s28 = sshll.u32 %s7124_s29, 11  ;;  %s10369_s14 = sld [smem:[#allocation80_spill]] }
  0x28   : > { %s514_s18 = scalar_lea.vmem [#allocation3], %s5572_s30  ;;  %s7313_s25 = scalar_lea.sflag [#allocation4], %s510_s24 }
  0x29   : > { %s521_s22 = sshll.u32 %s514_s18, 4  ;;  %p7060_p5 = pneg %p7294_p13  ;;  %s7311_s22 = int_to_ptr.vmem [resolvable:$true] %s521_s22 }
  0x2d   : > { %s7309_s15 = scalar_lea.hbm %s10369_s14, %s5658_s28  ;;  %s7063_s17 = scalar_lea.hbm %s10369_s14, 4096 }
  0x2e   : > { %s7058_s12 = scalar_lea.hbm %s7309_s15, 2048  ;;  %p7064_p0 = scmp.lt.s32.totalorder %s7309_s15, %s10369_s14 }
  0x2f   : > { %p7059_p4 = scmp.ne.s32.totalorder %s7309_s15, %s7058_s12  ;;  %p7065_p1 = scmp.lt.s32.totalorder %s7063_s17, %s7058_s12 }
  0x31   : > { %p7061_p11 = pnand %p7060_p5, %p7059_p4  ;;  %p7066_p2 = por %p7065_p1, %p7064_p0 }
  0x33   : > { %p7062_p12 = pneg %p7061_p11 }
  0x35   : > { %p7067_p3 = pnand %p7066_p2, %p7062_p12 }
  0x37   : > { %7070 = shalt.err (!%p7067_p3)
}
  0x38   : > { %s7071_s23 = scalar_lea.vmem %s7311_s22, 2048  ;;  %s7127_s24 = smov [#allocation3]  }
  0x39   : > { %p7072_p6 = scmp.ne.s32.totalorder %s7311_s22, %s7071_s23  ;;  %s7076_s30 = sshll.u32 %s7127_s24, 4  ;;  %s7077_s30 = int_to_ptr.vmem [resolvable:$false] %s7076_s30 }
  0x3a   : > { %s7078_s1 = scalar_lea.vmem %s7077_s30, 4096  ;;  %p7079_p4 = scmp.lt.s32.totalorder %s7311_s22, %s7077_s30 }
  0x3b   : > { %p7074_p7 = pnand %p7072_p6, %p7060_p5  ;;  %p7080_p11 = scmp.lt.s32.totalorder %s7078_s1, %s7071_s23 }
  0x3d   : > { %p7075_p10 = pneg %p7074_p7  ;;  %p7081_p8 = por %p7080_p11, %p7079_p4 }
  0x3f   : > { %p7082_p9 = pnand %p7081_p8, %p7075_p10 }
  0x41   : > { %7085 = shalt.err (!%p7082_p9)
}
  0x42   : > { %s7128_s12 = smov 128   ;;  %s7129_s18 = smov 8  }
  0x43   : > { %6386 = dma.hbm_to_vmem [thread:$0]  (!%p7294_p13), %s7309_s15, 2048, %s7311_s22, %s7313_s25, %s7128_s12, %s7128_s12, %s7129_s18  }
  0x44   : > { %p10370_p5 = scmp.ne.s32.totalorder %s10366_s21, 0 }
  0x46   : > { %547 = sbr.rel (%p10370_p5) target bundleno = 3745 (0xea1), region = 88 }
  0x4b   : > { %s549_s29 = sand.u32 1, %s7116_s27   ;;  %p10371_p8 = scmp.ne.s32.totalorder %s10365_s20, 0 }
  0x4c   : > { %s5576_s19 = sshll.u32 %s549_s29, 7  ;;  %s550_s17 = scalar_lea.sflag [#allocation4], %s549_s29 }
  0x4d   : > { %s7337_s28 = scalar_lea.vmem [#allocation3], %s5576_s19 }
  0x4e   : > { %7103 = dma.done.wait (%p10371_p8), %s550_s17, 2048  }
  0x4f   : > { %7105 = vsyncadd (%p10371_p8), %s550_s17, 4294965248  ;;  %p10372_p9 = scmp.eq.s32.totalorder %s7250_s16, 0 }
  0x51   : > { %7107 = dma.done.wait (%p10372_p9), [#allocation6], 16   ;;  %p10373_p13 = pmov %p10372_p9 }
  0x52   : > { %s5578_s15 = sshll.u32 %s7250_s16, 4  ;;  %vm10275_vm0 = vcmask 64512   ;;  %s10374_s25 = sld [smem:[#allocation79_spill]]  ;;  %v638_v1 = vld [vmem:[%s10202_s4] sm:$0xff]  ;;  %v640_v18 = vld [vmem:[%s10203_s5 + $0x8] sm:$0xff]  ;;  %v7130_v20 = vmov 1   ;;  %v10226_v29 = vlaneseq }
  0x53   : > { %7109 = vsyncadd (%p10373_p13), [#allocation6], 4294967280  ;;  %p621_p12 = scmp.lt.s32.totalorder %s5578_s15, 31  ;;  %5944 = vmatprep.subr.mxu0 %v638_v1  ;;  %5970 = vmatprep.subr.mxu1 %v640_v18  ;;  %v639_v19 = vld [vmem:[%s10203_s5] sm:$0xff]  ;;  %vm10278_vm1 = vcmask 130048   ;;  %v10224_v38 = vmov 0.0  }
  0x54   : > { %5945 = vmatpush3.msra.mxu0 %v638_v1  ;;  %5971 = vmatpush3.msra.mxu1 %v640_v18  ;;  %v7432_v32 = vand.u32 127, %v10226_v29  ;;  %s7133_s18 = smov 124   ;;  %v7134_v18 = vmov 2   ;;  %s7136_s1 = smov 127  }
  0x55   : > { %s10699_s15 = smov (!%p621_p12, %s5578_s15), 31  ;;  %5972 = vmatprep.subr.mxu1 %v639_v19  ;;  %6433 = vset.pattern.permute.xlu1 %v7130_v20  ;;  %p626_p0 = scmp.lt.s32.totalorder %s7250_s16, 1 }
  0x56   : > { %s5579_s21 = sshll.u32 %s10699_s15, 3  ;;  %5973 = vmatpush3.msra.mxu1 %v639_v19  ;;  %vm1995_vm2 = vcmp.ge.s32.totalorder %v7432_v32, 4  ;;  %vm1996_vm3 = vcmp.lt.s32.totalorder %v7432_v32, 8  ;;  %vm1635_vm5 = vcmp.lt.s32.totalorder %v7432_v32, 4  ;;  %vm2646_vm6 = vcmp.ge.s32.totalorder %v7432_v32, 8  ;;  %s10690_s15 = sld [smem:[#allocation83_spill]] }
  0x57   : > { %vm1997_vm4 = vmand %vm1995_vm2, %vm1996_vm3  ;;  %v7461_v40 = vsel %vm1635_vm5, 1.0, %v10224_v38  ;;  %vm2647_vm7 = vcmp.lt.s32.totalorder %v7432_v32, 12  ;;  %vm3168_vm8 = vcmp.ge.s32.totalorder %v7432_v32, 12  ;;  %vm3169_vm9 = vcmp.lt.s32.totalorder %v7432_v32, 16  ;;  %s10701_s16 = smov (!%p626_p0, %s7250_s16), 1 }
  0x58   : > { %s7351_s0 = scalar_lea.vmem %s10374_s25, %s5579_s21  ;;  %v7458_v39 = vsel %vm1997_vm4, 1.0, %v10224_v38  ;;  %vm2648_vm10 = vmand %vm2646_vm6, %vm2647_vm7  ;;  %v7135_v19 = vmov 3   ;;  %s9832_s12 = sshll.u32 %s10701_s16, 3 }
  0x59   : > { %v758_v2 = vld [vmem:[%s7351_s0] sm:$0xff]  ;;  %v759_v3 = vld [vmem:[%s7351_s0 + $0x8] sm:$0xff]  ;;  %v760_v4 = vld [vmem:[%s7351_s0 + $0x10] sm:$0xff]  ;;  %s629_s19 = scalar_lea.vmem %s10200_s2, %s9832_s12  ;;  %s633_s22 = scalar_lea.vmem %s10201_s3, %s9832_s12 }
  0x5a   : > { %5946 = vmatprep.mubr.msk.f32.mxu0 %vm10275_vm0, %v758_v2  ;;  %v761_v5 = vld [vmem:[%s7351_s0 + $0x18] sm:$0xff]  ;;  %v762_v6 = vld [vmem:[%s7351_s0 + $0x20] sm:$0xff]  ;;  %v763_v7 = vld [vmem:[%s7351_s0 + $0x28] sm:$0xff]  ;;  %s10687_s16 = sld [smem:[#allocation81_spill]] }
  0x5b   : > { %5947 = vmatmul.mubr.msk.f32.vlgmr.msra.gmra.mxu0 %vm10275_vm0, %v759_v3  ;;  %v764_v8 = vld [vmem:[%s7351_s0 + $0x30] sm:$0xff]  ;;  %v765_v9 = vld [vmem:[%s7351_s0 + $0x38] sm:$0xff]  ;;  %v766_v10 = vld [vmem:[%s7351_s0 + $0x40] sm:$0xff]  ;;  %s10691_s21 = sld [smem:[#allocation82_spill]] }
  0x5c   : > { %5949 = vmatprep.mubr.msk.f32.mxu0 %vm10275_vm0, %v760_v4  ;;  %v767_v11 = vld [vmem:[%s7351_s0 + $0x48] sm:$0xff]  ;;  %v768_v12 = vld [vmem:[%s7351_s0 + $0x50] sm:$0xff]  ;;  %v769_v13 = vld [vmem:[%s7351_s0 + $0x58] sm:$0xff]  ;;  %s10692_s25 = sld [smem:[#allocation84_spill]] }
  0x5d   : > { %v770_v14 = vld [vmem:[%s7351_s0 + $0x60] sm:$0xff]  ;;  %v771_v15 = vld [vmem:[%s7351_s0 + $0x68] sm:$0xff]  ;;  %v772_v16 = vld [vmem:[%s7351_s0 + $0x70] sm:$0xff] }
  0x5e   : > { %v773_v17 = vld [vmem:[%s7351_s0 + $0x78] sm:$0xff]  ;;  %vm3170_vm11 = vmand %vm3168_vm8, %vm3169_vm9 }
  0x5f   : > { %5950 = vmatmul.mubr.msk.f32.gmra.mxu0 %vm10275_vm0, %v761_v5 }
  0x60   : > { %5952 = vmatprep.mubr.msk.f32.mxu0 %vm10275_vm0, %v762_v6 }
  0x62   : > { %s637_s0 = scalar_lea.vmem %s10692_s25, %s9832_s12 }
  0x63   : > { %5953 = vmatmul.mubr.msk.f32.gmra.mxu0 %vm10275_vm0, %v763_v7 }
  0x64   : > { %5955 = vmatprep.mubr.msk.f32.mxu0 %vm10275_vm0, %v764_v8  ;;  %v7532_v8 = vsel %vm2648_vm10, 1.0, %v10224_v38 }
  0x65   : > { %10390 = vst [vmem:[#allocation27_spill] sm:$0xff] %v7532_v8 }
  0x67   : > { %5956 = vmatmul.mubr.msk.f32.gmra.mxu0 %vm10275_vm0, %v765_v9 }
  0x68   : > { %5958 = vmatprep.mubr.msk.f32.mxu0 %vm10275_vm0, %v766_v10 }
  0x6b   : > { %5959 = vmatmul.mubr.msk.f32.gmra.mxu0 %vm10275_vm0, %v767_v11 }
  0x6c   : > { %5961 = vmatprep.mubr.msk.f32.mxu0 %vm10275_vm0, %v768_v12  ;;  %v7543_v12 = vsel %vm3170_vm11, 1.0, %v10224_v38 }
  0x6d   : > { %10392 = vst [vmem:[#allocation29_spill] sm:$0xff] %v7543_v12 }
  0x6f   : > { %5962 = vmatmul.mubr.msk.f32.gmra.mxu0 %vm10275_vm0, %v769_v13 }
  0x70   : > { %5964 = vmatprep.mubr.msk.f32.mxu0 %vm10275_vm0, %v770_v14  ;;  %v10227_v14 = vmov 0  }
  0x71   : > { %6434 = vset.pattern.permute.xlu0 %v10227_v14 }
  0x73   : > { %5965 = vmatmul.mubr.msk.f32.gmra.mxu0 %vm10275_vm0, %v771_v15 }
  0x74   : > { %5967 = vmatprep.mubr.msk.f32.mxu0 %vm10275_vm0, %v772_v16 }
  0x77   : > { %5968 = vmatmul.mubr.msk.f32.gmra.mxu0 %vm10275_vm0, %v773_v17 }
 0x11b   : > { %v7395_v21 = vpop.f32.mrf.mxu0 }
 0x11c   : > { %10375 = vst [vmem:[#allocation12_spill] sm:$0xff] %v7395_v21  ;;  %v2001_v6 = vmul.f32 %v7395_v21, %v7458_v39  ;;  %v1640_v7 = vmul.f32 %v7395_v21, %v7461_v40 }
 0x11d   : > { %v7397_v22 = vpop.f32.mrf.mxu0 }
 0x11e   : > { %10376 = vst [vmem:[#allocation13_spill] sm:$0xff] %v7397_v22  ;;  %5974 = vmatprep.mubr.msk.f32.mxu1 %vm10278_vm1, %v7397_v22  ;;  %v2000_v9 = vmul.f32 %v7458_v39, %v7397_v22  ;;  %v1639_v10 = vmul.f32 %v7461_v40, %v7397_v22 }
 0x11f   : > { %v7401_v23 = vpop.f32.mrf.mxu0  ;;  %5975 = vmatmul.mubr.msk.f32.vlgmr.msra.gmra.mxu1 %vm10278_vm1, %v7395_v21 }
 0x120   : > { %10377 = vst [vmem:[#allocation14_spill] sm:$0xff] %v7401_v23  ;;  %v2003_v2 = vmul.f32 %v7401_v23, %v7458_v39  ;;  %v1642_v3 = vmul.f32 %v7401_v23, %v7461_v40 }
 0x121   : > { %v7405_v24 = vpop.f32.mrf.mxu0 }
 0x122   : > { %10378 = vst [vmem:[#allocation15_spill] sm:$0xff] %v7405_v24  ;;  %5977 = vmatprep.mubr.msk.f32.mxu1 %vm10278_vm1, %v7405_v24  ;;  %v2002_v4 = vmul.f32 %v7458_v39, %v7405_v24  ;;  %v1641_v5 = vmul.f32 %v7461_v40, %v7405_v24 }
 0x123   : > { %v7409_v25 = vpop.f32.mrf.mxu0  ;;  %5978 = vmatmul.mubr.msk.f32.gmra.mxu1 %vm10278_vm1, %v7401_v23 }
 0x124   : > { %10379 = vst [vmem:[#allocation16_spill] sm:$0xff] %v7409_v25  ;;  %v2005_v62 = vmul.f32 %v7409_v25, %v7458_v39  ;;  %v1644_v63 = vmul.f32 %v7409_v25, %v7461_v40 }
 0x125   : > { %v7413_v26 = vpop.f32.mrf.mxu0 }
 0x126   : > { %10380 = vst [vmem:[#allocation17_spill] sm:$0xff] %v7413_v26  ;;  %5980 = vmatprep.mubr.msk.f32.mxu1 %vm10278_vm1, %v7413_v26  ;;  %v2004_v0 = vmul.f32 %v7458_v39, %v7413_v26  ;;  %v1643_v1 = vmul.f32 %v7461_v40, %v7413_v26 }
 0x127   : > { %v7417_v27 = vpop.f32.mrf.mxu0  ;;  %5981 = vmatmul.mubr.msk.f32.gmra.mxu1 %vm10278_vm1, %v7409_v25 }
 0x128   : > { %10381 = vst [vmem:[#allocation18_spill] sm:$0xff] %v7417_v27  ;;  %v2007_v58 = vmul.f32 %v7417_v27, %v7458_v39  ;;  %v1646_v59 = vmul.f32 %v7417_v27, %v7461_v40 }
 0x129   : > { %v7421_v28 = vpop.f32.mrf.mxu0 }
 0x12a   : > { %10382 = vst [vmem:[#allocation19_spill] sm:$0xff] %v7421_v28  ;;  %5983 = vmatprep.mubr.msk.f32.mxu1 %vm10278_vm1, %v7421_v28  ;;  %v2006_v60 = vmul.f32 %v7458_v39, %v7421_v28  ;;  %v1645_v61 = vmul.f32 %v7461_v40, %v7421_v28 }
 0x12b   : > { %v7425_v30 = vpop.f32.mrf.mxu0  ;;  %5984 = vmatmul.mubr.msk.f32.gmra.mxu1 %vm10278_vm1, %v7417_v27 }
 0x12c   : > { %10383 = vst [vmem:[#allocation20_spill] sm:$0xff] %v7425_v30  ;;  %v2009_v54 = vmul.f32 %v7425_v30, %v7458_v39  ;;  %v1648_v55 = vmul.f32 %v7425_v30, %v7461_v40 }
 0x12d   : > { %v7429_v31 = vpop.f32.mrf.mxu0 }
 0x12e   : > { %10384 = vst [vmem:[#allocation21_spill] sm:$0xff] %v7429_v31  ;;  %5986 = vmatprep.mubr.msk.f32.mxu1 %vm10278_vm1, %v7429_v31  ;;  %v2008_v56 = vmul.f32 %v7458_v39, %v7429_v31  ;;  %v1647_v57 = vmul.f32 %v7461_v40, %v7429_v31 }
 0x12f   : > { %v7436_v33 = vpop.f32.mrf.mxu0  ;;  %5987 = vmatmul.mubr.msk.f32.gmra.mxu1 %vm10278_vm1, %v7425_v30 }
 0x130   : > { %10385 = vst [vmem:[#allocation22_spill] sm:$0xff] %v7436_v33  ;;  %v2011_v50 = vmul.f32 %v7436_v33, %v7458_v39  ;;  %v1650_v51 = vmul.f32 %v7436_v33, %v7461_v40 }
 0x131   : > { %v7440_v34 = vpop.f32.mrf.mxu0 }
 0x132   : > { %10386 = vst [vmem:[#allocation23_spill] sm:$0xff] %v7440_v34  ;;  %5989 = vmatprep.mubr.msk.f32.mxu1 %vm10278_vm1, %v7440_v34  ;;  %v2010_v52 = vmul.f32 %v7458_v39, %v7440_v34  ;;  %v1649_v53 = vmul.f32 %v7461_v40, %v7440_v34 }
 0x133   : > { %v7446_v35 = vpop.f32.mrf.mxu0  ;;  %5990 = vmatmul.mubr.msk.f32.gmra.mxu1 %vm10278_vm1, %v7436_v33 }
 0x134   : > { %10387 = vst [vmem:[#allocation24_spill] sm:$0xff] %v7446_v35  ;;  %v2013_v44 = vmul.f32 %v7446_v35, %v7458_v39  ;;  %v1652_v47 = vmul.f32 %v7446_v35, %v7461_v40 }
 0x135   : > { %v7451_v36 = vpop.f32.mrf.mxu0 }
 0x136   : > { %10388 = vst [vmem:[#allocation25_spill] sm:$0xff] %v7451_v36  ;;  %5992 = vmatprep.mubr.msk.f32.mxu1 %vm10278_vm1, %v7451_v36  ;;  %v2012_v48 = vmul.f32 %v7458_v39, %v7451_v36  ;;  %v1651_v49 = vmul.f32 %v7461_v40, %v7451_v36 }
 0x137   : > { %v7455_v37 = vpop.f32.mrf.mxu0  ;;  %5993 = vmatmul.mubr.msk.f32.gmra.mxu1 %vm10278_vm1, %v7446_v35 }
 0x138   : > { %v2015_v41 = vmul.f32 %v7455_v37, %v7458_v39  ;;  %v1654_v42 = vmul.f32 %v7455_v37, %v7461_v40  ;;  %v7540_v11 = vmul.f32 %v7455_v37, %v7532_v8  ;;  %v7547_v13 = vmul.f32 %v7455_v37, %v7543_v12 }
 0x139   : > { %v7469_v43 = vpop.f32.mrf.mxu0 }
 0x13a   : > { %10389 = vst [vmem:[#allocation26_spill] sm:$0xff] %v7469_v43  ;;  %5998 = vmatprep.subr.mxu0 %v2015_v41  ;;  %6054 = vmatprep.subr.mxu1 %v1654_v42  ;;  %v2014_v45 = vmul.f32 %v7458_v39, %v7469_v43  ;;  %v1653_v46 = vmul.f32 %v7461_v40, %v7469_v43  ;;  %10391 = vst [vmem:[#allocation28_spill] sm:$0xff] %v7540_v11 }
 0x13b   : > { %5999 = vmatpush3.msra.mxu0 %v2015_v41  ;;  %6055 = vmatpush3.msra.mxu1 %v1654_v42  ;;  %10393 = vst [vmem:[#allocation30_spill] sm:$0xff] %v7547_v13 }
 0x13c   : > { %6000 = vmatprep.subr.mxu0 %v2014_v45  ;;  %6056 = vmatprep.subr.mxu1 %v1653_v46 }
 0x13d   : > { %6001 = vmatpush3.msra.mxu0 %v2014_v45  ;;  %6057 = vmatpush3.msra.mxu1 %v1653_v46 }
 0x13e   : > { %6002 = vmatprep.subr.mxu0 %v2013_v44  ;;  %6058 = vmatprep.subr.mxu1 %v1652_v47 }
 0x13f   : > { %6003 = vmatpush3.msra.mxu0 %v2013_v44  ;;  %6059 = vmatpush3.msra.mxu1 %v1652_v47 }
 0x140   : > { %6004 = vmatprep.subr.mxu0 %v2012_v48  ;;  %6060 = vmatprep.subr.mxu1 %v1651_v49 }
 0x141   : > { %6005 = vmatpush3.msra.mxu0 %v2012_v48  ;;  %6061 = vmatpush3.msra.mxu1 %v1651_v49 }
 0x142   : > { %6006 = vmatprep.subr.mxu0 %v2011_v50  ;;  %6062 = vmatprep.subr.mxu1 %v1650_v51 }
 0x143   : > { %6007 = vmatpush3.msra.mxu0 %v2011_v50  ;;  %6063 = vmatpush3.msra.mxu1 %v1650_v51 }
 0x144   : > { %6008 = vmatprep.subr.mxu0 %v2010_v52  ;;  %6064 = vmatprep.subr.mxu1 %v1649_v53 }
 0x145   : > { %6009 = vmatpush3.msra.mxu0 %v2010_v52  ;;  %6065 = vmatpush3.msra.mxu1 %v1649_v53 }
 0x146   : > { %6010 = vmatprep.subr.mxu0 %v2009_v54  ;;  %6066 = vmatprep.subr.mxu1 %v1648_v55 }
 0x147   : > { %6011 = vmatpush3.msra.mxu0 %v2009_v54  ;;  %6067 = vmatpush3.msra.mxu1 %v1648_v55 }
 0x148   : > { %6012 = vmatprep.subr.mxu0 %v2008_v56  ;;  %6068 = vmatprep.subr.mxu1 %v1647_v57 }
 0x149   : > { %6013 = vmatpush3.msra.mxu0 %v2008_v56  ;;  %6069 = vmatpush3.msra.mxu1 %v1647_v57 }
 0x14a   : > { %6014 = vmatprep.subr.mxu0 %v2007_v58  ;;  %6070 = vmatprep.subr.mxu1 %v1646_v59 }
 0x14b   : > { %6015 = vmatpush3.msra.mxu0 %v2007_v58  ;;  %6071 = vmatpush3.msra.mxu1 %v1646_v59 }
 0x14c   : > { %6016 = vmatprep.subr.mxu0 %v2006_v60  ;;  %6072 = vmatprep.subr.mxu1 %v1645_v61 }
 0x14d   : > { %6017 = vmatpush3.msra.mxu0 %v2006_v60  ;;  %6073 = vmatpush3.msra.mxu1 %v1645_v61 }
 0x14e   : > { %6018 = vmatprep.subr.mxu0 %v2005_v62  ;;  %6074 = vmatprep.subr.mxu1 %v1644_v63 }
 0x14f   : > { %6019 = vmatpush3.msra.mxu0 %v2005_v62  ;;  %6075 = vmatpush3.msra.mxu1 %v1644_v63 }
 0x150   : > { %6020 = vmatprep.subr.mxu0 %v2004_v0  ;;  %6076 = vmatprep.subr.mxu1 %v1643_v1 }
 0x151   : > { %6021 = vmatpush3.msra.mxu0 %v2004_v0  ;;  %6077 = vmatpush3.msra.mxu1 %v1643_v1 }
 0x152   : > { %6022 = vmatprep.subr.mxu0 %v2003_v2  ;;  %6078 = vmatprep.subr.mxu1 %v1642_v3 }
 0x153   : > { %6023 = vmatpush3.msra.mxu0 %v2003_v2  ;;  %6079 = vmatpush3.msra.mxu1 %v1642_v3 }
 0x154   : > { %6024 = vmatprep.subr.mxu0 %v2002_v4  ;;  %6080 = vmatprep.subr.mxu1 %v1641_v5 }
 0x155   : > { %6025 = vmatpush3.msra.mxu0 %v2002_v4  ;;  %6081 = vmatpush3.msra.mxu1 %v1641_v5 }
 0x156   : > { %6026 = vmatprep.subr.mxu0 %v2001_v6  ;;  %6082 = vmatprep.subr.mxu1 %v1640_v7 }
 0x157   : > { %6027 = vmatpush3.msra.mxu0 %v2001_v6  ;;  %6083 = vmatpush3.msra.mxu1 %v1640_v7 }
 0x158   : > { %6028 = vmatprep.subr.mxu0 %v2000_v9  ;;  %6084 = vmatprep.subr.mxu1 %v1639_v10 }
 0x159   : > { %6029 = vmatpush3.msra.mxu0 %v2000_v9  ;;  %6085 = vmatpush3.msra.mxu1 %v1639_v10 }
 0x15a   : > { %5995 = vmatprep.mubr.msk.f32.mxu1 %vm10278_vm1, %v7469_v43  ;;  %6110 = vmatprep.subr.mxu0 %v7540_v11  ;;  %v10406_v11 = vmov 0  }
 0x15b   : > { %5996 = vmatmul.mubr.msk.f32.gmra.mxu1 %vm10278_vm1, %v7455_v37  ;;  %6166 = vmatprep.subr.mxu1 %v7547_v13 }
 0x1df   : > { %v5976_v15 = vpop.f32.mrf.mxu1 }
 0x1e0   : > { %1660 = vperm.xlu1 %6433, %v5976_v15   ;;  %1214 = vrot.lane.b32.xlu0 %v5976_v15, %s7133_s18 }
 0x1e1   : > { %v1117_v16 = vpop.f32.mrf.mxu1 }
 0x1e3   : > { %v5979_v17 = vpop.f32.mrf.mxu1 }
 0x1e4   : > { %6438 = vset.pattern.permute.xlu1 %v10227_v14  ;;  %1299 = vperm.xlu0 %6434, %v5976_v15  }
 0x1e5   : > { %1295 = vperm.xlu1 %6438, %v1117_v16   ;;  %v1127_v32 = vpop.f32.mrf.mxu1 }
 0x1e7   : > { %v5982_v37 = vpop.f32.mrf.mxu1 }
 0x1e8   : > { %6435 = vset.pattern.permute.xlu0 %v7134_v18 }
 0x1e9   : > { %2311 = vperm.xlu0 %6435, %v5976_v15   ;;  %1218 = vrot.lane.b32.xlu1 %v5979_v17, %s7133_s18  ;;  %v1137_v39 = vpop.f32.mrf.mxu1 }
 0x1ea   : > { %6441 = vset.pattern.permute.xlu1 %v7130_v20 }
 0x1eb   : > { %v5985_v40 = vpop.f32.mrf.mxu1 }
 0x1ed   : > { %6436 = vset.pattern.permute.xlu0 %v7135_v19  ;;  %1668 = vperm.xlu1 %6441, %v5979_v17   ;;  %v1147_v41 = vpop.f32.mrf.mxu1 }
 0x1ee   : > { %2833 = vperm.xlu0 %6436, %v5976_v15  }
 0x1ef   : > { %v5988_v42 = vpop.f32.mrf.mxu1 }
 0x1f1   : > { %6442 = vset.pattern.permute.xlu1 %v10227_v14  ;;  %v1157_v44 = vpop.f32.mrf.mxu1 }
 0x1f2   : > { %1212 = vrot.lane.b32.xlu0 %v1117_v16, %s7133_s18  ;;  %1307 = vperm.xlu1 %6442, %v5979_v17  }
 0x1f3   : > { %6437 = vset.pattern.permute.xlu0 %v7130_v20  ;;  %v5991_v45 = vpop.f32.mrf.mxu1 }
 0x1f5   : > { %v1167_v46 = vpop.f32.mrf.mxu1 }
 0x1f6   : > { %1656 = vperm.xlu0 %6437, %v1117_v16   ;;  %1216 = vrot.lane.b32.xlu1 %v1127_v32, %s7133_s18 }
 0x1f7   : > { %6445 = vset.pattern.permute.xlu1 %v7130_v20  ;;  %v5994_v47 = vpop.f32.mrf.mxu1 }
 0x1f9   : > { %v1177_v54 = vpop.f32.mrf.mxu1 }
 0x1fa   : > { %6439 = vset.pattern.permute.xlu0 %v7134_v18  ;;  %1664 = vperm.xlu1 %6445, %v1127_v32  }
 0x1fb   : > { %2307 = vperm.xlu0 %6439, %v1117_v16  }
 0x1fe   : > { %1222 = vrot.lane.b32.xlu1 %v5982_v37, %s7133_s18 }
 0x1ff   : > { %6440 = vset.pattern.permute.xlu0 %v7135_v19 }
 0x200   : > { %2829 = vperm.xlu0 %6440, %v1117_v16  }
 0x202   : > { %1676 = vperm.xlu1 %6445, %v5982_v37  }
 0x204   : > { %6443 = vset.pattern.permute.xlu0 %v7134_v18 }
 0x205   : > { %2319 = vperm.xlu0 %6443, %v5979_v17  }
 0x206   : > { %6453 = vset.pattern.permute.xlu1 %v10227_v14 }
 0x207   : > { %1311 = vperm.xlu1 %6453, %v1137_v39  }
 0x209   : > { %6444 = vset.pattern.permute.xlu0 %v7135_v19 }
 0x20a   : > { %2841 = vperm.xlu0 %6444, %v5979_v17  }
 0x20b   : > { %1226 = vrot.lane.b32.xlu1 %v5985_v40, %s7133_s18 }
 0x20c   : > { %6456 = vset.pattern.permute.xlu1 %v7130_v20 }
 0x20e   : > { %6446 = vset.pattern.permute.xlu0 %v10227_v14 }
 0x20f   : > { %1303 = vperm.xlu0 %6446, %v1127_v32   ;;  %1684 = vperm.xlu1 %6456, %v5985_v40  }
 0x213   : > { %6447 = vset.pattern.permute.xlu0 %v7134_v18  ;;  %6457 = vset.pattern.permute.xlu1 %v10227_v14 }
 0x214   : > { %2315 = vperm.xlu0 %6447, %v1127_v32   ;;  %1323 = vperm.xlu1 %6457, %v5985_v40  }
 0x218   : > { %6448 = vset.pattern.permute.xlu0 %v7135_v19  ;;  %6460 = vset.pattern.permute.xlu1 %v7130_v20 }
 0x219   : > { %2837 = vperm.xlu0 %6448, %v1127_v32   ;;  %1680 = vperm.xlu1 %6460, %v1147_v41  }
 0x21b   : > { %v5997_v57 = vpop.f32.mrf.mxu1 }
 0x21d   : > { %6449 = vset.pattern.permute.xlu0 %v10227_v14  ;;  %6462 = vset.pattern.permute.xlu1 %v7134_v18  ;;  %v1187_v61 = vpop.f32.mrf.mxu1 }
 0x21e   : > { %1315 = vperm.xlu0 %6449, %v5982_v37   ;;  %2331 = vperm.xlu1 %6462, %v1147_v41  }
 0x222   : > { %6450 = vset.pattern.permute.xlu0 %v7134_v18  ;;  %1230 = vrot.lane.b32.xlu1 %v5988_v42, %s7133_s18 }
 0x223   : > { %2327 = vperm.xlu0 %6450, %v5982_v37   ;;  %6464 = vset.pattern.permute.xlu1 %v7130_v20 }
 0x226   : > { %1692 = vperm.xlu1 %6464, %v5988_v42  }
 0x227   : > { %6451 = vset.pattern.permute.xlu0 %v7135_v19 }
 0x228   : > { %2849 = vperm.xlu0 %6451, %v5982_v37  }
 0x22a   : > { %6466 = vset.pattern.permute.xlu1 %v7134_v18 }
 0x22b   : > { %2343 = vperm.xlu1 %6466, %v5988_v42  }
 0x22c   : > { %1220 = vrot.lane.b32.xlu0 %v1137_v39, %s7133_s18 }
 0x22d   : > { %6452 = vset.pattern.permute.xlu0 %v7130_v20 }
 0x22f   : > { %6467 = vset.pattern.permute.xlu1 %v7135_v19 }
 0x230   : > { %1672 = vperm.xlu0 %6452, %v1137_v39   ;;  %2865 = vperm.xlu1 %6467, %v5988_v42  }
 0x234   : > { %6454 = vset.pattern.permute.xlu0 %v7134_v18  ;;  %6469 = vset.pattern.permute.xlu1 %v10227_v14 }
 0x235   : > { %2323 = vperm.xlu0 %6454, %v1137_v39   ;;  %1327 = vperm.xlu1 %6469, %v1157_v44  }
 0x239   : > { %6455 = vset.pattern.permute.xlu0 %v7135_v19  ;;  %1234 = vrot.lane.b32.xlu1 %v5991_v45, %s7133_s18 }
 0x23a   : > { %2845 = vperm.xlu0 %6455, %v1137_v39   ;;  %6472 = vset.pattern.permute.xlu1 %v7130_v20 }
 0x23d   : > { %1700 = vperm.xlu1 %6472, %v5991_v45  }
 0x23e   : > { %6458 = vset.pattern.permute.xlu0 %v7134_v18 }
 0x23f   : > { %2335 = vperm.xlu0 %6458, %v5985_v40  }
 0x241   : > { %6473 = vset.pattern.permute.xlu1 %v10227_v14 }
 0x242   : > { %1339 = vperm.xlu1 %6473, %v5991_v45  }
 0x243   : > { %6459 = vset.pattern.permute.xlu0 %v7135_v19 }
 0x244   : > { %2857 = vperm.xlu0 %6459, %v5985_v40  }
 0x246   : > { %6475 = vset.pattern.permute.xlu1 %v7135_v19 }
 0x247   : > { %2873 = vperm.xlu1 %6475, %v5991_v45  }
 0x248   : > { %1224 = vrot.lane.b32.xlu0 %v1147_v41, %s7133_s18 }
 0x249   : > { %6461 = vset.pattern.permute.xlu0 %v10227_v14 }
 0x24b   : > { %6476 = vset.pattern.permute.xlu1 %v7130_v20 }
 0x24c   : > { %1319 = vperm.xlu0 %6461, %v1147_v41   ;;  %1696 = vperm.xlu1 %6476, %v1167_v46  }
 0x250   : > { %6463 = vset.pattern.permute.xlu0 %v7135_v19  ;;  %6478 = vset.pattern.permute.xlu1 %v7134_v18 }
 0x251   : > { %2853 = vperm.xlu0 %6463, %v1147_v41   ;;  %2347 = vperm.xlu1 %6478, %v1167_v46  }
 0x252   : > { %v7608_v48 = vpop.permute.xlu0 %1214 }
 0x255   : > { %6465 = vset.pattern.permute.xlu0 %v10227_v14  ;;  %6479 = vset.pattern.permute.xlu1 %v7135_v19 }
 0x256   : > { %1331 = vperm.xlu0 %6465, %v5988_v42   ;;  %2869 = vperm.xlu1 %6479, %v1167_v46  }
 0x25a   : > { %1228 = vrot.lane.b32.xlu0 %v1157_v44, %s7133_s18  ;;  %1238 = vrot.lane.b32.xlu1 %v5994_v47, %s7133_s18 }
 0x25b   : > { %6468 = vset.pattern.permute.xlu0 %v7130_v20  ;;  %6480 = vset.pattern.permute.xlu1 %v7130_v20  ;;  %v7614_v50 = vpop.permute.xlu1 %1660 }
 0x25e   : > { %1688 = vperm.xlu0 %6468, %v1157_v44   ;;  %1708 = vperm.xlu1 %6480, %v5994_v47  }
 0x25f   : > { %v7612_v49 = vpop.permute.xlu0 %1299 }
 0x260   : > { %v7622_v52 = vpop.permute.xlu1 %1295 }
 0x262   : > { %6470 = vset.pattern.permute.xlu0 %v7134_v18  ;;  %6481 = vset.pattern.permute.xlu1 %v7134_v18 }
 0x263   : > { %2339 = vperm.xlu0 %6470, %v1157_v44   ;;  %2359 = vperm.xlu1 %6481, %v5994_v47  }
 0x264   : > { %v7618_v51 = vpop.permute.xlu0 %2311  ;;  %v7626_v55 = vpop.permute.xlu1 %1218 }
 0x267   : > { %6471 = vset.pattern.permute.xlu0 %v7135_v19  ;;  %6482 = vset.pattern.permute.xlu1 %v7135_v19 }
 0x268   : > { %2861 = vperm.xlu0 %6471, %v1157_v44   ;;  %2881 = vperm.xlu1 %6482, %v5994_v47   ;;  %v7634_v59 = vpop.permute.xlu1 %1668 }
 0x269   : > { %v7624_v53 = vpop.permute.xlu0 %2833 }
 0x26c   : > { %6474 = vset.pattern.permute.xlu0 %v7134_v18  ;;  %6484 = vset.pattern.permute.xlu1 %v10227_v14 }
 0x26d   : > { %v1213_v56 = vpop.permute.xlu0 %1212  ;;  %2351 = vperm.xlu0 %6474, %v5991_v45   ;;  %1343 = vperm.xlu1 %6484, %v1177_v54   ;;  %v7640_v62 = vpop.permute.xlu1 %1307 }
 0x271   : > { %v7630_v58 = vpop.permute.xlu0 %1656  ;;  %1232 = vrot.lane.b32.xlu0 %v1167_v46, %s7133_s18  ;;  %1242 = vrot.lane.b32.xlu1 %v5997_v57, %s7133_s18  ;;  %v1217_v0 = vpop.permute.xlu1 %1216 }
 0x272   : > { %6477 = vset.pattern.permute.xlu0 %v10227_v14  ;;  %6490 = vset.pattern.permute.xlu1 %v7135_v19 }
 0x275   : > { %1335 = vperm.xlu0 %6477, %v1167_v46   ;;  %2889 = vperm.xlu1 %6490, %v5997_v57   ;;  %v7650_v2 = vpop.permute.xlu1 %1664 }
 0x276   : > { %v7638_v60 = vpop.permute.xlu0 %2307 }
 0x279   : > { %1347 = vperm.xlu0 %6477, %v5994_v47   ;;  %6493 = vset.pattern.permute.xlu1 %v7134_v18  ;;  %v1223_v4 = vpop.permute.xlu1 %1222 }
 0x27a   : > { %2363 = vperm.xlu1 %6493, %v1187_v61  }
 0x27b   : > { %v7643_v63 = vpop.permute.xlu0 %2829 }
 0x27d   : > { %1236 = vrot.lane.b32.xlu0 %v1177_v54, %s7133_s18  ;;  %v7658_v6 = vpop.permute.xlu1 %1676 }
 0x27e   : > { %6494 = vset.pattern.permute.xlu1 %v7135_v19  ;;  %6483 = vset.pattern.permute.xlu0 %v7130_v20 }
 0x27f   : > { %2885 = vperm.xlu1 %6494, %v1187_v61  }
 0x280   : > { %v7648_v1 = vpop.permute.xlu0 %2319 }
 0x281   : > { %1704 = vperm.xlu0 %6483, %v1177_v54  }
 0x282   : > { %v7663_v9 = vpop.permute.xlu1 %1311 }
 0x285   : > { %v7652_v3 = vpop.permute.xlu0 %2841  ;;  %6485 = vset.pattern.permute.xlu0 %v7134_v18 }
 0x286   : > { %2355 = vperm.xlu0 %6485, %v1177_v54   ;;  %v1227_v15 = vpop.permute.xlu1 %1226 }
 0x28a   : > { %v7655_v5 = vpop.permute.xlu0 %1303  ;;  %6486 = vset.pattern.permute.xlu0 %v7135_v19  ;;  %v7671_v17 = vpop.permute.xlu1 %1684 }
 0x28b   : > { %2877 = vperm.xlu0 %6486, %v1177_v54  }
 0x28f   : > { %v7660_v7 = vpop.permute.xlu0 %2315  ;;  %6487 = vset.pattern.permute.xlu0 %v7130_v20  ;;  %v7677_v32 = vpop.permute.xlu1 %1323 }
 0x290   : > { %1716 = vperm.xlu0 %6487, %v5997_v57  }
 0x294   : > { %v7665_v10 = vpop.permute.xlu0 %2837  ;;  %6488 = vset.pattern.permute.xlu0 %v10227_v14 }
 0x295   : > { %1355 = vperm.xlu0 %6488, %v5997_v57  }
 0x299   : > { %v7668_v16 = vpop.permute.xlu0 %1315  ;;  %6489 = vset.pattern.permute.xlu0 %v7134_v18  ;;  %v7682_v18 = vpop.permute.xlu1 %1680 }
 0x29a   : > { %2367 = vperm.xlu0 %6489, %v5997_v57  }
 0x29d   : > { %v7687_v41 = vpop.permute.xlu1 %2331 }
 0x29e   : > { %v7673_v19 = vpop.permute.xlu0 %2327  ;;  %1240 = vrot.lane.b32.xlu0 %v1187_v61, %s7133_s18 }
 0x29f   : > { %6491 = vset.pattern.permute.xlu0 %v7130_v20 }
 0x2a1   : > { %v1231_v20 = vpop.permute.xlu1 %1230 }
 0x2a2   : > { %1712 = vperm.xlu0 %6491, %v1187_v61  }
 0x2a3   : > { %v7679_v37 = vpop.permute.xlu0 %2849 }
 0x2a5   : > { %v7694_v45 = vpop.permute.xlu1 %1692 }
 0x2a6   : > { %6492 = vset.pattern.permute.xlu0 %v10227_v14 }
 0x2a7   : > { %v1221_v39 = vpop.permute.xlu0 %1220  ;;  %1351 = vperm.xlu0 %6492, %v1187_v61  }
 0x2a8   : > { %1260 = vxpose.xlu1.b32.start [1/16] (narrow) %v1213_v56, 8 }
 0x2a9   : > { %v7700_v54 = vpop.permute.xlu1 %2343 }
 0x2ab   : > { %v7684_v40 = vpop.permute.xlu0 %1672 }
 0x2ac   : > { %1261 = vxpose.xlu1.b32.cont [2/16] (narrow) %v7608_v48, 8 }
 0x2ad   : > { %v7702_v56 = vpop.permute.xlu1 %2865 }
 0x2b0   : > { %v7689_v42 = vpop.permute.xlu0 %2323  ;;  %1262 = vxpose.xlu1.b32.cont [3/16] (narrow) %v1217_v0, 8 }
 0x2b4   : > { %1263 = vxpose.xlu1.b32.cont [4/16] (narrow) %v7626_v55, 8  ;;  %v7706_v55 = vpop.permute.xlu1 %1327 }
 0x2b5   : > { %v7692_v44 = vpop.permute.xlu0 %2845 }
 0x2b8   : > { %1264 = vxpose.xlu1.b32.cont [5/16] (narrow) %v1221_v39, 8  ;;  %v1235_v39 = vpop.permute.xlu1 %1234 }
 0x2ba   : > { %v7696_v46 = vpop.permute.xlu0 %2335 }
 0x2bc   : > { %1265 = vxpose.xlu1.b32.cont [6/16] (narrow) %v1223_v4, 8  ;;  %v7712_v4 = vpop.permute.xlu1 %1700 }
 0x2bf   : > { %v7698_v47 = vpop.permute.xlu0 %2857 }
 0x2c3   : > { %v1225_v48 = vpop.permute.xlu0 %1224 }
 0x2c4   : > { %1266 = vxpose.xlu1.b32.cont [7/16] (narrow) %v1225_v48, 8  ;;  %v7716_v48 = vpop.permute.xlu1 %1339 }
 0x2c7   : > { %v7704_v57 = vpop.permute.xlu0 %1319 }
 0x2c8   : > { %1267 = vxpose.xlu1.b32.cont [8/16] (narrow) %v1227_v15, 8  ;;  %v7722_v15 = vpop.permute.xlu1 %2873 }
 0x2c9   : > { %10397 = vst [vmem:[#allocation34_spill] sm:$0xff] %v7722_v15 }
 0x2cc   : > { %v7708_v61 = vpop.permute.xlu0 %2853  ;;  %v7726_v24 = vpop.permute.xlu1 %1696 }
 0x2cd   : > { %10394 = vst [vmem:[#allocation31_spill] sm:$0xff] %v7708_v61 }
 0x2d1   : > { %v7710_v0 = vpop.permute.xlu0 %1331 }
 0x2d5   : > { %v1229_v38 = vpop.permute.xlu0 %1228 }
 0x2d6   : > { %1268 = vxpose.xlu1.b32.cont [9/16] (narrow) %v1229_v38, 8  ;;  %v7728_v38 = vpop.permute.xlu1 %2347 }
 0x2d7   : > { %10399 = vst [vmem:[#allocation36_spill] sm:$0xff] %v7728_v38 }
 0x2d9   : > { %v7714_v29 = vpop.permute.xlu0 %1688 }
 0x2da   : > { %1269 = vxpose.xlu1.b32.cont [10/16] (narrow) %v1231_v20, 8  ;;  %v7734_v25 = vpop.permute.xlu1 %2869 }
 0x2db   : > { %10400 = vst [vmem:[#allocation37_spill] sm:$0xff] %v7734_v25 }
 0x2de   : > { %v7718_v14 = vpop.permute.xlu0 %2339  ;;  %v1239_v27 = vpop.permute.xlu1 %1238 }
 0x2df   : > { %10395 = vst [vmem:[#allocation32_spill] sm:$0xff] %v7718_v14 }
 0x2e3   : > { %v7720_v22 = vpop.permute.xlu0 %2861 }
 0x2e4   : > { %10396 = vst [vmem:[#allocation33_spill] sm:$0xff] %v7720_v22 }
 0x2e8   : > { %v7724_v21 = vpop.permute.xlu0 %2351 }
 0x2e9   : > { %10398 = vst [vmem:[#allocation35_spill] sm:$0xff] %v7724_v21 }
 0x2ec   : > { %v1233_v23 = vpop.permute.xlu0 %1232 }
 0x2ed   : > { %1270 = vxpose.xlu1.b32.cont [11/16] (narrow) %v1233_v23, 8  ;;  %v7742_v23 = vpop.permute.xlu1 %1708 }
 0x2f0   : > { %v7730_v26 = vpop.permute.xlu0 %1335 }
 0x2f1   : > { %1271 = vxpose.xlu1.b32.cont [12/16] (narrow) %v1235_v39, 8  ;;  %v7746_v12 = vpop.permute.xlu1 %2359 }
 0x2f2   : > { %10403 = vst [vmem:[#allocation40_spill] sm:$0xff] %v7746_v12 }
 0x2f4   : > { %v7732_v20 = vpop.permute.xlu0 %1347 }
 0x2f5   : > { %v7750_v33 = vpop.permute.xlu1 %2881 }
 0x2f6   : > { %10404 = vst [vmem:[#allocation41_spill] sm:$0xff] %v7750_v33 }
 0x2f8   : > { %v1237_v28 = vpop.permute.xlu0 %1236 }
 0x2f9   : > { %1272 = vxpose.xlu1.b32.cont [13/16] (narrow) %v1237_v28, 8  ;;  %v7754_v28 = vpop.permute.xlu1 %1343 }
 0x2fc   : > { %v7736_v31 = vpop.permute.xlu0 %1704 }
 0x2fd   : > { %1273 = vxpose.xlu1.b32.cont [14/16] (narrow) %v1239_v27, 8  ;;  %v1243_v35 = vpop.permute.xlu1 %1242 }
 0x301   : > { %v7738_v30 = vpop.permute.xlu0 %2355  ;;  %v7757_v8 = vpop.permute.xlu1 %2889 }
 0x302   : > { %10401 = vst [vmem:[#allocation38_spill] sm:$0xff] %v7738_v30  ;;  %10407 = vst [vmem:[#allocation43_spill] sm:$0xff] %v7757_v8 }
 0x305   : > { %v7759_v43 = vpop.permute.xlu1 %2363 }
 0x306   : > { %v7740_v34 = vpop.permute.xlu0 %2877  ;;  %10408 = vst [vmem:[#allocation44_spill] sm:$0xff] %v7759_v43  ;;  %v7786_v43 = vld [vmem:[%s7337_s28] sm:$0xff] }
 0x307   : > { %10402 = vst [vmem:[#allocation39_spill] sm:$0xff] %v7740_v34  ;;  %v10409_v34 = vlaneseq  ;;  %10414 = vst [vmem:[#allocation49_spill] sm:$0xff] %v7786_v43  ;;  %vm792_vm13 = vcmp.gt.f32.partialorder %v7786_v43, 0.0 }
 0x309   : > { %v7762_v30 = vshrl.u32 %v10409_v34, 7  ;;  %v7764_v25 = vpop.permute.xlu1 %2885  ;;  %v7783_v34 = vld [vmem:[%s7337_s28 + $0x8] sm:$0xff] }
 0x30a   : > { %10410 = vst [vmem:[#allocation45_spill] sm:$0xff] %v7764_v25  ;;  %10413 = vst [vmem:[#allocation48_spill] sm:$0xff] %v7783_v34  ;;  %vm793_vm12 = vcmp.gt.f32.partialorder %v7783_v34, 0.0 }
 0x30b   : > { %v7744_v13 = vpop.permute.xlu0 %1716  ;;  %v7770_v33 = vsub.s32 1, %v7762_v30 }
 0x30d   : > { %10412 = vst [vmem:[#allocation47_spill] sm:$0xff] %v7770_v33 }
 0x30e   : > { %v10461_v43 = vld [vmem:[#allocation39_spill] sm:$0xff] }
 0x310   : > { %v7748_v39 = vpop.permute.xlu0 %1355 }
 0x315   : > { %v7752_v36 = vpop.permute.xlu0 %2367 }
 0x316   : > { %10405 = vst [vmem:[#allocation42_spill] sm:$0xff] %v7752_v36  ;;  %v7767_v36 = vsub.s32 0, %v7762_v30 }
 0x318   : > { %10411 = vst [vmem:[#allocation46_spill] sm:$0xff] %v7767_v36 }
 0x319   : > { %v1241_v27 = vpop.permute.xlu0 %1240 }
 0x31a   : > { %1274 = vxpose.xlu1.b32.cont [15/16] (narrow) %v1241_v27, 8 }
 0x31e   : > { %1275 = vxpose.xlu1.b32.end [16/16] (narrow) %v1243_v35, 8 }
 0x33c   : > { %6495 = vset.pattern.permute.xlu1 %v10406_v11 }
 0x35e   : > { %v7772_v27 = vpop.trf.xlu1 }
 0x35f   : > { %v7776_v35 = vrot.slane %v7772_v27, %v7767_v36  ;;  %v7780_v11 = vrot.slane %v7772_v27, %v7770_v33  ;;  %v7799_v33 = vld [vmem:[%s7337_s28 + $0x18] sm:$0xff] }
 0x360   : > { %10415 = vst [vmem:[#allocation50_spill] sm:$0xff] %v7799_v33  ;;  %vm795_vm4 = vcmp.gt.f32.partialorder %v7799_v33, 0.0  ;;  %v10450_v33 = vld [vmem:[#allocation36_spill] sm:$0xff] }
 0x361   : > { %v1724_v25 = vadd.f32 %v7780_v11, %v7614_v50  ;;  %v1723_v8 = vadd.f32 %v7780_v11, %v7630_v58  ;;  %v1726_v38 = vadd.f32 %v7780_v11, %v7634_v59  ;;  %v1362_v36 = vadd.f32 %v7776_v35, %v7622_v52 }
 0x362   : > { %v1365_v12 = vadd.f32 %v7776_v35, %v7640_v62  ;;  %v1363_v50 = vadd.f32 %v7776_v35, %v7612_v49  ;;  %v1728_v61 = vadd.f32 %v7780_v11, %v7658_v6 }
 0x363   : > { %vm1740_vm14 = vcmp.gt.f32.partialorder %v1724_v25, 0.0  ;;  %v1756_v58 = vmul.f32 0.2, %v1724_v25  ;;  %vm1739_vm15 = vcmp.gt.f32.partialorder %v1723_v8, 0.0  ;;  %v1755_v22 = vmul.f32 0.2, %v1723_v8 }
 0x364   : > { %vm1742_vm2 = vcmp.gt.f32.partialorder %v1726_v38, 0.0  ;;  %v1758_v59 = vmul.f32 0.2, %v1726_v38  ;;  %vm1378_vm3 = vcmp.gt.f32.partialorder %v1362_v36, 0.0  ;;  %v1394_v52 = vmul.f32 0.2, %v1362_v36 }
 0x365   : > { %v1772_v15 = vsel %vm1740_vm14, %v1724_v25, %v1756_v58  ;;  %v1771_v14 = vsel %vm1739_vm15, %v1723_v8, %v1755_v22  ;;  %v1397_v62 = vmul.f32 0.2, %v1365_v12  ;;  %vm1381_vm5 = vcmp.gt.f32.partialorder %v1365_v12, 0.0 }
 0x366   : > { %v7808_v21 = vsel %vm793_vm12, %v1772_v15, -1e+30  ;;  %v7812_v49 = vsel %vm792_vm13, %v1771_v14, -1e+30  ;;  %v1774_v22 = vsel %vm1742_vm2, %v1726_v38, %v1758_v59  ;;  %v1410_v25 = vsel %vm1378_vm3, %v1362_v36, %v1394_v52 }
 0x367   : > { %10416 = vst [vmem:[#allocation51_spill] sm:$0xff] %v7808_v21  ;;  %10417 = vst [vmem:[#allocation52_spill] sm:$0xff] %v7812_v49  ;;  %1805 = vmax.xlane.f32.xlu1 %v7808_v21  ;;  %1803 = vmax.xlane.f32.xlu0 %v7812_v49  ;;  %v1725_v8 = vadd.f32 %v7780_v11, %v7650_v2  ;;  %vm1379_vm6 = vcmp.gt.f32.partialorder %v1363_v50, 0.0  ;;  %v1395_v15 = vmul.f32 0.2, %v1363_v50  ;;  %v7829_v21 = vld [vmem:[%s7337_s28 + $0x28] sm:$0xff] }
 0x368   : > { %v7822_v14 = vsel %vm795_vm4, %v1774_v22, -1e+30  ;;  %v7826_v58 = vsel %vm792_vm13, %v1410_v25, -1e+30  ;;  %v1413_v6 = vsel %vm1381_vm5, %v1365_v12, %v1397_v62  ;;  %10419 = vst [vmem:[#allocation54_spill] sm:$0xff] %v7829_v21  ;;  %v7832_v49 = vld [vmem:[%s7337_s28 + $0x10] sm:$0xff]  ;;  %v1367_v36 = vadd.f32 %v7776_v35, %v7668_v16 }
 0x369   : > { %10418 = vst [vmem:[#allocation53_spill] sm:$0xff] %v7822_v14  ;;  %10420 = vst [vmem:[#allocation55_spill] sm:$0xff] %v7832_v49  ;;  %v1411_v2 = vsel %vm1379_vm6, %v1363_v50, %v1395_v15  ;;  %v1760_v38 = vmul.f32 0.2, %v1728_v61  ;;  %v1757_v59 = vmul.f32 0.2, %v1725_v8  ;;  %v1364_v52 = vadd.f32 %v7776_v35, %v7655_v5 }
 0x36a   : > { %vm1744_vm7 = vcmp.gt.f32.partialorder %v1728_v61, 0.0  ;;  %vm1741_vm8 = vcmp.gt.f32.partialorder %v1725_v8, 0.0  ;;  %v7842_v12 = vsel %vm795_vm4, %v1413_v6, -1e+30  ;;  %vm797_vm9 = vcmp.gt.f32.partialorder %v7829_v21, 0.0  ;;  %v7857_v6 = vld [vmem:[%s7337_s28 + $0x38] sm:$0xff] }
 0x36b   : > { %1809 = vmax.xlane.f32.xlu1 %v7822_v14  ;;  %1442 = vmax.xlane.f32.xlu0 %v7826_v58  ;;  %vm794_vm10 = vcmp.gt.f32.partialorder %v7832_v49, 0.0  ;;  %v7848_v16 = vsel %vm793_vm12, %v1411_v2, -1e+30  ;;  %v1399_v50 = vmul.f32 0.2, %v1367_v36  ;;  %v1730_v5 = vadd.f32 %v7780_v11, %v7671_v17  ;;  %10421 = vst [vmem:[#allocation56_spill] sm:$0xff] %v7857_v6 }
 0x36c   : > { %v1727_v62 = vadd.f32 %v7780_v11, %v7684_v40  ;;  %v1776_v22 = vsel %vm1744_vm7, %v1728_v61, %v1760_v38  ;;  %v1773_v25 = vsel %vm1741_vm8, %v1725_v8, %v1757_v59  ;;  %vm1383_vm11 = vcmp.gt.f32.partialorder %v1367_v36, 0.0  ;;  %v7860_v2 = vld [vmem:[%s7337_s28 + $0x20] sm:$0xff]  ;;  %v10448_v21 = vld [vmem:[#allocation33_spill] sm:$0xff] }
 0x36d   : > { %v1396_v15 = vmul.f32 0.2, %v1364_v52  ;;  %vm1380_vm14 = vcmp.gt.f32.partialorder %v1364_v52, 0.0  ;;  %10422 = vst [vmem:[#allocation57_spill] sm:$0xff] %v7860_v2  ;;  %v1369_v14 = vadd.f32 %v7776_v35, %v7677_v32  ;;  %v7866_v17 = vsel %vm797_vm9, %v1776_v22, -1e+30 }
 0x36e   : > { %v7870_v40 = vsel %vm794_vm10, %v1773_v25, -1e+30  ;;  %v1415_v61 = vsel %vm1383_vm11, %v1367_v36, %v1399_v50  ;;  %v1762_v8 = vmul.f32 0.2, %v1730_v5  ;;  %vm1746_vm15 = vcmp.gt.f32.partialorder %v1730_v5, 0.0 }
 0x36f   : > { %1448 = vmax.xlane.f32.xlu1 %v7842_v12  ;;  %1444 = vmax.xlane.f32.xlu0 %v7848_v16  ;;  %v1412_v38 = vsel %vm1380_vm14, %v1364_v52, %v1396_v15  ;;  %v1759_v59 = vmul.f32 0.2, %v1727_v62  ;;  %v1366_v32 = vadd.f32 %v7776_v35, %v7663_v9  ;;  %vm1743_vm2 = vcmp.gt.f32.partialorder %v1727_v62, 0.0 }
 0x370   : > { %v7878_v22 = vsel %vm797_vm9, %v1415_v61, -1e+30  ;;  %vm10294_vm3 = vcmp.gt.f32.partialorder %v7857_v6, 0.0  ;;  %vm796_vm5 = vcmp.gt.f32.partialorder %v7860_v2, 0.0  ;;  %v7884_v36 = vsel %vm794_vm10, %v1412_v38, -1e+30 }
 0x371   : > { %10423 = vst [vmem:[#allocation58_spill] sm:$0xff] %v7878_v22  ;;  %10424 = vst [vmem:[#allocation59_spill] sm:$0xff] %v7884_v36  ;;  %v1778_v52 = vsel %vm1746_vm15, %v1730_v5, %v1762_v8  ;;  %v1401_v50 = vmul.f32 0.2, %v1369_v14  ;;  %v1732_v9 = vadd.f32 %v7780_v11, %v7694_v45  ;;  %v1775_v25 = vsel %vm1743_vm2, %v1727_v62, %v1759_v59  ;;  %v7901_v8 = vld [vmem:[%s7337_s28 + $0x48] sm:$0xff]  ;;  %v10447_v6 = vld [vmem:[#allocation34_spill] sm:$0xff] }
 0x372   : > { %vm1385_vm6 = vcmp.gt.f32.partialorder %v1369_v14, 0.0  ;;  %v1398_v15 = vmul.f32 0.2, %v1366_v32  ;;  %v1729_v61 = vadd.f32 %v7780_v11, %v7682_v18  ;;  %vm1382_vm7 = vcmp.gt.f32.partialorder %v1366_v32, 0.0  ;;  %10425 = vst [vmem:[#allocation60_spill] sm:$0xff] %v7901_v8 }
 0x373   : > { %1813 = vmax.xlane.f32.xlu1 %v7866_v17  ;;  %1807 = vmax.xlane.f32.xlu0 %v7870_v40  ;;  %v7894_v38 = vsel %vm10294_vm3, %v1778_v52, -1e+30  ;;  %v7898_v5 = vsel %vm796_vm5, %v1775_v25, -1e+30  ;;  %v1417_v45 = vsel %vm1385_vm6, %v1369_v14, %v1401_v50  ;;  %v1371_v62 = vadd.f32 %v7776_v35, %v7710_v0 }
 0x374   : > { %v1414_v18 = vsel %vm1382_vm7, %v1366_v32, %v1398_v15  ;;  %vm1748_vm8 = vcmp.gt.f32.partialorder %v1732_v9, 0.0  ;;  %v1761_v59 = vmul.f32 0.2, %v1729_v61  ;;  %v1368_v52 = vadd.f32 %v7776_v35, %v7704_v57 }
 0x375   : > { %vm1745_vm11 = vcmp.gt.f32.partialorder %v1729_v61, 0.0  ;;  %v7914_v14 = vsel %vm10294_vm3, %v1417_v45, -1e+30  ;;  %vm10293_vm14 = vcmp.gt.f32.partialorder %v7901_v8, 0.0  ;;  %v7920_v0 = vsel %vm796_vm5, %v1414_v18, -1e+30 }
 0x376   : > { %10427 = vst [vmem:[#allocation62_spill] sm:$0xff] %v7914_v14  ;;  %10428 = vst [vmem:[#allocation63_spill] sm:$0xff] %v7920_v0  ;;  %v1403_v50 = vmul.f32 0.2, %v1371_v62  ;;  %v1734_v57 = vadd.f32 %v7780_v11, %v7712_v4  ;;  %v1777_v25 = vsel %vm1745_vm11, %v1729_v61, %v1761_v59  ;;  %vm1387_vm2 = vcmp.gt.f32.partialorder %v1371_v62, 0.0 }
 0x377   : > { %1452 = vmax.xlane.f32.xlu1 %v7878_v22  ;;  %1446 = vmax.xlane.f32.xlu0 %v7884_v36  ;;  %v1764_v22 = vmul.f32 0.2, %v1732_v9  ;;  %v7904_v36 = vld [vmem:[%s7337_s28 + $0x30] sm:$0xff]  ;;  %v1400_v15 = vmul.f32 0.2, %v1368_v52  ;;  %v1731_v45 = vadd.f32 %v7780_v11, %v7714_v29  ;;  %vm1384_vm6 = vcmp.gt.f32.partialorder %v1368_v52, 0.0 }
 0x378   : > { %10426 = vst [vmem:[#allocation61_spill] sm:$0xff] %v7904_v36  ;;  %vm798_vm15 = vcmp.gt.f32.partialorder %v7904_v36, 0.0  ;;  %v1419_v4 = vsel %vm1387_vm2, %v1371_v62, %v1403_v50  ;;  %v1373_v61 = vadd.f32 %v7776_v35, %v7716_v48  ;;  %vm1750_vm7 = vcmp.gt.f32.partialorder %v1734_v57, 0.0 }
 0x379   : > { %v1780_v32 = vsel %vm1748_vm8, %v1732_v9, %v1764_v22  ;;  %v7934_v22 = vsel %vm798_vm15, %v1777_v25, -1e+30  ;;  %v7937_v9 = vld [vmem:[%s7337_s28 + $0x58] sm:$0xff]  ;;  %v1416_v29 = vsel %vm1384_vm6, %v1368_v52, %v1400_v15  ;;  %v1763_v59 = vmul.f32 0.2, %v1731_v45 }
 0x37a   : > { %v7930_v18 = vsel %vm10293_vm14, %v1780_v32, -1e+30  ;;  %10429 = vst [vmem:[#allocation64_spill] sm:$0xff] %v7937_v9  ;;  %v1370_v32 = vadd.f32 %v7776_v35, %v7706_v55  ;;  %vm1747_vm8 = vcmp.gt.f32.partialorder %v1731_v45, 0.0  ;;  %v7950_v62 = vsel %vm10293_vm14, %v1419_v4, -1e+30 }
 0x37b   : > { %1817 = vmax.xlane.f32.xlu1 %v7894_v38  ;;  %1811 = vmax.xlane.f32.xlu0 %v7898_v5  ;;  %10431 = vst [vmem:[#allocation66_spill] sm:$0xff] %v7950_v62  ;;  %vm10280_vm11 = vcmp.gt.f32.partialorder %v7937_v9, 0.0  ;;  %v7956_v48 = vsel %vm798_vm15, %v1416_v29, -1e+30  ;;  %v1405_v50 = vmul.f32 0.2, %v1373_v61  ;;  %v1736_v55 = vadd.f32 %v7780_v11, %v7742_v23 }
 0x37c   : > { %10432 = vst [vmem:[#allocation67_spill] sm:$0xff] %v7956_v48  ;;  %v1779_v25 = vsel %vm1747_vm8, %v1731_v45, %v1763_v59  ;;  %vm1389_vm6 = vcmp.gt.f32.partialorder %v1373_v61, 0.0  ;;  %v1402_v15 = vmul.f32 0.2, %v1370_v32  ;;  %v1733_v4 = vadd.f32 %v7780_v11, %v7726_v24 }
 0x37d   : > { %vm1386_vm0 = vcmp.gt.f32.partialorder %v1370_v32, 0.0  ;;  %v1421_v23 = vsel %vm1389_vm6, %v1373_v61, %v1405_v50  ;;  %v1375_v45 = vadd.f32 %v7776_v35, %v7732_v20  ;;  %v2372_v61 = vsub.s32 2, %v7762_v30 }
 0x37e   : > { %v1418_v24 = vsel %vm1386_vm0, %v1370_v32, %v1402_v15  ;;  %v1765_v59 = vmul.f32 0.2, %v1733_v4  ;;  %vm1749_vm8 = vcmp.gt.f32.partialorder %v1733_v4, 0.0  ;;  %v7987_v50 = vsel %vm10280_vm11, %v1421_v23, -1e+30 }
 0x37f   : > { %1456 = vmax.xlane.f32.xlu1 %v7914_v14  ;;  %1450 = vmax.xlane.f32.xlu0 %v7920_v0  ;;  %v1766_v14 = vmul.f32 0.2, %v1734_v57  ;;  %v7940_v0 = vld [vmem:[%s7337_s28 + $0x40] sm:$0xff]  ;;  %10437 = vst [vmem:[#allocation72_spill] sm:$0xff] %v7987_v50  ;;  %vm1391_vm0 = vcmp.gt.f32.partialorder %v1375_v45, 0.0  ;;  %v1738_v23 = vadd.f32 %v7780_v11, %v7744_v13 }
 0x380   : > { %10430 = vst [vmem:[#allocation65_spill] sm:$0xff] %v7940_v0  ;;  %vm10283_vm2 = vcmp.gt.f32.partialorder %v7940_v0, 0.0  ;;  %v8017_v13 = vld [vmem:[%s7337_s28 + $0x60] sm:$0xff] }
 0x381   : > { %v1782_v52 = vsel %vm1750_vm7, %v1734_v57, %v1766_v14  ;;  %v7970_v14 = vsel %vm10283_vm2, %v1779_v25, -1e+30  ;;  %v7973_v57 = vld [vmem:[%s7337_s28 + $0x68] sm:$0xff]  ;;  %vm1752_vm7 = vcmp.gt.f32.partialorder %v1736_v55, 0.0  ;;  %v7993_v20 = vsel %vm10283_vm2, %v1418_v24, -1e+30 }
 0x382   : > { %v7966_v29 = vsel %vm10280_vm11, %v1782_v52, -1e+30  ;;  %10434 = vst [vmem:[#allocation69_spill] sm:$0xff] %v7970_v14  ;;  %10435 = vst [vmem:[#allocation70_spill] sm:$0xff] %v7973_v57  ;;  %v1372_v52 = vadd.f32 %v7776_v35, %v7730_v26  ;;  %vm10284_vm6 = vcmp.gt.f32.partialorder %v7973_v57, 0.0  ;;  %v1781_v25 = vsel %vm1749_vm8, %v1733_v4, %v1765_v59 }
 0x383   : > { %1821 = vmax.xlane.f32.xlu1 %v7930_v18  ;;  %1815 = vmax.xlane.f32.xlu0 %v7934_v22  ;;  %10433 = vst [vmem:[#allocation68_spill] sm:$0xff] %v7966_v29  ;;  %10438 = vst [vmem:[#allocation73_spill] sm:$0xff] %v7993_v20  ;;  %v1407_v26 = vmul.f32 0.2, %v1375_v45  ;;  %v2894_v24 = vsub.s32 3, %v7762_v30  ;;  %vm804_vm2 = vcmp.gt.f32.partialorder %v8017_v13, 0.0 }
 0x384   : > { %v1404_v15 = vmul.f32 0.2, %v1372_v52  ;;  %vm1388_vm11 = vcmp.gt.f32.partialorder %v1372_v52, 0.0  ;;  %10442 = vst [vmem:[#allocation77_spill] sm:$0xff] %v8017_v13 }
 0x385   : > { %v1423_v59 = vsel %vm1391_vm0, %v1375_v45, %v1407_v26  ;;  %v8026_v45 = vrot.slane %v7772_v27, %v2894_v24 }
 0x386   : > { %v1420_v30 = vsel %vm1388_vm11, %v1372_v52, %v1404_v15  ;;  %v8030_v26 = vsel %vm10284_vm6, %v1423_v59, -1e+30 }
 0x387   : > { %1460 = vmax.xlane.f32.xlu1 %v7950_v62  ;;  %1454 = vmax.xlane.f32.xlu0 %v7956_v48  ;;  %v1768_v62 = vmul.f32 0.2, %v1736_v55  ;;  %v7976_v48 = vld [vmem:[%s7337_s28 + $0x50] sm:$0xff]  ;;  %v2904_v2 = vadd.f32 %v8026_v45, %v10448_v21 }
 0x388   : > { %10436 = vst [vmem:[#allocation71_spill] sm:$0xff] %v7976_v48  ;;  %vm802_vm1 = vcmp.gt.f32.partialorder %v7976_v48, 0.0 }
 0x389   : > { %v1784_v32 = vsel %vm1752_vm7, %v1736_v55, %v1768_v62  ;;  %v8003_v62 = vrot.slane %v7772_v27, %v2372_v61  ;;  %v8011_v4 = vsel %vm802_vm1, %v1781_v25, -1e+30  ;;  %v1770_v61 = vmul.f32 0.2, %v1738_v23  ;;  %v1713_v25 = vpop.permute.xlu0 %1712 }
 0x38a   : > { %v8007_v55 = vsel %vm10284_vm6, %v1784_v32, -1e+30  ;;  %10440 = vst [vmem:[#allocation75_spill] sm:$0xff] %v8011_v4  ;;  %vm1754_vm7 = vcmp.gt.f32.partialorder %v1738_v23, 0.0  ;;  %v1737_v59 = vadd.f32 %v7780_v11, %v1713_v25 }
 0x38b   : > { %1825 = vmax.xlane.f32.xlu1 %v7966_v29  ;;  %1819 = vmax.xlane.f32.xlu0 %v7970_v14  ;;  %v1735_v29 = vadd.f32 %v7780_v11, %v7736_v31  ;;  %10439 = vst [vmem:[#allocation74_spill] sm:$0xff] %v8007_v55  ;;  %v1377_v31 = vadd.f32 %v7776_v35, %v7748_v39  ;;  %v8036_v39 = vsel %vm802_vm1, %v1420_v30, -1e+30  ;;  %v8052_v14 = vld [vmem:[%s7337_s28 + $0x70] sm:$0xff] }
 0x38c   : > { %v2375_v52 = vadd.f32 %v8003_v62, %v7618_v51  ;;  %v1786_v27 = vsel %vm1754_vm7, %v1738_v23, %v1770_v61  ;;  %10443 = vst [vmem:[#allocation78_spill] sm:$0xff] %v8052_v14  ;;  %v2897_v23 = vadd.f32 %v8026_v45, %v7624_v53  ;;  %v1769_v61 = vmul.f32 0.2, %v1737_v59 }
 0x38d   : > { %v1767_v32 = vmul.f32 0.2, %v1735_v29  ;;  %vm1751_vm8 = vcmp.gt.f32.partialorder %v1735_v29, 0.0  ;;  %vm1393_vm11 = vcmp.gt.f32.partialorder %v1377_v31, 0.0 }
 0x38e   : > { %vm2391_vm7 = vcmp.gt.f32.partialorder %v2375_v52, 0.0 }
 0x38f   : > { %1464 = vmax.xlane.f32.xlu1 %v7987_v50  ;;  %1458 = vmax.xlane.f32.xlu0 %v7993_v20  ;;  %v8014_v50 = vld [vmem:[%s7337_s28 + $0x78] sm:$0xff]  ;;  %v1374_v20 = vadd.f32 %v7776_v35, %v7754_v28  ;;  %v1409_v28 = vmul.f32 0.2, %v1377_v31  ;;  %v1783_v15 = vsel %vm1751_vm8, %v1735_v29, %v1767_v32  ;;  %v2407_v29 = vmul.f32 0.2, %v2375_v52 }
 0x390   : > { %10441 = vst [vmem:[#allocation76_spill] sm:$0xff] %v8014_v50  ;;  %vm10288_vm0 = vcmp.gt.f32.partialorder %v8014_v50, 0.0  ;;  %vm1753_vm8 = vcmp.gt.f32.partialorder %v1737_v59, 0.0 }
 0x391   : > { %v1406_v24 = vmul.f32 0.2, %v1374_v20  ;;  %vm1390_vm6 = vcmp.gt.f32.partialorder %v1374_v20, 0.0  ;;  %v8045_v30 = vsel %vm10288_vm0, %v1786_v27, -1e+30  ;;  %v1425_v51 = vsel %vm1393_vm11, %v1377_v31, %v1409_v28 }
 0x392   : > { %v8061_v25 = vsel %vm10288_vm0, %v1425_v51, -1e+30  ;;  %vm806_vm11 = vcmp.gt.f32.partialorder %v8052_v14, 0.0  ;;  %v2929_v31 = vmul.f32 0.2, %v2897_v23  ;;  %v2374_v28 = vadd.f32 %v8003_v62, %v7638_v60  ;;  %v10471_v14 = vld [vmem:[#allocation53_spill] sm:$0xff] }
 0x393   : > { %1829 = vmax.xlane.f32.xlu1 %v8007_v55  ;;  %1823 = vmax.xlane.f32.xlu0 %v8011_v4  ;;  %v1352_v55 = vpop.permute.xlu0 %1351  ;;  %v8049_v4 = vsel %vm804_vm2, %v1783_v15, -1e+30  ;;  %v1422_v11 = vsel %vm1390_vm6, %v1374_v20, %v1406_v24  ;;  %v2377_v20 = vadd.f32 %v8003_v62, %v7648_v1  ;;  %vm2913_vm6 = vcmp.gt.f32.partialorder %v2897_v23, 0.0 }
 0x394   : > { %v1376_v32 = vadd.f32 %v7776_v35, %v1352_v55  ;;  %v8066_v53 = vsel %vm804_vm2, %v1422_v11, -1e+30  ;;  %v2423_v35 = vsel %vm2391_vm7, %v2375_v52, %v2407_v29  ;;  %v1785_v55 = vsel %vm1753_vm8, %v1737_v59, %v1769_v61 }
 0x395   : > { %v2899_v15 = vadd.f32 %v8026_v45, %v7652_v3  ;;  %v8078_v24 = vsel %vm793_vm12, %v2423_v35, -1e+30  ;;  %v8082_v1 = vsel %vm806_vm11, %v1785_v55, -1e+30  ;;  %v2945_v60 = vsel %vm2913_vm6, %v2897_v23, %v2929_v31 }
 0x396   : > { %v1408_v27 = vmul.f32 0.2, %v1376_v32  ;;  %vm1392_vm0 = vcmp.gt.f32.partialorder %v1376_v32, 0.0  ;;  %v2409_v51 = vmul.f32 0.2, %v2377_v20  ;;  %vm2393_vm7 = vcmp.gt.f32.partialorder %v2377_v20, 0.0 }
 0x397   : > { %1468 = vmax.xlane.f32.xlu1 %v8030_v26  ;;  %1462 = vmax.xlane.f32.xlu0 %v8036_v39  ;;  %v2406_v59 = vmul.f32 0.2, %v2374_v28  ;;  %v2896_v3 = vadd.f32 %v8026_v45, %v7643_v63  ;;  %vm2390_vm8 = vcmp.gt.f32.partialorder %v2374_v28, 0.0  ;;  %v8090_v11 = vsel %vm793_vm12, %v2945_v60, -1e+30 }
 0x398   : > { %v1424_v52 = vsel %vm1392_vm0, %v1376_v32, %v1408_v27  ;;  %v2425_v23 = vsel %vm2393_vm7, %v2377_v20, %v2409_v51  ;;  %v2931_v61 = vmul.f32 0.2, %v2899_v15  ;;  %v2379_v31 = vadd.f32 %v8003_v62, %v7673_v19 }
 0x399   : > { %v8094_v29 = vsel %vm806_vm11, %v1424_v52, -1e+30  ;;  %v2422_v32 = vsel %vm2390_vm8, %v2374_v28, %v2406_v59  ;;  %vm2915_vm0 = vcmp.gt.f32.partialorder %v2899_v15, 0.0  ;;  %v2928_v63 = vmul.f32 0.2, %v2896_v3 }
 0x39a   : > { %v2376_v35 = vadd.f32 %v8003_v62, %v7660_v7  ;;  %vm2912_vm6 = vcmp.gt.f32.partialorder %v2896_v3, 0.0  ;;  %v8104_v55 = vsel %vm795_vm4, %v2425_v23, -1e+30  ;;  %v8108_v20 = vsel %vm792_vm13, %v2422_v32, -1e+30 }
 0x39b   : > { %1833 = vmax.xlane.f32.xlu1 %v8045_v30  ;;  %1827 = vmax.xlane.f32.xlu0 %v8049_v4  ;;  %v2947_v19 = vsel %vm2915_vm0, %v2899_v15, %v2931_v61  ;;  %v2411_v27 = vmul.f32 0.2, %v2379_v31  ;;  %v2901_v60 = vadd.f32 %v8026_v45, %v7679_v37  ;;  %v2944_v28 = vsel %vm2912_vm6, %v2896_v3, %v2928_v63 }
 0x39c   : > { %vm2395_vm7 = vcmp.gt.f32.partialorder %v2379_v31, 0.0  ;;  %v2408_v7 = vmul.f32 0.2, %v2376_v35  ;;  %v2898_v51 = vadd.f32 %v8026_v45, %v7665_v10  ;;  %vm2392_vm8 = vcmp.gt.f32.partialorder %v2376_v35, 0.0 }
 0x39d   : > { %v8118_v52 = vsel %vm795_vm4, %v2947_v19, -1e+30  ;;  %v8122_v15 = vsel %vm792_vm13, %v2944_v28, -1e+30  ;;  %v2427_v37 = vsel %vm2395_vm7, %v2379_v31, %v2411_v27  ;;  %v2933_v59 = vmul.f32 0.2, %v2901_v60 }
 0x39e   : > { %v2381_v23 = vadd.f32 %v8003_v62, %v7696_v46  ;;  %v2424_v3 = vsel %vm2392_vm8, %v2376_v35, %v2408_v7  ;;  %vm2917_vm0 = vcmp.gt.f32.partialorder %v2901_v60, 0.0  ;;  %v2930_v10 = vmul.f32 0.2, %v2898_v51 }
 0x39f   : > { %1472 = vmax.xlane.f32.xlu1 %v8061_v25  ;;  %1466 = vmax.xlane.f32.xlu0 %v8066_v53  ;;  %v2378_v61 = vadd.f32 %v8003_v62, %v7689_v42  ;;  %vm2914_vm6 = vcmp.gt.f32.partialorder %v2898_v51, 0.0  ;;  %v8132_v32 = vsel %vm797_vm9, %v2427_v37, -1e+30  ;;  %v8136_v31 = vsel %vm794_vm10, %v2424_v3, -1e+30 }
 0x3a0   : > { %v2949_v46 = vsel %vm2917_vm0, %v2901_v60, %v2933_v59  ;;  %v2413_v63 = vmul.f32 0.2, %v2381_v23  ;;  %v2903_v19 = vadd.f32 %v8026_v45, %v7698_v47  ;;  %v2946_v35 = vsel %vm2914_vm6, %v2898_v51, %v2930_v10 }
 0x3a1   : > { %vm2397_vm7 = vcmp.gt.f32.partialorder %v2381_v23, 0.0  ;;  %v2410_v42 = vmul.f32 0.2, %v2378_v61  ;;  %v2900_v27 = vadd.f32 %v8026_v45, %v7692_v44  ;;  %vm2394_vm8 = vcmp.gt.f32.partialorder %v2378_v61, 0.0 }
 0x3a2   : > { %v8146_v28 = vsel %vm797_vm9, %v2949_v46, -1e+30  ;;  %v8150_v60 = vsel %vm794_vm10, %v2946_v35, -1e+30  ;;  %v2429_v47 = vsel %vm2397_vm7, %v2381_v23, %v2413_v63  ;;  %v2935_v7 = vmul.f32 0.2, %v2903_v19 }
 0x3a3   : > { %2456 = vmax.xlane.f32.xlu1 %v8078_v24  ;;  %1831 = vmax.xlane.f32.xlu0 %v8082_v1  ;;  %v2383_v37 = vadd.f32 %v8003_v62, %v7700_v54  ;;  %v2426_v51 = vsel %vm2394_vm8, %v2378_v61, %v2410_v42  ;;  %vm2919_vm0 = vcmp.gt.f32.partialorder %v2903_v19, 0.0  ;;  %v2932_v44 = vmul.f32 0.2, %v2900_v27  ;;  %v10444_v63 = vld [vmem:[#allocation31_spill] sm:$0xff] }
 0x3a4   : > { %v2380_v59 = vadd.f32 %v8003_v62, %v7687_v41  ;;  %vm2916_vm6 = vcmp.gt.f32.partialorder %v2900_v27, 0.0  ;;  %v8160_v3 = vsel %vm10294_vm3, %v2429_v47, -1e+30  ;;  %v8164_v23 = vsel %vm796_vm5, %v2426_v51, -1e+30  ;;  %v10445_v51 = vld [vmem:[#allocation35_spill] sm:$0xff] }
 0x3a5   : > { %v2951_v54 = vsel %vm2919_vm0, %v2903_v19, %v2935_v7  ;;  %v2415_v10 = vmul.f32 0.2, %v2383_v37  ;;  %v2905_v46 = vadd.f32 %v8026_v45, %v7702_v56  ;;  %v2948_v61 = vsel %vm2916_vm6, %v2900_v27, %v2932_v44 }
 0x3a6   : > { %vm2399_vm7 = vcmp.gt.f32.partialorder %v2383_v37, 0.0  ;;  %v2412_v41 = vmul.f32 0.2, %v2380_v59  ;;  %v2902_v35 = vadd.f32 %v8026_v45, %v10444_v63  ;;  %vm2396_vm8 = vcmp.gt.f32.partialorder %v2380_v59, 0.0  ;;  %v10446_v63 = vld [vmem:[#allocation32_spill] sm:$0xff] }
 0x3a7   : > { %2978 = vmax.xlane.f32.xlu1 %v8090_v11  ;;  %1470 = vmax.xlane.f32.xlu0 %v8094_v29  ;;  %v8174_v42 = vsel %vm10294_vm3, %v2951_v54, -1e+30  ;;  %v8178_v19 = vsel %vm796_vm5, %v2948_v61, -1e+30  ;;  %v2431_v56 = vsel %vm2399_vm7, %v2383_v37, %v2415_v10  ;;  %vm2921_vm0 = vcmp.gt.f32.partialorder %v2905_v46, 0.0 }
 0x3a8   : > { %v2937_v47 = vmul.f32 0.2, %v2905_v46  ;;  %v2428_v27 = vsel %vm2396_vm8, %v2380_v59, %v2412_v41  ;;  %v2934_v7 = vmul.f32 0.2, %v2902_v35  ;;  %v2385_v44 = vadd.f32 %v8003_v62, %v10445_v51 }
 0x3a9   : > { %v2382_v54 = vadd.f32 %v8003_v62, %v10446_v63  ;;  %vm2918_vm6 = vcmp.gt.f32.partialorder %v2902_v35, 0.0  ;;  %v8188_v61 = vsel %vm10293_vm14, %v2431_v56, -1e+30  ;;  %v8192_v37 = vsel %vm798_vm15, %v2428_v27, -1e+30 }
 0x3aa   : > { %v2953_v10 = vsel %vm2921_vm0, %v2905_v46, %v2937_v47  ;;  %v2907_v59 = vadd.f32 %v8026_v45, %v10447_v6  ;;  %v2950_v41 = vsel %vm2918_vm6, %v2902_v35, %v2934_v7  ;;  %v2417_v51 = vmul.f32 0.2, %v2385_v44  ;;  %v10449_v47 = vld [vmem:[#allocation40_spill] sm:$0xff] }
 0x3ab   : > { %2460 = vmax.xlane.f32.xlu1 %v8104_v55  ;;  %2454 = vmax.xlane.f32.xlu0 %v8108_v20  ;;  %v2414_v63 = vmul.f32 0.2, %v2382_v54  ;;  %vm2401_vm7 = vcmp.gt.f32.partialorder %v2385_v44, 0.0  ;;  %vm2398_vm8 = vcmp.gt.f32.partialorder %v2382_v54, 0.0  ;;  %v8202_v56 = vsel %vm10293_vm14, %v2953_v10, -1e+30 }
 0x3ac   : > { %v8206_v46 = vsel %vm798_vm15, %v2950_v41, -1e+30  ;;  %vm2923_vm0 = vcmp.gt.f32.partialorder %v2907_v59, 0.0  ;;  %v2939_v6 = vmul.f32 0.2, %v2907_v59  ;;  %v2387_v35 = vadd.f32 %v8003_v62, %v10449_v47 }
 0x3ad   : > { %v2433_v21 = vsel %vm2401_vm7, %v2385_v44, %v2417_v51  ;;  %v2430_v27 = vsel %vm2398_vm8, %v2382_v54, %v2414_v63  ;;  %v2936_v7 = vmul.f32 0.2, %v2904_v2  ;;  %v2384_v10 = vadd.f32 %v8003_v62, %v10450_v33  ;;  %v10453_v51 = vld [vmem:[#allocation41_spill] sm:$0xff] }
 0x3ae   : > { %vm2920_vm6 = vcmp.gt.f32.partialorder %v2904_v2, 0.0  ;;  %vm10451_vm14 = vcmp.gt.f32.partialorder %v7937_v9, 0.0  ;;  %vm10452_vm3 = vcmp.gt.f32.partialorder %v7940_v0, 0.0  ;;  %v2955_v47 = vsel %vm2923_vm0, %v2907_v59, %v2939_v6  ;;  %v10454_v63 = vld [vmem:[#allocation37_spill] sm:$0xff]  ;;  %v10456_v6 = vld [vmem:[#allocation42_spill] sm:$0xff] }
 0x3af   : > { %2982 = vmax.xlane.f32.xlu1 %v8118_v52  ;;  %2976 = vmax.xlane.f32.xlu0 %v8122_v15  ;;  %v8216_v41 = vsel %vm10451_vm14, %v2433_v21, -1e+30  ;;  %v8220_v8 = vsel %vm10452_vm3, %v2430_v27, -1e+30  ;;  %v2419_v36 = vmul.f32 0.2, %v2387_v35  ;;  %v2952_v44 = vsel %vm2920_vm6, %v2904_v2, %v2936_v7 }
 0x3b0   : > { %v2416_v54 = vmul.f32 0.2, %v2384_v10  ;;  %v2909_v33 = vadd.f32 %v8026_v45, %v10453_v51  ;;  %v2906_v49 = vadd.f32 %v8026_v45, %v10454_v63  ;;  %vm2403_vm14 = vcmp.gt.f32.partialorder %v2387_v35, 0.0  ;;  %v10457_v27 = vld [vmem:[#allocation38_spill] sm:$0xff] }
 0x3b1   : > { %vm2400_vm7 = vcmp.gt.f32.partialorder %v2384_v10, 0.0  ;;  %vm10455_vm8 = vcmp.gt.f32.partialorder %v7937_v9, 0.0  ;;  %v8234_v59 = vsel %vm10452_vm3, %v2952_v44, -1e+30  ;;  %v2389_v2 = vadd.f32 %v8003_v62, %v10456_v6 }
 0x3b2   : > { %v8230_v21 = vsel %vm10455_vm8, %v2955_v47, -1e+30  ;;  %v2386_v7 = vadd.f32 %v8003_v62, %v10457_v27  ;;  %v2435_v51 = vsel %vm2403_vm14, %v2387_v35, %v2419_v36  ;;  %v2432_v63 = vsel %vm2400_vm7, %v2384_v10, %v2416_v54  ;;  %v10458_v47 = vld [vmem:[#allocation43_spill] sm:$0xff] }
 0x3b3   : > { %2464 = vmax.xlane.f32.xlu1 %v8132_v32  ;;  %2458 = vmax.xlane.f32.xlu0 %v8136_v31  ;;  %v2941_v34 = vmul.f32 0.2, %v2909_v33  ;;  %v2938_v9 = vmul.f32 0.2, %v2906_v49  ;;  %vm2925_vm0 = vcmp.gt.f32.partialorder %v2909_v33, 0.0  ;;  %vm2922_vm6 = vcmp.gt.f32.partialorder %v2906_v49, 0.0 }
 0x3b4   : > { %v2911_v44 = vadd.f32 %v8026_v45, %v10458_v47  ;;  %vm10459_vm8 = vcmp.gt.f32.partialorder %v7973_v57, 0.0  ;;  %v8250_v6 = vsel %vm802_vm1, %v2432_v63, -1e+30  ;;  %v2421_v27 = vmul.f32 0.2, %v2389_v2 }
 0x3b5   : > { %v8246_v0 = vsel %vm10459_vm8, %v2435_v51, -1e+30  ;;  %v2908_v36 = vadd.f32 %v8026_v45, %v10461_v43  ;;  %v2957_v35 = vsel %vm2925_vm0, %v2909_v33, %v2941_v34  ;;  %v2954_v10 = vsel %vm2922_vm6, %v2906_v49, %v2938_v9  ;;  %vm10462_vm3 = vmmov %vm10459_vm8  ;;  %v10463_v49 = vld [vmem:[#allocation44_spill] sm:$0xff] }
 0x3b6   : > { %10460 = vst [vmem:[#allocation31_spill] sm:$0xff] %v8246_v0  ;;  %vm2405_vm14 = vcmp.gt.f32.partialorder %v2389_v2, 0.0  ;;  %v2418_v54 = vmul.f32 0.2, %v2386_v7  ;;  %vm2402_vm7 = vcmp.gt.f32.partialorder %v2386_v7, 0.0  ;;  %v2388_v9 = vadd.f32 %v8003_v62, %v10463_v49 }
 0x3b7   : > { %2986 = vmax.xlane.f32.xlu1 %v8146_v28  ;;  %2980 = vmax.xlane.f32.xlu0 %v8150_v60  ;;  %v8258_v51 = vsel %vm10462_vm3, %v2957_v35, -1e+30  ;;  %v8262_v63 = vsel %vm802_vm1, %v2954_v10, -1e+30  ;;  %v2437_v47 = vsel %vm2405_vm14, %v2389_v2, %v2421_v27  ;;  %v2940_v34 = vmul.f32 0.2, %v2908_v36 }
 0x3b8   : > { %v2434_v43 = vsel %vm2402_vm7, %v2386_v7, %v2418_v54  ;;  %vm2927_vm0 = vcmp.gt.f32.partialorder %v2911_v44, 0.0  ;;  %vm2924_vm6 = vcmp.gt.f32.partialorder %v2908_v36, 0.0  ;;  %vm10464_vm8 = vcmp.gt.f32.partialorder %v8014_v50, 0.0  ;;  %v10465_v10 = vld [vmem:[#allocation45_spill] sm:$0xff] }
 0x3b9   : > { %v8270_v33 = vsel %vm10464_vm8, %v2437_v47, -1e+30  ;;  %v8274_v35 = vsel %vm804_vm2, %v2434_v43, -1e+30  ;;  %v2956_v7 = vsel %vm2924_vm6, %v2908_v36, %v2940_v34  ;;  %v2420_v27 = vmul.f32 0.2, %v2388_v9  ;;  %vm10466_vm7 = vmmov %vm10464_vm8 }
 0x3ba   : > { %v2910_v62 = vadd.f32 %v8026_v45, %v10465_v10  ;;  %vm2404_vm14 = vcmp.gt.f32.partialorder %v2388_v9, 0.0  ;;  %v8286_v47 = vsel %vm804_vm2, %v2956_v7, -1e+30 }
 0x3bb   : > { %2468 = vmax.xlane.f32.xlu1 %v8160_v3  ;;  %2462 = vmax.xlane.f32.xlu0 %v8164_v23  ;;  %v2436_v43 = vsel %vm2404_vm14, %v2388_v9, %v2420_v27  ;;  %v10470_v9 = vld [vmem:[#allocation52_spill] sm:$0xff] }
 0x3bc   : > { %vm2926_vm3 = vcmp.gt.f32.partialorder %v2910_v62, 0.0 }
 0x3bf   : > { %2990 = vmax.xlane.f32.xlu1 %v8174_v42  ;;  %2984 = vmax.xlane.f32.xlu0 %v8178_v19 }
 0x3c3   : > { %2472 = vmax.xlane.f32.xlu1 %v8188_v61  ;;  %2466 = vmax.xlane.f32.xlu0 %v8192_v37 }
 0x3c7   : > { %2994 = vmax.xlane.f32.xlu1 %v8202_v56  ;;  %2988 = vmax.xlane.f32.xlu0 %v8206_v46 }
 0x3cb   : > { %2476 = vmax.xlane.f32.xlu1 %v8216_v41  ;;  %2470 = vmax.xlane.f32.xlu0 %v8220_v8 }
 0x3cf   : > { %2998 = vmax.xlane.f32.xlu1 %v8230_v21  ;;  %2992 = vmax.xlane.f32.xlu0 %v8234_v59 }
 0x3d3   : > { %2480 = vmax.xlane.f32.xlu1 %v8246_v0  ;;  %2474 = vmax.xlane.f32.xlu0 %v8250_v6  ;;  %v2943_v0 = vmul.f32 0.2, %v2911_v44 }
 0x3d5   : > { %v2959_v2 = vsel %vm2927_vm0, %v2911_v44, %v2943_v0  ;;  %v2942_v0 = vmul.f32 0.2, %v2910_v62  ;;  %v8292_v44 = vsel %vm806_vm11, %v2436_v43, -1e+30 }
 0x3d6   : > { %v8282_v54 = vsel %vm10466_vm7, %v2959_v2, -1e+30  ;;  %v10469_v2 = vld [vmem:[#allocation51_spill] sm:$0xff] }
 0x3d7   : > { %3002 = vmax.xlane.f32.xlu1 %v8258_v51  ;;  %2996 = vmax.xlane.f32.xlu0 %v8262_v63  ;;  %10467 = vst [vmem:[#allocation35_spill] sm:$0xff] %v8282_v54  ;;  %v2958_v45 = vsel %vm2926_vm3, %v2910_v62, %v2942_v0 }
 0x3d8   : > { %v8297_v36 = vsel %vm806_vm11, %v2958_v45, -1e+30 }
 0x3d9   : > { %10468 = vst [vmem:[#allocation32_spill] sm:$0xff] %v8297_v36 }
 0x3db   : > { %2484 = vmax.xlane.f32.xlu1 %v8270_v33  ;;  %2478 = vmax.xlane.f32.xlu0 %v8274_v35 }
 0x3df   : > { %3006 = vmax.xlane.f32.xlu1 %v8282_v54  ;;  %3000 = vmax.xlane.f32.xlu0 %v8286_v47 }
 0x3e3   : > { %2482 = vmax.xlane.f32.xlu0 %v8292_v44 }
 0x3e7   : > { %3004 = vmax.xlane.f32.xlu0 %v8297_v36 }
 0x3f0   : > { %v1806_v34 = vpop.xlane.xlu1 %1805  ;;  %v1804_v49 = vpop.xlane.xlu0 %1803 }
 0x3f1   : > { %v1836_v7 = vsub.f32 %v10469_v2, %v1806_v34  ;;  %v1835_v27 = vsub.f32 %v10470_v9, %v1804_v49 }
 0x3f3   : > { %v1853_v10 = vmul.f32 1.442695, %v1836_v7  ;;  %v1851_v50 = vmul.f32 1.442695, %v1835_v27 }
 0x3f4   : > { %v1810_v57 = vpop.xlane.xlu1 %1809  ;;  %v1443_v43 = vpop.xlane.xlu0 %1442 }
 0x3f5   : > { %6496 = vpow2.f32 %v1853_v10  ;;  %v1474_v13 = vsub.f32 %v7826_v58, %v1443_v43  ;;  %v1838_v48 = vsub.f32 %v10471_v14, %v1810_v57  ;;  %v10472_v14 = vld [vmem:[#allocation59_spill] sm:$0xff]  ;;  %v10473_v43 = vld [vmem:[#allocation58_spill] sm:$0xff] }
 0x3f6   : > { %6498 = vpow2.f32 %v1851_v50 }
 0x3f7   : > { %v1490_v62 = vmul.f32 1.442695, %v1474_v13  ;;  %v1857_v49 = vmul.f32 1.442695, %v1838_v48 }
 0x3f8   : > { %v1449_v0 = vpop.xlane.xlu1 %1448  ;;  %v1445_v45 = vpop.xlane.xlu0 %1444 }
 0x3f9   : > { %v1475_v36 = vsub.f32 %v7848_v16, %v1445_v45  ;;  %6500 = vpow2.f32 %v1490_v62  ;;  %v1477_v7 = vsub.f32 %v7842_v12, %v1449_v0 }
 0x3fb   : > { %v1492_v54 = vmul.f32 1.442695, %v1475_v36  ;;  %v1496_v13 = vmul.f32 1.442695, %v1477_v7 }
 0x3fc   : > { %v1814_v34 = vpop.xlane.xlu1 %1813  ;;  %v1808_v2 = vpop.xlane.xlu0 %1807 }
 0x3fd   : > { %v1837_v9 = vsub.f32 %v7870_v40, %v1808_v2  ;;  %6502 = vpow2.f32 %v1492_v54  ;;  %v1840_v10 = vsub.f32 %v7866_v17, %v1814_v34 }
 0x3fe   : > { %6504 = vpow2.f32 %v1857_v49 }
 0x3ff   : > { %v1855_v27 = vmul.f32 1.442695, %v1837_v9  ;;  %v1861_v54 = vmul.f32 1.442695, %v1840_v10  ;;  %v10474_v9 = vld [vmem:[#allocation63_spill] sm:$0xff] }
 0x400   : > { %v1453_v58 = vpop.xlane.xlu1 %1452  ;;  %v1447_v50 = vpop.xlane.xlu0 %1446 }
 0x401   : > { %v1476_v57 = vsub.f32 %v10472_v14, %v1447_v50  ;;  %6506 = vpow2.f32 %v1855_v27  ;;  %v1479_v62 = vsub.f32 %v10473_v43, %v1453_v58  ;;  %v10475_v14 = vld [vmem:[#allocation62_spill] sm:$0xff] }
 0x402   : > { %v8309_v16 = vpop.eup %6496  ;;  %6508 = vpow2.f32 %v1496_v13 }
 0x403   : > { %v8311_v36 = vpop.eup %6498  ;;  %v1494_v48 = vmul.f32 1.442695, %v1476_v57  ;;  %1885 = vadd.xlane.f32.xlu1 %v8309_v16  ;;  %v1500_v49 = vmul.f32 1.442695, %v1479_v62 }
 0x404   : > { %1883 = vadd.xlane.f32.xlu0 %v8311_v36  ;;  %v1818_v12 = vpop.xlane.xlu1 %1817  ;;  %v1812_v40 = vpop.xlane.xlu0 %1811 }
 0x405   : > { %v1839_v17 = vsub.f32 %v7898_v5, %v1812_v40  ;;  %6510 = vpow2.f32 %v1494_v48  ;;  %v1842_v7 = vsub.f32 %v7894_v38, %v1818_v12 }
 0x406   : > { %v8317_v0 = vpop.eup %6500  ;;  %6512 = vpow2.f32 %v1861_v54 }
 0x407   : > { %v1859_v45 = vmul.f32 1.442695, %v1839_v17  ;;  %v1865_v10 = vmul.f32 1.442695, %v1842_v7 }
 0x408   : > { %1522 = vadd.xlane.f32.xlu0 %v8317_v0  ;;  %v1457_v34 = vpop.xlane.xlu1 %1456  ;;  %v1451_v2 = vpop.xlane.xlu0 %1450 }
 0x409   : > { %v1478_v27 = vsub.f32 %v10474_v9, %v1451_v2  ;;  %6514 = vpow2.f32 %v1859_v45  ;;  %v1481_v57 = vsub.f32 %v10475_v14, %v1457_v34  ;;  %v10476_v45 = vld [vmem:[#allocation67_spill] sm:$0xff] }
 0x40a   : > { %v8322_v50 = vpop.eup %6502  ;;  %6516 = vpow2.f32 %v1500_v49 }
 0x40b   : > { %v1498_v58 = vmul.f32 1.442695, %v1478_v27  ;;  %1524 = vadd.xlane.f32.xlu1 %v8322_v50  ;;  %v8327_v40 = vpop.eup %6504  ;;  %v1504_v62 = vmul.f32 1.442695, %v1481_v57 }
 0x40c   : > { %v1822_v5 = vpop.xlane.xlu1 %1821  ;;  %v1816_v13 = vpop.xlane.xlu0 %1815 }
 0x40d   : > { %v1841_v48 = vsub.f32 %v7934_v22, %v1816_v13  ;;  %6518 = vpow2.f32 %v1498_v58  ;;  %v1844_v17 = vsub.f32 %v7930_v18, %v1822_v5  ;;  %v10477_v58 = vld [vmem:[#allocation66_spill] sm:$0xff] }
 0x40e   : > { %v8329_v38 = vpop.eup %6506  ;;  %6520 = vpow2.f32 %v1865_v10  ;;  %v10478_v10 = vld [vmem:[#allocation69_spill] sm:$0xff] }
 0x40f   : > { %v1863_v12 = vmul.f32 1.442695, %v1841_v48  ;;  %1889 = vadd.xlane.f32.xlu1 %v8327_v40  ;;  %1887 = vadd.xlane.f32.xlu0 %v8329_v38  ;;  %v8335_v2 = vpop.eup %6508  ;;  %v1869_v27 = vmul.f32 1.442695, %v1844_v17 }
 0x410   : > { %v1461_v54 = vpop.xlane.xlu1 %1460  ;;  %v1455_v43 = vpop.xlane.xlu0 %1454 }
 0x411   : > { %v1480_v34 = vsub.f32 %v10476_v45, %v1455_v43  ;;  %6522 = vpow2.f32 %v1863_v12  ;;  %v1483_v13 = vsub.f32 %v10477_v58, %v1461_v54  ;;  %v10481_v45 = vld [vmem:[#allocation73_spill] sm:$0xff] }
 0x412   : > { %v8337_v22 = vpop.eup %6510  ;;  %6524 = vpow2.f32 %v1504_v62  ;;  %v10480_v62 = vld [vmem:[#allocation68_spill] sm:$0xff] }
 0x413   : > { %v1502_v49 = vmul.f32 1.442695, %v1480_v34  ;;  %1528 = vadd.xlane.f32.xlu1 %v8335_v2  ;;  %1526 = vadd.xlane.f32.xlu0 %v8337_v22  ;;  %v8343_v5 = vpop.eup %6512  ;;  %v1508_v43 = vmul.f32 1.442695, %v1483_v13 }
 0x414   : > { %v1826_v7 = vpop.xlane.xlu1 %1825  ;;  %v1820_v9 = vpop.xlane.xlu0 %1819  ;;  %10479 = vst [vmem:[#allocation34_spill] sm:$0xff] %v8343_v5 }
 0x415   : > { %v1843_v18 = vsub.f32 %v10478_v10, %v1820_v9  ;;  %6526 = vpow2.f32 %v1502_v49  ;;  %v1846_v17 = vsub.f32 %v10480_v62, %v1826_v7 }
 0x416   : > { %v8345_v14 = vpop.eup %6514  ;;  %6528 = vpow2.f32 %v1869_v27  ;;  %v10483_v27 = vld [vmem:[#allocation72_spill] sm:$0xff] }
 0x417   : > { %v1867_v57 = vmul.f32 1.442695, %v1843_v18  ;;  %1893 = vadd.xlane.f32.xlu1 %v8343_v5  ;;  %1891 = vadd.xlane.f32.xlu0 %v8345_v14  ;;  %v8351_v34 = vpop.eup %6516  ;;  %v1873_v18 = vmul.f32 1.442695, %v1846_v17  ;;  %v10484_v5 = vld [vmem:[#allocation75_spill] sm:$0xff] }
 0x418   : > { %v1465_v48 = vpop.xlane.xlu1 %1464  ;;  %v1459_v12 = vpop.xlane.xlu0 %1458  ;;  %10482 = vst [vmem:[#allocation33_spill] sm:$0xff] %v8351_v34 }
 0x419   : > { %v1482_v54 = vsub.f32 %v10481_v45, %v1459_v12  ;;  %6530 = vpow2.f32 %v1867_v57  ;;  %v1485_v13 = vsub.f32 %v10483_v27, %v1465_v48 }
 0x41a   : > { %v8353_v9 = vpop.eup %6518  ;;  %6532 = vpow2.f32 %v1508_v43  ;;  %v10486_v43 = vld [vmem:[#allocation74_spill] sm:$0xff] }
 0x41b   : > { %v1506_v49 = vmul.f32 1.442695, %v1482_v54  ;;  %1532 = vadd.xlane.f32.xlu1 %v8351_v34  ;;  %1530 = vadd.xlane.f32.xlu0 %v8353_v9  ;;  %v8359_v62 = vpop.eup %6520  ;;  %v1512_v34 = vmul.f32 1.442695, %v1485_v13 }
 0x41c   : > { %v1830_v58 = vpop.xlane.xlu1 %1829  ;;  %v1824_v10 = vpop.xlane.xlu0 %1823  ;;  %10485 = vst [vmem:[#allocation40_spill] sm:$0xff] %v8359_v62 }
 0x41d   : > { %v1845_v7 = vsub.f32 %v10484_v5, %v1824_v10  ;;  %6534 = vpow2.f32 %v1506_v49  ;;  %v1848_v17 = vsub.f32 %v10486_v43, %v1830_v58 }
 0x41e   : > { %v8361_v12 = vpop.eup %6522  ;;  %6536 = vpow2.f32 %v1873_v18 }
 0x41f   : > { %v1871_v57 = vmul.f32 1.442695, %v1845_v7  ;;  %1897 = vadd.xlane.f32.xlu1 %v8359_v62  ;;  %1895 = vadd.xlane.f32.xlu0 %v8361_v12  ;;  %v8367_v27 = vpop.eup %6524  ;;  %v1877_v62 = vmul.f32 1.442695, %v1848_v17 }
 0x420   : > { %v1469_v45 = vpop.xlane.xlu1 %1468  ;;  %v1463_v54 = vpop.xlane.xlu0 %1462 }
 0x421   : > { %v1484_v48 = vsub.f32 %v8036_v39, %v1463_v54  ;;  %6538 = vpow2.f32 %v1871_v57  ;;  %v1487_v18 = vsub.f32 %v8030_v26, %v1469_v45 }
 0x422   : > { %v8369_v5 = vpop.eup %6526  ;;  %6540 = vpow2.f32 %v1512_v34 }
 0x423   : > { %v1510_v49 = vmul.f32 1.442695, %v1484_v48  ;;  %1536 = vadd.xlane.f32.xlu1 %v8367_v27  ;;  %1534 = vadd.xlane.f32.xlu0 %v8369_v5  ;;  %v8375_v13 = vpop.eup %6528  ;;  %v1516_v48 = vmul.f32 1.442695, %v1487_v18 }
 0x424   : > { %v1834_v10 = vpop.xlane.xlu1 %1833  ;;  %v1828_v7 = vpop.xlane.xlu0 %1827 }
 0x425   : > { %v1847_v58 = vsub.f32 %v8049_v4, %v1828_v7  ;;  %6542 = vpow2.f32 %v1510_v49  ;;  %v1850_v34 = vsub.f32 %v8045_v30, %v1834_v10 }
 0x426   : > { %v8377_v39 = vpop.eup %6530  ;;  %6544 = vpow2.f32 %v1877_v62 }
 0x427   : > { %v1875_v57 = vmul.f32 1.442695, %v1847_v58  ;;  %1901 = vadd.xlane.f32.xlu1 %v8375_v13  ;;  %1899 = vadd.xlane.f32.xlu0 %v8377_v39  ;;  %v8383_v45 = vpop.eup %6532  ;;  %v1881_v58 = vmul.f32 1.442695, %v1850_v34 }
 0x428   : > { %v1473_v54 = vpop.xlane.xlu1 %1472  ;;  %v1467_v43 = vpop.xlane.xlu0 %1466 }
 0x429   : > { %v1486_v26 = vsub.f32 %v8066_v53, %v1467_v43  ;;  %6546 = vpow2.f32 %v1875_v57  ;;  %v1489_v62 = vsub.f32 %v8061_v25, %v1473_v54 }
 0x42a   : > { %v8385_v4 = vpop.eup %6534  ;;  %6548 = vpow2.f32 %v1516_v48 }
 0x42b   : > { %v1514_v17 = vmul.f32 1.442695, %v1486_v26  ;;  %1540 = vadd.xlane.f32.xlu1 %v8383_v45  ;;  %1538 = vadd.xlane.f32.xlu0 %v8385_v4  ;;  %v8391_v10 = vpop.eup %6536  ;;  %v1520_v26 = vmul.f32 1.442695, %v1489_v62 }
 0x42c   : > { %v2457_v49 = vpop.xlane.xlu1 %2456  ;;  %v1832_v7 = vpop.xlane.xlu0 %1831 }
 0x42d   : > { %v1849_v30 = vsub.f32 %v8082_v1, %v1832_v7  ;;  %6550 = vpow2.f32 %v1514_v17  ;;  %v2487_v48 = vsub.f32 %v8078_v24, %v2457_v49 }
 0x42e   : > { %v8393_v53 = vpop.eup %6538  ;;  %6552 = vpow2.f32 %v1881_v58 }
 0x42f   : > { %v1879_v18 = vmul.f32 1.442695, %v1849_v30  ;;  %1905 = vadd.xlane.f32.xlu1 %v8391_v10  ;;  %1903 = vadd.xlane.f32.xlu0 %v8393_v53  ;;  %v8399_v54 = vpop.eup %6540  ;;  %v2504_v30 = vmul.f32 1.442695, %v2487_v48 }
 0x430   : > { %v2979_v57 = vpop.xlane.xlu1 %2978  ;;  %v1471_v43 = vpop.xlane.xlu0 %1470 }
 0x431   : > { %v1488_v25 = vsub.f32 %v8094_v29, %v1471_v43  ;;  %6554 = vpow2.f32 %v1879_v18  ;;  %v3009_v58 = vsub.f32 %v8090_v11, %v2979_v57 }
 0x432   : > { %v8401_v1 = vpop.eup %6542  ;;  %6556 = vpow2.f32 %v1520_v26 }
 0x433   : > { %v1518_v34 = vmul.f32 1.442695, %v1488_v25  ;;  %1544 = vadd.xlane.f32.xlu1 %v8399_v54  ;;  %1542 = vadd.xlane.f32.xlu0 %v8401_v1  ;;  %v8407_v49 = vpop.eup %6544  ;;  %v3026_v25 = vmul.f32 1.442695, %v3009_v58 }
 0x434   : > { %v2461_v17 = vpop.xlane.xlu1 %2460  ;;  %v2455_v7 = vpop.xlane.xlu0 %2454 }
 0x435   : > { %v2486_v24 = vsub.f32 %v8108_v20, %v2455_v7  ;;  %6558 = vpow2.f32 %v1518_v34  ;;  %v2489_v26 = vsub.f32 %v8104_v55, %v2461_v17 }
 0x436   : > { %v8409_v29 = vpop.eup %6546  ;;  %6560 = vpow2.f32 %v2504_v30 }
 0x437   : > { %v2502_v62 = vmul.f32 1.442695, %v2486_v24  ;;  %1909 = vadd.xlane.f32.xlu1 %v8407_v49  ;;  %1907 = vadd.xlane.f32.xlu0 %v8409_v29  ;;  %v8415_v57 = vpop.eup %6548  ;;  %v2508_v24 = vmul.f32 1.442695, %v2489_v26 }
 0x438   : > { %v2983_v18 = vpop.xlane.xlu1 %2982  ;;  %v2977_v43 = vpop.xlane.xlu0 %2976 }
 0x439   : > { %v3008_v11 = vsub.f32 %v8122_v15, %v2977_v43  ;;  %6562 = vpow2.f32 %v2502_v62  ;;  %v3011_v30 = vsub.f32 %v8118_v52, %v2983_v18 }
 0x43a   : > { %v8417_v20 = vpop.eup %6550  ;;  %6564 = vpow2.f32 %v3026_v25 }
 0x43b   : > { %v3024_v48 = vmul.f32 1.442695, %v3008_v11  ;;  %1548 = vadd.xlane.f32.xlu1 %v8415_v57  ;;  %1546 = vadd.xlane.f32.xlu0 %v8417_v20  ;;  %v8423_v17 = vpop.eup %6552  ;;  %v3030_v11 = vmul.f32 1.442695, %v3011_v30 }
 0x43c   : > { %v2465_v34 = vpop.xlane.xlu1 %2464  ;;  %v2459_v7 = vpop.xlane.xlu0 %2458 }
 0x43d   : > { %v2488_v55 = vsub.f32 %v8136_v31, %v2459_v7  ;;  %6566 = vpow2.f32 %v3024_v48  ;;  %v2491_v25 = vsub.f32 %v8132_v32, %v2465_v34 }
 0x43e   : > { %v8425_v15 = vpop.eup %6554  ;;  %6568 = vpow2.f32 %v2508_v24 }
 0x43f   : > { %v2506_v58 = vmul.f32 1.442695, %v2488_v55  ;;  %1913 = vadd.xlane.f32.xlu1 %v8423_v17  ;;  %1911 = vadd.xlane.f32.xlu0 %v8425_v15  ;;  %v8431_v18 = vpop.eup %6556  ;;  %v2512_v55 = vmul.f32 1.442695, %v2491_v25 }
 0x440   : > { %v2987_v62 = vpop.xlane.xlu1 %2986  ;;  %v2981_v43 = vpop.xlane.xlu0 %2980 }
 0x441   : > { %v3010_v52 = vsub.f32 %v8150_v60, %v2981_v43  ;;  %6570 = vpow2.f32 %v2506_v58  ;;  %v3013_v24 = vsub.f32 %v8146_v28, %v2987_v62 }
 0x442   : > { %v8433_v31 = vpop.eup %6558  ;;  %6572 = vpow2.f32 %v3030_v11 }
 0x443   : > { %v3028_v26 = vmul.f32 1.442695, %v3010_v52  ;;  %1552 = vadd.xlane.f32.xlu1 %v8431_v18  ;;  %1550 = vadd.xlane.f32.xlu0 %v8433_v31  ;;  %v8439_v34 = vpop.eup %6560  ;;  %v3034_v52 = vmul.f32 1.442695, %v3013_v24 }
 0x444   : > { %v2469_v48 = vpop.xlane.xlu1 %2468  ;;  %v2463_v7 = vpop.xlane.xlu0 %2462 }
 0x445   : > { %v2490_v32 = vsub.f32 %v8164_v23, %v2463_v7  ;;  %6574 = vpow2.f32 %v3028_v26  ;;  %v2493_v11 = vsub.f32 %v8160_v3, %v2469_v48 }
 0x446   : > { %v8441_v60 = vpop.eup %6562  ;;  %6576 = vpow2.f32 %v2512_v55 }
 0x447   : > { %v2510_v30 = vmul.f32 1.442695, %v2490_v32  ;;  %2536 = vadd.xlane.f32.xlu1 %v8439_v34  ;;  %2534 = vadd.xlane.f32.xlu0 %v8441_v60  ;;  %v8447_v62 = vpop.eup %6564  ;;  %v2516_v32 = vmul.f32 1.442695, %v2493_v11 }
 0x448   : > { %v2991_v58 = vpop.xlane.xlu1 %2990  ;;  %v2985_v43 = vpop.xlane.xlu0 %2984 }
 0x449   : > { %v3012_v28 = vsub.f32 %v8178_v19, %v2985_v43  ;;  %6578 = vpow2.f32 %v2510_v30  ;;  %v3015_v55 = vsub.f32 %v8174_v42, %v2991_v58 }
 0x44a   : > { %v8449_v23 = vpop.eup %6566  ;;  %6580 = vpow2.f32 %v3034_v52 }
 0x44b   : > { %v3032_v25 = vmul.f32 1.442695, %v3012_v28  ;;  %3058 = vadd.xlane.f32.xlu1 %v8447_v62  ;;  %3056 = vadd.xlane.f32.xlu0 %v8449_v23  ;;  %v8455_v48 = vpop.eup %6568  ;;  %v3038_v28 = vmul.f32 1.442695, %v3015_v55 }
 0x44c   : > { %v2473_v26 = vpop.xlane.xlu1 %2472  ;;  %v2467_v7 = vpop.xlane.xlu0 %2466 }
 0x44d   : > { %v2492_v3 = vsub.f32 %v8192_v37, %v2467_v7  ;;  %6582 = vpow2.f32 %v3032_v25  ;;  %v2495_v52 = vsub.f32 %v8188_v61, %v2473_v26 }
 0x44e   : > { %v8457_v19 = vpop.eup %6570  ;;  %6584 = vpow2.f32 %v2516_v32 }
 0x44f   : > { %10487 = vst [vmem:[#allocation36_spill] sm:$0xff] %v8457_v19  ;;  %v2514_v24 = vmul.f32 1.442695, %v2492_v3  ;;  %2540 = vadd.xlane.f32.xlu1 %v8455_v48  ;;  %2538 = vadd.xlane.f32.xlu0 %v8457_v19  ;;  %v8463_v58 = vpop.eup %6572  ;;  %v2520_v3 = vmul.f32 1.442695, %v2495_v52 }
 0x450   : > { %v2995_v30 = vpop.xlane.xlu1 %2994  ;;  %v2989_v43 = vpop.xlane.xlu0 %2988  ;;  %10488 = vst [vmem:[#allocation41_spill] sm:$0xff] %v8463_v58 }
 0x451   : > { %v3014_v42 = vsub.f32 %v8206_v46, %v2989_v43  ;;  %6586 = vpow2.f32 %v2514_v24  ;;  %v3017_v32 = vsub.f32 %v8202_v56, %v2995_v30 }
 0x452   : > { %v8465_v37 = vpop.eup %6574  ;;  %6588 = vpow2.f32 %v3038_v28 }
 0x453   : > { %10489 = vst [vmem:[#allocation37_spill] sm:$0xff] %v8465_v37  ;;  %v3036_v11 = vmul.f32 1.442695, %v3014_v42  ;;  %3062 = vadd.xlane.f32.xlu1 %v8463_v58  ;;  %3060 = vadd.xlane.f32.xlu0 %v8465_v37  ;;  %v8471_v26 = vpop.eup %6576  ;;  %v3042_v42 = vmul.f32 1.442695, %v3017_v32 }
 0x454   : > { %v2477_v25 = vpop.xlane.xlu1 %2476  ;;  %v2471_v7 = vpop.xlane.xlu0 %2470  ;;  %10490 = vst [vmem:[#allocation42_spill] sm:$0xff] %v8471_v26 }
 0x455   : > { %v2494_v61 = vsub.f32 %v8220_v8, %v2471_v7  ;;  %6590 = vpow2.f32 %v3036_v11  ;;  %v2497_v28 = vsub.f32 %v8216_v41, %v2477_v25 }
 0x456   : > { %v8473_v46 = vpop.eup %6578  ;;  %6592 = vpow2.f32 %v2520_v3 }
 0x457   : > { %10491 = vst [vmem:[#allocation38_spill] sm:$0xff] %v8473_v46  ;;  %v2518_v55 = vmul.f32 1.442695, %v2494_v61  ;;  %2544 = vadd.xlane.f32.xlu1 %v8471_v26  ;;  %2542 = vadd.xlane.f32.xlu0 %v8473_v46  ;;  %v8479_v30 = vpop.eup %6580  ;;  %v2524_v61 = vmul.f32 1.442695, %v2497_v28  ;;  %v10525_v26 = vld [vmem:[#allocation23_spill] sm:$0xff] }
 0x458   : > { %v2999_v24 = vpop.xlane.xlu1 %2998  ;;  %v2993_v43 = vpop.xlane.xlu0 %2992  ;;  %10492 = vst [vmem:[#allocation43_spill] sm:$0xff] %v8479_v30 }
 0x459   : > { %v3016_v56 = vsub.f32 %v8234_v59, %v2993_v43  ;;  %6594 = vpow2.f32 %v2518_v55  ;;  %v3019_v3 = vsub.f32 %v8230_v21, %v2999_v24 }
 0x45a   : > { %v8481_v8 = vpop.eup %6582  ;;  %6596 = vpow2.f32 %v3042_v42  ;;  %v10496_v42 = vld [vmem:[#allocation31_spill] sm:$0xff] }
 0x45b   : > { %10493 = vst [vmem:[#allocation39_spill] sm:$0xff] %v8481_v8  ;;  %v3040_v52 = vmul.f32 1.442695, %v3016_v56  ;;  %3066 = vadd.xlane.f32.xlu1 %v8479_v30  ;;  %3064 = vadd.xlane.f32.xlu0 %v8481_v8  ;;  %v8487_v25 = vpop.eup %6584  ;;  %v3046_v56 = vmul.f32 1.442695, %v3019_v3 }
 0x45c   : > { %v2481_v11 = vpop.xlane.xlu1 %2480  ;;  %v2475_v7 = vpop.xlane.xlu0 %2474  ;;  %10494 = vst [vmem:[#allocation44_spill] sm:$0xff] %v8487_v25 }
 0x45d   : > { %v2496_v41 = vsub.f32 %v8250_v6, %v2475_v7  ;;  %6598 = vpow2.f32 %v3040_v52  ;;  %v2499_v28 = vsub.f32 %v10496_v42, %v2481_v11 }
 0x45e   : > { %v8489_v59 = vpop.eup %6586  ;;  %6600 = vpow2.f32 %v2524_v61 }
 0x45f   : > { %10495 = vst [vmem:[#allocation45_spill] sm:$0xff] %v8489_v59  ;;  %v2522_v32 = vmul.f32 1.442695, %v2496_v41  ;;  %2548 = vadd.xlane.f32.xlu1 %v8487_v25  ;;  %2546 = vadd.xlane.f32.xlu0 %v8489_v59  ;;  %v8495_v24 = vpop.eup %6588  ;;  %v2528_v41 = vmul.f32 1.442695, %v2499_v28 }
 0x460   : > { %v3003_v55 = vpop.xlane.xlu1 %3002  ;;  %v2997_v43 = vpop.xlane.xlu0 %2996  ;;  %10497 = vst [vmem:[#allocation51_spill] sm:$0xff] %v8495_v24 }
 0x461   : > { %v3018_v21 = vsub.f32 %v8262_v63, %v2997_v43  ;;  %6602 = vpow2.f32 %v2522_v32  ;;  %v3021_v61 = vsub.f32 %v8258_v51, %v3003_v55 }
 0x462   : > { %v8497_v6 = vpop.eup %6590  ;;  %6604 = vpow2.f32 %v3046_v56 }
 0x463   : > { %10498 = vst [vmem:[#allocation52_spill] sm:$0xff] %v8497_v6  ;;  %v3044_v52 = vmul.f32 1.442695, %v3018_v21  ;;  %3070 = vadd.xlane.f32.xlu1 %v8495_v24  ;;  %3068 = vadd.xlane.f32.xlu0 %v8497_v6  ;;  %v8503_v42 = vpop.eup %6592  ;;  %v3050_v21 = vmul.f32 1.442695, %v3021_v61 }
 0x464   : > { %v2479_v7 = vpop.xlane.xlu0 %2478  ;;  %v2485_v3 = vpop.xlane.xlu1 %2484  ;;  %10499 = vst [vmem:[#allocation53_spill] sm:$0xff] %v8503_v42 }
 0x465   : > { %v2498_v11 = vsub.f32 %v8274_v35, %v2479_v7  ;;  %6606 = vpow2.f32 %v3044_v52  ;;  %v2501_v51 = vsub.f32 %v8270_v33, %v2485_v3 }
 0x466   : > { %v8505_v63 = vpop.eup %6594  ;;  %6608 = vpow2.f32 %v2528_v41 }
 0x467   : > { %10500 = vst [vmem:[#allocation59_spill] sm:$0xff] %v8505_v63  ;;  %v2526_v32 = vmul.f32 1.442695, %v2498_v11  ;;  %2552 = vadd.xlane.f32.xlu1 %v8503_v42  ;;  %2550 = vadd.xlane.f32.xlu0 %v8505_v63  ;;  %v8510_v28 = vpop.eup %6596  ;;  %v10504_v11 = vld [vmem:[#allocation35_spill] sm:$0xff] }
 0x468   : > { %v3001_v43 = vpop.xlane.xlu0 %3000  ;;  %10501 = vst [vmem:[#allocation58_spill] sm:$0xff] %v8510_v28  ;;  %v3007_v55 = vpop.xlane.xlu1 %3006 }
 0x469   : > { %v3020_v56 = vsub.f32 %v8286_v47, %v3001_v43  ;;  %6610 = vpow2.f32 %v2526_v32  ;;  %v2532_v47 = vmul.f32 1.442695, %v2501_v51  ;;  %v3023_v43 = vsub.f32 %v10504_v11, %v3007_v55 }
 0x46a   : > { %v8513_v35 = vpop.eup %6598  ;;  %6612 = vpow2.f32 %v3050_v21 }
 0x46b   : > { %10502 = vst [vmem:[#allocation63_spill] sm:$0xff] %v8513_v35  ;;  %v3048_v52 = vmul.f32 1.442695, %v3020_v56  ;;  %3074 = vadd.xlane.f32.xlu1 %v8510_v28  ;;  %3072 = vadd.xlane.f32.xlu0 %v8513_v35  ;;  %v8518_v61 = vpop.eup %6600  ;;  %v10506_v56 = vld [vmem:[#allocation32_spill] sm:$0xff] }
 0x46c   : > { %v2483_v7 = vpop.xlane.xlu0 %2482  ;;  %10503 = vst [vmem:[#allocation62_spill] sm:$0xff] %v8518_v61 }
 0x46d   : > { %v2500_v41 = vsub.f32 %v8292_v44, %v2483_v7  ;;  %6614 = vpow2.f32 %v3048_v52  ;;  %v3054_v44 = vmul.f32 1.442695, %v3023_v43 }
 0x46e   : > { %v8521_v33 = vpop.eup %6602 }
 0x46f   : > { %10505 = vst [vmem:[#allocation67_spill] sm:$0xff] %v8521_v33  ;;  %v2530_v3 = vmul.f32 1.442695, %v2500_v41  ;;  %2556 = vadd.xlane.f32.xlu1 %v8518_v61  ;;  %2554 = vadd.xlane.f32.xlu0 %v8521_v33  ;;  %v8526_v21 = vpop.eup %6604 }
 0x470   : > { %v3005_v32 = vpop.xlane.xlu0 %3004  ;;  %10507 = vst [vmem:[#allocation66_spill] sm:$0xff] %v8526_v21 }
 0x471   : > { %6616 = vpow2.f32 %v2530_v3  ;;  %v3022_v35 = vsub.f32 %v10506_v56, %v3005_v32 }
 0x472   : > { %6618 = vpow2.f32 %v2532_v47  ;;  %v8528_v7 = vpop.eup %6606 }
 0x473   : > { %10508 = vst [vmem:[#allocation69_spill] sm:$0xff] %v8528_v7  ;;  %v3052_v51 = vmul.f32 1.442695, %v3022_v35  ;;  %3078 = vadd.xlane.f32.xlu1 %v8526_v21  ;;  %3076 = vadd.xlane.f32.xlu0 %v8528_v7  ;;  %v8532_v55 = vpop.eup %6608 }
 0x474   : > { %10509 = vst [vmem:[#allocation68_spill] sm:$0xff] %v8532_v55 }
 0x475   : > { %6620 = vpow2.f32 %v3052_v51 }
 0x476   : > { %6622 = vpow2.f32 %v3054_v44  ;;  %v8534_v52 = vpop.eup %6610 }
 0x477   : > { %10510 = vst [vmem:[#allocation73_spill] sm:$0xff] %v8534_v52  ;;  %2560 = vadd.xlane.f32.xlu1 %v8532_v55  ;;  %2558 = vadd.xlane.f32.xlu0 %v8534_v52  ;;  %v8538_v41 = vpop.eup %6612 }
 0x478   : > { %10511 = vst [vmem:[#allocation72_spill] sm:$0xff] %v8538_v41 }
 0x47a   : > { %v8540_v47 = vpop.eup %6614 }
 0x47b   : > { %10512 = vst [vmem:[#allocation75_spill] sm:$0xff] %v8540_v47  ;;  %3082 = vadd.xlane.f32.xlu1 %v8538_v41  ;;  %3080 = vadd.xlane.f32.xlu0 %v8540_v47 }
 0x47e   : > { %v8544_v35 = vpop.eup %6616 }
 0x47f   : > { %10513 = vst [vmem:[#allocation74_spill] sm:$0xff] %v8544_v35  ;;  %v8546_v11 = vpop.eup %6618  ;;  %2562 = vadd.xlane.f32.xlu0 %v8544_v35 }
 0x480   : > { %10514 = vst [vmem:[#allocation31_spill] sm:$0xff] %v8546_v11  ;;  %2564 = vadd.xlane.f32.xlu1 %v8546_v11 }
 0x482   : > { %v8550_v43 = vpop.eup %6620 }
 0x483   : > { %10515 = vst [vmem:[#allocation35_spill] sm:$0xff] %v8550_v43  ;;  %v8552_v3 = vpop.eup %6622  ;;  %3084 = vadd.xlane.f32.xlu0 %v8550_v43 }
 0x484   : > { %10516 = vst [vmem:[#allocation32_spill] sm:$0xff] %v8552_v3  ;;  %3086 = vadd.xlane.f32.xlu1 %v8552_v3 }
 0x48c   : > { %v1886_v32 = vpop.xlane.xlu1 %1885 }
 0x48d   : > { %6624 = vrcp.f32 %v1886_v32  ;;  %v1884_v56 = vpop.xlane.xlu0 %1883 }
 0x48e   : > { %6626 = vrcp.f32 %v1884_v56 }
 0x491   : > { %v1523_v44 = vpop.xlane.xlu0 %1522 }
 0x492   : > { %6628 = vrcp.f32 %v1523_v44 }
 0x494   : > { %v1525_v51 = vpop.xlane.xlu1 %1524 }
 0x495   : > { %6630 = vrcp.f32 %v1525_v51 }
 0x498   : > { %v1890_v47 = vpop.xlane.xlu1 %1889  ;;  %v1888_v11 = vpop.xlane.xlu0 %1887 }
 0x499   : > { %6632 = vrcp.f32 %v1890_v47 }
 0x49a   : > { %v6625_v41 = vpop.eup %6624  ;;  %6634 = vrcp.f32 %v1888_v11 }
 0x49b   : > { %v6627_v35 = vpop.eup %6626  ;;  %v1932_v52 = vmul.f32 %v6625_v41, %v1886_v32 }
 0x49c   : > { %v1931_v55 = vmul.f32 %v6627_v35, %v1884_v56  ;;  %v1529_v3 = vpop.xlane.xlu1 %1528  ;;  %v1527_v21 = vpop.xlane.xlu0 %1526 }
 0x49d   : > { %v1948_v7 = vsub.f32 2.0, %v1932_v52  ;;  %6636 = vrcp.f32 %v1529_v3 }
 0x49e   : > { %v1947_v43 = vsub.f32 2.0, %v1931_v55  ;;  %6638 = vrcp.f32 %v1527_v21 }
 0x49f   : > { %v6629_v33 = vpop.eup %6628  ;;  %v1964_v61 = vmul.f32 %v6625_v41, %v1948_v7 }
 0x4a0   : > { %v1570_v28 = vmul.f32 %v6629_v33, %v1523_v44  ;;  %v1963_v63 = vmul.f32 %v6627_v35, %v1947_v43  ;;  %v8557_v6 = vpop.xlane.xlu1 %1893  ;;  %v8559_v24 = vpop.xlane.xlu0 %1891 }
 0x4a1   : > { %v1980_v42 = vmul.f32 %v8309_v16, %v1964_v61  ;;  %6640 = vrcp.f32 %v8557_v6  ;;  %v10517_v16 = vld [vmem:[#allocation26_spill] sm:$0xff]  ;;  %v10518_v61 = vld [vmem:[#allocation27_spill] sm:$0xff] }
 0x4a2   : > { %v1586_v59 = vsub.f32 2.0, %v1570_v28  ;;  %v1979_v52 = vmul.f32 %v8311_v36, %v1963_v63  ;;  %v6631_v32 = vpop.eup %6630  ;;  %6642 = vrcp.f32 %v8559_v24  ;;  %v2665_v43 = vmul.f32 %v10518_v61, %v10517_v16  ;;  %v10519_v28 = vld [vmem:[#allocation28_spill] sm:$0xff] }
 0x4a3   : > { %v1571_v55 = vmul.f32 %v6631_v32, %v1525_v51  ;;  %v2661_v37 = vmul.f32 %v10518_v61, %v10525_v26 }
 0x4a4   : > { %6030 = vmatprep.mubr.f32.mxu0 %v1979_v52  ;;  %v1602_v7 = vmul.f32 %v6629_v33, %v1586_v59  ;;  %v8564_v41 = vpop.xlane.xlu1 %1532  ;;  %v8566_v35 = vpop.xlane.xlu0 %1530  ;;  %v10520_v59 = vld [vmem:[#allocation24_spill] sm:$0xff] }
 0x4a5   : > { %6031 = vmatmul.mubr.f32.vlgmr.msra.gmra.mxu0 %v1980_v42  ;;  %v1587_v56 = vsub.f32 2.0, %v1571_v55  ;;  %6644 = vrcp.f32 %v8564_v41  ;;  %v2664_v33 = vmul.f32 %v10520_v59, %v10518_v61 }
 0x4a6   : > { %6111 = vmatpush3.msra.mxu0 %v10519_v28  ;;  %v1618_v36 = vmul.f32 %v8317_v0, %v1602_v7  ;;  %v6633_v63 = vpop.eup %6632  ;;  %6646 = vrcp.f32 %v8566_v35  ;;  %v10521_v28 = vld [vmem:[#allocation25_spill] sm:$0xff] }
 0x4a7   : > { %6112 = vmatprep.subr.mxu0 %v2665_v43  ;;  %v6635_v42 = vpop.eup %6634  ;;  %v1603_v44 = vmul.f32 %v6631_v32, %v1587_v56  ;;  %v1934_v51 = vmul.f32 %v6633_v63, %v1890_v47  ;;  %v2663_v0 = vmul.f32 %v10518_v61, %v10521_v28  ;;  %v10522_v47 = vld [vmem:[#allocation22_spill] sm:$0xff] }
 0x4a8   : > { %6113 = vmatpush3.msra.mxu0 %v2665_v43  ;;  %6086 = vmatprep.mubr.f32.mxu1 %v1618_v36  ;;  %v1933_v52 = vmul.f32 %v6635_v42, %v1888_v11  ;;  %v8576_v55 = vpop.xlane.xlu1 %1897  ;;  %v8578_v25 = vpop.xlane.xlu0 %1895  ;;  %v2662_v11 = vmul.f32 %v10522_v47, %v10518_v61  ;;  %v10523_v36 = vld [vmem:[#allocation29_spill] sm:$0xff] }
 0x4a9   : > { %6114 = vmatprep.subr.mxu0 %v2664_v33  ;;  %v1619_v7 = vmul.f32 %v8322_v50, %v1603_v44  ;;  %v1950_v8 = vsub.f32 2.0, %v1934_v51  ;;  %6648 = vrcp.f32 %v8576_v55  ;;  %v3187_v46 = vmul.f32 %v10523_v36, %v10517_v16  ;;  %v10524_v51 = vld [vmem:[#allocation30_spill] sm:$0xff] }
 0x4aa   : > { %6115 = vmatpush3.msra.mxu0 %v2664_v33  ;;  %v6637_v30 = vpop.eup %6636  ;;  %v1949_v32 = vsub.f32 2.0, %v1933_v52  ;;  %6650 = vrcp.f32 %v8578_v25 }
 0x4ab   : > { %6116 = vmatprep.subr.mxu0 %v2663_v0  ;;  %v6639_v43 = vpop.eup %6638  ;;  %v1573_v56 = vmul.f32 %v6637_v30, %v1529_v3  ;;  %6087 = vmatmul.mubr.f32.vlgmr.msra.gmra.mxu1 %v1619_v7  ;;  %v1966_v50 = vmul.f32 %v6633_v63, %v1950_v8  ;;  %v3186_v8 = vmul.f32 %v10520_v59, %v10523_v36 }
 0x4ac   : > { %6117 = vmatpush3.msra.mxu0 %v2663_v0  ;;  %v1572_v44 = vmul.f32 %v6639_v43, %v1527_v21  ;;  %6167 = vmatpush3.msra.mxu1 %v10524_v51  ;;  %v8590_v33 = vpop.xlane.xlu1 %1536  ;;  %v8592_v52 = vpop.xlane.xlu0 %1534  ;;  %v1965_v58 = vmul.f32 %v6635_v42, %v1949_v32  ;;  %v10526_v42 = vld [vmem:[#allocation20_spill] sm:$0xff] }
 0x4ad   : > { %6118 = vmatprep.subr.mxu0 %v2662_v11  ;;  %v1589_v19 = vsub.f32 2.0, %v1573_v56  ;;  %6652 = vrcp.f32 %v8590_v33  ;;  %6168 = vmatprep.subr.mxu1 %v3187_v46  ;;  %v1982_v21 = vmul.f32 %v8327_v40, %v1966_v50  ;;  %v2660_v0 = vmul.f32 %v10526_v42, %v10518_v61 }
 0x4ae   : > { %6119 = vmatpush3.msra.mxu0 %v2662_v11  ;;  %v6641_v3 = vpop.eup %6640  ;;  %v1588_v16 = vsub.f32 2.0, %v1572_v44  ;;  %6654 = vrcp.f32 %v8592_v52  ;;  %6169 = vmatpush3.msra.mxu1 %v3187_v46  ;;  %v1981_v63 = vmul.f32 %v8329_v38, %v1965_v58  ;;  %v3185_v46 = vmul.f32 %v10523_v36, %v10521_v28 }
 0x4af   : > { %6120 = vmatprep.subr.mxu0 %v2661_v37  ;;  %v6643_v7 = vpop.eup %6642  ;;  %v1605_v32 = vmul.f32 %v6637_v30, %v1589_v19  ;;  %v1936_v11 = vmul.f32 %v6641_v3, %v8557_v6  ;;  %6170 = vmatprep.subr.mxu1 %v3186_v8  ;;  %v10527_v19 = vld [vmem:[#allocation21_spill] sm:$0xff]  ;;  %v10528_v30 = vld [vmem:[#allocation18_spill] sm:$0xff]  ;;  %v3184_v28 = vmul.f32 %v10522_v47, %v10523_v36 }
 0x4b0   : > { %6121 = vmatpush3.msra.mxu0 %v2661_v37  ;;  %v1935_v59 = vmul.f32 %v6643_v7, %v8559_v24  ;;  %6033 = vmatprep.mubr.f32.mxu0 %v1981_v63  ;;  %v8606_v40 = vpop.xlane.xlu1 %1901  ;;  %v8610_v56 = vpop.xlane.xlu0 %1899  ;;  %v1604_v38 = vmul.f32 %v6639_v43, %v1588_v16  ;;  %v2659_v37 = vmul.f32 %v10518_v61, %v10527_v19 }
 0x4b1   : > { %6122 = vmatprep.subr.mxu0 %v2660_v0  ;;  %v1952_v58 = vsub.f32 2.0, %v1936_v11  ;;  %6171 = vmatpush3.msra.mxu1 %v3186_v8  ;;  %6656 = vrcp.f32 %v8606_v40  ;;  %v2658_v24 = vmul.f32 %v10528_v30, %v10518_v61 }
 0x4b2   : > { %6034 = vmatmul.mubr.f32.gmra.mxu0 %v1982_v21  ;;  %v6645_v6 = vpop.eup %6644  ;;  %v1951_v50 = vsub.f32 2.0, %v1935_v59  ;;  %6172 = vmatprep.subr.mxu1 %v3185_v46  ;;  %6658 = vrcp.f32 %v8610_v56  ;;  %v1620_v43 = vmul.f32 %v8337_v22, %v1604_v38  ;;  %v1621_v21 = vmul.f32 %v8335_v2, %v1605_v32  ;;  %v10529_v2 = vld [vmem:[#allocation19_spill] sm:$0xff] }
 0x4b3   : > { %6123 = vmatpush3.msra.mxu0 %v2660_v0  ;;  %v6647_v44 = vpop.eup %6646  ;;  %v1968_v51 = vmul.f32 %v6641_v3, %v1952_v58  ;;  %v1575_v8 = vmul.f32 %v6645_v6, %v8564_v41  ;;  %6173 = vmatpush3.msra.mxu1 %v3185_v46  ;;  %v3183_v22 = vmul.f32 %v10523_v36, %v10525_v26  ;;  %v10530_v26 = vld [vmem:[#allocation34_spill] sm:$0xff] }
 0x4b4   : > { %6124 = vmatprep.subr.mxu0 %v2659_v37  ;;  %v1574_v16 = vmul.f32 %v6647_v44, %v8566_v35  ;;  %6174 = vmatprep.subr.mxu1 %v3184_v28  ;;  %v8624_v63 = vpop.xlane.xlu1 %1540  ;;  %v8626_v0 = vpop.xlane.xlu0 %1538  ;;  %v1967_v11 = vmul.f32 %v6643_v7, %v1951_v50  ;;  %v2657_v35 = vmul.f32 %v10518_v61, %v10529_v2 }
 0x4b5   : > { %6125 = vmatpush3.msra.mxu0 %v2659_v37  ;;  %v1591_v47 = vsub.f32 2.0, %v1575_v8  ;;  %6089 = vmatprep.mubr.f32.mxu1 %v1620_v43  ;;  %6660 = vrcp.f32 %v8624_v63  ;;  %v3182_v46 = vmul.f32 %v10526_v42, %v10523_v36  ;;  %v1984_v38 = vmul.f32 %v10530_v26, %v1968_v51  ;;  %v10531_v37 = vld [vmem:[#allocation16_spill] sm:$0xff] }
 0x4b6   : > { %6126 = vmatprep.subr.mxu0 %v2658_v24  ;;  %v6649_v41 = vpop.eup %6648  ;;  %v1590_v3 = vsub.f32 2.0, %v1574_v16  ;;  %6175 = vmatpush3.msra.mxu1 %v3184_v28  ;;  %6662 = vrcp.f32 %v8626_v0  ;;  %v1983_v32 = vmul.f32 %v8345_v14, %v1967_v11 }
 0x4b7   : > { %6127 = vmatpush3.msra.mxu0 %v2658_v24  ;;  %v6651_v7 = vpop.eup %6650  ;;  %v1938_v59 = vmul.f32 %v6649_v41, %v8576_v55  ;;  %6090 = vmatmul.mubr.f32.gmra.mxu1 %v1621_v21  ;;  %v2656_v24 = vmul.f32 %v10531_v37, %v10518_v61  ;;  %v1607_v55 = vmul.f32 %v6645_v6, %v1591_v47  ;;  %v10532_v6 = vld [vmem:[#allocation17_spill] sm:$0xff] }
 0x4b8   : > { %6176 = vmatprep.subr.mxu1 %v3183_v22  ;;  %v1937_v58 = vmul.f32 %v6651_v7, %v8578_v25  ;;  %6128 = vmatprep.subr.mxu0 %v2657_v35  ;;  %v8642_v50 = vpop.xlane.xlu1 %1905  ;;  %v8644_v14 = vpop.xlane.xlu0 %1903  ;;  %v1606_v28 = vmul.f32 %v6647_v44, %v1590_v3  ;;  %v3181_v25 = vmul.f32 %v10523_v36, %v10527_v19 }
 0x4b9   : > { %6177 = vmatpush3.msra.mxu1 %v3183_v22  ;;  %v1954_v43 = vsub.f32 2.0, %v1938_v59  ;;  %6129 = vmatpush3.msra.mxu0 %v2657_v35  ;;  %6664 = vrcp.f32 %v8642_v50  ;;  %v2655_v44 = vmul.f32 %v10518_v61, %v10532_v6  ;;  %v3180_v47 = vmul.f32 %v10528_v30, %v10523_v36  ;;  %v10533_v35 = vld [vmem:[#allocation14_spill] sm:$0xff] }
 0x4ba   : > { %6178 = vmatprep.subr.mxu1 %v3182_v46  ;;  %v6653_v42 = vpop.eup %6652  ;;  %v1953_v51 = vsub.f32 2.0, %v1937_v58  ;;  %6036 = vmatprep.mubr.f32.mxu0 %v1983_v32  ;;  %6666 = vrcp.f32 %v8644_v14  ;;  %v1622_v16 = vmul.f32 %v8353_v9, %v1606_v28  ;;  %v2654_v32 = vmul.f32 %v10533_v35, %v10518_v61  ;;  %v10534_v9 = vld [vmem:[#allocation33_spill] sm:$0xff] }
 0x4bb   : > { %6130 = vmatprep.subr.mxu0 %v2656_v24  ;;  %v6655_v8 = vpop.eup %6654  ;;  %v1577_v21 = vmul.f32 %v6653_v42, %v8590_v33  ;;  %6179 = vmatpush3.msra.mxu1 %v3182_v46  ;;  %v1970_v33 = vmul.f32 %v6649_v41, %v1954_v43  ;;  %v3179_v41 = vmul.f32 %v10523_v36, %v10529_v2  ;;  %v10536_v2 = vld [vmem:[#allocation40_spill] sm:$0xff] }
 0x4bc   : > { %6037 = vmatmul.mubr.f32.gmra.mxu0 %v1984_v38  ;;  %v1576_v11 = vmul.f32 %v6655_v8, %v8592_v52  ;;  %6180 = vmatprep.subr.mxu1 %v3181_v25  ;;  %v8657_v19 = vpop.xlane.xlu1 %1544  ;;  %v8659_v22 = vpop.xlane.xlu0 %1542  ;;  %v1969_v3 = vmul.f32 %v6651_v7, %v1953_v51  ;;  %v1623_v52 = vmul.f32 %v10534_v9, %v1607_v55  ;;  %v10535_v38 = vld [vmem:[#allocation15_spill] sm:$0xff] }
 0x4bd   : > { %6131 = vmatpush3.msra.mxu0 %v2656_v24  ;;  %6181 = vmatpush3.msra.mxu1 %v3181_v25  ;;  %6668 = vrcp.f32 %v8657_v19  ;;  %v1593_v46 = vsub.f32 2.0, %v1577_v21  ;;  %v2653_v58 = vmul.f32 %v10518_v61, %v10535_v38  ;;  %v3178_v28 = vmul.f32 %v10531_v37, %v10523_v36  ;;  %v10537_v37 = vld [vmem:[#allocation12_spill] sm:$0xff] }
 0x4be   : > { %6132 = vmatprep.subr.mxu0 %v2655_v44  ;;  %v6657_v59 = vpop.eup %6656  ;;  %v1592_v26 = vsub.f32 2.0, %v1576_v11  ;;  %6182 = vmatprep.subr.mxu1 %v3180_v47  ;;  %6670 = vrcp.f32 %v8659_v22  ;;  %v1985_v55 = vmul.f32 %v8361_v12, %v1969_v3  ;;  %v1986_v25 = vmul.f32 %v10536_v2, %v1970_v33  ;;  %v10538_v33 = vld [vmem:[#allocation13_spill] sm:$0xff] }
 0x4bf   : > { %6133 = vmatpush3.msra.mxu0 %v2655_v44  ;;  %v6659_v30 = vpop.eup %6658  ;;  %v1940_v7 = vmul.f32 %v6657_v59, %v8606_v40  ;;  %6092 = vmatprep.mubr.f32.mxu1 %v1622_v16  ;;  %v1609_v44 = vmul.f32 %v6653_v42, %v1593_v46  ;;  %v2652_v12 = vmul.f32 %v10537_v37, %v10518_v61 }
 0x4c0   : > { %6134 = vmatprep.subr.mxu0 %v2654_v32  ;;  %v1939_v24 = vmul.f32 %v6659_v30, %v8610_v56  ;;  %6183 = vmatpush3.msra.mxu1 %v3180_v47  ;;  %v8675_v43 = vpop.xlane.xlu1 %1909  ;;  %v8677_v40 = vpop.xlane.xlu0 %1907  ;;  %v1608_v21 = vmul.f32 %v6655_v8, %v1592_v26  ;;  %v3177_v3 = vmul.f32 %v10523_v36, %v10532_v6 }
 0x4c1   : > { %6135 = vmatpush3.msra.mxu0 %v2654_v32  ;;  %v1956_v51 = vsub.f32 2.0, %v1940_v7  ;;  %6093 = vmatmul.mubr.f32.gmra.mxu1 %v1623_v52  ;;  %6672 = vrcp.f32 %v8675_v43  ;;  %v2651_v8 = vmul.f32 %v10518_v61, %v10538_v33  ;;  %v3175_v7 = vmul.f32 %v10523_v36, %v10535_v38 }
 0x4c2   : > { %6184 = vmatprep.subr.mxu1 %v3179_v41  ;;  %v6661_v56 = vpop.eup %6660  ;;  %v1955_v16 = vsub.f32 2.0, %v1939_v24  ;;  %6136 = vmatprep.subr.mxu0 %v2653_v58  ;;  %6674 = vrcp.f32 %v8677_v40  ;;  %v1624_v6 = vmul.f32 %v8369_v5, %v1608_v21 }
 0x4c3   : > { %6185 = vmatpush3.msra.mxu1 %v3179_v41  ;;  %v6663_v11 = vpop.eup %6662  ;;  %v1579_v47 = vmul.f32 %v6661_v56, %v8624_v63  ;;  %6137 = vmatpush3.msra.mxu0 %v2653_v58  ;;  %v1972_v42 = vmul.f32 %v6657_v59, %v1956_v51  ;;  %v3176_v63 = vmul.f32 %v10533_v35, %v10523_v36 }
 0x4c4   : > { %6186 = vmatprep.subr.mxu1 %v3178_v28  ;;  %v1578_v32 = vmul.f32 %v6663_v11, %v8626_v0  ;;  %6039 = vmatprep.mubr.f32.mxu0 %v1985_v55  ;;  %v8690_v9 = vpop.xlane.xlu1 %1548  ;;  %v8692_v52 = vpop.xlane.xlu0 %1546  ;;  %v1971_v46 = vmul.f32 %v6659_v30, %v1955_v16  ;;  %v1625_v0 = vmul.f32 %v8367_v27, %v1609_v44 }
 0x4c5   : > { %6138 = vmatprep.subr.mxu0 %v2652_v12  ;;  %v1595_v26 = vsub.f32 2.0, %v1579_v47  ;;  %6187 = vmatpush3.msra.mxu1 %v3178_v28  ;;  %6676 = vrcp.f32 %v8690_v9  ;;  %v1988_v27 = vmul.f32 %v8375_v13, %v1972_v42  ;;  %v3173_v44 = vmul.f32 %v10523_v36, %v10538_v33 }
 0x4c6   : > { %6040 = vmatmul.mubr.f32.gmra.mxu0 %v1986_v25  ;;  %v6665_v61 = vpop.eup %6664  ;;  %v1594_v59 = vsub.f32 2.0, %v1578_v32  ;;  %6188 = vmatprep.subr.mxu1 %v3177_v3  ;;  %6678 = vrcp.f32 %v8692_v52  ;;  %v1987_v5 = vmul.f32 %v8377_v39, %v1971_v46 }
 0x4c7   : > { %6139 = vmatpush3.msra.mxu0 %v2652_v12  ;;  %v6667_v30 = vpop.eup %6666  ;;  %v1611_v41 = vmul.f32 %v6661_v56, %v1595_v26  ;;  %v1942_v58 = vmul.f32 %v6665_v61, %v8642_v50  ;;  %6189 = vmatpush3.msra.mxu1 %v3177_v3  ;;  %v3174_v50 = vmul.f32 %v10537_v37, %v10523_v36 }
 0x4c8   : > { %6140 = vmatprep.subr.mxu0 %v2651_v8  ;;  %v1941_v35 = vmul.f32 %v6667_v30, %v8644_v14  ;;  %6190 = vmatprep.subr.mxu1 %v3176_v63  ;;  %v8705_v24 = vpop.xlane.xlu1 %1913  ;;  %v8708_v28 = vpop.xlane.xlu0 %1911  ;;  %v1610_v38 = vmul.f32 %v6663_v11, %v1594_v59 }
 0x4c9   : > { %6141 = vmatpush3.msra.mxu0 %v2651_v8  ;;  %v1958_v55 = vsub.f32 2.0, %v1942_v58  ;;  %6095 = vmatprep.mubr.f32.mxu1 %v1624_v6  ;;  %6680 = vrcp.f32 %v8705_v24  ;;  %v1627_v13 = vmul.f32 %v8383_v45, %v1611_v41 }
 0x4ca   : > { %6191 = vmatpush3.msra.mxu1 %v3176_v63  ;;  %v6669_v39 = vpop.eup %6668  ;;  %v1957_v51 = vsub.f32 2.0, %v1941_v35  ;;  %6682 = vrcp.f32 %v8708_v28  ;;  %v1626_v14 = vmul.f32 %v8385_v4, %v1610_v38  ;;  %6042 = vmatprep.mubr.f32.mxu0 %v1987_v5 }
 0x4cb   : > { %6096 = vmatmul.mubr.f32.gmra.mxu1 %v1625_v0  ;;  %6192 = vmatprep.subr.mxu1 %v3175_v7  ;;  %v6671_v2 = vpop.eup %6670  ;;  %v1974_v25 = vmul.f32 %v6665_v61, %v1958_v55  ;;  %v1581_v21 = vmul.f32 %v6669_v39, %v8657_v19 }
 0x4cc   : > { %6193 = vmatpush3.msra.mxu1 %v3175_v7  ;;  %v1580_v56 = vmul.f32 %v6671_v2, %v8659_v22  ;;  %6043 = vmatmul.mubr.f32.gmra.mxu0 %v1988_v27  ;;  %v8720_v16 = vpop.xlane.xlu1 %1552  ;;  %v8722_v37 = vpop.xlane.xlu0 %1550  ;;  %v1973_v4 = vmul.f32 %v6667_v30, %v1957_v51 }
 0x4cd   : > { %6194 = vmatprep.subr.mxu1 %v3174_v50  ;;  %v1597_v12 = vsub.f32 2.0, %v1581_v21  ;;  %6098 = vmatprep.mubr.f32.mxu1 %v1626_v14  ;;  %6684 = vrcp.f32 %v8720_v16  ;;  %v1990_v45 = vmul.f32 %v8391_v10, %v1974_v25 }
 0x4ce   : > { %6195 = vmatpush3.msra.mxu1 %v3174_v50  ;;  %v6673_v19 = vpop.eup %6672  ;;  %v1596_v11 = vsub.f32 2.0, %v1580_v56  ;;  %6686 = vrcp.f32 %v8722_v37  ;;  %v1989_v36 = vmul.f32 %v8393_v53, %v1973_v4 }
 0x4cf   : > { %6196 = vmatprep.subr.mxu1 %v3173_v44  ;;  %6099 = vmatmul.mubr.f32.gmra.mxu1 %v1627_v13  ;;  %v6675_v22 = vpop.eup %6674  ;;  %v1613_v47 = vmul.f32 %v6669_v39, %v1597_v12  ;;  %v1944_v3 = vmul.f32 %v6673_v19, %v8675_v43 }
 0x4d0   : > { %6197 = vmatpush3.msra.mxu1 %v3173_v44  ;;  %v1943_v33 = vmul.f32 %v6675_v22, %v8677_v40  ;;  %6045 = vmatprep.mubr.f32.mxu0 %v1989_v36  ;;  %v2537_v8 = vpop.xlane.xlu1 %2536  ;;  %v2535_v42 = vpop.xlane.xlu0 %2534  ;;  %v1612_v32 = vmul.f32 %v6671_v2, %v1596_v11 }
 0x4d1   : > { %v1960_v10 = vsub.f32 2.0, %v1944_v3  ;;  %6688 = vrcp.f32 %v2537_v8  ;;  %6046 = vmatmul.mubr.f32.gmra.mxu0 %v1990_v45  ;;  %v1629_v46 = vmul.f32 %v8399_v54, %v1613_v47 }
 0x4d2   : > { %v6677_v26 = vpop.eup %6676  ;;  %v1959_v63 = vsub.f32 2.0, %v1943_v33  ;;  %6690 = vrcp.f32 %v2535_v42  ;;  %v1628_v53 = vmul.f32 %v8401_v1, %v1612_v32 }
 0x4d3   : > { %v6679_v6 = vpop.eup %6678  ;;  %v1976_v61 = vmul.f32 %v6673_v19, %v1960_v10  ;;  %v1583_v43 = vmul.f32 %v6677_v26, %v8690_v9 }
 0x4d4   : > { %v1582_v40 = vmul.f32 %v6679_v6, %v8692_v52  ;;  %6101 = vmatprep.mubr.f32.mxu1 %v1628_v53  ;;  %v3059_v59 = vpop.xlane.xlu1 %3058  ;;  %v3057_v0 = vpop.xlane.xlu0 %3056  ;;  %v1975_v7 = vmul.f32 %v6675_v22, %v1959_v63 }
 0x4d5   : > { %v1599_v30 = vsub.f32 2.0, %v1583_v43  ;;  %6692 = vrcp.f32 %v3059_v59  ;;  %6102 = vmatmul.mubr.f32.gmra.mxu1 %v1629_v46  ;;  %v1992_v54 = vmul.f32 %v8407_v49, %v1976_v61 }
 0x4d6   : > { %v6681_v41 = vpop.eup %6680  ;;  %v1598_v58 = vsub.f32 2.0, %v1582_v40  ;;  %6694 = vrcp.f32 %v3057_v0  ;;  %v1991_v1 = vmul.f32 %v8409_v29, %v1975_v7 }
 0x4d7   : > { %v6683_v5 = vpop.eup %6682  ;;  %v1615_v35 = vmul.f32 %v6677_v26, %v1599_v30  ;;  %v1946_v9 = vmul.f32 %v6681_v41, %v8705_v24 }
 0x4d8   : > { %v1945_v52 = vmul.f32 %v6683_v5, %v8708_v28  ;;  %6048 = vmatprep.mubr.f32.mxu0 %v1991_v1  ;;  %v2541_v27 = vpop.xlane.xlu1 %2540  ;;  %v2539_v38 = vpop.xlane.xlu0 %2538  ;;  %v1614_v55 = vmul.f32 %v6679_v6, %v1598_v58 }
 0x4d9   : > { %v1962_v50 = vsub.f32 2.0, %v1946_v9  ;;  %6696 = vrcp.f32 %v2541_v27  ;;  %6049 = vmatmul.mubr.f32.gmra.mxu0 %v1992_v54  ;;  %v1631_v49 = vmul.f32 %v8415_v57, %v1615_v35 }
 0x4da   : > { %v6685_v39 = vpop.eup %6684  ;;  %v1961_v51 = vsub.f32 2.0, %v1945_v52  ;;  %6698 = vrcp.f32 %v2539_v38  ;;  %v1630_v29 = vmul.f32 %v8417_v20, %v1614_v55 }
 0x4db   : > { %v6687_v14 = vpop.eup %6686  ;;  %v1978_v13 = vmul.f32 %v6681_v41, %v1962_v50  ;;  %v1585_v24 = vmul.f32 %v6685_v39, %v8720_v16 }
 0x4dc   : > { %v1584_v28 = vmul.f32 %v6687_v14, %v8722_v37  ;;  %6104 = vmatprep.mubr.f32.mxu1 %v1630_v29  ;;  %v3063_v2 = vpop.xlane.xlu1 %3062  ;;  %v3061_v25 = vpop.xlane.xlu0 %3060  ;;  %v1977_v21 = vmul.f32 %v6683_v5, %v1961_v51 }
 0x4dd   : > { %v1601_v56 = vsub.f32 2.0, %v1585_v24  ;;  %6700 = vrcp.f32 %v3063_v2  ;;  %6105 = vmatmul.mubr.f32.gmra.mxu1 %v1631_v49  ;;  %v1994_v57 = vmul.f32 %v8423_v17, %v1978_v13 }
 0x4de   : > { %v6689_v44 = vpop.eup %6688  ;;  %v1600_v4 = vsub.f32 2.0, %v1584_v28  ;;  %6702 = vrcp.f32 %v3061_v25  ;;  %v1993_v20 = vmul.f32 %v8425_v15, %v1977_v21  ;;  %v10540_v21 = vld [vmem:[#allocation41_spill] sm:$0xff] }
 0x4df   : > { %v6691_v12 = vpop.eup %6690  ;;  %v1617_v45 = vmul.f32 %v6685_v39, %v1601_v56  ;;  %v2583_v19 = vmul.f32 %v6689_v44, %v2537_v8  ;;  %v10539_v39 = vld [vmem:[#allocation36_spill] sm:$0xff] }
 0x4e0   : > { %v2582_v16 = vmul.f32 %v6691_v12, %v2535_v42  ;;  %6051 = vmatprep.mubr.f32.mxu0 %v1993_v20  ;;  %v2545_v37 = vpop.xlane.xlu1 %2544  ;;  %v2543_v11 = vpop.xlane.xlu0 %2542  ;;  %v1616_v36 = vmul.f32 %v6687_v14, %v1600_v4 }
 0x4e1   : > { %v2599_v22 = vsub.f32 2.0, %v2583_v19  ;;  %6704 = vrcp.f32 %v2545_v37  ;;  %6052 = vmatmul.mubr.f32.gmra.mxu0 %v1994_v57  ;;  %v1633_v47 = vmul.f32 %v8431_v18, %v1617_v45 }
 0x4e2   : > { %v6693_v3 = vpop.eup %6692  ;;  %v2598_v17 = vsub.f32 2.0, %v2582_v16  ;;  %6706 = vrcp.f32 %v2543_v11  ;;  %v1632_v33 = vmul.f32 %v8433_v31, %v1616_v36 }
 0x4e3   : > { %v6695_v32 = vpop.eup %6694  ;;  %v2615_v15 = vmul.f32 %v6689_v44, %v2599_v22  ;;  %v3105_v10 = vmul.f32 %v6693_v3, %v3059_v59  ;;  %v10541_v44 = vld [vmem:[#allocation37_spill] sm:$0xff]  ;;  %v10542_v22 = vld [vmem:[#allocation42_spill] sm:$0xff] }
 0x4e4   : > { %v3104_v46 = vmul.f32 %v6695_v32, %v3057_v0  ;;  %6107 = vmatprep.mubr.f32.mxu1 %v1632_v33  ;;  %v3067_v8 = vpop.xlane.xlu1 %3066  ;;  %v3065_v42 = vpop.xlane.xlu0 %3064  ;;  %v2614_v26 = vmul.f32 %v6691_v12, %v2598_v17  ;;  %v10543_v33 = vld [vmem:[#allocation38_spill] sm:$0xff] }
 0x4e5   : > { %v2631_v63 = vmul.f32 %v8439_v34, %v2615_v15  ;;  %v3121_v53 = vsub.f32 2.0, %v3105_v10  ;;  %6708 = vrcp.f32 %v3067_v8  ;;  %6108 = vmatmul.mubr.f32.gmra.mxu1 %v1633_v47 }
 0x4e6   : > { %v6697_v6 = vpop.eup %6696  ;;  %v3120_v18 = vsub.f32 2.0, %v3104_v46  ;;  %6710 = vrcp.f32 %v3065_v42  ;;  %v2630_v61 = vmul.f32 %v8441_v60, %v2614_v26 }
 0x4e7   : > { %v6699_v43 = vpop.eup %6698  ;;  %v3137_v31 = vmul.f32 %v6693_v3, %v3121_v53  ;;  %v2585_v40 = vmul.f32 %v6697_v6, %v2541_v27 }
 0x4e8   : > { %v2584_v7 = vmul.f32 %v6699_v43, %v2539_v38  ;;  %6142 = vmatprep.mubr.f32.mxu0 %v2630_v61  ;;  %v2549_v59 = vpop.xlane.xlu1 %2548  ;;  %v2547_v0 = vpop.xlane.xlu0 %2546  ;;  %v3136_v30 = vmul.f32 %v6695_v32, %v3120_v18 }
 0x4e9   : > { %v3153_v54 = vmul.f32 %v8447_v62, %v3137_v31  ;;  %v2601_v41 = vsub.f32 2.0, %v2585_v40  ;;  %6712 = vrcp.f32 %v2549_v59  ;;  %6143 = vmatmul.mubr.f32.vlgmr.msra.gmra.mxu0 %v2631_v63  ;;  %v10545_v31 = vld [vmem:[#allocation39_spill] sm:$0xff] }
 0x4ea   : > { %v6701_v34 = vpop.eup %6700  ;;  %v2600_v58 = vsub.f32 2.0, %v2584_v7  ;;  %6714 = vrcp.f32 %v2547_v0  ;;  %v3152_v1 = vmul.f32 %v8449_v23, %v3136_v30 }
 0x4eb   : > { %v6703_v5 = vpop.eup %6702  ;;  %v2617_v60 = vmul.f32 %v6697_v6, %v2601_v41  ;;  %v3107_v35 = vmul.f32 %v6701_v34, %v3063_v2  ;;  %v10544_v6 = vld [vmem:[#allocation43_spill] sm:$0xff] }
 0x4ec   : > { %v3106_v9 = vmul.f32 %v6703_v5, %v3061_v25  ;;  %6198 = vmatprep.mubr.f32.mxu1 %v3152_v1  ;;  %v3071_v52 = vpop.xlane.xlu1 %3070  ;;  %v3069_v27 = vpop.xlane.xlu0 %3068  ;;  %v2616_v38 = vmul.f32 %v6699_v43, %v2600_v58  ;;  %v10546_v1 = vld [vmem:[#allocation44_spill] sm:$0xff] }
 0x4ed   : > { %v3123_v55 = vsub.f32 2.0, %v3107_v35  ;;  %6716 = vrcp.f32 %v3071_v52  ;;  %6199 = vmatmul.mubr.f32.vlgmr.msra.gmra.mxu1 %v3153_v54  ;;  %v2633_v62 = vmul.f32 %v8455_v48, %v2617_v60 }
 0x4ee   : > { %v6705_v50 = vpop.eup %6704  ;;  %v3122_v49 = vsub.f32 2.0, %v3106_v9  ;;  %6718 = vrcp.f32 %v3069_v27  ;;  %v2632_v51 = vmul.f32 %v10539_v39, %v2616_v38  ;;  %v10547_v9 = vld [vmem:[#allocation45_spill] sm:$0xff] }
 0x4ef   : > { %v6707_v29 = vpop.eup %6706  ;;  %v3139_v23 = vmul.f32 %v6701_v34, %v3123_v55  ;;  %v2587_v14 = vmul.f32 %v6705_v50, %v2545_v37 }
 0x4f0   : > { %v2586_v13 = vmul.f32 %v6707_v29, %v2543_v11  ;;  %6145 = vmatprep.mubr.f32.mxu0 %v2632_v51  ;;  %v2553_v24 = vpop.xlane.xlu1 %2552  ;;  %v2551_v28 = vpop.xlane.xlu0 %2550  ;;  %v3138_v2 = vmul.f32 %v6703_v5, %v3122_v49 }
 0x4f1   : > { %v2603_v25 = vsub.f32 2.0, %v2587_v14  ;;  %6720 = vrcp.f32 %v2553_v24  ;;  %6146 = vmatmul.mubr.f32.gmra.mxu0 %v2633_v62  ;;  %v3155_v56 = vmul.f32 %v10540_v21, %v3139_v23 }
 0x4f2   : > { %v6709_v57 = vpop.eup %6708  ;;  %v2602_v48 = vsub.f32 2.0, %v2586_v13  ;;  %6722 = vrcp.f32 %v2551_v28  ;;  %v3154_v4 = vmul.f32 %v10541_v44, %v3138_v2  ;;  %v10549_v2 = vld [vmem:[#allocation52_spill] sm:$0xff] }
 0x4f3   : > { %v6711_v20 = vpop.eup %6710  ;;  %v2619_v12 = vmul.f32 %v6705_v50, %v2603_v25  ;;  %v3109_v45 = vmul.f32 %v6709_v57, %v3067_v8 }
 0x4f4   : > { %v3108_v19 = vmul.f32 %v6711_v20, %v3065_v42  ;;  %6201 = vmatprep.mubr.f32.mxu1 %v3154_v4  ;;  %v3075_v16 = vpop.xlane.xlu1 %3074  ;;  %v3073_v37 = vpop.xlane.xlu0 %3072  ;;  %v2618_v11 = vmul.f32 %v6707_v29, %v2602_v48  ;;  %v10548_v29 = vld [vmem:[#allocation51_spill] sm:$0xff] }
 0x4f5   : > { %v3125_v36 = vsub.f32 2.0, %v3109_v45  ;;  %6724 = vrcp.f32 %v3075_v16  ;;  %6202 = vmatmul.mubr.f32.gmra.mxu1 %v3155_v56  ;;  %v2635_v47 = vmul.f32 %v10542_v22, %v2619_v12 }
 0x4f6   : > { %v6713_v3 = vpop.eup %6712  ;;  %v3124_v17 = vsub.f32 2.0, %v3108_v19  ;;  %6726 = vrcp.f32 %v3073_v37  ;;  %v2634_v32 = vmul.f32 %v10543_v33, %v2618_v11  ;;  %v10551_v11 = vld [vmem:[#allocation59_spill] sm:$0xff] }
 0x4f7   : > { %v6715_v15 = vpop.eup %6714  ;;  %v3141_v10 = vmul.f32 %v6709_v57, %v3125_v36  ;;  %v2589_v46 = vmul.f32 %v6713_v3, %v2549_v59 }
 0x4f8   : > { %v2588_v26 = vmul.f32 %v6715_v15, %v2547_v0  ;;  %6148 = vmatprep.mubr.f32.mxu0 %v2634_v32  ;;  %v2557_v8 = vpop.xlane.xlu1 %2556  ;;  %v2555_v42 = vpop.xlane.xlu0 %2554  ;;  %v3140_v63 = vmul.f32 %v6711_v20, %v3124_v17  ;;  %v10550_v20 = vld [vmem:[#allocation53_spill] sm:$0xff] }
 0x4f9   : > { %v2605_v53 = vsub.f32 2.0, %v2589_v46  ;;  %6728 = vrcp.f32 %v2557_v8  ;;  %6149 = vmatmul.mubr.f32.gmra.mxu0 %v2635_v47  ;;  %v3157_v18 = vmul.f32 %v10544_v6, %v3141_v10 }
 0x4fa   : > { %v6717_v61 = vpop.eup %6716  ;;  %v2604_v43 = vsub.f32 2.0, %v2588_v26  ;;  %6730 = vrcp.f32 %v2555_v42  ;;  %v3156_v40 = vmul.f32 %v10545_v31, %v3140_v63  ;;  %v10553_v63 = vld [vmem:[#allocation63_spill] sm:$0xff] }
 0x4fb   : > { %v6719_v7 = vpop.eup %6718  ;;  %v2621_v30 = vmul.f32 %v6713_v3, %v2605_v53  ;;  %v3111_v54 = vmul.f32 %v6717_v61, %v3071_v52 }
 0x4fc   : > { %v3110_v41 = vmul.f32 %v6719_v7, %v3069_v27  ;;  %6204 = vmatprep.mubr.f32.mxu1 %v3156_v40  ;;  %v3079_v59 = vpop.xlane.xlu1 %3078  ;;  %v3077_v0 = vpop.xlane.xlu0 %3076  ;;  %v2620_v34 = vmul.f32 %v6715_v15, %v2604_v43  ;;  %v10552_v15 = vld [vmem:[#allocation58_spill] sm:$0xff] }
 0x4fd   : > { %v3127_v58 = vsub.f32 2.0, %v3111_v54  ;;  %6732 = vrcp.f32 %v3079_v59  ;;  %6205 = vmatmul.mubr.f32.gmra.mxu1 %v3157_v18  ;;  %v2637_v5 = vmul.f32 %v10546_v1, %v2621_v30 }
 0x4fe   : > { %v6721_v60 = vpop.eup %6720  ;;  %v3126_v35 = vsub.f32 2.0, %v3110_v41  ;;  %6734 = vrcp.f32 %v3077_v0  ;;  %v2636_v38 = vmul.f32 %v10547_v9, %v2620_v34  ;;  %v10555_v34 = vld [vmem:[#allocation67_spill] sm:$0xff]  ;;  %v10556_v9 = vld [vmem:[#allocation66_spill] sm:$0xff] }
 0x4ff   : > { %v6723_v55 = vpop.eup %6722  ;;  %v3143_v62 = vmul.f32 %v6717_v61, %v3127_v58  ;;  %v2591_v50 = vmul.f32 %v6721_v60, %v2553_v24 }
 0x500   : > { %v2590_v49 = vmul.f32 %v6723_v55, %v2551_v28  ;;  %6151 = vmatprep.mubr.f32.mxu0 %v2636_v38  ;;  %v2561_v52 = vpop.xlane.xlu1 %2560  ;;  %v2559_v27 = vpop.xlane.xlu0 %2558  ;;  %v3142_v39 = vmul.f32 %v6719_v7, %v3126_v35  ;;  %v10554_v7 = vld [vmem:[#allocation62_spill] sm:$0xff] }
 0x501   : > { %v2607_v51 = vsub.f32 2.0, %v2591_v50  ;;  %6736 = vrcp.f32 %v2561_v52  ;;  %6152 = vmatmul.mubr.f32.gmra.mxu0 %v2637_v5  ;;  %v3159_v23 = vmul.f32 %v10548_v29, %v3143_v62  ;;  %v10557_v50 = vld [vmem:[#allocation69_spill] sm:$0xff] }
 0x502   : > { %v6725_v14 = vpop.eup %6724  ;;  %v2606_v13 = vsub.f32 2.0, %v2590_v49  ;;  %6738 = vrcp.f32 %v2559_v27  ;;  %v3158_v25 = vmul.f32 %v10549_v2, %v3142_v39 }
 0x503   : > { %v6727_v21 = vpop.eup %6726  ;;  %v2623_v56 = vmul.f32 %v6721_v60, %v2607_v51  ;;  %v3113_v57 = vmul.f32 %v6725_v14, %v3075_v16 }
 0x504   : > { %v3112_v48 = vmul.f32 %v6727_v21, %v3073_v37  ;;  %6207 = vmatprep.mubr.f32.mxu1 %v3158_v25  ;;  %v3083_v24 = vpop.xlane.xlu1 %3082  ;;  %v3081_v28 = vpop.xlane.xlu0 %3080  ;;  %v2622_v44 = vmul.f32 %v6723_v55, %v2606_v13 }
 0x505   : > { %v3129_v4 = vsub.f32 2.0, %v3113_v57  ;;  %6740 = vrcp.f32 %v3083_v24  ;;  %6208 = vmatmul.mubr.f32.gmra.mxu1 %v3159_v23  ;;  %v2639_v12 = vmul.f32 %v10550_v20, %v2623_v56 }
 0x506   : > { %v6729_v45 = vpop.eup %6728  ;;  %v3128_v19 = vsub.f32 2.0, %v3112_v48  ;;  %6742 = vrcp.f32 %v3081_v28  ;;  %v2638_v36 = vmul.f32 %v10551_v11, %v2622_v44  ;;  %v10561_v11 = vld [vmem:[#allocation75_spill] sm:$0xff] }
 0x507   : > { %v6731_v22 = vpop.eup %6730  ;;  %v3145_v47 = vmul.f32 %v6725_v14, %v3129_v4  ;;  %v2593_v3 = vmul.f32 %v6729_v45, %v2557_v8 }
 0x508   : > { %v2592_v17 = vmul.f32 %v6731_v22, %v2555_v42  ;;  %6154 = vmatprep.mubr.f32.mxu0 %v2638_v36  ;;  %v2563_v37 = vpop.xlane.xlu0 %2562  ;;  %v3144_v33 = vmul.f32 %v6727_v21, %v3128_v19  ;;  %v10559_v21 = vld [vmem:[#allocation73_spill] sm:$0xff] }
 0x509   : > { %v2565_v16 = vpop.xlane.xlu1 %2564  ;;  %v2609_v32 = vsub.f32 2.0, %v2593_v3  ;;  %6155 = vmatmul.mubr.f32.gmra.mxu0 %v2639_v12  ;;  %v3161_v10 = vmul.f32 %v10552_v15, %v3145_v47 }
 0x50a   : > { %6744 = vrcp.f32 %v2565_v16  ;;  %v6733_v46 = vpop.eup %6732  ;;  %v2608_v26 = vsub.f32 2.0, %v2592_v17  ;;  %v3160_v53 = vmul.f32 %v10553_v63, %v3144_v33 }
 0x50b   : > { %6746 = vrcp.f32 %v2563_v37  ;;  %v6735_v6 = vpop.eup %6734  ;;  %v2625_v18 = vmul.f32 %v6729_v45, %v2609_v32  ;;  %v3115_v61 = vmul.f32 %v6733_v46, %v3079_v59 }
 0x50c   : > { %v3114_v43 = vmul.f32 %v6735_v6, %v3077_v0  ;;  %6210 = vmatprep.mubr.f32.mxu1 %v3160_v53  ;;  %v3085_v42 = vpop.xlane.xlu0 %3084  ;;  %v2624_v31 = vmul.f32 %v6731_v22, %v2608_v26  ;;  %v10564_v53 = vld [vmem:[#allocation32_spill] sm:$0xff] }
 0x50d   : > { %v3087_v8 = vpop.xlane.xlu1 %3086  ;;  %v3131_v40 = vsub.f32 2.0, %v3115_v61  ;;  %6211 = vmatmul.mubr.f32.gmra.mxu1 %v3161_v10  ;;  %v2641_v30 = vmul.f32 %v10554_v7, %v2625_v18  ;;  %v10563_v10 = vld [vmem:[#allocation74_spill] sm:$0xff]  ;;  %v10565_v18 = vld [vmem:[#allocation35_spill] sm:$0xff] }
 0x50e   : > { %6748 = vrcp.f32 %v3087_v8  ;;  %v6737_v54 = vpop.eup %6736  ;;  %v3130_v41 = vsub.f32 2.0, %v3114_v43  ;;  %v2640_v58 = vmul.f32 %v10555_v34, %v2624_v31 }
 0x50f   : > { %6750 = vrcp.f32 %v3085_v42  ;;  %v6739_v1 = vpop.eup %6738  ;;  %v3147_v5 = vmul.f32 %v6733_v46, %v3131_v40  ;;  %v2595_v60 = vmul.f32 %v6737_v54, %v2561_v52  ;;  %v10558_v52 = vld [vmem:[#allocation68_spill] sm:$0xff] }
 0x510   : > { %v2594_v35 = vmul.f32 %v6739_v1, %v2559_v27  ;;  %6157 = vmatprep.mubr.f32.mxu0 %v2640_v58  ;;  %v3146_v59 = vmul.f32 %v6735_v6, %v3130_v41  ;;  %v643_v58 = vld [vmem:[%s10205_s7 + $0x8] sm:$0xff] }
 0x511   : > { %v2611_v0 = vsub.f32 2.0, %v2595_v60  ;;  %6158 = vmatmul.mubr.f32.gmra.mxu0 %v2641_v30  ;;  %v3163_v38 = vmul.f32 %v10556_v9, %v3147_v5  ;;  %6222 = vmatprep.subr.mxu0 %v643_v58 }
 0x512   : > { %v6741_v55 = vpop.eup %6740  ;;  %v2610_v62 = vsub.f32 2.0, %v2594_v35  ;;  %v3162_v49 = vmul.f32 %v10557_v50, %v3146_v59  ;;  %6223 = vmatpush3.msra.mxu0 %v643_v58 }
 0x513   : > { %v6743_v39 = vpop.eup %6742  ;;  %v2627_v51 = vmul.f32 %v6737_v54, %v2611_v0  ;;  %v3117_v29 = vmul.f32 %v6741_v55, %v3083_v24  ;;  %v10560_v24 = vld [vmem:[#allocation72_spill] sm:$0xff] }
 0x514   : > { %v2626_v23 = vmul.f32 %v6739_v1, %v2610_v62  ;;  %v3116_v14 = vmul.f32 %v6743_v39, %v3081_v28  ;;  %6213 = vmatprep.mubr.f32.mxu1 %v3162_v49 }
 0x515   : > { %v3133_v13 = vsub.f32 2.0, %v3117_v29  ;;  %6214 = vmatmul.mubr.f32.gmra.mxu1 %v3163_v38  ;;  %v2643_v27 = vmul.f32 %v10558_v52, %v2627_v51 }
 0x516   : > { %v3132_v25 = vsub.f32 2.0, %v3116_v14  ;;  %v2642_v56 = vmul.f32 %v10559_v21, %v2626_v23 }
 0x517   : > { %v6745_v2 = vpop.eup %6744  ;;  %v3149_v48 = vmul.f32 %v6741_v55, %v3133_v13  ;;  %v642_v13 = vld [vmem:[%s10205_s7] sm:$0xff] }
 0x518   : > { %v6747_v57 = vpop.eup %6746  ;;  %v2597_v44 = vmul.f32 %v6745_v2, %v2565_v16  ;;  %v3148_v4 = vmul.f32 %v6743_v39, %v3132_v25  ;;  %6160 = vmatprep.mubr.f32.mxu0 %v2642_v56  ;;  %v10562_v16 = vld [vmem:[#allocation31_spill] sm:$0xff]  ;;  %6224 = vmatprep.subr.mxu0 %v642_v13 }
 0x519   : > { %v2596_v20 = vmul.f32 %v6747_v57, %v2563_v37  ;;  %6161 = vmatmul.mubr.f32.gmra.mxu0 %v2643_v27  ;;  %v3165_v45 = vmul.f32 %v10560_v24, %v3149_v48 }
 0x51a   : > { %v2613_v12 = vsub.f32 2.0, %v2597_v44  ;;  %v3164_v36 = vmul.f32 %v10561_v11, %v3148_v4  ;;  %6225 = vmatpush3.msra.mxu0 %v642_v13 }
 0x51b   : > { %v6749_v28 = vpop.eup %6748  ;;  %v2612_v19 = vsub.f32 2.0, %v2596_v20 }
 0x51c   : > { %v6751_v22 = vpop.eup %6750  ;;  %v2629_v47 = vmul.f32 %v6745_v2, %v2613_v12  ;;  %v3119_v3 = vmul.f32 %v6749_v28, %v3087_v8  ;;  %6216 = vmatprep.mubr.f32.mxu1 %v3164_v36 }
 0x51d   : > { %v2628_v17 = vmul.f32 %v6747_v57, %v2612_v19  ;;  %v3118_v33 = vmul.f32 %v6751_v22, %v3085_v42  ;;  %6217 = vmatmul.mubr.f32.gmra.mxu1 %v3165_v45  ;;  %v8829_v45 = vld [vmem:[%s10204_s6] ss:$0 sm:$0xff] }
 0x51e   : > { %v3135_v32 = vsub.f32 2.0, %v3119_v3  ;;  %v2645_v15 = vmul.f32 %v10562_v16, %v2629_v47 }
 0x51f   : > { %v3134_v37 = vsub.f32 2.0, %v3118_v33  ;;  %v2644_v46 = vmul.f32 %v10563_v10, %v2628_v17 }
 0x520   : > { %v3151_v26 = vmul.f32 %v6749_v28, %v3135_v32 }
 0x521   : > { %v3150_v63 = vmul.f32 %v6751_v22, %v3134_v37  ;;  %6163 = vmatprep.mubr.f32.mxu0 %v2644_v46 }
 0x522   : > { %6164 = vmatmul.mubr.f32.gmra.mxu0 %v2645_v15  ;;  %v3167_v6 = vmul.f32 %v10564_v53, %v3151_v26 }
 0x523   : > { %v3166_v61 = vmul.f32 %v10565_v18, %v3150_v63 }
 0x525   : > { %6219 = vmatprep.mubr.f32.mxu1 %v3166_v61 }
 0x526   : > { %6220 = vmatmul.mubr.f32.gmra.mxu1 %v3167_v6 }
 0x565   : > { %v6032_v43 = vpop.f32.mrf.mxu0 }
 0x567   : > { %v2082_v42 = vpop.f32.mrf.mxu0 }
 0x56b   : > { %v6088_v8 = vpop.f32.mrf.mxu1 }
 0x56c   : > { %v2233_v4 = vadd.f32 %v6088_v8, %v6032_v43 }
 0x56d   : > { %v2227_v31 = vpop.f32.mrf.mxu1 }
 0x56e   : > { %v2228_v12 = vadd.f32 %v2227_v31, %v2082_v42 }
 0x572   : > { %v6035_v40 = vpop.f32.mrf.mxu0 }
 0x574   : > { %v2092_v30 = vpop.f32.mrf.mxu0 }
 0x577   : > { %v6091_v7 = vpop.f32.mrf.mxu1 }
 0x578   : > { %v2243_v17 = vadd.f32 %v6091_v7, %v6035_v40  ;;  %v647_v40 = vld [vmem:[%s10206_s8 + $0x18] sm:$0xff]  ;;  %v646_v7 = vld [vmem:[%s10206_s8 + $0x10] sm:$0xff] }
 0x579   : > { %v2237_v54 = vpop.f32.mrf.mxu1  ;;  %6250 = vmatprep.subr.mxu1 %v647_v40 }
 0x57a   : > { %v2238_v15 = vadd.f32 %v2237_v54, %v2092_v30  ;;  %6251 = vmatpush3.msra.mxu1 %v647_v40 }
 0x57b   : > { %6252 = vmatprep.subr.mxu1 %v646_v7 }
 0x57c   : > { %v8778_v41 = vpop.f32.mrf.mxu0  ;;  %6253 = vmatpush3.msra.mxu1 %v646_v7 }
 0x57e   : > { %v8785_v1 = vpop.f32.mrf.mxu0 }
 0x581   : > { %v8780_v34 = vpop.f32.mrf.mxu1 }
 0x582   : > { %v2253_v30 = vadd.f32 %v8780_v34, %v8778_v41 }
 0x583   : > { %v8787_v5 = vpop.f32.mrf.mxu1 }
 0x584   : > { %v2248_v13 = vadd.f32 %v8787_v5, %v8785_v1 }
 0x586   : > { %v8789_v60 = vpop.f32.mrf.mxu0 }
 0x588   : > { %v8793_v59 = vpop.f32.mrf.mxu0 }
 0x58b   : > { %v8791_v35 = vpop.f32.mrf.mxu1 }
 0x58c   : > { %v8797_v9 = vpop.f32.mrf.mxu0 }
 0x58d   : > { %v8795_v0 = vpop.f32.mrf.mxu1 }
 0x58e   : > { %v8801_v55 = vpop.f32.mrf.mxu0 }
 0x58f   : > { %v8799_v38 = vpop.f32.mrf.mxu1 }
 0x591   : > { %v8803_v62 = vpop.f32.mrf.mxu1  ;;  %v8805_v50 = vpop.f32.mrf.mxu0 }
 0x593   : > { %v8809_v39 = vpop.f32.mrf.mxu0 }
 0x595   : > { %v8807_v49 = vpop.f32.mrf.mxu1 }
 0x597   : > { %v8811_v51 = vpop.f32.mrf.mxu1 }
 0x599   : > { %v6050_v29 = vpop.f32.mrf.mxu0 }
 0x59b   : > { %v8818_v52 = vpop.f32.mrf.mxu0 }
 0x59d   : > { %v6106_v23 = vpop.f32.mrf.mxu1 }
 0x59e   : > { %v8813_v14 = vadd.f32 %v6106_v23, %v6050_v29  ;;  %v645_v23 = vld [vmem:[%s10206_s8 + $0x8] sm:$0xff] }
 0x59f   : > { %v8820_v27 = vpop.f32.mrf.mxu1  ;;  %6254 = vmatprep.subr.mxu1 %v645_v23 }
 0x5a0   : > { %6255 = vmatpush3.msra.mxu1 %v645_v23  ;;  %v2268_v23 = vadd.f32 %v8803_v62, %v8801_v55 }
 0x5a1   : > { %v6053_v2 = vpop.f32.mrf.mxu0 }
 0x5a3   : > { %v2152_v56 = vpop.f32.mrf.mxu0 }
 0x5a5   : > { %v6109_v25 = vpop.f32.mrf.mxu1 }
 0x5a6   : > { %v8822_v21 = vadd.f32 %v6109_v25, %v6053_v2 }
 0x5a7   : > { %v2297_v57 = vpop.f32.mrf.mxu1 }
 0x5a8   : > { %v8824_v48 = vadd.f32 %v2297_v57, %v2152_v56  ;;  %v644_v56 = vld [vmem:[%s10206_s8] sm:$0xff] }
 0x5a9   : > { %v6144_v44 = vpop.f32.mrf.mxu0  ;;  %6256 = vmatprep.subr.mxu1 %v644_v56 }
 0x5aa   : > { %v2813_v24 = vadd.f32 %v6144_v44, %v2233_v4  ;;  %6257 = vmatpush3.msra.mxu1 %v644_v56 }
 0x5ab   : > { %v2733_v20 = vpop.f32.mrf.mxu0 }
 0x5ac   : > { %v2812_v19 = vadd.f32 %v2733_v20, %v2228_v12 }
 0x5ad   : > { %v6200_v28 = vpop.f32.mrf.mxu1 }
 0x5ae   : > { %v3335_v11 = vadd.f32 %v6200_v28, %v2813_v24 }
 0x5af   : > { %v3255_v36 = vpop.f32.mrf.mxu1 }
 0x5b0   : > { %v8832_v22 = vadd.f32 %v8829_v45, %v3335_v11  ;;  %v3334_v47 = vadd.f32 %v3255_v36, %v2812_v19  ;;  %v10566_v36 = vmov 0.0  }
 0x5b1   : > { %v6147_v3 = vpop.f32.mrf.mxu0  ;;  %6338 = vmatprep.subr.mxu1 %v10566_v36 }
 0x5b2   : > { %v3421_v33 = vand.u32 2147483647, %v8832_v22  ;;  %v8836_v32 = vadd.f32 %v8829_v45, %v3334_v47  ;;  %v2815_v46 = vadd.f32 %v6147_v3, %v2243_v17  ;;  %v2263_v47 = vadd.f32 %v8791_v35, %v8789_v60 }
 0x5b3   : > { %v2743_v16 = vpop.f32.mrf.mxu0  ;;  %vm3389_vm14 = vcmp.ne.f32.partialorder %v8832_v22, %v8832_v22 }
 0x5b4   : > { %v3437_v37 = vsub.f32 0.0, %v3421_v33  ;;  %v3420_v10 = vand.u32 2147483647, %v8836_v32  ;;  %v2814_v6 = vadd.f32 %v2743_v16, %v2238_v15  ;;  %vm3388_vm0 = vcmp.ne.f32.partialorder %v8836_v32, %v8836_v32 }
 0x5b5   : > { %v6203_v26 = vpop.f32.mrf.mxu1 }
 0x5b6   : > { %v3454_v63 = vmul.f32 1.442695, %v3437_v37  ;;  %v3436_v53 = vsub.f32 0.0, %v3420_v10  ;;  %v3337_v18 = vadd.f32 %v6203_v26, %v2815_v46  ;;  %v2258_v10 = vadd.f32 %v8795_v0, %v8793_v59 }
 0x5b7   : > { %v3265_v61 = vpop.f32.mrf.mxu1  ;;  %v2273_v0 = vadd.f32 %v8799_v38, %v8797_v9  ;;  %v2283_v9 = vadd.f32 %v8807_v49, %v8805_v50  ;;  %v8900_v38 = vadd.f32 %v8811_v51, %v8809_v39  ;;  %v3373_v50 = vmax.f32 %v8832_v22, 0.0 }
 0x5b8   : > { %6752 = vpow2.f32 %v3454_v63  ;;  %v3452_v43 = vmul.f32 1.442695, %v3436_v53  ;;  %v8840_v8 = vadd.f32 %v8829_v45, %v3337_v18  ;;  %v3336_v42 = vadd.f32 %v3265_v61, %v2814_v6 }
 0x5b9   : > { %v6150_v31 = vpop.f32.mrf.mxu0 }
 0x5ba   : > { %6754 = vpow2.f32 %v3452_v43  ;;  %v3423_v54 = vand.u32 2147483647, %v8840_v8  ;;  %v8852_v58 = vadd.f32 %v8829_v45, %v3336_v42  ;;  %v2817_v25 = vadd.f32 %v6150_v31, %v2253_v30 }
 0x5bb   : > { %v2753_v29 = vpop.f32.mrf.mxu0  ;;  %vm3391_vm3 = vcmp.ne.f32.partialorder %v8840_v8, %v8840_v8 }
 0x5bc   : > { %v3439_v2 = vsub.f32 0.0, %v3423_v54  ;;  %v3422_v41 = vand.u32 2147483647, %v8852_v58  ;;  %v2816_v44 = vadd.f32 %v2753_v29, %v2248_v13  ;;  %vm3390_vm7 = vcmp.ne.f32.partialorder %v8852_v58, %v8852_v58 }
 0x5bd   : > { %v6206_v34 = vpop.f32.mrf.mxu1 }
 0x5be   : > { %v3458_v57 = vmul.f32 1.442695, %v3439_v2  ;;  %v3339_v4 = vadd.f32 %v6206_v34, %v2817_v25  ;;  %v3438_v20 = vsub.f32 0.0, %v3422_v41 }
 0x5bf   : > { %v3275_v12 = vpop.f32.mrf.mxu1 }
 0x5c0   : > { %6756 = vpow2.f32 %v3458_v57  ;;  %v8864_v1 = vadd.f32 %v8829_v45, %v3339_v4  ;;  %v3338_v5 = vadd.f32 %v3275_v12, %v2816_v44  ;;  %v3456_v24 = vmul.f32 1.442695, %v3438_v20 }
 0x5c1   : > { %v6153_v28 = vpop.f32.mrf.mxu0  ;;  %v8908_v44 = vadd.f32 %v8820_v27, %v8818_v52  ;;  %v3372_v12 = vmax.f32 %v8836_v32, 0.0  ;;  %v3374_v27 = vmax.f32 %v8852_v58, 0.0 }
 0x5c2   : > { %v3425_v19 = vand.u32 2147483647, %v8864_v1  ;;  %v8868_v11 = vadd.f32 %v8829_v45, %v3338_v5  ;;  %6758 = vpow2.f32 %v3456_v24  ;;  %v2819_v16 = vadd.f32 %v6153_v28, %v2263_v47 }
 0x5c3   : > { %v2763_v15 = vpop.f32.mrf.mxu0  ;;  %v3375_v5 = vmax.f32 %v8840_v8, 0.0 }
 0x5c4   : > { %v3441_v3 = vsub.f32 0.0, %v3425_v19  ;;  %v3424_v17 = vand.u32 2147483647, %v8868_v11  ;;  %v2818_v18 = vadd.f32 %v2763_v15, %v2258_v10  ;;  %v3377_v15 = vmax.f32 %v8864_v1, 0.0 }
 0x5c5   : > { %v8874_v33 = vpop.eup %6752  ;;  %v6209_v37 = vpop.f32.mrf.mxu1 }
 0x5c6   : > { %v3493_v46 = vadd.f32 1.0, %v8874_v33  ;;  %v3462_v26 = vmul.f32 1.442695, %v3441_v3  ;;  %v3440_v53 = vsub.f32 0.0, %v3424_v17  ;;  %v3341_v6 = vadd.f32 %v6209_v37, %v2819_v16 }
 0x5c7   : > { %v8879_v63 = vpop.eup %6754  ;;  %v3285_v60 = vpop.f32.mrf.mxu1  ;;  %v3496_v51 = vmul.f32 -0.5, %v8874_v33  ;;  %v3499_v17 = vand.u32 2147483647, %v8874_v33 }
 0x5c8   : > { %6760 = vlog2.f32 %v3493_v46  ;;  %v3484_v35 = vadd.f32 1.0, %v8879_v63  ;;  %v3460_v61 = vmul.f32 1.442695, %v3440_v53  ;;  %v8883_v42 = vadd.f32 %v8829_v45, %v3341_v6 }
 0x5c9   : > { %6762 = vpow2.f32 %v3462_v26  ;;  %v6156_v43 = vpop.f32.mrf.mxu0  ;;  %v3340_v59 = vadd.f32 %v3285_v60, %v2818_v18  ;;  %v3487_v57 = vmul.f32 -0.5, %v8879_v63  ;;  %v3490_v16 = vand.u32 2147483647, %v8879_v63 }
 0x5ca   : > { %6764 = vlog2.f32 %v3484_v35  ;;  %v3427_v31 = vand.u32 2147483647, %v8883_v42  ;;  %v2821_v30 = vadd.f32 %v6156_v43, %v2273_v0  ;;  %v3497_v10 = vadd.f32 1.0, %v3496_v51 }
 0x5cb   : > { %6766 = vpow2.f32 %v3460_v61  ;;  %v8889_v40 = vadd.f32 %v8829_v45, %v3340_v59  ;;  %v2773_v54 = vpop.f32.mrf.mxu0  ;;  %v3488_v52 = vadd.f32 1.0, %v3487_v57  ;;  %v3376_v26 = vmax.f32 %v8868_v11, 0.0 }
 0x5cc   : > { %v3443_v2 = vsub.f32 0.0, %v3427_v31  ;;  %v2820_v62 = vadd.f32 %v2773_v54, %v2268_v23  ;;  %vm8938_vm6 = vcmp.lt.f32.partialorder %v3499_v17, 0.0004427343  ;;  %vm8942_vm8 = vcmp.lt.f32.partialorder %v3490_v16, 0.0004427343 }
 0x5cd   : > { %v8891_v7 = vpop.eup %6756  ;;  %v6212_v29 = vpop.f32.mrf.mxu1  ;;  %v3426_v25 = vand.u32 2147483647, %v8889_v40  ;;  %v3489_v31 = vmul.f32 %v8879_v63, %v3488_v52 }
 0x5ce   : > { %v3511_v13 = vadd.f32 1.0, %v8891_v7  ;;  %v3343_v41 = vadd.f32 %v6212_v29, %v2821_v30  ;;  %v3466_v55 = vmul.f32 1.442695, %v3443_v2  ;;  %v3514_v46 = vmul.f32 -0.5, %v8891_v7 }
 0x5cf   : > { %v3295_v34 = vpop.f32.mrf.mxu1  ;;  %v8903_v56 = vpop.eup %6758  ;;  %v3442_v39 = vsub.f32 0.0, %v3426_v25 }
 0x5d0   : > { %6768 = vlog2.f32 %v3511_v13  ;;  %v3502_v49 = vadd.f32 1.0, %v8903_v56  ;;  %v8914_v4 = vadd.f32 %v8829_v45, %v3343_v41  ;;  %v3342_v20 = vadd.f32 %v3295_v34, %v2820_v62 }
 0x5d1   : > { %6770 = vpow2.f32 %v3466_v55  ;;  %v3464_v24 = vmul.f32 1.442695, %v3442_v39  ;;  %v6159_v47 = vpop.f32.mrf.mxu0  ;;  %v3505_v18 = vmul.f32 -0.5, %v8903_v56  ;;  %v3515_v25 = vadd.f32 1.0, %v3514_v46 }
 0x5d2   : > { %6772 = vlog2.f32 %v3502_v49  ;;  %v3429_v28 = vand.u32 2147483647, %v8914_v4  ;;  %v8921_v19 = vadd.f32 %v8829_v45, %v3342_v20  ;;  %v2823_v43 = vadd.f32 %v6159_v47, %v2283_v9 }
 0x5d3   : > { %6774 = vpow2.f32 %v3464_v24  ;;  %v2783_v13 = vpop.f32.mrf.mxu0  ;;  %v3498_v9 = vmul.f32 %v8874_v33, %v3497_v10  ;;  %v3517_v34 = vand.u32 2147483647, %v8891_v7  ;;  %v3506_v57 = vadd.f32 1.0, %v3505_v18 }
 0x5d4   : > { %v3445_v53 = vsub.f32 0.0, %v3429_v28  ;;  %v3428_v54 = vand.u32 2147483647, %v8921_v19  ;;  %v3379_v55 = vmax.f32 %v8883_v42, 0.0  ;;  %v2822_v33 = vadd.f32 %v2783_v13, %v8900_v38 }
 0x5d5   : > { %v6761_v3 = vpop.eup %6760  ;;  %v6215_v6 = vpop.f32.mrf.mxu1  ;;  %v3508_v52 = vand.u32 2147483647, %v8903_v56  ;;  %v3507_v46 = vmul.f32 %v8903_v56, %v3506_v57 }
 0x5d6   : > { %v8926_v37 = vpop.eup %6762  ;;  %v3495_v35 = vmul.f32 0.6931472, %v6761_v3  ;;  %v3470_v30 = vmul.f32 1.442695, %v3445_v53  ;;  %v3345_v2 = vadd.f32 %v6215_v6, %v2823_v43  ;;  %v3444_v51 = vsub.f32 0.0, %v3428_v54 }
 0x5d7   : > { %v6765_v60 = vpop.eup %6764  ;;  %v3529_v61 = vadd.f32 1.0, %v8926_v37  ;;  %v3305_v62 = vpop.f32.mrf.mxu1  ;;  %v3532_v39 = vmul.f32 -0.5, %v8926_v37  ;;  %v3516_v3 = vmul.f32 %v8891_v7, %v3515_v25 }
 0x5d8   : > { %v8932_v59 = vpop.eup %6766  ;;  %v3486_v0 = vmul.f32 0.6931472, %v6765_v60  ;;  %v3501_v49 = vsel %vm8938_vm6, %v3498_v9, %v3495_v35  ;;  %v8962_v28 = vadd.f32 %v8829_v45, %v3345_v2  ;;  %v3468_v17 = vmul.f32 1.442695, %v3444_v51 }
 0x5d9   : > { %6776 = vlog2.f32 %v3529_v61  ;;  %v3520_v41 = vadd.f32 1.0, %v8932_v59  ;;  %v3344_v16 = vadd.f32 %v3305_v62, %v2822_v33  ;;  %vm8971_vm6 = vcmp.lt.f32.partialorder %v3517_v34, 0.0004427343  ;;  %v6162_v13 = vpop.f32.mrf.mxu0 }
 0x5da   : > { %v3492_v63 = vsel %vm8942_vm8, %v3489_v31, %v3486_v0  ;;  %6778 = vpow2.f32 %v3470_v30  ;;  %v3431_v53 = vand.u32 2147483647, %v8962_v28  ;;  %v3533_v7 = vadd.f32 1.0, %v3532_v39 }
 0x5db   : > { %v3628_v24 = vadd.f32 %v3492_v63, %v3372_v12  ;;  %6780 = vlog2.f32 %v3520_v41  ;;  %v3629_v12 = vadd.f32 %v3501_v49, %v3373_v50  ;;  %v3535_v35 = vand.u32 2147483647, %v8926_v37  ;;  %v2793_v33 = vpop.f32.mrf.mxu0 }
 0x5dc   : > { %6782 = vpow2.f32 %v3468_v17  ;;  %v3447_v43 = vsub.f32 0.0, %v3431_v53  ;;  %vm3509_vm8 = vcmp.lt.f32.partialorder %v3508_v52, 0.0004427343  ;;  %v3523_v0 = vmul.f32 -0.5, %v8932_v59 }
 0x5dd   : > { %v6769_v20 = vpop.eup %6768  ;;  %v3644_v50 = vsel %vm3388_vm0, %v8836_v32, %v3628_v24  ;;  %v8989_v31 = vadd.f32 %v8829_v45, %v3344_v16  ;;  %v3645_v30 = vsel %vm3389_vm14, %v8832_v22, %v3629_v12  ;;  %vm3393_vm0 = vcmp.ne.f32.partialorder %v8864_v1, %v8864_v1  ;;  %v6218_v34 = vpop.f32.mrf.mxu1 }
 0x5de   : > { %v3513_v47 = vmul.f32 0.6931472, %v6769_v20  ;;  %v8967_v38 = vpop.eup %6770  ;;  %v3526_v63 = vand.u32 2147483647, %v8932_v59  ;;  %v3534_v25 = vmul.f32 %v8926_v37, %v3533_v7  ;;  %v3474_v41 = vmul.f32 1.442695, %v3447_v43 }
 0x5df   : > { %v6773_v6 = vpop.eup %6772  ;;  %v3547_v18 = vadd.f32 1.0, %v8967_v38  ;;  %v3430_v62 = vand.u32 2147483647, %v8989_v31  ;;  %v2825_v49 = vadd.f32 %v6162_v13, %v8813_v14  ;;  %vm3392_vm14 = vcmp.ne.f32.partialorder %v8868_v11, %v8868_v11  ;;  %v3315_v12 = vpop.f32.mrf.mxu1 }
 0x5e0   : > { %v3519_v60 = vsel %vm8971_vm6, %v3516_v3, %v3513_v47  ;;  %v3504_v61 = vmul.f32 0.6931472, %v6773_v6  ;;  %v8985_v56 = vpop.eup %6774  ;;  %vm9002_vm6 = vcmp.lt.f32.partialorder %v3535_v35, 0.0004427343  ;;  %v3524_v51 = vadd.f32 1.0, %v3523_v0 }
 0x5e1   : > { %6784 = vlog2.f32 %v3547_v18  ;;  %v3631_v54 = vadd.f32 %v3519_v60, %v3375_v5  ;;  %v3538_v23 = vadd.f32 1.0, %v8985_v56  ;;  %v3550_v5 = vmul.f32 -0.5, %v8967_v38 }
 0x5e2   : > { %v3510_v29 = vsel %vm3509_vm8, %v3507_v46, %v3504_v61  ;;  %6786 = vtanh.f32 %v3644_v50  ;;  %vm9023_vm8 = vcmp.lt.f32.partialorder %v3526_v63, 0.0004427343  ;;  %v3446_v14 = vsub.f32 0.0, %v3430_v62  ;;  %v6165_v10 = vpop.f32.mrf.mxu0 }
 0x5e3   : > { %v3630_v2 = vadd.f32 %v3510_v29, %v3374_v27  ;;  %6788 = vlog2.f32 %v3538_v23  ;;  %v3647_v37 = vsel %vm3391_vm3, %v8840_v8, %v3631_v54  ;;  %v3347_v52 = vadd.f32 %v6218_v34, %v2825_v49 }
 0x5e4   : > { %6790 = vtanh.f32 %v3645_v30  ;;  %v3551_v3 = vadd.f32 1.0, %v3550_v5  ;;  %v3541_v17 = vmul.f32 -0.5, %v8985_v56  ;;  %v3472_v6 = vmul.f32 1.442695, %v3446_v14 }
 0x5e5   : > { %v3646_v27 = vsel %vm3390_vm7, %v8852_v58, %v3630_v2  ;;  %v9034_v60 = vadd.f32 %v8829_v45, %v3347_v52  ;;  %v3525_v35 = vmul.f32 %v8932_v59, %v3524_v51  ;;  %v3553_v18 = vand.u32 2147483647, %v8967_v38 }
 0x5e6   : > { %v6777_v57 = vpop.eup %6776  ;;  %6792 = vtanh.f32 %v3646_v27  ;;  %v6221_v50 = vpop.f32.mrf.mxu1  ;;  %vm3395_vm7 = vcmp.ne.f32.partialorder %v8883_v42, %v8883_v42  ;;  %v2827_v43 = vadd.f32 %v6165_v10, %v8822_v21  ;;  %v3552_v0 = vmul.f32 %v8967_v38, %v3551_v3 }
 0x5e7   : > { %v3531_v39 = vmul.f32 0.6931472, %v6777_v57  ;;  %v9021_v20 = vpop.eup %6778  ;;  %6794 = vpow2.f32 %v3474_v41  ;;  %v3542_v30 = vadd.f32 1.0, %v3541_v17  ;;  %v3433_v54 = vand.u32 2147483647, %v9034_v60 }
 0x5e8   : > { %v3565_v16 = vadd.f32 1.0, %v9021_v20  ;;  %v6781_v46 = vpop.eup %6780  ;;  %6796 = vtanh.f32 %v3647_v37  ;;  %v3568_v13 = vmul.f32 -0.5, %v9021_v20  ;;  %v3349_v9 = vadd.f32 %v6221_v50, %v2827_v43 }
 0x5e9   : > { %v3537_v47 = vsel %vm9002_vm6, %v3534_v25, %v3531_v39  ;;  %v3522_v7 = vmul.f32 0.6931472, %v6781_v46  ;;  %v9050_v29 = vpop.eup %6782  ;;  %v3544_v21 = vand.u32 2147483647, %v8985_v56  ;;  %v3449_v25 = vsub.f32 0.0, %v3433_v54 }
 0x5ea   : > { %v3633_v53 = vadd.f32 %v3537_v47, %v3377_v15  ;;  %6798 = vlog2.f32 %v3565_v16  ;;  %v2824_v15 = vadd.f32 %v2793_v33, %v8908_v44  ;;  %v3556_v63 = vadd.f32 1.0, %v9050_v29  ;;  %v3325_v33 = vpop.f32.mrf.mxu1 }
 0x5eb   : > { %6800 = vpow2.f32 %v3472_v6  ;;  %v3528_v59 = vsel %vm9023_vm8, %v3525_v35, %v3522_v7  ;;  %v9065_v34 = vadd.f32 %v8829_v45, %v3349_v9  ;;  %vm3554_vm3 = vcmp.lt.f32.partialorder %v3553_v18, 0.0004427343 }
 0x5ec   : > { %v3649_v61 = vsel %vm3393_vm0, %v8864_v1, %v3633_v53  ;;  %v3632_v23 = vadd.f32 %v3528_v59, %v3376_v26  ;;  %v3346_v2 = vadd.f32 %v3315_v12, %v2824_v15  ;;  %v2803_v26 = vpop.f32.mrf.mxu0  ;;  %v3378_v27 = vmax.f32 %v8889_v40, 0.0 }
 0x5ed   : > { %6802 = vtanh.f32 %v3649_v61  ;;  %v3478_v62 = vmul.f32 1.442695, %v3449_v25  ;;  %v3543_v39 = vmul.f32 %v8985_v56, %v3542_v30  ;;  %v3569_v51 = vadd.f32 1.0, %v3568_v13 }
 0x5ee   : > { %v6785_v44 = vpop.eup %6784  ;;  %v3648_v38 = vsel %vm3392_vm14, %v8868_v11, %v3632_v23  ;;  %v9062_v41 = vadd.f32 %v8829_v45, %v3346_v2  ;;  %v2826_v47 = vadd.f32 %v2803_v26, %v8824_v48  ;;  %vm3394_vm0 = vcmp.ne.f32.partialorder %v8889_v40, %v8889_v40 }
 0x5ef   : > { %v3549_v5 = vmul.f32 0.6931472, %v6785_v44  ;;  %v6787_v57 = vpop.eup %6786  ;;  %6804 = vtanh.f32 %v3648_v38  ;;  %vm3545_vm6 = vcmp.lt.f32.partialorder %v3544_v21, 0.0004427343  ;;  %v3435_v56 = vand.u32 2147483647, %v9065_v34 }
 0x5f0   : > { %v6789_v49 = vpop.eup %6788  ;;  %6806 = vlog2.f32 %v3556_v63  ;;  %v3432_v17 = vand.u32 2147483647, %v9062_v41  ;;  %v3348_v10 = vadd.f32 %v3325_v33, %v2826_v47  ;;  %v3676_v48 = vmul.f32 %v6787_v57, %v8836_v32 }
 0x5f1   : > { %v3555_v37 = vsel %vm3554_vm3, %v3552_v0, %v3549_v5  ;;  %v6791_v24 = vpop.eup %6790  ;;  %v3540_v52 = vmul.f32 0.6931472, %v6789_v49  ;;  %6808 = vpow2.f32 %v3478_v62  ;;  %v3571_v6 = vand.u32 2147483647, %v9021_v20 }
 0x5f2   : > { %v3635_v14 = vadd.f32 %v3555_v37, %v3379_v55  ;;  %v3677_v46 = vmul.f32 %v6791_v24, %v8832_v22  ;;  %v3570_v18 = vmul.f32 %v9021_v20, %v3569_v51  ;;  %v3448_v50 = vsub.f32 0.0, %v3432_v17 }
 0x5f3   : > { %v6793_v3 = vpop.eup %6792  ;;  %v3546_v12 = vsel %vm3545_vm6, %v3543_v39, %v3540_v52  ;;  %v3451_v61 = vsub.f32 0.0, %v3435_v56  ;;  %vm10577_vm14 = vcmask 130048   ;;  %v3559_v22 = vmul.f32 -0.5, %v9050_v29 }
 0x5f4   : > { %v9076_v16 = vpop.eup %6794  ;;  %v3651_v55 = vsel %vm3395_vm7, %v8883_v42, %v3635_v14  ;;  %v3634_v53 = vadd.f32 %v3546_v12, %v3378_v27  ;;  %6226 = vmatprep.mubr.msk.f32.mxu0 %vm10577_vm14, %v3676_v48  ;;  %vm10578_vm8 = vmmov %vm10577_vm14  ;;  %v3678_v43 = vmul.f32 %v6793_v3, %v8852_v58  ;;  %v3476_v0 = vmul.f32 1.442695, %v3448_v50 }
 0x5f5   : > { %v3583_v7 = vadd.f32 1.0, %v9076_v16  ;;  %v6797_v35 = vpop.eup %6796  ;;  %6810 = vtanh.f32 %v3651_v55  ;;  %6227 = vmatmul.mubr.msk.f32.vlgmr.msra.gmra.mxu0 %vm10578_vm8, %v3677_v46  ;;  %v9098_v30 = vadd.f32 %v8829_v45, %v3348_v10  ;;  %vm3572_vm7 = vcmp.lt.f32.partialorder %v3571_v6, 0.0004427343  ;;  %vm10579_vm3 = vmmov %vm10578_vm8 }
 0x5f6   : > { %v3650_v32 = vsel %vm3394_vm0, %v8889_v40, %v3634_v53  ;;  %6229 = vmatprep.mubr.msk.f32.mxu0 %vm10579_vm3, %v3678_v43  ;;  %v3482_v13 = vmul.f32 1.442695, %v3451_v61  ;;  %v3381_v9 = vmax.f32 %v8914_v4, 0.0  ;;  %v3560_v58 = vadd.f32 1.0, %v3559_v22  ;;  %vm10580_vm0 = vmmov %vm10579_vm3 }
 0x5f7   : > { %v6799_v15 = vpop.eup %6798  ;;  %6812 = vlog2.f32 %v3583_v7  ;;  %v3562_v44 = vand.u32 2147483647, %v9050_v29  ;;  %v3434_v21 = vand.u32 2147483647, %v9098_v30  ;;  %v3679_v45 = vmul.f32 %v6797_v35, %v8840_v8  ;;  %vm10581_vm8 = vmmov %vm10580_vm0 }
 0x5f8   : > { %v9095_v59 = vpop.eup %6800  ;;  %6814 = vtanh.f32 %v3650_v32  ;;  %v3567_v20 = vmul.f32 0.6931472, %v6799_v15  ;;  %v3586_v38 = vmul.f32 -0.5, %v9076_v16  ;;  %vm3397_vm6 = vcmp.ne.f32.partialorder %v8914_v4, %v8914_v4 }
 0x5f9   : > { %v3574_v54 = vadd.f32 1.0, %v9095_v59  ;;  %6816 = vpow2.f32 %v3476_v0  ;;  %v3450_v26 = vsub.f32 0.0, %v3434_v21  ;;  %6230 = vmatmul.mubr.msk.f32.gmra.mxu0 %vm10580_vm0, %v3679_v45  ;;  %v3380_v62 = vmax.f32 %v8921_v19, 0.0 }
 0x5fa   : > { %v3573_v23 = vsel %vm3572_vm7, %v3570_v18, %v3567_v20  ;;  %v6803_v2 = vpop.eup %6802  ;;  %v3561_v8 = vmul.f32 %v9050_v29, %v3560_v58  ;;  %vm3563_vm14 = vcmp.lt.f32.partialorder %v3562_v44, 0.0004427343  ;;  %v3587_v24 = vadd.f32 1.0, %v3586_v38  ;;  %vm10582_vm7 = vmmov %vm10580_vm0 }
 0x5fb   : > { %6818 = vlog2.f32 %v3574_v54  ;;  %v3637_v25 = vadd.f32 %v3573_v23, %v3381_v9  ;;  %v3480_v39 = vmul.f32 1.442695, %v3450_v26  ;;  %v3681_v51 = vmul.f32 %v6803_v2, %v8864_v1 }
 0x5fc   : > { %6820 = vpow2.f32 %v3482_v13  ;;  %v6805_v63 = vpop.eup %6804  ;;  %v3577_v14 = vmul.f32 -0.5, %v9095_v59  ;;  %v3589_v47 = vand.u32 2147483647, %v9076_v16  ;;  %vm3396_vm3 = vcmp.ne.f32.partialorder %v8921_v19, %v8921_v19 }
 0x5fd   : > { %v6807_v5 = vpop.eup %6806  ;;  %v3680_v57 = vmul.f32 %v6805_v63, %v8868_v11  ;;  %v3653_v11 = vsel %vm3397_vm6, %v8914_v4, %v3637_v25  ;;  %v3588_v55 = vmul.f32 %v9076_v16, %v3587_v24  ;;  %v3383_v10 = vmax.f32 %v8962_v28, 0.0  ;;  %vm10583_vm6 = vmmov %vm10582_vm7 }
 0x5fe   : > { %v9109_v27 = vpop.eup %6808  ;;  %v3558_v49 = vmul.f32 0.6931472, %v6807_v5  ;;  %v3578_v12 = vadd.f32 1.0, %v3577_v14  ;;  %vm3590_vm0 = vcmp.lt.f32.partialorder %v3589_v47, 0.0004427343  ;;  %v3385_v38 = vmax.f32 %v9034_v60, 0.0 }
 0x5ff   : > { %v3601_v37 = vadd.f32 1.0, %v9109_v27  ;;  %6232 = vmatprep.mubr.msk.f32.mxu0 %vm10581_vm8, %v3680_v57  ;;  %v3580_v48 = vand.u32 2147483647, %v9095_v59  ;;  %v3604_v32 = vmul.f32 -0.5, %v9109_v27  ;;  %vm3399_vm8 = vcmp.ne.f32.partialorder %v8962_v28, %v8962_v28 }
 0x600   : > { %v3564_v33 = vsel %vm3563_vm14, %v3561_v8, %v3558_v49  ;;  %6233 = vmatmul.mubr.msk.f32.gmra.mxu0 %vm10582_vm7, %v3681_v51  ;;  %v3579_v16 = vmul.f32 %v9095_v59, %v3578_v12  ;;  %vm10584_vm14 = vmmov %vm10583_vm6  ;;  %v3607_v54 = vand.u32 2147483647, %v9109_v27 }
 0x601   : > { %v3636_v52 = vadd.f32 %v3564_v33, %v3380_v62  ;;  %6822 = vlog2.f32 %v3601_v37  ;;  %vm3581_vm7 = vcmp.lt.f32.partialorder %v3580_v48, 0.0004427343  ;;  %v3605_v59 = vadd.f32 1.0, %v3604_v32 }
 0x602   : > { %v6811_v29 = vpop.eup %6810  ;;  %6824 = vpow2.f32 %v3480_v39  ;;  %v3384_v33 = vmax.f32 %v9062_v41, 0.0 }
 0x603   : > { %6826 = vtanh.f32 %v3653_v11  ;;  %v3652_v1 = vsel %vm3396_vm3, %v8921_v19, %v3636_v52  ;;  %v3683_v7 = vmul.f32 %v6811_v29, %v8883_v42  ;;  %vm3398_vm3 = vcmp.ne.f32.partialorder %v8989_v31, %v8989_v31 }
 0x604   : > { %v6813_v3 = vpop.eup %6812  ;;  %6828 = vtanh.f32 %v3652_v1  ;;  %v3606_v44 = vmul.f32 %v9109_v27, %v3605_v59  ;;  %v3387_v1 = vmax.f32 %v9065_v34, 0.0 }
 0x605   : > { %v6815_v17 = vpop.eup %6814  ;;  %v3585_v56 = vmul.f32 0.6931472, %v6813_v3 }
 0x606   : > { %v3682_v46 = vmul.f32 %v6815_v17, %v8889_v40  ;;  %v6817_v53 = vpop.eup %6816  ;;  %v3382_v40 = vmax.f32 %v8989_v31, 0.0 }
 0x607   : > { %v3591_v6 = vsel %vm3590_vm0, %v3588_v55, %v3585_v56  ;;  %v3592_v50 = vadd.f32 1.0, %v6817_v53  ;;  %v3595_v9 = vmul.f32 -0.5, %v6817_v53  ;;  %vm3608_vm0 = vcmp.lt.f32.partialorder %v3607_v54, 0.0004427343 }
 0x608   : > { %v6819_v35 = vpop.eup %6818  ;;  %v3639_v18 = vadd.f32 %v3591_v6, %v3383_v10  ;;  %6235 = vmatprep.mubr.msk.f32.mxu0 %vm10583_vm6, %v3682_v46  ;;  %v3598_v57 = vand.u32 2147483647, %v6817_v53 }
 0x609   : > { %v6821_v61 = vpop.eup %6820  ;;  %v3576_v15 = vmul.f32 0.6931472, %v6819_v35  ;;  %6236 = vmatmul.mubr.msk.f32.gmra.mxu0 %vm10584_vm14, %v3683_v7  ;;  %6830 = vlog2.f32 %v3592_v50  ;;  %v3596_v5 = vadd.f32 1.0, %v3595_v9  ;;  %vm10585_vm14 = vmmov %vm10583_vm6  ;;  %v3386_v35 = vmax.f32 %v9098_v30, 0.0 }
 0x60a   : > { %v3655_v42 = vsel %vm3399_vm8, %v8962_v28, %v3639_v18  ;;  %v3619_v43 = vadd.f32 1.0, %v6821_v61  ;;  %v3622_v25 = vmul.f32 -0.5, %v6821_v61  ;;  %v3625_v51 = vand.u32 2147483647, %v6821_v61 }
 0x60b   : > { %v3582_v22 = vsel %vm3581_vm7, %v3579_v16, %v3576_v15  ;;  %v3597_v39 = vmul.f32 %v6817_v53, %v3596_v5  ;;  %vm3401_vm8 = vcmp.ne.f32.partialorder %v9034_v60, %v9034_v60  ;;  %vm3599_vm7 = vcmp.lt.f32.partialorder %v3598_v57, 0.0004427343 }
 0x60c   : > { %v3638_v20 = vadd.f32 %v3582_v22, %v3382_v40  ;;  %6832 = vlog2.f32 %v3619_v43  ;;  %v3623_v37 = vadd.f32 1.0, %v3622_v25 }
 0x60d   : > { %6834 = vtanh.f32 %v3655_v42 }
 0x60e   : > { %v3654_v0 = vsel %vm3398_vm3, %v8989_v31, %v3638_v20  ;;  %v6823_v23 = vpop.eup %6822  ;;  %v3624_v29 = vmul.f32 %v6821_v61, %v3623_v37  ;;  %vm3400_vm3 = vcmp.ne.f32.partialorder %v9062_v41, %v9062_v41 }
 0x60f   : > { %6836 = vtanh.f32 %v3654_v0  ;;  %v6825_v13 = vpop.eup %6824  ;;  %v3603_v2 = vmul.f32 0.6931472, %v6823_v23 }
 0x610   : > { %v6827_v58 = vpop.eup %6826  ;;  %v3610_v21 = vadd.f32 1.0, %v6825_v13  ;;  %v3613_v11 = vmul.f32 -0.5, %v6825_v13  ;;  %v3616_v10 = vand.u32 2147483647, %v6825_v13 }
 0x611   : > { %v6829_v45 = vpop.eup %6828  ;;  %v3609_v63 = vsel %vm3608_vm0, %v3606_v44, %v3603_v2  ;;  %v3685_v62 = vmul.f32 %v6827_v58, %v8914_v4  ;;  %vm3626_vm0 = vcmp.lt.f32.partialorder %v3625_v51, 0.0004427343 }
 0x612   : > { %6838 = vlog2.f32 %v3610_v21  ;;  %v3684_v26 = vmul.f32 %v6829_v45, %v8921_v19  ;;  %v3641_v49 = vadd.f32 %v3609_v63, %v3385_v38  ;;  %v3614_v17 = vadd.f32 1.0, %v3613_v11 }
 0x614   : > { %6238 = vmatprep.mubr.msk.f32.mxu0 %vm10583_vm6, %v3684_v26  ;;  %v3657_v4 = vsel %vm3401_vm8, %v9034_v60, %v3641_v49  ;;  %v3615_v7 = vmul.f32 %v6825_v13, %v3614_v17  ;;  %vm3403_vm8 = vcmp.ne.f32.partialorder %v9065_v34, %v9065_v34 }
 0x615   : > { %6239 = vmatmul.mubr.msk.f32.gmra.mxu0 %vm10585_vm14, %v3685_v62  ;;  %6840 = vtanh.f32 %v3657_v4  ;;  %vm10586_vm14 = vmmov %vm10583_vm6 }
 0x616   : > { %v6831_v8 = vpop.eup %6830 }
 0x617   : > { %v3594_v27 = vmul.f32 0.6931472, %v6831_v8 }
 0x619   : > { %v6833_v19 = vpop.eup %6832  ;;  %v3600_v24 = vsel %vm3599_vm7, %v3597_v39, %v3594_v27  ;;  %vm3617_vm7 = vcmp.lt.f32.partialorder %v3616_v10, 0.0004427343 }
 0x61a   : > { %v6835_v14 = vpop.eup %6834  ;;  %v3640_v52 = vadd.f32 %v3600_v24, %v3384_v33  ;;  %v3621_v47 = vmul.f32 0.6931472, %v6833_v19 }
 0x61b   : > { %v3687_v48 = vmul.f32 %v6835_v14, %v8962_v28 }
 0x61c   : > { %v6837_v3 = vpop.eup %6836  ;;  %v3656_v56 = vsel %vm3400_vm3, %v9062_v41, %v3640_v52  ;;  %v3627_v55 = vsel %vm3626_vm0, %v3624_v29, %v3621_v47  ;;  %vm3402_vm3 = vcmp.ne.f32.partialorder %v9098_v30, %v9098_v30  ;;  %vm10587_vm0 = vmmov %vm10583_vm6 }
 0x61d   : > { %v3686_v12 = vmul.f32 %v6837_v3, %v8989_v31  ;;  %6842 = vtanh.f32 %v3656_v56  ;;  %v3643_v46 = vadd.f32 %v3627_v55, %v3387_v1 }
 0x61f   : > { %6241 = vmatprep.mubr.msk.f32.mxu0 %vm10583_vm6, %v3686_v12  ;;  %v6839_v53 = vpop.eup %6838  ;;  %v3659_v31 = vsel %vm3403_vm8, %v9065_v34, %v3643_v46  ;;  %vm10588_vm6 = vmmov %vm10587_vm0 }
 0x620   : > { %6242 = vmatmul.mubr.msk.f32.gmra.mxu0 %vm10586_vm14, %v3687_v48  ;;  %v3612_v6 = vmul.f32 0.6931472, %v6839_v53  ;;  %6844 = vtanh.f32 %v3659_v31  ;;  %vm10589_vm14 = vmmov %vm10587_vm0 }
 0x621   : > { %vm10590_vm8 = vmmov %vm10587_vm0 }
 0x622   : > { %v3618_v18 = vsel %vm3617_vm7, %v3615_v7, %v3612_v6  ;;  %v6841_v61 = vpop.eup %6840  ;;  %vm3885_vm7 = vcmask 261120  }
 0x623   : > { %v3642_v50 = vadd.f32 %v3618_v18, %v3386_v35  ;;  %v3689_v32 = vmul.f32 %v6841_v61, %v9034_v60 }
 0x625   : > { %v3658_v28 = vsel %vm3402_vm3, %v9098_v30, %v3642_v50 }
 0x626   : > { %6846 = vtanh.f32 %v3658_v28 }
 0x62a   : > { %v6843_v15 = vpop.eup %6842 }
 0x62b   : > { %v3688_v16 = vmul.f32 %v6843_v15, %v9062_v41 }
 0x62d   : > { %6244 = vmatprep.mubr.msk.f32.mxu0 %vm10587_vm0, %v3688_v16  ;;  %v6845_v40 = vpop.eup %6844 }
 0x62e   : > { %6245 = vmatmul.mubr.msk.f32.gmra.mxu0 %vm10588_vm6, %v3689_v32  ;;  %v3691_v43 = vmul.f32 %v6845_v40, %v9065_v34  ;;  %v10591_v32 = vld [vmem:[#allocation46_spill] sm:$0xff] }
 0x633   : > { %v6847_v42 = vpop.eup %6846 }
 0x634   : > { %v3690_v22 = vmul.f32 %v6847_v42, %v9098_v30 }
 0x636   : > { %6247 = vmatprep.mubr.msk.f32.mxu0 %vm10589_vm14, %v3690_v22 }
 0x637   : > { %6248 = vmatmul.mubr.msk.f32.gmra.mxu0 %vm10590_vm8, %v3691_v43 }
 0x6b5   : > { %v6228_v20 = vpop.f32.mrf.mxu0 }
 0x6b7   : > { %v3806_v59 = vpop.f32.mrf.mxu0 }
 0x6b8   : > { %6258 = vmatprep.mubr.msk.f32.mxu1 %vm3885_vm7, %v3806_v59 }
 0x6b9   : > { %6259 = vmatmul.mubr.msk.f32.vlgmr.msra.gmra.mxu1 %vm3885_vm7, %v6228_v20  ;;  %v6231_v60 = vpop.f32.mrf.mxu0 }
 0x6bb   : > { %v3816_v41 = vpop.f32.mrf.mxu0 }
 0x6bc   : > { %6261 = vmatprep.mubr.msk.f32.mxu1 %vm3885_vm7, %v3816_v41 }
 0x6bd   : > { %6262 = vmatmul.mubr.msk.f32.gmra.mxu1 %vm3885_vm7, %v6231_v60 }
 0x6c0   : > { %v6234_v30 = vpop.f32.mrf.mxu0 }
 0x6c2   : > { %v3826_v0 = vpop.f32.mrf.mxu0 }
 0x6c3   : > { %6264 = vmatprep.mubr.msk.f32.mxu1 %vm3885_vm7, %v3826_v0 }
 0x6c4   : > { %6265 = vmatmul.mubr.msk.f32.gmra.mxu1 %vm3885_vm7, %v6234_v30 }
 0x6c9   : > { %v6237_v34 = vpop.f32.mrf.mxu0 }
 0x6cb   : > { %v3836_v54 = vpop.f32.mrf.mxu0 }
 0x6cc   : > { %6267 = vmatprep.mubr.msk.f32.mxu1 %vm3885_vm7, %v3836_v54 }
 0x6cd   : > { %6268 = vmatmul.mubr.msk.f32.gmra.mxu1 %vm3885_vm7, %v6237_v34 }
 0x6d5   : > { %v6240_v23 = vpop.f32.mrf.mxu0 }
 0x6d7   : > { %v3846_v13 = vpop.f32.mrf.mxu0 }
 0x6d8   : > { %6270 = vmatprep.mubr.msk.f32.mxu1 %vm3885_vm7, %v3846_v13 }
 0x6d9   : > { %6271 = vmatmul.mubr.msk.f32.gmra.mxu1 %vm3885_vm7, %v6240_v23 }
 0x6e0   : > { %v6243_v2 = vpop.f32.mrf.mxu0 }
 0x6e2   : > { %v3856_v9 = vpop.f32.mrf.mxu0 }
 0x6e3   : > { %6273 = vmatprep.mubr.msk.f32.mxu1 %vm3885_vm7, %v3856_v9 }
 0x6e4   : > { %6274 = vmatmul.mubr.msk.f32.gmra.mxu1 %vm3885_vm7, %v6243_v2 }
 0x6ee   : > { %v6246_v58 = vpop.f32.mrf.mxu0 }
 0x6f0   : > { %v3866_v44 = vpop.f32.mrf.mxu0 }
 0x6f1   : > { %6276 = vmatprep.mubr.msk.f32.mxu1 %vm3885_vm7, %v3866_v44 }
 0x6f2   : > { %6277 = vmatmul.mubr.msk.f32.gmra.mxu1 %vm3885_vm7, %v6246_v58 }
 0x6f7   : > { %v6249_v21 = vpop.f32.mrf.mxu0 }
 0x6f8   : > { %6282 = vmatprep.subr.mxu0 %v6249_v21 }
 0x6f9   : > { %v3876_v45 = vpop.f32.mrf.mxu0  ;;  %6283 = vmatpush3.msra.mxu0 %v6249_v21 }
 0x6fa   : > { %6279 = vmatprep.mubr.msk.f32.mxu1 %vm3885_vm7, %v3876_v45  ;;  %6284 = vmatprep.subr.mxu0 %v3876_v45 }
 0x6fb   : > { %6280 = vmatmul.mubr.msk.f32.gmra.mxu1 %vm3885_vm7, %v6249_v21  ;;  %6285 = vmatpush3.msra.mxu0 %v3876_v45 }
 0x6fc   : > { %6286 = vmatprep.subr.mxu0 %v6246_v58 }
 0x6fd   : > { %6287 = vmatpush3.msra.mxu0 %v6246_v58 }
 0x6fe   : > { %6288 = vmatprep.subr.mxu0 %v3866_v44 }
 0x6ff   : > { %6289 = vmatpush3.msra.mxu0 %v3866_v44 }
 0x700   : > { %6290 = vmatprep.subr.mxu0 %v6243_v2 }
 0x701   : > { %6291 = vmatpush3.msra.mxu0 %v6243_v2 }
 0x702   : > { %6292 = vmatprep.subr.mxu0 %v3856_v9 }
 0x703   : > { %6293 = vmatpush3.msra.mxu0 %v3856_v9 }
 0x704   : > { %6294 = vmatprep.subr.mxu0 %v6240_v23 }
 0x705   : > { %6295 = vmatpush3.msra.mxu0 %v6240_v23 }
 0x706   : > { %6296 = vmatprep.subr.mxu0 %v3846_v13 }
 0x707   : > { %6297 = vmatpush3.msra.mxu0 %v3846_v13 }
 0x708   : > { %6298 = vmatprep.subr.mxu0 %v6237_v34 }
 0x709   : > { %6299 = vmatpush3.msra.mxu0 %v6237_v34 }
 0x70a   : > { %6300 = vmatprep.subr.mxu0 %v3836_v54 }
 0x70b   : > { %6301 = vmatpush3.msra.mxu0 %v3836_v54 }
 0x70c   : > { %6302 = vmatprep.subr.mxu0 %v6234_v30 }
 0x70d   : > { %6303 = vmatpush3.msra.mxu0 %v6234_v30 }
 0x70e   : > { %6304 = vmatprep.subr.mxu0 %v3826_v0 }
 0x70f   : > { %6305 = vmatpush3.msra.mxu0 %v3826_v0 }
 0x710   : > { %6306 = vmatprep.subr.mxu0 %v6231_v60 }
 0x711   : > { %6307 = vmatpush3.msra.mxu0 %v6231_v60 }
 0x712   : > { %6308 = vmatprep.subr.mxu0 %v3816_v41 }
 0x713   : > { %6309 = vmatpush3.msra.mxu0 %v3816_v41 }
 0x714   : > { %6310 = vmatprep.subr.mxu0 %v6228_v20 }
 0x715   : > { %6311 = vmatpush3.msra.mxu0 %v6228_v20 }
 0x716   : > { %6312 = vmatprep.subr.mxu0 %v3806_v59 }
 0x717   : > { %6313 = vmatpush3.msra.mxu0 %v3806_v59 }
 0x779   : > { %v6260_v63 = vpop.f32.mrf.mxu1 }
 0x77a   : > { %4097 = vrot.lane.b32.xlu1 %v6260_v63, %s7136_s1 }
 0x77b   : > { %v4000_v25 = vpop.f32.mrf.mxu1 }
 0x77c   : > { %4095 = vrot.lane.b32.xlu0 %v4000_v25, %s7136_s1 }
 0x77d   : > { %v6263_v38 = vpop.f32.mrf.mxu1 }
 0x77e   : > { %4180 = vperm.xlu1 %6495, %v6260_v63  }
 0x77f   : > { %v4010_v5 = vpop.f32.mrf.mxu1 }
 0x780   : > { %4176 = vperm.xlu0 %6492, %v4000_v25  }
 0x782   : > { %4101 = vrot.lane.b32.xlu1 %v6263_v38, %s7136_s1 }
 0x784   : > { %4188 = vperm.xlu0 %6492, %v6263_v38   ;;  %v6266_v26 = vpop.f32.mrf.mxu1 }
 0x786   : > { %4099 = vrot.lane.b32.xlu1 %v4010_v5, %s7136_s1  ;;  %v4020_v57 = vpop.f32.mrf.mxu1 }
 0x788   : > { %4103 = vrot.lane.b32.xlu0 %v4020_v57, %s7136_s1 }
 0x78a   : > { %4184 = vperm.xlu1 %6495, %v4010_v5  }
 0x78d   : > { %v6269_v62 = vpop.f32.mrf.mxu1 }
 0x78e   : > { %4105 = vrot.lane.b32.xlu1 %v6266_v26, %s7136_s1 }
 0x78f   : > { %v4030_v49 = vpop.f32.mrf.mxu1 }
 0x790   : > { %4107 = vrot.lane.b32.xlu0 %v4030_v49, %s7136_s1 }
 0x792   : > { %4192 = vperm.xlu1 %6495, %v4020_v57  }
 0x796   : > { %4109 = vrot.lane.b32.xlu1 %v6269_v62, %s7136_s1 }
 0x799   : > { %v6272_v8 = vpop.f32.mrf.mxu1 }
 0x79a   : > { %4113 = vrot.lane.b32.xlu1 %v6272_v8, %s7136_s1 }
 0x79b   : > { %v4040_v37 = vpop.f32.mrf.mxu1 }
 0x79c   : > { %4111 = vrot.lane.b32.xlu0 %v4040_v37, %s7136_s1 }
 0x7a4   : > { %v6275_v27 = vpop.f32.mrf.mxu1 }
 0x7a5   : > { %4117 = vrot.lane.b32.xlu1 %v6275_v27, %s7136_s1 }
 0x7a6   : > { %v4050_v39 = vpop.f32.mrf.mxu1 }
 0x7a7   : > { %4115 = vrot.lane.b32.xlu0 %v4050_v39, %s7136_s1 }
 0x7b2   : > { %v6278_v51 = vpop.f32.mrf.mxu1 }
 0x7b3   : > { %4121 = vrot.lane.b32.xlu1 %v6278_v51, %s7136_s1 }
 0x7b4   : > { %v4060_v11 = vpop.f32.mrf.mxu1 }
 0x7b5   : > { %4119 = vrot.lane.b32.xlu0 %v4060_v11, %s7136_s1 }
 0x7bb   : > { %v6281_v33 = vpop.f32.mrf.mxu1 }
 0x7bc   : > { %4125 = vrot.lane.b32.xlu1 %v6281_v33, %s7136_s1 }
 0x7bd   : > { %v4070_v19 = vpop.f32.mrf.mxu1 }
 0x7be   : > { %4123 = vrot.lane.b32.xlu0 %v4070_v19, %s7136_s1 }
 0x7c0   : > { %4200 = vperm.xlu1 %6495, %v4030_v49  }
 0x7c2   : > { %4196 = vperm.xlu0 %6492, %v6266_v26  }
 0x7c4   : > { %4208 = vperm.xlu1 %6495, %v4040_v37   ;;  %v10612_v37 = vld [vmem:[#allocation76_spill] sm:$0xff] }
 0x7c6   : > { %4204 = vperm.xlu0 %6492, %v6269_v62  }
 0x7c8   : > { %4216 = vperm.xlu1 %6495, %v4050_v39  }
 0x7ca   : > { %4212 = vperm.xlu0 %6492, %v6272_v8  }
 0x7cc   : > { %4224 = vperm.xlu1 %6495, %v4060_v11  }
 0x7ce   : > { %4220 = vperm.xlu0 %6492, %v6275_v27  }
 0x7d2   : > { %4228 = vperm.xlu0 %6492, %v6278_v51  }
 0x7d6   : > { %4232 = vperm.xlu0 %6492, %v4070_v19  }
 0x7da   : > { %4236 = vperm.xlu0 %6492, %v6281_v33  }
 0x7ec   : > { %v4098_v24 = vpop.permute.xlu1 %4097 }
 0x7ee   : > { %v4096_v4 = vpop.permute.xlu0 %4095 }
 0x7f5   : > { %4143 = vxpose.xlu1.b32.start [1/16] (narrow) %v4096_v4, 8 }
 0x7f9   : > { %4144 = vxpose.xlu1.b32.cont [2/16] (narrow) %v4098_v24, 8  ;;  %v4181_v14 = vpop.permute.xlu1 %4180 }
 0x7fb   : > { %v4177_v52 = vpop.permute.xlu0 %4176 }
 0x7fd   : > { %v4102_v47 = vpop.permute.xlu1 %4101 }
 0x7ff   : > { %v4189_v3 = vpop.permute.xlu0 %4188 }
 0x801   : > { %v4100_v29 = vpop.permute.xlu1 %4099 }
 0x802   : > { %4145 = vxpose.xlu1.b32.cont [3/16] (narrow) %v4100_v29, 8 }
 0x803   : > { %v4104_v17 = vpop.permute.xlu0 %4103 }
 0x805   : > { %v4185_v1 = vpop.permute.xlu1 %4184 }
 0x806   : > { %4146 = vxpose.xlu1.b32.cont [4/16] (narrow) %v4102_v47, 8 }
 0x807   : > { %v4108_v12 = vpop.permute.xlu0 %4107 }
 0x809   : > { %v4106_v56 = vpop.permute.xlu1 %4105 }
 0x80a   : > { %4147 = vxpose.xlu1.b32.cont [5/16] (narrow) %v4104_v17, 8 }
 0x80d   : > { %v4193_v55 = vpop.permute.xlu1 %4192 }
 0x80e   : > { %4148 = vxpose.xlu1.b32.cont [6/16] (narrow) %v4106_v56, 8  ;;  %v4112_v48 = vpop.permute.xlu0 %4111  ;;  %v10599_v56 = vld [vmem:[#allocation56_spill] sm:$0xff] }
 0x811   : > { %v4110_v10 = vpop.permute.xlu1 %4109 }
 0x812   : > { %4149 = vxpose.xlu1.b32.cont [7/16] (narrow) %v4108_v12, 8 }
 0x815   : > { %v4114_v46 = vpop.permute.xlu1 %4113 }
 0x816   : > { %4150 = vxpose.xlu1.b32.cont [8/16] (narrow) %v4110_v10, 8 }
 0x819   : > { %v4116_v53 = vpop.permute.xlu0 %4115  ;;  %v4118_v6 = vpop.permute.xlu1 %4117 }
 0x81a   : > { %4151 = vxpose.xlu1.b32.cont [9/16] (narrow) %v4112_v48, 8 }
 0x81e   : > { %4152 = vxpose.xlu1.b32.cont [10/16] (narrow) %v4114_v46, 8 }
 0x822   : > { %4153 = vxpose.xlu1.b32.cont [11/16] (narrow) %v4116_v53, 8  ;;  %v10601_v53 = vld [vmem:[#allocation65_spill] sm:$0xff] }
 0x823   : > { %vm10602_vm8 = vcmp.gt.f32.partialorder %v10601_v53, 0.0 }
 0x825   : > { %v4122_v35 = vpop.permute.xlu1 %4121 }
 0x826   : > { %4154 = vxpose.xlu1.b32.cont [12/16] (narrow) %v4118_v6, 8 }
 0x827   : > { %v4120_v7 = vpop.permute.xlu0 %4119 }
 0x82a   : > { %4155 = vxpose.xlu1.b32.cont [13/16] (narrow) %v4120_v7, 8 }
 0x82e   : > { %4156 = vxpose.xlu1.b32.cont [14/16] (narrow) %v4122_v35, 8  ;;  %v4126_v18 = vpop.permute.xlu1 %4125 }
 0x830   : > { %v4124_v31 = vpop.permute.xlu0 %4123 }
 0x832   : > { %4157 = vxpose.xlu1.b32.cont [15/16] (narrow) %v4124_v31, 8 }
 0x836   : > { %4158 = vxpose.xlu1.b32.end [16/16] (narrow) %v4126_v18, 8 }
 0x83b   : > { %v4201_v50 = vpop.permute.xlu1 %4200 }
 0x83d   : > { %v4197_v44 = vpop.permute.xlu0 %4196 }
 0x83f   : > { %v4209_v28 = vpop.permute.xlu1 %4208 }
 0x841   : > { %v4205_v8 = vpop.permute.xlu0 %4204 }
 0x843   : > { %v4217_v61 = vpop.permute.xlu1 %4216 }
 0x847   : > { %v9207_v15 = vpop.permute.xlu1 %4224 }
 0x876   : > { %v4159_v16 = vpop.trf.xlu1 }
 0x877   : > { %v9210_v40 = vrot.slane %v4159_v16, %v10591_v32 }
 0x879   : > { %v4243_v42 = vadd.f32 %v9210_v40, %v4177_v52  ;;  %v4244_v22 = vadd.f32 %v9210_v40, %v4181_v14  ;;  %v4245_v59 = vadd.f32 %v9210_v40, %v4185_v1  ;;  %v4246_v54 = vadd.f32 %v9210_v40, %v4189_v3  ;;  %v4213_v52 = vpop.permute.xlu0 %4212 }
 0x87a   : > { %v4247_v58 = vadd.f32 %v9210_v40, %v4193_v55  ;;  %v4248_v38 = vadd.f32 %v9210_v40, %v4197_v44  ;;  %v4249_v49 = vadd.f32 %v9210_v40, %v4201_v50  ;;  %v4250_v11 = vadd.f32 %v9210_v40, %v4205_v8  ;;  %v10603_v50 = vld [vmem:[#allocation60_spill] sm:$0xff] }
 0x87b   : > { %vm4259_vm3 = vcmp.gt.f32.partialorder %v4243_v42, 0.0  ;;  %v4275_v43 = vmul.f32 0.2, %v4243_v42  ;;  %v4276_v20 = vmul.f32 0.2, %v4244_v22  ;;  %vm4260_vm0 = vcmp.gt.f32.partialorder %v4244_v22, 0.0 }
 0x87c   : > { %v4277_v34 = vmul.f32 0.2, %v4245_v59  ;;  %vm4261_vm6 = vcmp.gt.f32.partialorder %v4245_v59, 0.0  ;;  %v4278_v9 = vmul.f32 0.2, %v4246_v54  ;;  %vm4262_vm14 = vcmp.gt.f32.partialorder %v4246_v54, 0.0 }
 0x87d   : > { %v4291_v60 = vsel %vm4259_vm3, %v4243_v42, %v4275_v43  ;;  %v4292_v0 = vsel %vm4260_vm0, %v4244_v22, %v4276_v20  ;;  %v4279_v25 = vmul.f32 0.2, %v4247_v58  ;;  %v4280_v62 = vmul.f32 0.2, %v4248_v38  ;;  %v4221_v46 = vpop.permute.xlu0 %4220 }
 0x87e   : > { %v9217_v30 = vsel %vm792_vm13, %v4291_v60, -1e+30  ;;  %v9223_v13 = vsel %vm793_vm12, %v4292_v0, -1e+30  ;;  %v4293_v2 = vsel %vm4261_vm6, %v4245_v59, %v4277_v34  ;;  %v4294_v63 = vsel %vm4262_vm14, %v4246_v54, %v4278_v9  ;;  %v10606_v0 = vld [vmem:[#allocation64_spill] sm:$0xff] }
 0x87f   : > { %4323 = vmax.xlane.f32.xlu0 %v9217_v30  ;;  %v9229_v45 = vsel %vm794_vm10, %v4293_v2, -1e+30  ;;  %vm4263_vm12 = vcmp.gt.f32.partialorder %v4247_v58, 0.0  ;;  %v9235_v26 = vsel %vm795_vm4, %v4294_v63, -1e+30  ;;  %vm4264_vm13 = vcmp.gt.f32.partialorder %v4248_v38, 0.0 }
 0x880   : > { %v4295_v57 = vsel %vm4263_vm12, %v4247_v58, %v4279_v25  ;;  %v4296_v39 = vsel %vm4264_vm13, %v4248_v38, %v4280_v62  ;;  %v4281_v51 = vmul.f32 0.2, %v4249_v49  ;;  %vm4265_vm4 = vcmp.gt.f32.partialorder %v4249_v49, 0.0  ;;  %v10609_v25 = vld [vmem:[#allocation70_spill] sm:$0xff] }
 0x881   : > { %v9241_v27 = vsel %vm796_vm5, %v4295_v57, -1e+30  ;;  %v9247_v19 = vsel %vm797_vm9, %v4296_v39, -1e+30  ;;  %v4282_v24 = vmul.f32 0.2, %v4250_v11  ;;  %v4251_v14 = vadd.f32 %v9210_v40, %v4209_v28  ;;  %v4229_v18 = vpop.permute.xlu0 %4228 }
 0x882   : > { %v4297_v4 = vsel %vm4265_vm4, %v4249_v49, %v4281_v51  ;;  %vm4266_vm10 = vcmp.gt.f32.partialorder %v4250_v11, 0.0  ;;  %v4252_v17 = vadd.f32 %v9210_v40, %v4213_v52  ;;  %vm10600_vm5 = vcmp.gt.f32.partialorder %v10599_v56, 0.0 }
 0x883   : > { %4325 = vmax.xlane.f32.xlu0 %v9223_v13  ;;  %v9253_v29 = vsel %vm798_vm15, %v4297_v4, -1e+30  ;;  %v4298_v3 = vsel %vm4266_vm10, %v4250_v11, %v4282_v24  ;;  %v4283_v1 = vmul.f32 0.2, %v4251_v14  ;;  %vm4267_vm9 = vcmp.gt.f32.partialorder %v4251_v14, 0.0 }
 0x884   : > { %v9259_v55 = vsel %vm10600_vm5, %v4298_v3, -1e+30  ;;  %v4284_v10 = vmul.f32 0.2, %v4252_v17  ;;  %v4253_v48 = vadd.f32 %v9210_v40, %v4217_v61  ;;  %vm4268_vm15 = vcmp.gt.f32.partialorder %v4252_v17, 0.0 }
 0x885   : > { %v4299_v12 = vsel %vm4267_vm9, %v4251_v14, %v4283_v1  ;;  %v4254_v31 = vadd.f32 %v9210_v40, %v4221_v46  ;;  %vm10604_vm0 = vcmp.gt.f32.partialorder %v10603_v50, 0.0  ;;  %v4255_v42 = vadd.f32 %v9210_v40, %v9207_v15  ;;  %v4233_v41 = vpop.permute.xlu0 %4232 }
 0x886   : > { %v9265_v6 = vsel %vm10602_vm8, %v4299_v12, -1e+30  ;;  %v4300_v7 = vsel %vm4268_vm15, %v4252_v17, %v4284_v10  ;;  %v4285_v35 = vmul.f32 0.2, %v4253_v48  ;;  %vm4269_vm3 = vcmp.gt.f32.partialorder %v4253_v48, 0.0 }
 0x887   : > { %4327 = vmax.xlane.f32.xlu0 %v9229_v45  ;;  %v9271_v28 = vsel %vm10604_vm0, %v4300_v7, -1e+30  ;;  %v4286_v16 = vmul.f32 0.2, %v4254_v31  ;;  %vm4270_vm6 = vcmp.gt.f32.partialorder %v4254_v31, 0.0  ;;  %v4256_v60 = vadd.f32 %v9210_v40, %v4229_v18 }
 0x888   : > { %v4301_v61 = vsel %vm4269_vm3, %v4253_v48, %v4285_v35  ;;  %v4287_v59 = vmul.f32 0.2, %v4255_v42  ;;  %vm4271_vm14 = vcmp.gt.f32.partialorder %v4255_v42, 0.0  ;;  %vm10607_vm12 = vcmp.gt.f32.partialorder %v10606_v0, 0.0 }
 0x889   : > { %v9278_v43 = vsel %vm802_vm1, %v4301_v61, -1e+30  ;;  %v4302_v20 = vsel %vm4270_vm6, %v4254_v31, %v4286_v16  ;;  %v4288_v54 = vmul.f32 0.2, %v4256_v60  ;;  %v4257_v23 = vadd.f32 %v9210_v40, %v4233_v41  ;;  %v4237_v2 = vpop.permute.xlu0 %4236 }
 0x88a   : > { %v9284_v34 = vsel %vm10607_vm12, %v4302_v20, -1e+30  ;;  %v4303_v15 = vsel %vm4271_vm14, %v4255_v42, %v4287_v59  ;;  %vm4272_vm1 = vcmp.gt.f32.partialorder %v4256_v60, 0.0  ;;  %v4258_v63 = vadd.f32 %v9210_v40, %v4237_v2 }
 0x88b   : > { %4329 = vmax.xlane.f32.xlu0 %v9235_v26  ;;  %v9290_v58 = vsel %vm804_vm2, %v4303_v15, -1e+30  ;;  %v4304_v44 = vsel %vm4272_vm1, %v4256_v60, %v4288_v54  ;;  %v4289_v21 = vmul.f32 0.2, %v4257_v23  ;;  %vm4273_vm13 = vcmp.gt.f32.partialorder %v4257_v23, 0.0 }
 0x88c   : > { %vm10610_vm4 = vcmp.gt.f32.partialorder %v10609_v25, 0.0  ;;  %v4290_v57 = vmul.f32 0.2, %v4258_v63  ;;  %vm4274_vm10 = vcmp.gt.f32.partialorder %v4258_v63, 0.0  ;;  %vm10613_vm2 = vcmp.gt.f32.partialorder %v10612_v37, 0.0 }
 0x88d   : > { %v9296_v38 = vsel %vm10610_vm4, %v4304_v44, -1e+30  ;;  %v4305_v5 = vsel %vm4273_vm13, %v4257_v23, %v4289_v21 }
 0x88e   : > { %v9301_v49 = vsel %vm806_vm11, %v4305_v5, -1e+30  ;;  %v4306_v8 = vsel %vm4274_vm10, %v4258_v63, %v4290_v57  ;;  %vm7137_vm11 = vmmov 0  }
 0x88f   : > { %4331 = vmax.xlane.f32.xlu0 %v9241_v27  ;;  %v9306_v40 = vsel %vm10613_vm2, %v4306_v8, -1e+30  ;;  %6370 = vmatprep.mubr.msk.f32.mxu1 %vm7137_vm11, %v10566_v36 }
 0x893   : > { %4333 = vmax.xlane.f32.xlu0 %v9247_v19 }
 0x897   : > { %4335 = vmax.xlane.f32.xlu0 %v9253_v29 }
 0x89b   : > { %4337 = vmax.xlane.f32.xlu0 %v9259_v55 }
 0x89f   : > { %4339 = vmax.xlane.f32.xlu0 %v9265_v6 }
 0x8a3   : > { %4341 = vmax.xlane.f32.xlu0 %v9271_v28 }
 0x8a7   : > { %4343 = vmax.xlane.f32.xlu0 %v9278_v43 }
 0x8ab   : > { %4345 = vmax.xlane.f32.xlu0 %v9284_v34 }
 0x8af   : > { %4347 = vmax.xlane.f32.xlu0 %v9290_v58 }
 0x8b3   : > { %4349 = vmax.xlane.f32.xlu0 %v9296_v38 }
 0x8b7   : > { %4351 = vmax.xlane.f32.xlu0 %v9301_v49 }
 0x8bb   : > { %4353 = vmax.xlane.f32.xlu0 %v9306_v40 }
 0x908   : > { %v4324_v39 = vpop.xlane.xlu0 %4323 }
 0x909   : > { %v4355_v51 = vsub.f32 %v9217_v30, %v4324_v39 }
 0x90b   : > { %v4371_v11 = vmul.f32 1.442695, %v4355_v51 }
 0x90c   : > { %v4326_v33 = vpop.xlane.xlu0 %4325 }
 0x90d   : > { %6848 = vpow2.f32 %v4371_v11  ;;  %v4356_v4 = vsub.f32 %v9223_v13, %v4326_v33 }
 0x90f   : > { %v4373_v24 = vmul.f32 1.442695, %v4356_v4 }
 0x910   : > { %v4328_v14 = vpop.xlane.xlu0 %4327 }
 0x911   : > { %6850 = vpow2.f32 %v4373_v24  ;;  %v4357_v52 = vsub.f32 %v9229_v45, %v4328_v14 }
 0x913   : > { %v4375_v47 = vmul.f32 1.442695, %v4357_v52 }
 0x914   : > { %v4330_v3 = vpop.xlane.xlu0 %4329 }
 0x915   : > { %6852 = vpow2.f32 %v4375_v47  ;;  %v4358_v1 = vsub.f32 %v9235_v26, %v4330_v3 }
 0x917   : > { %v4377_v17 = vmul.f32 1.442695, %v4358_v1 }
 0x918   : > { %v4332_v56 = vpop.xlane.xlu0 %4331 }
 0x919   : > { %6854 = vpow2.f32 %v4377_v17  ;;  %v4359_v30 = vsub.f32 %v9241_v27, %v4332_v56 }
 0x91a   : > { %v9314_v12 = vpop.eup %6848 }
 0x91b   : > { %v4379_v10 = vmul.f32 1.442695, %v4359_v30  ;;  %4403 = vadd.xlane.f32.xlu0 %v9314_v12 }
 0x91c   : > { %v4334_v13 = vpop.xlane.xlu0 %4333 }
 0x91d   : > { %6856 = vpow2.f32 %v4379_v10  ;;  %v4360_v48 = vsub.f32 %v9247_v19, %v4334_v13 }
 0x91e   : > { %v9318_v45 = vpop.eup %6850 }
 0x91f   : > { %v4381_v46 = vmul.f32 1.442695, %v4360_v48  ;;  %4405 = vadd.xlane.f32.xlu1 %v9318_v45 }
 0x920   : > { %v4336_v26 = vpop.xlane.xlu0 %4335 }
 0x921   : > { %6858 = vpow2.f32 %v4381_v46  ;;  %v4361_v53 = vsub.f32 %v9253_v29, %v4336_v26 }
 0x922   : > { %v9322_v7 = vpop.eup %6852 }
 0x923   : > { %v4383_v27 = vmul.f32 1.442695, %v4361_v53  ;;  %4407 = vadd.xlane.f32.xlu0 %v9322_v7 }
 0x924   : > { %v4338_v35 = vpop.xlane.xlu0 %4337 }
 0x925   : > { %6860 = vpow2.f32 %v4383_v27  ;;  %v4362_v31 = vsub.f32 %v9259_v55, %v4338_v35 }
 0x926   : > { %v9326_v18 = vpop.eup %6854 }
 0x927   : > { %v4385_v19 = vmul.f32 1.442695, %v4362_v31  ;;  %4409 = vadd.xlane.f32.xlu0 %v9326_v18 }
 0x928   : > { %v4340_v50 = vpop.xlane.xlu0 %4339 }
 0x929   : > { %6862 = vpow2.f32 %v4385_v19  ;;  %v4363_v61 = vsub.f32 %v9265_v6, %v4340_v50 }
 0x92a   : > { %v9330_v16 = vpop.eup %6856 }
 0x92b   : > { %v4387_v29 = vmul.f32 1.442695, %v4363_v61  ;;  %4411 = vadd.xlane.f32.xlu0 %v9330_v16 }
 0x92c   : > { %v4342_v42 = vpop.xlane.xlu0 %4341 }
 0x92d   : > { %6864 = vpow2.f32 %v4387_v29  ;;  %v4364_v22 = vsub.f32 %v9271_v28, %v4342_v42 }
 0x92e   : > { %v9334_v20 = vpop.eup %6858 }
 0x92f   : > { %v4389_v55 = vmul.f32 1.442695, %v4364_v22  ;;  %4413 = vadd.xlane.f32.xlu0 %v9334_v20 }
 0x930   : > { %v4344_v59 = vpop.xlane.xlu0 %4343 }
 0x931   : > { %6866 = vpow2.f32 %v4389_v55  ;;  %v4365_v60 = vsub.f32 %v9278_v43, %v4344_v59 }
 0x932   : > { %v9338_v41 = vpop.eup %6860 }
 0x933   : > { %v4391_v6 = vmul.f32 1.442695, %v4365_v60  ;;  %4415 = vadd.xlane.f32.xlu0 %v9338_v41 }
 0x934   : > { %v4346_v0 = vpop.xlane.xlu0 %4345 }
 0x935   : > { %6868 = vpow2.f32 %v4391_v6  ;;  %v4366_v15 = vsub.f32 %v9284_v34, %v4346_v0 }
 0x936   : > { %v9342_v54 = vpop.eup %6862 }
 0x937   : > { %v4393_v28 = vmul.f32 1.442695, %v4366_v15  ;;  %4417 = vadd.xlane.f32.xlu0 %v9342_v54 }
 0x938   : > { %v4348_v23 = vpop.xlane.xlu0 %4347 }
 0x939   : > { %6870 = vpow2.f32 %v4393_v28  ;;  %v4367_v2 = vsub.f32 %v9290_v58, %v4348_v23 }
 0x93a   : > { %v9346_v9 = vpop.eup %6864 }
 0x93b   : > { %v4395_v43 = vmul.f32 1.442695, %v4367_v2  ;;  %4419 = vadd.xlane.f32.xlu0 %v9346_v9 }
 0x93c   : > { %v4350_v44 = vpop.xlane.xlu0 %4349 }
 0x93d   : > { %6872 = vpow2.f32 %v4395_v43  ;;  %v4368_v21 = vsub.f32 %v9296_v38, %v4350_v44 }
 0x93e   : > { %v9350_v63 = vpop.eup %6866 }
 0x93f   : > { %v4397_v34 = vmul.f32 1.442695, %v4368_v21  ;;  %4421 = vadd.xlane.f32.xlu0 %v9350_v63 }
 0x940   : > { %v4352_v25 = vpop.xlane.xlu0 %4351 }
 0x941   : > { %6874 = vpow2.f32 %v4397_v34  ;;  %v4369_v5 = vsub.f32 %v9301_v49, %v4352_v25 }
 0x942   : > { %v9354_v57 = vpop.eup %6868 }
 0x943   : > { %v4399_v58 = vmul.f32 1.442695, %v4369_v5  ;;  %4423 = vadd.xlane.f32.xlu0 %v9354_v57 }
 0x944   : > { %v4354_v62 = vpop.xlane.xlu0 %4353 }
 0x945   : > { %6876 = vpow2.f32 %v4399_v58  ;;  %v4370_v8 = vsub.f32 %v9306_v40, %v4354_v62 }
 0x946   : > { %v9358_v37 = vpop.eup %6870 }
 0x947   : > { %v4401_v38 = vmul.f32 1.442695, %v4370_v8  ;;  %4425 = vadd.xlane.f32.xlu0 %v9358_v37 }
 0x949   : > { %6878 = vpow2.f32 %v4401_v38 }
 0x94a   : > { %v9361_v39 = vpop.eup %6872 }
 0x94b   : > { %4427 = vadd.xlane.f32.xlu1 %v9361_v39 }
 0x94e   : > { %v9364_v49 = vpop.eup %6874 }
 0x94f   : > { %4429 = vadd.xlane.f32.xlu0 %v9364_v49 }
 0x952   : > { %v9367_v51 = vpop.eup %6876 }
 0x953   : > { %4431 = vadd.xlane.f32.xlu1 %v9367_v51 }
 0x956   : > { %v9370_v11 = vpop.eup %6878 }
 0x957   : > { %4433 = vadd.xlane.f32.xlu0 %v9370_v11 }
 0x9a4   : > { %v4404_v40 = vpop.xlane.xlu0 %4403 }
 0x9a5   : > { %6880 = vrcp.f32 %v4404_v40 }
 0x9a8   : > { %v4406_v33 = vpop.xlane.xlu1 %4405 }
 0x9a9   : > { %6882 = vrcp.f32 %v4406_v33 }
 0x9ac   : > { %v4408_v4 = vpop.xlane.xlu0 %4407 }
 0x9ad   : > { %6884 = vrcp.f32 %v4408_v4 }
 0x9b0   : > { %v4410_v24 = vpop.xlane.xlu0 %4409 }
 0x9b1   : > { %6886 = vrcp.f32 %v4410_v24 }
 0x9b2   : > { %v6881_v14 = vpop.eup %6880 }
 0x9b3   : > { %v4451_v52 = vmul.f32 %v6881_v14, %v4404_v40 }
 0x9b4   : > { %v4412_v47 = vpop.xlane.xlu0 %4411 }
 0x9b5   : > { %v4467_v3 = vsub.f32 2.0, %v4451_v52  ;;  %6888 = vrcp.f32 %v4412_v47 }
 0x9b6   : > { %v6883_v1 = vpop.eup %6882 }
 0x9b7   : > { %v4483_v17 = vmul.f32 %v6881_v14, %v4467_v3  ;;  %v4452_v56 = vmul.f32 %v6883_v1, %v4406_v33 }
 0x9b8   : > { %v4414_v30 = vpop.xlane.xlu0 %4413 }
 0x9b9   : > { %v4468_v10 = vsub.f32 2.0, %v4452_v56  ;;  %6890 = vrcp.f32 %v4414_v30  ;;  %v4499_v13 = vmul.f32 %v9314_v12, %v4483_v17 }
 0x9ba   : > { %v6885_v48 = vpop.eup %6884 }
 0x9bb   : > { %v4484_v46 = vmul.f32 %v6883_v1, %v4468_v10  ;;  %v4453_v26 = vmul.f32 %v6885_v48, %v4408_v4  ;;  %6314 = vmatprep.mubr.f32.mxu0 %v4499_v13 }
 0x9bc   : > { %v4416_v53 = vpop.xlane.xlu0 %4415 }
 0x9bd   : > { %v4500_v27 = vmul.f32 %v9318_v45, %v4484_v46  ;;  %v4469_v35 = vsub.f32 2.0, %v4453_v26  ;;  %6892 = vrcp.f32 %v4416_v53 }
 0x9be   : > { %v6887_v31 = vpop.eup %6886 }
 0x9bf   : > { %v4485_v19 = vmul.f32 %v6885_v48, %v4469_v35  ;;  %v4454_v50 = vmul.f32 %v6887_v31, %v4410_v24  ;;  %6315 = vmatmul.mubr.f32.vlgmr.msra.gmra.mxu0 %v4500_v27 }
 0x9c0   : > { %v4418_v61 = vpop.xlane.xlu0 %4417 }
 0x9c1   : > { %v4470_v29 = vsub.f32 2.0, %v4454_v50  ;;  %6894 = vrcp.f32 %v4418_v61  ;;  %v4501_v42 = vmul.f32 %v9322_v7, %v4485_v19 }
 0x9c2   : > { %v6889_v22 = vpop.eup %6888 }
 0x9c3   : > { %v4486_v12 = vmul.f32 %v6887_v31, %v4470_v29  ;;  %v4455_v55 = vmul.f32 %v6889_v22, %v4412_v47  ;;  %6317 = vmatprep.mubr.f32.mxu0 %v4501_v42 }
 0x9c4   : > { %v4420_v59 = vpop.xlane.xlu0 %4419 }
 0x9c5   : > { %v4471_v60 = vsub.f32 2.0, %v4455_v55  ;;  %6896 = vrcp.f32 %v4420_v59  ;;  %v4502_v45 = vmul.f32 %v9326_v18, %v4486_v12 }
 0x9c6   : > { %v6891_v6 = vpop.eup %6890 }
 0x9c7   : > { %v4487_v0 = vmul.f32 %v6889_v22, %v4471_v60  ;;  %v4456_v15 = vmul.f32 %v6891_v6, %v4414_v30  ;;  %6318 = vmatmul.mubr.f32.gmra.mxu0 %v4502_v45 }
 0x9c8   : > { %v4422_v28 = vpop.xlane.xlu0 %4421 }
 0x9c9   : > { %v4472_v23 = vsub.f32 2.0, %v4456_v15  ;;  %6898 = vrcp.f32 %v4422_v28  ;;  %v4503_v2 = vmul.f32 %v9330_v16, %v4487_v0 }
 0x9ca   : > { %v6893_v43 = vpop.eup %6892 }
 0x9cb   : > { %v4488_v7 = vmul.f32 %v6891_v6, %v4472_v23  ;;  %v4457_v44 = vmul.f32 %v6893_v43, %v4416_v53  ;;  %6320 = vmatprep.mubr.f32.mxu0 %v4503_v2 }
 0x9cc   : > { %v4424_v21 = vpop.xlane.xlu0 %4423 }
 0x9cd   : > { %v4473_v34 = vsub.f32 2.0, %v4457_v44  ;;  %6900 = vrcp.f32 %v4424_v21  ;;  %v4504_v25 = vmul.f32 %v9334_v20, %v4488_v7 }
 0x9ce   : > { %v6895_v5 = vpop.eup %6894 }
 0x9cf   : > { %v4489_v18 = vmul.f32 %v6893_v43, %v4473_v34  ;;  %v4458_v58 = vmul.f32 %v6895_v5, %v4418_v61  ;;  %6321 = vmatmul.mubr.f32.gmra.mxu0 %v4504_v25 }
 0x9d0   : > { %v4426_v62 = vpop.xlane.xlu0 %4425 }
 0x9d1   : > { %v4474_v8 = vsub.f32 2.0, %v4458_v58  ;;  %6902 = vrcp.f32 %v4426_v62  ;;  %v4505_v38 = vmul.f32 %v9338_v41, %v4489_v18 }
 0x9d2   : > { %v6897_v40 = vpop.eup %6896 }
 0x9d3   : > { %v4490_v16 = vmul.f32 %v6895_v5, %v4474_v8  ;;  %v4459_v33 = vmul.f32 %v6897_v40, %v4420_v59  ;;  %6323 = vmatprep.mubr.f32.mxu0 %v4505_v38  ;;  %v9390_v5 = vld [vmem:[#allocation5] ss:$0 sm:$0xff] }
 0x9d4   : > { %v4428_v4 = vpop.xlane.xlu1 %4427 }
 0x9d5   : > { %v4475_v24 = vsub.f32 2.0, %v4459_v33  ;;  %6904 = vrcp.f32 %v4428_v4  ;;  %v4506_v14 = vmul.f32 %v9342_v54, %v4490_v16 }
 0x9d6   : > { %v6899_v52 = vpop.eup %6898 }
 0x9d7   : > { %v4491_v20 = vmul.f32 %v6897_v40, %v4475_v24  ;;  %v4460_v47 = vmul.f32 %v6899_v52, %v4422_v28  ;;  %6324 = vmatmul.mubr.f32.gmra.mxu0 %v4506_v14 }
 0x9d8   : > { %v4430_v3 = vpop.xlane.xlu0 %4429 }
 0x9d9   : > { %v4476_v1 = vsub.f32 2.0, %v4460_v47  ;;  %6906 = vrcp.f32 %v4430_v3  ;;  %v4507_v17 = vmul.f32 %v9346_v9, %v4491_v20 }
 0x9da   : > { %v6901_v56 = vpop.eup %6900 }
 0x9db   : > { %v4492_v41 = vmul.f32 %v6899_v52, %v4476_v1  ;;  %v4461_v30 = vmul.f32 %v6901_v56, %v4424_v21  ;;  %6326 = vmatprep.mubr.f32.mxu0 %v4507_v17 }
 0x9dc   : > { %v4432_v10 = vpop.xlane.xlu1 %4431 }
 0x9dd   : > { %v4477_v13 = vsub.f32 2.0, %v4461_v30  ;;  %6908 = vrcp.f32 %v4432_v10  ;;  %v4508_v48 = vmul.f32 %v9350_v63, %v4492_v41 }
 0x9de   : > { %v6903_v46 = vpop.eup %6902 }
 0x9df   : > { %v4493_v54 = vmul.f32 %v6901_v56, %v4477_v13  ;;  %v4462_v26 = vmul.f32 %v6903_v46, %v4426_v62  ;;  %6327 = vmatmul.mubr.f32.gmra.mxu0 %v4508_v48 }
 0x9e0   : > { %v4434_v53 = vpop.xlane.xlu0 %4433 }
 0x9e1   : > { %v4478_v27 = vsub.f32 2.0, %v4462_v26  ;;  %6910 = vrcp.f32 %v4434_v53  ;;  %v4509_v35 = vmul.f32 %v9354_v57, %v4493_v54 }
 0x9e2   : > { %v6905_v31 = vpop.eup %6904 }
 0x9e3   : > { %v4494_v9 = vmul.f32 %v6903_v46, %v4478_v27  ;;  %v4463_v19 = vmul.f32 %v6905_v31, %v4428_v4  ;;  %6329 = vmatprep.mubr.f32.mxu0 %v4509_v35 }
 0x9e5   : > { %v4479_v50 = vsub.f32 2.0, %v4463_v19  ;;  %v4510_v61 = vmul.f32 %v9358_v37, %v4494_v9 }
 0x9e6   : > { %v6907_v29 = vpop.eup %6906 }
 0x9e7   : > { %v4495_v42 = vmul.f32 %v6905_v31, %v4479_v50  ;;  %v4464_v22 = vmul.f32 %v6907_v29, %v4430_v3  ;;  %6330 = vmatmul.mubr.f32.gmra.mxu0 %v4510_v61 }
 0x9e9   : > { %v4480_v63 = vsub.f32 2.0, %v4464_v22  ;;  %v4511_v12 = vmul.f32 %v9361_v39, %v4495_v42 }
 0x9ea   : > { %v6909_v55 = vpop.eup %6908 }
 0x9eb   : > { %v4496_v59 = vmul.f32 %v6907_v29, %v4480_v63  ;;  %v4465_v60 = vmul.f32 %v6909_v55, %v4432_v10  ;;  %6332 = vmatprep.mubr.f32.mxu0 %v4511_v12 }
 0x9ed   : > { %v4481_v45 = vsub.f32 2.0, %v4465_v60  ;;  %v4512_v57 = vmul.f32 %v9364_v49, %v4496_v59 }
 0x9ee   : > { %v6911_v6 = vpop.eup %6910 }
 0x9ef   : > { %v4497_v0 = vmul.f32 %v6909_v55, %v4481_v45  ;;  %v4466_v15 = vmul.f32 %v6911_v6, %v4434_v53  ;;  %6333 = vmatmul.mubr.f32.gmra.mxu0 %v4512_v57 }
 0x9f1   : > { %v4482_v28 = vsub.f32 2.0, %v4466_v15  ;;  %v4513_v37 = vmul.f32 %v9367_v51, %v4497_v0 }
 0x9f3   : > { %v4498_v23 = vmul.f32 %v6911_v6, %v4482_v28  ;;  %6335 = vmatprep.mubr.f32.mxu0 %v4513_v37 }
 0x9f5   : > { %v4514_v2 = vmul.f32 %v9370_v11, %v4498_v23 }
 0x9f7   : > { %6336 = vmatmul.mubr.f32.gmra.mxu0 %v4514_v2 }
 0xa7f   : > { %v6316_v39 = vpop.f32.mrf.mxu0 }
 0xa80   : > { %v9393_v51 = vadd.f32 %v6316_v39, %v9390_v5 }
 0xa81   : > { %v4587_v43 = vpop.f32.mrf.mxu0 }
 0xa82   : > { %10614 = vst [vmem:[#allocation26_spill] sm:$0xff] %v9393_v51  ;;  %v9396_v11 = vadd.f32 %v9390_v5, %v4587_v43  ;;  %v4715_v40 = vand.u32 2147483647, %v9393_v51 }
 0xa84   : > { %10615 = vst [vmem:[#allocation27_spill] sm:$0xff] %v9396_v11  ;;  %v4714_v33 = vand.u32 2147483647, %v9396_v11  ;;  %v4731_v20 = vsub.f32 0.0, %v4715_v40 }
 0xa86   : > { %v4730_v1 = vsub.f32 0.0, %v4714_v33  ;;  %v4748_v46 = vmul.f32 1.442695, %v4731_v20 }
 0xa87   : > { %v6319_v7 = vpop.f32.mrf.mxu0 }
 0xa88   : > { %v9399_v62 = vadd.f32 %v6319_v7, %v9390_v5  ;;  %v4746_v53 = vmul.f32 1.442695, %v4730_v1  ;;  %6912 = vpow2.f32 %v4748_v46 }
 0xa89   : > { %v4597_v44 = vpop.f32.mrf.mxu0 }
 0xa8a   : > { %10616 = vst [vmem:[#allocation28_spill] sm:$0xff] %v9399_v62  ;;  %v9402_v8 = vadd.f32 %v9390_v5, %v4597_v44  ;;  %v4717_v4 = vand.u32 2147483647, %v9399_v62  ;;  %6914 = vpow2.f32 %v4746_v53 }
 0xa8c   : > { %10617 = vst [vmem:[#allocation24_spill] sm:$0xff] %v9402_v8  ;;  %v4716_v24 = vand.u32 2147483647, %v9402_v8  ;;  %v4733_v56 = vsub.f32 0.0, %v4717_v4 }
 0xa8e   : > { %v4732_v41 = vsub.f32 0.0, %v4716_v24  ;;  %v4752_v31 = vmul.f32 1.442695, %v4733_v56 }
 0xa8f   : > { %v6322_v21 = vpop.f32.mrf.mxu0 }
 0xa90   : > { %v9412_v14 = vadd.f32 %v6322_v21, %v9390_v5  ;;  %v4750_v9 = vmul.f32 1.442695, %v4732_v41  ;;  %6916 = vpow2.f32 %v4752_v31 }
 0xa91   : > { %v4607_v34 = vpop.f32.mrf.mxu0 }
 0xa92   : > { %v9415_v47 = vadd.f32 %v9390_v5, %v4607_v34  ;;  %v4719_v13 = vand.u32 2147483647, %v9412_v14  ;;  %6918 = vpow2.f32 %v4750_v9 }
 0xa94   : > { %10618 = vst [vmem:[#allocation25_spill] sm:$0xff] %v9415_v47  ;;  %v4718_v54 = vand.u32 2147483647, %v9415_v47  ;;  %v4735_v61 = vsub.f32 0.0, %v4719_v13 }
 0xa95   : > { %v9456_v20 = vpop.eup %6912 }
 0xa96   : > { %v4734_v63 = vsub.f32 0.0, %v4718_v54  ;;  %v4756_v15 = vmul.f32 1.442695, %v4735_v61  ;;  %10619 = vst [vmem:[#allocation22_spill] sm:$0xff] %v9456_v20  ;;  %v4787_v46 = vadd.f32 1.0, %v9456_v20 }
 0xa97   : > { %v6325_v49 = vpop.f32.mrf.mxu0 }
 0xa98   : > { %v9406_v16 = vadd.f32 %v6325_v49, %v9390_v5  ;;  %v4754_v23 = vmul.f32 1.442695, %v4734_v63 }
 0xa99   : > { %v4617_v25 = vpop.f32.mrf.mxu0 }
 0xa9a   : > { %v4721_v3 = vand.u32 2147483647, %v9406_v16  ;;  %v9440_v55 = vadd.f32 %v9390_v5, %v4617_v25  ;;  %vm4689_vm11 = vcmp.ne.f32.partialorder %v9406_v16, %v9406_v16 }
 0xa9c   : > { %v4737_v26 = vsub.f32 0.0, %v4721_v3  ;;  %v4720_v2 = vand.u32 2147483647, %v9440_v55  ;;  %v9458_v3 = vpop.eup %6914 }
 0xa9d   : > { %10620 = vst [vmem:[#allocation29_spill] sm:$0xff] %v9458_v3  ;;  %v9460_v56 = vpop.eup %6916 }
 0xa9e   : > { %v4760_v12 = vmul.f32 1.442695, %v4737_v26  ;;  %v4736_v25 = vsub.f32 0.0, %v4720_v2  ;;  %v4778_v26 = vadd.f32 1.0, %v9458_v3  ;;  %v4805_v53 = vadd.f32 1.0, %v9460_v56 }
 0xa9f   : > { %v6328_v18 = vpop.f32.mrf.mxu0  ;;  %v9462_v41 = vpop.eup %6918 }
 0xaa0   : > { %v9426_v48 = vadd.f32 %v6328_v18, %v9390_v5  ;;  %6920 = vpow2.f32 %v4760_v12  ;;  %v4758_v24 = vmul.f32 1.442695, %v4736_v25 }
 0xaa1   : > { %v4627_v58 = vpop.f32.mrf.mxu0 }
 0xaa2   : > { %v9434_v19 = vadd.f32 %v9390_v5, %v4627_v58  ;;  %v4723_v29 = vand.u32 2147483647, %v9426_v48  ;;  %vm4691_vm4 = vcmp.ne.f32.partialorder %v9426_v48, %v9426_v48 }
 0xaa4   : > { %v4722_v57 = vand.u32 2147483647, %v9434_v19  ;;  %v4739_v28 = vsub.f32 0.0, %v4723_v29  ;;  %v4796_v29 = vadd.f32 1.0, %v9462_v41 }
 0xaa6   : > { %v4738_v7 = vsub.f32 0.0, %v4722_v57  ;;  %v4764_v49 = vmul.f32 1.442695, %v4739_v28 }
 0xaa7   : > { %v6331_v38 = vpop.f32.mrf.mxu0 }
 0xaa8   : > { %v9419_v17 = vadd.f32 %v6331_v38, %v9390_v5  ;;  %v4762_v40 = vmul.f32 1.442695, %v4738_v7 }
 0xaa9   : > { %v4637_v52 = vpop.f32.mrf.mxu0 }
 0xaaa   : > { %v9422_v30 = vadd.f32 %v9390_v5, %v4637_v52  ;;  %v4725_v27 = vand.u32 2147483647, %v9419_v17  ;;  %vm4693_vm6 = vcmp.ne.f32.partialorder %v9419_v17, %v9419_v17 }
 0xaac   : > { %v4724_v50 = vand.u32 2147483647, %v9422_v30  ;;  %v4741_v59 = vsub.f32 0.0, %v4725_v27 }
 0xaad   : > { %v9464_v13 = vpop.eup %6920 }
 0xaae   : > { %v4740_v6 = vsub.f32 0.0, %v4724_v50  ;;  %v4768_v39 = vmul.f32 1.442695, %v4741_v59  ;;  %v4841_v50 = vadd.f32 1.0, %v9464_v13 }
 0xaaf   : > { %v6334_v10 = vpop.f32.mrf.mxu0 }
 0xab0   : > { %v9431_v35 = vadd.f32 %v6334_v10, %v9390_v5  ;;  %v4766_v44 = vmul.f32 1.442695, %v4740_v6 }
 0xab1   : > { %v4647_v22 = vpop.f32.mrf.mxu0 }
 0xab2   : > { %v4727_v42 = vand.u32 2147483647, %v9431_v35  ;;  %v9444_v0 = vadd.f32 %v9390_v5, %v4647_v22  ;;  %v4790_v22 = vmul.f32 -0.5, %v9456_v20  ;;  %vm4695_vm9 = vcmp.ne.f32.partialorder %v9431_v35, %v9431_v35 }
 0xab4   : > { %v4743_v60 = vsub.f32 0.0, %v4727_v42  ;;  %v4726_v21 = vand.u32 2147483647, %v9444_v0  ;;  %v9500_v7 = vadd.f32 1.0, %v4790_v22  ;;  %vm4694_vm3 = vcmp.ne.f32.partialorder %v9444_v0, %v9444_v0 }
 0xab6   : > { %v4772_v37 = vmul.f32 1.442695, %v4743_v60  ;;  %v4742_v18 = vsub.f32 0.0, %v4726_v21  ;;  %v4781_v60 = vmul.f32 -0.5, %v9458_v3  ;;  %10621 = vst [vmem:[#allocation30_spill] sm:$0xff] %v9500_v7 }
 0xab7   : > { %v6337_v45 = vpop.f32.mrf.mxu0 }
 0xab8   : > { %6922 = vpow2.f32 %v4772_v37  ;;  %v9449_v34 = vadd.f32 %v6337_v45, %v9390_v5  ;;  %v4770_v33 = vmul.f32 1.442695, %v4742_v18 }
 0xab9   : > { %v4657_v43 = vpop.f32.mrf.mxu0  ;;  %6924 = vpow2.f32 %v4756_v15  ;;  %v4808_v15 = vmul.f32 -0.5, %v9460_v56 }
 0xaba   : > { %6926 = vpow2.f32 %v4754_v23  ;;  %v9452_v58 = vadd.f32 %v9390_v5, %v4657_v43  ;;  %v4729_v38 = vand.u32 2147483647, %v9449_v34  ;;  %v4799_v23 = vmul.f32 -0.5, %v9462_v41 }
 0xabb   : > { %6928 = vpow2.f32 %v4768_v39  ;;  %v4681_v63 = vmax.f32 %v9449_v34, 0.0  ;;  %vm4697_vm15 = vcmp.ne.f32.partialorder %v9449_v34, %v9449_v34 }
 0xabc   : > { %6930 = vpow2.f32 %v4766_v44  ;;  %v4745_v4 = vsub.f32 0.0, %v4729_v38  ;;  %v4728_v52 = vand.u32 2147483647, %v9452_v58  ;;  %vm4696_vm2 = vcmp.ne.f32.partialorder %v9452_v58, %v9452_v58 }
 0xabd   : > { %6932 = vpow2.f32 %v4764_v49  ;;  %v9504_v49 = vadd.f32 1.0, %v4781_v60  ;;  %v4678_v60 = vmax.f32 %v9444_v0, 0.0 }
 0xabe   : > { %6934 = vpow2.f32 %v4770_v33  ;;  %v4776_v1 = vmul.f32 1.442695, %v4745_v4  ;;  %v4744_v5 = vsub.f32 0.0, %v4728_v52  ;;  %v9515_v52 = vadd.f32 1.0, %v4808_v15 }
 0xabf   : > { %6936 = vpow2.f32 %v4762_v40  ;;  %10622 = vst [vmem:[#allocation23_spill] sm:$0xff] %v9504_v49 }
 0xac0   : > { %6938 = vpow2.f32 %v4758_v24  ;;  %v4774_v10 = vmul.f32 1.442695, %v4744_v5 }
 0xac1   : > { %6940 = vpow2.f32 %v4776_v1  ;;  %v9517_v1 = vadd.f32 1.0, %v4799_v23 }
 0xac2   : > { %6942 = vpow2.f32 %v4774_v10 }
 0xac3   : > { %6944 = vlog2.f32 %v4787_v46  ;;  %10623 = vst [vmem:[#allocation20_spill] sm:$0xff] %v9517_v1 }
 0xac4   : > { %6946 = vlog2.f32 %v4778_v26 }
 0xac5   : > { %v9467_v54 = vpop.eup %6922  ;;  %6948 = vlog2.f32 %v4805_v53 }
 0xac6   : > { %v9471_v27 = vpop.eup %6924  ;;  %v4895_v31 = vadd.f32 1.0, %v9467_v54 }
 0xac7   : > { %v9474_v9 = vpop.eup %6926  ;;  %v4823_v12 = vadd.f32 1.0, %v9471_v27  ;;  %v4826_v46 = vmul.f32 -0.5, %v9471_v27 }
 0xac8   : > { %v9477_v61 = vpop.eup %6928  ;;  %6950 = vlog2.f32 %v4895_v31  ;;  %v4814_v21 = vadd.f32 1.0, %v9474_v9  ;;  %v4817_v26 = vmul.f32 -0.5, %v9474_v9  ;;  %v4844_v31 = vmul.f32 -0.5, %v9464_v13 }
 0xac9   : > { %v9480_v42 = vpop.eup %6930  ;;  %6952 = vlog2.f32 %v4841_v50  ;;  %v4877_v37 = vadd.f32 1.0, %v9477_v61 }
 0xaca   : > { %v9485_v59 = vpop.eup %6932  ;;  %6954 = vlog2.f32 %v4796_v29  ;;  %v4868_v2 = vadd.f32 1.0, %v9480_v42 }
 0xacb   : > { %v9490_v6 = vpop.eup %6934  ;;  %6956 = vlog2.f32 %v4823_v12  ;;  %v4859_v18 = vadd.f32 1.0, %v9485_v59  ;;  %v4862_v50 = vmul.f32 -0.5, %v9485_v59 }
 0xacc   : > { %v4886_v39 = vadd.f32 1.0, %v9490_v6  ;;  %v9498_v43 = vpop.eup %6936 }
 0xacd   : > { %v9508_v38 = vpop.eup %6938  ;;  %v4850_v5 = vadd.f32 1.0, %v9498_v43  ;;  %v4863_v44 = vadd.f32 1.0, %v4862_v50  ;;  %v4865_v50 = vand.u32 2147483647, %v9485_v59 }
 0xace   : > { %6958 = vlog2.f32 %v4886_v39  ;;  %v9513_v24 = vpop.eup %6940  ;;  %v4832_v22 = vadd.f32 1.0, %v9508_v38  ;;  %v4835_v23 = vmul.f32 -0.5, %v9508_v38 }
 0xacf   : > { %6960 = vlog2.f32 %v4877_v37  ;;  %v9520_v10 = vpop.eup %6942  ;;  %v4913_v53 = vadd.f32 1.0, %v9513_v24  ;;  %v4916_v57 = vmul.f32 -0.5, %v9513_v24  ;;  %vm9588_vm8 = vcmp.lt.f32.partialorder %v4865_v50, 0.0004427343 }
 0xad0   : > { %6962 = vlog2.f32 %v4868_v2  ;;  %v4904_v29 = vadd.f32 1.0, %v9520_v10  ;;  %v9531_v15 = vpop.eup %6944  ;;  %v4898_v2 = vmul.f32 -0.5, %v9467_v54  ;;  %v9552_v4 = vadd.f32 1.0, %v4835_v23 }
 0xad1   : > { %6964 = vlog2.f32 %v4814_v21  ;;  %10624 = vst [vmem:[#allocation21_spill] sm:$0xff] %v9531_v15  ;;  %v9536_v39 = vpop.eup %6946  ;;  %v9538_v21 = vadd.f32 1.0, %v4826_v46  ;;  %v4853_v46 = vmul.f32 -0.5, %v9498_v43  ;;  %v9565_v23 = vmul.f32 %v9485_v59, %v4863_v44 }
 0xad2   : > { %6966 = vlog2.f32 %v4859_v18  ;;  %10625 = vst [vmem:[#allocation18_spill] sm:$0xff] %v9536_v39  ;;  %v9540_v18 = vadd.f32 1.0, %v4817_v26  ;;  %v9543_v25 = vpop.eup %6948  ;;  %v4889_v26 = vmul.f32 -0.5, %v9490_v6  ;;  %v4899_v33 = vadd.f32 1.0, %v4898_v2 }
 0xad3   : > { %6968 = vlog2.f32 %v4913_v53  ;;  %v9545_v53 = vadd.f32 1.0, %v4844_v31  ;;  %v4679_v31 = vmax.f32 %v9431_v35, 0.0  ;;  %v9571_v11 = vadd.f32 1.0, %v4853_v46 }
 0xad4   : > { %6970 = vlog2.f32 %v4850_v5  ;;  %v4871_v5 = vmul.f32 -0.5, %v9480_v42  ;;  %v4890_v36 = vadd.f32 1.0, %v4889_v26  ;;  %v4907_v8 = vmul.f32 -0.5, %v9520_v10 }
 0xad5   : > { %6972 = vlog2.f32 %v4904_v29  ;;  %v6951_v28 = vpop.eup %6950  ;;  %v4880_v29 = vmul.f32 -0.5, %v9477_v61  ;;  %v4900_v59 = vmul.f32 %v9467_v54, %v4899_v33  ;;  %v4892_v44 = vand.u32 2147483647, %v9490_v6 }
 0xad6   : > { %6974 = vlog2.f32 %v4832_v22  ;;  %v6953_v40 = vpop.eup %6952  ;;  %v4901_v22 = vand.u32 2147483647, %v9467_v54  ;;  %v4897_v2 = vmul.f32 0.6931472, %v6951_v28  ;;  %v4917_v26 = vadd.f32 1.0, %v4916_v57 }
 0xad7   : > { %v9556_v37 = vpop.eup %6954  ;;  %v9569_v32 = vmul.f32 0.6931472, %v6953_v40  ;;  %v4881_v3 = vadd.f32 1.0, %v4880_v29  ;;  %v4680_v29 = vmax.f32 %v9452_v58, 0.0  ;;  %v4883_v33 = vand.u32 2147483647, %v9477_v61 }
 0xad8   : > { %10626 = vst [vmem:[#allocation19_spill] sm:$0xff] %v9556_v37  ;;  %v9562_v12 = vpop.eup %6956  ;;  %vm9579_vm5 = vcmp.lt.f32.partialorder %v4901_v22, 0.0004427343  ;;  %v4872_v62 = vadd.f32 1.0, %v4871_v5  ;;  %v4874_v57 = vand.u32 2147483647, %v9480_v42  ;;  %v4891_v50 = vmul.f32 %v9490_v6, %v4890_v36 }
 0xad9   : > { %v4903_v22 = vsel %vm9579_vm5, %v4900_v59, %v4897_v2  ;;  %v4908_v20 = vadd.f32 1.0, %v4907_v8  ;;  %v4882_v1 = vmul.f32 %v9477_v61, %v4881_v3  ;;  %vm9601_vm0 = vcmp.lt.f32.partialorder %v4892_v44, 0.0004427343 }
 0xada   : > { %v4910_v2 = vand.u32 2147483647, %v9520_v10  ;;  %v4918_v8 = vmul.f32 %v9513_v24, %v4917_v26  ;;  %vm9611_vm14 = vcmp.lt.f32.partialorder %v4883_v33, 0.0004427343  ;;  %v4873_v44 = vmul.f32 %v9480_v42, %v4872_v62 }
 0xadb   : > { %v6959_v45 = vpop.eup %6958  ;;  %vm9619_vm1 = vcmp.lt.f32.partialorder %v4874_v57, 0.0004427343  ;;  %v4855_v33 = vmul.f32 %v9498_v43, %v9571_v11  ;;  %v4846_v11 = vmul.f32 %v9464_v13, %v9545_v53  ;;  %v10642_v54 = vand.u32 2147483647, %v9464_v13 }
 0xadc   : > { %v6961_v51 = vpop.eup %6960  ;;  %v4888_v46 = vmul.f32 0.6931472, %v6959_v45  ;;  %v4919_v45 = vand.u32 2147483647, %v9513_v24  ;;  %vm4911_vm13 = vcmp.lt.f32.partialorder %v4910_v2, 0.0004427343  ;;  %vm4692_vm5 = vcmp.ne.f32.partialorder %v9422_v30, %v9422_v30 }
 0xadd   : > { %v6963_v28 = vpop.eup %6962  ;;  %v4879_v47 = vmul.f32 0.6931472, %v6961_v51  ;;  %v4935_v51 = vadd.f32 %v4903_v22, %v4679_v31  ;;  %v4909_v22 = vmul.f32 %v9520_v10, %v4908_v20  ;;  %v10645_v2 = vmax.f32 %v9426_v48, 0.0 }
 0xade   : > { %v9586_v49 = vpop.eup %6964  ;;  %v4870_v15 = vmul.f32 0.6931472, %v6963_v28  ;;  %v4894_v40 = vsel %vm9601_vm0, %v4891_v50, %v4888_v46  ;;  %vm4920_vm12 = vcmp.lt.f32.partialorder %v4919_v45, 0.0004427343  ;;  %v10641_v45 = vmax.f32 %v9422_v30, 0.0 }
 0xadf   : > { %v6967_v39 = vpop.eup %6966  ;;  %v4885_v28 = vsel %vm9611_vm14, %v4882_v1, %v4879_v47  ;;  %v4934_v24 = vadd.f32 %v4894_v40, %v4678_v60  ;;  %v4951_v47 = vsel %vm4695_vm9, %v9431_v35, %v4935_v51  ;;  %v10637_v1 = vand.u32 2147483647, %v9498_v43 }
 0xae0   : > { %v6969_v7 = vpop.eup %6968  ;;  %v4861_v3 = vmul.f32 0.6931472, %v6967_v39  ;;  %v4876_v42 = vsel %vm9619_vm1, %v4873_v44, %v4870_v15  ;;  %vm9665_vm9 = vcmp.lt.f32.partialorder %v10642_v54, 0.0004427343  ;;  %v4825_v53 = vmul.f32 0.6931472, %v9562_v12 }
 0xae1   : > { %v6971_v59 = vpop.eup %6970  ;;  %v4915_v36 = vmul.f32 0.6931472, %v6969_v7  ;;  %vm9633_vm10 = vcmp.lt.f32.partialorder %v10637_v1, 0.0004427343  ;;  %v4932_v57 = vadd.f32 %v4876_v42, %v10641_v45  ;;  %v4849_v13 = vsel %vm9665_vm9, %v4846_v11, %v9569_v32  ;;  %v10664_v45 = vld [vmem:[#allocation30_spill] sm:$0xff]  ;;  %v10668_v11 = vld [vmem:[#allocation25_spill] sm:$0xff] }
 0xae2   : > { %v6973_v6 = vpop.eup %6972  ;;  %v4852_v62 = vmul.f32 0.6931472, %v6971_v59  ;;  %v4867_v26 = vsel %vm9588_vm8, %v9565_v23, %v4861_v3  ;;  %v4837_v40 = vmul.f32 %v9508_v38, %v9552_v4  ;;  %v10649_v3 = vmax.f32 %v9434_v19, 0.0 }
 0xae3   : > { %v4921_v37 = vsel %vm4920_vm12, %v4918_v8, %v4915_v36  ;;  %v4906_v31 = vmul.f32 0.6931472, %v6973_v6  ;;  %v6975_v46 = vpop.eup %6974  ;;  %v4931_v59 = vadd.f32 %v4867_v26, %v10645_v2  ;;  %v4820_v36 = vand.u32 2147483647, %v9474_v9  ;;  %v10670_v2 = vld [vmem:[#allocation18_spill] sm:$0xff] }
 0xae4   : > { %v4937_v39 = vadd.f32 %v4921_v37, %v4681_v63  ;;  %v10640_v63 = vmax.f32 %v9419_v17, 0.0  ;;  %v4834_v43 = vmul.f32 0.6931472, %v6975_v46  ;;  %v4858_v23 = vsel %vm9633_vm10, %v4855_v33, %v4852_v62 }
 0xae5   : > { %v4912_v20 = vsel %vm4911_vm13, %v4909_v22, %v4906_v31  ;;  %v10646_v8 = vand.u32 2147483647, %v9508_v38  ;;  %v4930_v61 = vadd.f32 %v4858_v23, %v10649_v3  ;;  %v4948_v12 = vsel %vm4692_vm5, %v9422_v30, %v4932_v57  ;;  %v10665_v57 = vld [vmem:[#allocation22_spill] sm:$0xff] }
 0xae6   : > { %v4933_v60 = vadd.f32 %v4885_v28, %v10640_v63  ;;  %v4953_v15 = vsel %vm4697_vm15, %v9449_v34, %v4937_v39  ;;  %v4936_v37 = vadd.f32 %v4912_v20, %v4680_v29  ;;  %v4950_v29 = vsel %vm4694_vm3, %v9444_v0, %v4934_v24 }
 0xae7   : > { %6976 = vtanh.f32 %v4953_v15  ;;  %vm9686_vm15 = vcmp.lt.f32.partialorder %v10646_v8, 0.0004427343  ;;  %vm4687_vm8 = vcmp.ne.f32.partialorder %v9412_v14, %v9412_v14  ;;  %v4828_v32 = vmul.f32 %v9471_v27, %v9538_v21 }
 0xae8   : > { %6978 = vtanh.f32 %v4951_v47  ;;  %v4952_v50 = vsel %vm4696_vm2, %v9452_v58, %v4936_v37  ;;  %v4949_v51 = vsel %vm4693_vm6, %v9419_v17, %v4933_v60  ;;  %v4816_v4 = vmul.f32 0.6931472, %v9586_v49  ;;  %v10657_v47 = vld [vmem:[#allocation19_spill] sm:$0xff]  ;;  %v10662_v60 = vld [vmem:[#allocation21_spill] sm:$0xff]  ;;  %v10663_v37 = vld [vmem:[#allocation20_spill] sm:$0xff] }
 0xae9   : > { %6980 = vtanh.f32 %v4952_v50  ;;  %v4840_v38 = vsel %vm9686_vm15, %v4837_v40, %v4834_v43  ;;  %v10650_v44 = vand.u32 2147483647, %v9471_v27  ;;  %v10653_v31 = vmax.f32 %v9406_v16, 0.0  ;;  %v651_v40 = vld [vmem:[%s10208_s10 + $0x10] sm:$0xff] }
 0xaea   : > { %6982 = vtanh.f32 %v4950_v29  ;;  %v4947_v21 = vsel %vm4691_vm4, %v9426_v48, %v4931_v59  ;;  %vm4690_vm0 = vcmp.ne.f32.partialorder %v9434_v19, %v9434_v19  ;;  %v4807_v49 = vmul.f32 0.6931472, %v9543_v25 }
 0xaeb   : > { %6984 = vtanh.f32 %v4949_v51  ;;  %vm9702_vm3 = vcmp.lt.f32.partialorder %v10650_v44, 0.0004427343  ;;  %v4929_v22 = vadd.f32 %v4849_v13, %v10653_v31  ;;  %v4819_v46 = vmul.f32 %v9474_v9, %v9540_v18  ;;  %v10678_v44 = vld [vmem:[#allocation26_spill] sm:$0xff] }
 0xaec   : > { %v4831_v27 = vsel %vm9702_vm3, %v4828_v32, %v4825_v53  ;;  %6986 = vtanh.f32 %v4948_v12  ;;  %v4802_v7 = vand.u32 2147483647, %v9462_v41  ;;  %vm9720_vm6 = vcmp.lt.f32.partialorder %v4820_v36, 0.0004427343  ;;  %v10674_v36 = vld [vmem:[#allocation28_spill] sm:$0xff]  ;;  %v10677_v12 = vld [vmem:[#allocation29_spill] sm:$0xff] }
 0xaed   : > { %v10656_v39 = vmax.f32 %v9440_v55, 0.0  ;;  %v4946_v42 = vsel %vm4690_vm0, %v9434_v19, %v4930_v61  ;;  %v4810_v25 = vmul.f32 %v9460_v56, %v9515_v52  ;;  %v4798_v20 = vmul.f32 0.6931472, %v10657_v47  ;;  %v10676_v61 = vld [vmem:[#allocation23_spill] sm:$0xff] }
 0xaee   : > { %v4822_v9 = vsel %vm9720_vm6, %v4819_v46, %v4816_v4  ;;  %6988 = vtanh.f32 %v4947_v21  ;;  %v10658_v18 = vand.u32 2147483647, %v9460_v56  ;;  %v10661_v10 = vmax.f32 %v9412_v14, 0.0  ;;  %v10682_v21 = vld [vmem:[#allocation24_spill] sm:$0xff] }
 0xaef   : > { %v4928_v62 = vadd.f32 %v4840_v38, %v10656_v39  ;;  %v4945_v52 = vsel %vm4689_vm11, %v9406_v16, %v4929_v22  ;;  %vm4688_vm12 = vcmp.ne.f32.partialorder %v9440_v55, %v9440_v55  ;;  %v4789_v15 = vmul.f32 0.6931472, %v10662_v60  ;;  %v682_v22 = vld [vmem:[%s10211_s13 + $0xb0] sm:$0xff] }
 0xaf0   : > { %vm9734_vm14 = vcmp.lt.f32.partialorder %v10658_v18, 0.0004427343  ;;  %v4927_v63 = vadd.f32 %v4831_v27, %v10661_v10  ;;  %v4801_v26 = vmul.f32 %v9462_v41, %v10663_v37  ;;  %6990 = vtanh.f32 %v4946_v42  ;;  %v10685_v42 = vld [vmem:[#allocation27_spill] sm:$0xff] }
 0xaf1   : > { %v4813_v56 = vsel %vm9734_vm14, %v4810_v25, %v4807_v49  ;;  %v4792_v29 = vmul.f32 %v10665_v57, %v10664_v45  ;;  %vm9753_vm1 = vcmp.lt.f32.partialorder %v4802_v7, 0.0004427343  ;;  %v10669_v43 = vmax.f32 %v10668_v11, 0.0 }
 0xaf2   : > { %v4944_v54 = vsel %vm4688_vm12, %v9440_v55, %v4928_v62  ;;  %v4780_v59 = vmul.f32 0.6931472, %v10670_v2  ;;  %v4804_v41 = vsel %vm9753_vm1, %v4801_v26, %v4798_v20  ;;  %6992 = vtanh.f32 %v4945_v52  ;;  %v656_v2 = vld [vmem:[%s10208_s10 + $0x38] sm:$0xff] }
 0xaf3   : > { %v4926_v23 = vadd.f32 %v4822_v9, %v10669_v43  ;;  %v10671_v13 = vand.u32 2147483647, %v10665_v57  ;;  %v10675_v8 = vmax.f32 %v10674_v36, 0.0  ;;  %v4943_v3 = vsel %vm4687_vm8, %v9412_v14, %v4927_v63 }
 0xaf4   : > { %v6977_v33 = vpop.eup %6976  ;;  %vm4686_vm4 = vcmp.ne.f32.partialorder %v10668_v11, %v10668_v11  ;;  %v4783_v32 = vmul.f32 %v10677_v12, %v10676_v61  ;;  %6994 = vtanh.f32 %v4944_v54  ;;  %v4667_v28 = vmax.f32 %v10678_v44, 0.0  ;;  %v658_v54 = vld [vmem:[%s10209_s11 + $0x8] sm:$0xff]  ;;  %v690_v61 = vld [vmem:[%s10211_s13 + $0xf0] sm:$0xff] }
 0xaf5   : > { %v6979_v5 = vpop.eup %6978  ;;  %v4985_v51 = vmul.f32 %v6977_v33, %v9449_v34  ;;  %vm9766_vm13 = vcmp.lt.f32.partialorder %v10671_v13, 0.0004427343  ;;  %v4925_v6 = vadd.f32 %v4813_v56, %v10675_v8  ;;  %v10679_v31 = vand.u32 2147483647, %v10677_v12  ;;  %v652_v13 = vld [vmem:[%s10208_s10 + $0x18] sm:$0xff]  ;;  %v649_v8 = vld [vmem:[%s10208_s10] sm:$0xff] }
 0xaf6   : > { %v6981_v53 = vpop.eup %6980  ;;  %v4795_v34 = vsel %vm9766_vm13, %v4792_v29, %v4789_v15  ;;  %v10683_v49 = vmax.f32 %v10682_v21, 0.0  ;;  %v4942_v46 = vsel %vm4686_vm4, %v10668_v11, %v4926_v23  ;;  %v10684_v7 = vmov 0.0   ;;  %v790_v23 = vld [vmem:[%s629_s19] sm:$0xff]  ;;  %v689_v12 = vld [vmem:[%s10211_s13 + $0xe8] sm:$0xff] }
 0xaf7   : > { %6339 = vmatpush3.msra.mxu1 %v4985_v51  ;;  %v4984_v4 = vmul.f32 %v6981_v53, %v9452_v58  ;;  %v6983_v38 = vpop.eup %6982  ;;  %vm9786_vm10 = vcmp.lt.f32.partialorder %v10679_v31, 0.0004427343  ;;  %vm4685_vm2 = vcmp.ne.f32.partialorder %v10674_v36, %v10674_v36  ;;  %6996 = vtanh.f32 %v4943_v3  ;;  %v654_v51 = vld [vmem:[%s10208_s10 + $0x28] sm:$0xff]  ;;  %v653_v53 = vld [vmem:[%s10208_s10 + $0x20] sm:$0xff]  ;;  %v683_v31 = vld [vmem:[%s10211_s13 + $0xb8] sm:$0xff] }
 0xaf8   : > { %v4924_v27 = vadd.f32 %v4804_v41, %v10683_v49  ;;  %6340 = vmatprep.subr.mxu1 %v10684_v7  ;;  %v4786_v24 = vsel %vm9786_vm10, %v4783_v32, %v4780_v59  ;;  %v4983_v58 = vmul.f32 %v6979_v5, %v9431_v35  ;;  %v6985_v39 = vpop.eup %6984  ;;  %v4923_v62 = vadd.f32 %v4795_v34, %v4667_v28  ;;  %v657_v5 = vld [vmem:[%s10209_s11] sm:$0xff]  ;;  %v655_v41 = vld [vmem:[%s10208_s10 + $0x30] sm:$0xff]  ;;  %v691_v34 = vld [vmem:[%s10211_s13 + $0xf8] sm:$0xff] }
 0xaf9   : > { %6341 = vmatpush3.msra.mxu1 %v4984_v4  ;;  %v4666_v25 = vmax.f32 %v10685_v42, 0.0  ;;  %v4941_v47 = vsel %vm4685_vm2, %v10674_v36, %v4925_v6  ;;  %vm4684_vm11 = vcmp.ne.f32.partialorder %v10682_v21, %v10682_v21  ;;  %6998 = vtanh.f32 %v4942_v46  ;;  %v6987_v9 = vpop.eup %6986  ;;  %v791_v59 = vld [vmem:[%s633_s22] sm:$0xff]  ;;  %5268 = vmatprep.subr.mxu0 %v691_v34  ;;  %v687_v4 = vld [vmem:[%s10211_s13 + $0xd8] sm:$0xff]  ;;  %v678_v46 = vld [vmem:[%s10211_s13 + $0x90] sm:$0xff] }
 0xafa   : > { %6342 = vmatprep.subr.mxu1 %v10684_v7  ;;  %v4982_v20 = vmul.f32 %v6983_v38, %v9444_v0  ;;  %v4940_v1 = vsel %vm4684_vm11, %v10682_v21, %v4924_v27  ;;  %vm4683_vm9 = vcmp.ne.f32.partialorder %v10678_v44, %v10678_v44  ;;  %7000 = vtanh.f32 %v4941_v47  ;;  %v688_v32 = vld [vmem:[%s10211_s13 + $0xe0] sm:$0xff]  ;;  %5269 = vmatpush1.msra.mxu0 %v690_v61  ;;  %v686_v38 = vld [vmem:[%s10211_s13 + $0xd0] sm:$0xff]  ;;  %v679_v27 = vld [vmem:[%s10211_s13 + $0x98] sm:$0xff] }
 0xafb   : > { %6343 = vmatpush3.msra.mxu1 %v4983_v58  ;;  %v4922_v18 = vadd.f32 %v4786_v24, %v4666_v25  ;;  %v4981_v35 = vmul.f32 %v6985_v39, %v9419_v17  ;;  %v6989_v10 = vpop.eup %6988  ;;  %v4939_v63 = vsel %vm4683_vm9, %v10678_v44, %v4923_v62  ;;  %vm4682_vm5 = vcmp.ne.f32.partialorder %v10685_v42, %v10685_v42  ;;  %v684_v28 = vld [vmem:[%s10211_s13 + $0xc0] sm:$0xff]  ;;  %v675_v58 = vld [vmem:[%s10211_s13 + $0x78] sm:$0xff]  ;;  %v674_v39 = vld [vmem:[%s10211_s13 + $0x70] sm:$0xff] }
 0xafc   : > { %6344 = vmatprep.subr.mxu1 %v10684_v7  ;;  %7002 = vtanh.f32 %v4940_v1  ;;  %v4980_v0 = vmul.f32 %v6987_v9, %v9422_v30  ;;  %v4979_v17 = vmul.f32 %v6989_v10, %v9426_v48  ;;  %vm10686_vm15 = vcmask 64512   ;;  %5270 = vmatprep.subr.mxu0 %v689_v12  ;;  %v680_v49 = vld [vmem:[%s10211_s13 + $0xa0] sm:$0xff]  ;;  %v673_v62 = vld [vmem:[%s10211_s13 + $0x68] sm:$0xff]  ;;  %v671_v25 = vld [vmem:[%s10211_s13 + $0x58] sm:$0xff] }
 0xafd   : > { %6345 = vmatpush3.msra.mxu1 %v4982_v20  ;;  %v6991_v52 = vpop.eup %6990  ;;  %v4938_v60 = vsel %vm4682_vm5, %v10685_v42, %v4922_v18  ;;  %7004 = vtanh.f32 %v4939_v63  ;;  %5271 = vmatpush1.msra.mxu0 %v688_v32  ;;  %v676_v24 = vld [vmem:[%s10211_s13 + $0x80] sm:$0xff]  ;;  %v670_v47 = vld [vmem:[%s10211_s13 + $0x50] sm:$0xff]  ;;  %v669_v20 = vld [vmem:[%s10211_s13 + $0x48] sm:$0xff]  ;;  %vm5455_vm13 = vcmask 7168  }
 0xafe   : > { %6346 = vmatprep.subr.mxu1 %v10684_v7  ;;  %7006 = vtanh.f32 %v4938_v60  ;;  %v4978_v56 = vmul.f32 %v6991_v52, %v9434_v19  ;;  %5272 = vmatprep.subr.mxu0 %v687_v4  ;;  %v668_v9 = vld [vmem:[%s10211_s13 + $0x40] sm:$0xff]  ;;  %v667_v18 = vld [vmem:[%s10211_s13 + $0x38] sm:$0xff]  ;;  %v666_v1 = vld [vmem:[%s10211_s13 + $0x30] sm:$0xff] }
 0xaff   : > { %6347 = vmatpush3.msra.mxu1 %v4981_v35  ;;  %v6993_v15 = vpop.eup %6992  ;;  %5273 = vmatpush1.msra.mxu0 %v686_v38  ;;  %v665_v35 = vld [vmem:[%s10211_s13 + $0x28] sm:$0xff]  ;;  %v664_v10 = vld [vmem:[%s10211_s13 + $0x20] sm:$0xff]  ;;  %v663_v63 = vld [vmem:[%s10211_s13 + $0x18] sm:$0xff] }
 0xb00   : > { %6348 = vmatprep.subr.mxu1 %v10684_v7  ;;  %v4977_v30 = vmul.f32 %v6993_v15, %v9406_v16  ;;  %v661_v52 = vld [vmem:[%s10211_s13 + $0x8] sm:$0xff]  ;;  %v660_v60 = vld [vmem:[%s10211_s13] sm:$0xff]  ;;  %v722_v15 = vld [vmem:[%s10211_s13 + $0x1f0] sm:$0xff] }
 0xb01   : > { %6349 = vmatpush3.msra.mxu1 %v4980_v0  ;;  %v6995_v37 = vpop.eup %6994  ;;  %v662_v0 = vld [vmem:[%s10211_s13 + $0x10] sm:$0xff]  ;;  %v659_v61 = vld [vmem:[%s10687_s16] sm:$0x3] }
 0xb02   : > { %6350 = vmatprep.subr.mxu1 %v10684_v7  ;;  %v4976_v48 = vmul.f32 %v6995_v37, %v9440_v55  ;;  %v720_v37 = vld [vmem:[%s10211_s13 + $0x1e0] sm:$0xff]  ;;  %v10688_v32 = vld [vmem:[#allocation46_spill] sm:$0xff] }
 0xb03   : > { %6351 = vmatpush3.msra.mxu1 %v4979_v17  ;;  %v723_v17 = vld [vmem:[%s10211_s13 + $0x1f8] sm:$0xff]  ;;  %v5208_v4 = vrot.slane %v659_v61, %v10688_v32 }
 0xb04   : > { %6352 = vmatprep.subr.mxu1 %v10684_v7  ;;  %v6997_v26 = vpop.eup %6996 }
 0xb05   : > { %6353 = vmatpush3.msra.mxu1 %v4978_v56  ;;  %v4975_v45 = vmul.f32 %v6997_v26, %v9412_v14  ;;  %v721_v56 = vld [vmem:[%s10211_s13 + $0x1e8] sm:$0xff]  ;;  %v718_v26 = vld [vmem:[%s10211_s13 + $0x1d0] sm:$0xff] }
 0xb06   : > { %6354 = vmatprep.subr.mxu1 %v10684_v7  ;;  %v6999_v33 = vpop.eup %6998 }
 0xb07   : > { %6355 = vmatpush3.msra.mxu1 %v4977_v30  ;;  %v7001_v19 = vpop.eup %7000  ;;  %v4974_v16 = vmul.f32 %v6999_v33, %v10668_v11  ;;  %v719_v30 = vld [vmem:[%s10211_s13 + $0x1d8] sm:$0xff]  ;;  %v716_v33 = vld [vmem:[%s10211_s13 + $0x1c0] sm:$0xff] }
 0xb08   : > { %6356 = vmatprep.subr.mxu1 %v10684_v7  ;;  %v4973_v29 = vmul.f32 %v7001_v19, %v10674_v36  ;;  %v650_v36 = vld [vmem:[%s10208_s10 + $0x8] sm:$0xff]  ;;  %v714_v19 = vld [vmem:[%s10211_s13 + $0x1b0] sm:$0xff] }
 0xb09   : > { %6357 = vmatpush3.msra.mxu1 %v4976_v48  ;;  %v7003_v57 = vpop.eup %7002  ;;  %v717_v48 = vld [vmem:[%s10211_s13 + $0x1c8] sm:$0xff] }
 0xb0a   : > { %6358 = vmatprep.subr.mxu1 %v10684_v7  ;;  %v7005_v55 = vpop.eup %7004  ;;  %v4972_v14 = vmul.f32 %v7003_v57, %v10682_v21  ;;  %v681_v21 = vld [vmem:[%s10211_s13 + $0xa8] sm:$0xff]  ;;  %v712_v57 = vld [vmem:[%s10211_s13 + $0x1a0] sm:$0xff] }
 0xb0b   : > { %6359 = vmatpush3.msra.mxu1 %v4975_v45  ;;  %v7007_v50 = vpop.eup %7006  ;;  %v4971_v11 = vmul.f32 %v7005_v55, %v10678_v44  ;;  %v685_v44 = vld [vmem:[%s10211_s13 + $0xc8] sm:$0xff]  ;;  %v715_v45 = vld [vmem:[%s10211_s13 + $0x1b8] sm:$0xff]  ;;  %v710_v55 = vld [vmem:[%s10211_s13 + $0x190] sm:$0xff] }
 0xb0c   : > { %6360 = vmatprep.subr.mxu1 %v10684_v7  ;;  %v4970_v43 = vmul.f32 %v7007_v50, %v10685_v42  ;;  %5274 = vmatprep.subr.mxu0 %v685_v44  ;;  %v672_v42 = vld [vmem:[%s10211_s13 + $0x60] sm:$0xff] }
 0xb0d   : > { %6361 = vmatpush3.msra.mxu1 %v4974_v16  ;;  %5275 = vmatpush1.msra.mxu0 %v684_v28  ;;  %v713_v16 = vld [vmem:[%s10211_s13 + $0x1a8] sm:$0xff]  ;;  %v708_v50 = vld [vmem:[%s10211_s13 + $0x180] sm:$0xff] }
 0xb0e   : > { %6362 = vmatprep.subr.mxu1 %v10684_v7  ;;  %5276 = vmatprep.subr.mxu0 %v683_v31  ;;  %v10689_v28 = vld [vmem:[#allocation47_spill] sm:$0xff] }
 0xb0f   : > { %6363 = vmatpush3.msra.mxu1 %v4973_v29  ;;  %5277 = vmatpush1.msra.mxu0 %v682_v22  ;;  %v711_v29 = vld [vmem:[%s10211_s13 + $0x198] sm:$0xff]  ;;  %v5212_v31 = vrot.slane %v659_v61, %v10689_v28  ;;  %v747_v61 = vld [vmem:[%s10690_s15 + $0xb0] sm:$0xff] }
 0xb10   : > { %6364 = vmatprep.subr.mxu1 %v10684_v7  ;;  %5278 = vmatprep.subr.mxu0 %v681_v21 }
 0xb11   : > { %6365 = vmatpush3.msra.mxu1 %v4972_v14  ;;  %5279 = vmatpush1.msra.mxu0 %v680_v49  ;;  %v709_v14 = vld [vmem:[%s10211_s13 + $0x188] sm:$0xff] }
 0xb12   : > { %6366 = vmatprep.subr.mxu1 %v10684_v7  ;;  %5280 = vmatprep.subr.mxu0 %v679_v27 }
 0xb13   : > { %6367 = vmatpush3.msra.mxu1 %v4971_v11  ;;  %5281 = vmatpush1.msra.mxu0 %v678_v46  ;;  %v707_v11 = vld [vmem:[%s10211_s13 + $0x178] sm:$0xff] }
 0xb14   : > { %6368 = vmatprep.subr.mxu1 %v10684_v7 }
 0xb15   : > { %6369 = vmatpush3.msra.mxu1 %v4970_v43  ;;  %v706_v43 = vld [vmem:[%s10211_s13 + $0x170] sm:$0xff] }
 0xb16   : > { %6371 = vmatmul.mubr.f32.vlgmr.msra.gmra.mxu1 %v790_v23  ;;  %5089 = vmatprep.subr.mxu1 %v658_v54  ;;  %v705_v23 = vld [vmem:[%s10211_s13 + $0x168] sm:$0xff]  ;;  %v704_v54 = vld [vmem:[%s10211_s13 + $0x160] sm:$0xff] }
 0xb17   : > { %5090 = vmatpush1.msra.mxu1 %v657_v5  ;;  %5123 = vmatprep.mubr.f32.mxu1 %v10684_v7  ;;  %v703_v5 = vld [vmem:[%s10211_s13 + $0x158] sm:$0xff] }
 0xb18   : > { %5157 = vmatprep.subr.mxu1 %v656_v2  ;;  %v702_v2 = vld [vmem:[%s10211_s13 + $0x150] sm:$0xff] }
 0xb1a   : > { %5653 = vmatmul.mubr.msk.f32.vlgmr.msra.gmra.mxu1 %vm10686_vm15, %v791_v59  ;;  %v701_v59 = vld [vmem:[%s10211_s13 + $0x148] sm:$0xff] }
 0xb1b   : > { %5158 = vmatpush1.msra.mxu1 %v655_v41  ;;  %5197 = vmatprep.mubr.f32.mxu1 %v10684_v7  ;;  %v677_v7 = vld [vmem:[%s10211_s13 + $0x88] sm:$0xff]  ;;  %v700_v41 = vld [vmem:[%s10211_s13 + $0x140] sm:$0xff] }
 0xb1c   : > { %5159 = vmatprep.subr.mxu1 %v654_v51  ;;  %5282 = vmatprep.subr.mxu0 %v677_v7  ;;  %v699_v51 = vld [vmem:[%s10211_s13 + $0x138] sm:$0xff] }
 0xb1d   : > { %5160 = vmatpush1.msra.mxu1 %v653_v53  ;;  %5283 = vmatpush1.msra.mxu0 %v676_v24  ;;  %v698_v53 = vld [vmem:[%s10211_s13 + $0x130] sm:$0xff] }
 0xb1e   : > { %5161 = vmatprep.subr.mxu1 %v652_v13  ;;  %5284 = vmatprep.subr.mxu0 %v675_v58  ;;  %v697_v13 = vld [vmem:[%s10211_s13 + $0x128] sm:$0xff] }
 0xb1f   : > { %5162 = vmatpush1.msra.mxu1 %v651_v40  ;;  %5285 = vmatpush1.msra.mxu0 %v674_v39  ;;  %v696_v40 = vld [vmem:[%s10211_s13 + $0x120] sm:$0xff] }
 0xb20   : > { %5163 = vmatprep.subr.mxu1 %v650_v36  ;;  %5286 = vmatprep.subr.mxu0 %v673_v62  ;;  %v695_v36 = vld [vmem:[%s10211_s13 + $0x118] sm:$0xff] }
 0xb21   : > { %5164 = vmatpush1.msra.mxu1 %v649_v8  ;;  %5287 = vmatpush1.msra.mxu0 %v672_v42  ;;  %v694_v8 = vld [vmem:[%s10211_s13 + $0x110] sm:$0xff] }
 0xb22   : > { %5288 = vmatprep.subr.mxu0 %v671_v25 }
 0xb23   : > { %5289 = vmatpush1.msra.mxu0 %v670_v47 }
 0xb24   : > { %5290 = vmatprep.subr.mxu0 %v669_v20 }
 0xb25   : > { %5291 = vmatpush1.msra.mxu0 %v668_v9 }
 0xb26   : > { %5292 = vmatprep.subr.mxu0 %v667_v18 }
 0xb27   : > { %5293 = vmatpush1.msra.mxu0 %v666_v1 }
 0xb28   : > { %5294 = vmatprep.subr.mxu0 %v665_v35 }
 0xb29   : > { %5295 = vmatpush1.msra.mxu0 %v664_v10 }
 0xb2a   : > { %5296 = vmatprep.subr.mxu0 %v663_v63 }
 0xb2b   : > { %5297 = vmatpush1.msra.mxu0 %v662_v0 }
 0xb2c   : > { %5298 = vmatprep.subr.mxu0 %v661_v52 }
 0xb2d   : > { %5299 = vmatpush1.msra.mxu0 %v660_v60 }
 0xb2e   : > { %5300 = vmatprep.subr.mxu0 %v723_v17 }
 0xb2f   : > { %5301 = vmatpush2.msra.mxu0 %v722_v15 }
 0xb30   : > { %5302 = vmatprep.subr.mxu0 %v721_v56 }
 0xb31   : > { %5303 = vmatpush2.msra.mxu0 %v720_v37 }
 0xb32   : > { %5304 = vmatprep.subr.mxu0 %v719_v30 }
 0xb33   : > { %5305 = vmatpush2.msra.mxu0 %v718_v26 }
 0xb34   : > { %5306 = vmatprep.subr.mxu0 %v717_v48 }
 0xb35   : > { %5307 = vmatpush2.msra.mxu0 %v716_v33 }
 0xb36   : > { %5308 = vmatprep.subr.mxu0 %v715_v45 }
 0xb37   : > { %5309 = vmatpush2.msra.mxu0 %v714_v19 }
 0xb38   : > { %5310 = vmatprep.subr.mxu0 %v713_v16 }
 0xb39   : > { %5311 = vmatpush2.msra.mxu0 %v712_v57 }
 0xb3a   : > { %5312 = vmatprep.subr.mxu0 %v711_v29 }
 0xb3b   : > { %5313 = vmatpush2.msra.mxu0 %v710_v55 }
 0xb3c   : > { %5314 = vmatprep.subr.mxu0 %v709_v14 }
 0xb3d   : > { %5315 = vmatpush2.msra.mxu0 %v708_v50  ;;  %v756_v50 = vld [vmem:[%s10690_s15 + $0xf8] sm:$0xff] }
 0xb3e   : > { %5316 = vmatprep.subr.mxu0 %v707_v11  ;;  %v740_v11 = vld [vmem:[%s10690_s15 + $0x78] sm:$0xff]  ;;  %5909 = vmatprep.subr.mxu1 %v756_v50 }
 0xb3f   : > { %5317 = vmatpush2.msra.mxu0 %v706_v43  ;;  %v755_v43 = vld [vmem:[%s10690_s15 + $0xf0] sm:$0xff] }
 0xb40   : > { %5318 = vmatprep.subr.mxu0 %v705_v23  ;;  %v739_v23 = vld [vmem:[%s10690_s15 + $0x70] sm:$0xff] }
 0xb41   : > { %5319 = vmatpush2.msra.mxu0 %v704_v54  ;;  %v754_v54 = vld [vmem:[%s10690_s15 + $0xe8] sm:$0xff] }
 0xb42   : > { %5320 = vmatprep.subr.mxu0 %v703_v5  ;;  %v738_v5 = vld [vmem:[%s10690_s15 + $0x68] sm:$0xff] }
 0xb43   : > { %5321 = vmatpush2.msra.mxu0 %v702_v2  ;;  %v753_v2 = vld [vmem:[%s10690_s15 + $0xe0] sm:$0xff] }
 0xb44   : > { %5322 = vmatprep.subr.mxu0 %v701_v59  ;;  %v737_v59 = vld [vmem:[%s10690_s15 + $0x60] sm:$0xff] }
 0xb45   : > { %5323 = vmatpush2.msra.mxu0 %v700_v41  ;;  %v752_v41 = vld [vmem:[%s10690_s15 + $0xd8] sm:$0xff] }
 0xb46   : > { %5324 = vmatprep.subr.mxu0 %v699_v51  ;;  %v736_v51 = vld [vmem:[%s10690_s15 + $0x58] sm:$0xff] }
 0xb47   : > { %5325 = vmatpush2.msra.mxu0 %v698_v53  ;;  %v751_v53 = vld [vmem:[%s10690_s15 + $0xd0] sm:$0xff] }
 0xb48   : > { %5326 = vmatprep.subr.mxu0 %v697_v13  ;;  %v735_v13 = vld [vmem:[%s10690_s15 + $0x50] sm:$0xff] }
 0xb49   : > { %5327 = vmatpush2.msra.mxu0 %v696_v40  ;;  %v750_v40 = vld [vmem:[%s10690_s15 + $0xc8] sm:$0xff] }
 0xb4a   : > { %5328 = vmatprep.subr.mxu0 %v695_v36  ;;  %v734_v36 = vld [vmem:[%s10690_s15 + $0x48] sm:$0xff] }
 0xb4b   : > { %5329 = vmatpush2.msra.mxu0 %v694_v8  ;;  %v749_v8 = vld [vmem:[%s10690_s15 + $0xc0] sm:$0xff] }
 0xbd6   : > { %v5052_v6 = vpop.f32.mrf.mxu1 }
 0xbd7   : > { %5654 = vmatmul.mubr.msk.f32.vlgmr.msra.gmra.mxu1 %vm3885_vm7, %v5052_v6  ;;  %v693_v6 = vld [vmem:[%s10211_s13 + $0x108] sm:$0xff] }
 0xbd8   : > { %v6372_v3 = vpop.f32.mrf.mxu1  ;;  %5330 = vmatprep.subr.mxu0 %v693_v6  ;;  %5910 = vmatpush3.msra.mxu1 %v740_v11  ;;  %v733_v6 = vld [vmem:[%s10690_s15 + $0x40] sm:$0xff] }
 0xbd9   : > { %v692_v3 = vld [vmem:[%s10211_s13 + $0x100] sm:$0xff]  ;;  %5911 = vmatprep.subr.mxu1 %v755_v43 }
 0xbda   : > { %5331 = vmatpush2.msra.mxu0 %v692_v3  ;;  %v5125_v34 = vpop.f32.mrf.mxu1  ;;  %5912 = vmatpush3.msra.mxu1 %v739_v23  ;;  %v748_v3 = vld [vmem:[%s10690_s15 + $0xb8] sm:$0xff] }
 0xbdb   : > { %5913 = vmatprep.subr.mxu1 %v754_v54 }
 0xbdc   : > { %v5127_v12 = vpop.f32.mrf.mxu1  ;;  %5914 = vmatpush3.msra.mxu1 %v738_v5 }
 0xbdd   : > { %5915 = vmatprep.subr.mxu1 %v753_v2 }
 0xbde   : > { %5916 = vmatpush3.msra.mxu1 %v737_v59 }
 0xbdf   : > { %5917 = vmatprep.subr.mxu1 %v752_v41 }
 0xbe0   : > { %5918 = vmatpush3.msra.mxu1 %v736_v51 }
 0xbe1   : > { %5919 = vmatprep.subr.mxu1 %v751_v53  ;;  %v5655_v53 = vld [vmem:[#allocation2] ss:$0 sm:$0xff] }
 0xbe2   : > { %5920 = vmatpush3.msra.mxu1 %v735_v13 }
 0xbe3   : > { %5921 = vmatprep.subr.mxu1 %v750_v40 }
 0xbe4   : > { %5922 = vmatpush3.msra.mxu1 %v734_v36 }
 0xbe5   : > { %5923 = vmatprep.subr.mxu1 %v749_v8 }
 0xbe6   : > { %5924 = vmatpush3.msra.mxu1 %v733_v6 }
 0xbe7   : > { %5925 = vmatprep.subr.mxu1 %v748_v3 }
 0xc97   : > { %v5199_v38 = vpop.f32.mrf.mxu1 }
 0xc98   : > { %v5200_v44 = vadd.f32 %v5199_v38, %v5125_v34  ;;  %v732_v34 = vld [vmem:[%s10690_s15 + $0x38] sm:$0xff]  ;;  %v730_v38 = vld [vmem:[%s10690_s15 + $0x28] sm:$0xff] }
 0xc99   : > { %v5201_v22 = vpop.f32.mrf.mxu1  ;;  %5926 = vmatpush3.msra.mxu1 %v732_v34 }
 0xc9a   : > { %v5215_v21 = vadd.f32 %v5208_v4, %v5200_v44  ;;  %v5202_v49 = vadd.f32 %v5201_v22, %v5127_v12  ;;  %v731_v12 = vld [vmem:[%s10690_s15 + $0x30] sm:$0xff]  ;;  %v746_v4 = vld [vmem:[%s10690_s15 + $0xa8] sm:$0xff]  ;;  %5927 = vmatprep.subr.mxu1 %v747_v61  ;;  %v745_v44 = vld [vmem:[%s10690_s15 + $0xa0] sm:$0xff] }
 0xc9b   : > { %5928 = vmatpush3.msra.mxu1 %v731_v12  ;;  %v744_v22 = vld [vmem:[%s10690_s15 + $0x98] sm:$0xff] }
 0xc9c   : > { %v5223_v27 = vand.u32 2147483647, %v5215_v21  ;;  %v5216_v46 = vadd.f32 %v5212_v31, %v5202_v49  ;;  %v5217_v15 = vmax.f32 %v5215_v21, 0.0  ;;  %vm5219_vm3 = vcmp.ne.f32.partialorder %v5215_v21, %v5215_v21  ;;  %5929 = vmatprep.subr.mxu1 %v746_v4  ;;  %v729_v31 = vld [vmem:[%s10690_s15 + $0x20] sm:$0xff]  ;;  %v743_v49 = vld [vmem:[%s10690_s15 + $0x90] sm:$0xff] }
 0xc9d   : > { %5930 = vmatpush3.msra.mxu1 %v730_v38 }
 0xc9e   : > { %v5225_v7 = vsub.f32 0.0, %v5223_v27  ;;  %v5224_v24 = vand.u32 2147483647, %v5216_v46  ;;  %v5218_v48 = vmax.f32 %v5216_v46, 0.0  ;;  %vm5220_vm0 = vcmp.ne.f32.partialorder %v5216_v46, %v5216_v46  ;;  %5931 = vmatprep.subr.mxu1 %v745_v44  ;;  %v727_v27 = vld [vmem:[%s10690_s15 + $0x10] sm:$0xff] }
 0xc9f   : > { %5932 = vmatpush3.msra.mxu1 %v729_v31 }
 0xca0   : > { %v5227_v58 = vmul.f32 1.442695, %v5225_v7  ;;  %v5226_v39 = vsub.f32 0.0, %v5224_v24  ;;  %5933 = vmatprep.subr.mxu1 %v744_v22  ;;  %v726_v7 = vld [vmem:[%s10690_s15 + $0x8] sm:$0xff]  ;;  %v741_v24 = vld [vmem:[%s10690_s15 + $0x80] sm:$0xff] }
 0xca2   : > { %7008 = vpow2.f32 %v5227_v58  ;;  %v5229_v62 = vmul.f32 1.442695, %v5226_v39  ;;  %v725_v58 = vld [vmem:[%s10690_s15] sm:$0xff] }
 0xca3   : > { %v724_v39 = vld [vmem:[%s10691_s21] sm:$0x3] }
 0xca4   : > { %7010 = vpow2.f32 %v5229_v62  ;;  %v5261_v62 = vrot.slane %v724_v39, %v10688_v32 }
 0xcaf   : > { %v7009_v42 = vpop.eup %7008 }
 0xcb0   : > { %v5231_v25 = vadd.f32 1.0, %v7009_v42  ;;  %v5234_v9 = vmul.f32 -0.5, %v7009_v42  ;;  %v5237_v35 = vand.u32 2147483647, %v7009_v42 }
 0xcb1   : > { %v7011_v47 = vpop.eup %7010 }
 0xcb2   : > { %7012 = vlog2.f32 %v5231_v25  ;;  %v5240_v20 = vadd.f32 1.0, %v7011_v47  ;;  %v5243_v18 = vmul.f32 -0.5, %v7011_v47  ;;  %v5235_v1 = vadd.f32 1.0, %v5234_v9 }
 0xcb3   : > { %v5246_v0 = vand.u32 2147483647, %v7011_v47  ;;  %vm5238_vm7 = vcmp.lt.f32.partialorder %v5237_v35, 0.0004427343 }
 0xcb4   : > { %7014 = vlog2.f32 %v5240_v20  ;;  %v5244_v10 = vadd.f32 1.0, %v5243_v18  ;;  %v5236_v60 = vmul.f32 %v7009_v42, %v5235_v1  ;;  %v5265_v42 = vrot.slane %v724_v39, %v10689_v28 }
 0xcb5   : > { %vm5247_vm8 = vcmp.lt.f32.partialorder %v5246_v0, 0.0004427343 }
 0xcb6   : > { %v5245_v30 = vmul.f32 %v7011_v47, %v5244_v10 }
 0xcbf   : > { %v7013_v63 = vpop.eup %7012 }
 0xcc0   : > { %v5233_v52 = vmul.f32 0.6931472, %v7013_v63 }
 0xcc1   : > { %v7015_v17 = vpop.eup %7014 }
 0xcc2   : > { %v5239_v56 = vsel %vm5238_vm7, %v5236_v60, %v5233_v52  ;;  %v5242_v37 = vmul.f32 0.6931472, %v7015_v17 }
 0xcc3   : > { %v5249_v26 = vadd.f32 %v5239_v56, %v5217_v15 }
 0xcc4   : > { %v5248_v33 = vsel %vm5247_vm8, %v5245_v30, %v5242_v37 }
 0xcc5   : > { %v5251_v45 = vsel %vm5219_vm3, %v5215_v21, %v5249_v26  ;;  %v5250_v19 = vadd.f32 %v5248_v33, %v5218_v48 }
 0xcc6   : > { %7016 = vtanh.f32 %v5251_v45 }
 0xcc7   : > { %v5252_v16 = vsel %vm5220_vm0, %v5216_v46, %v5250_v19 }
 0xcc8   : > { %7018 = vtanh.f32 %v5252_v16 }
 0xcd3   : > { %v7017_v57 = vpop.eup %7016 }
 0xcd4   : > { %v5255_v14 = vmul.f32 %v7017_v57, %v5215_v21  ;;  %v728_v21 = vld [vmem:[%s10690_s15 + $0x18] sm:$0xff] }
 0xcd5   : > { %v7019_v29 = vpop.eup %7018  ;;  %5934 = vmatpush3.msra.mxu1 %v728_v21 }
 0xcd6   : > { %v5256_v55 = vmul.f32 %v7019_v29, %v5216_v46  ;;  %v742_v46 = vld [vmem:[%s10690_s15 + $0x88] sm:$0xff]  ;;  %5935 = vmatprep.subr.mxu1 %v743_v49 }
 0xcd7   : > { %5936 = vmatpush3.msra.mxu1 %v727_v27 }
 0xcd8   : > { %5332 = vmatprep.mubr.f32.mxu0 %v5256_v55  ;;  %5937 = vmatprep.subr.mxu1 %v742_v46 }
 0xcd9   : > { %5333 = vmatmul.mubr.f32.vlgmr.msra.gmra.mxu0 %v5255_v14  ;;  %5938 = vmatpush3.msra.mxu1 %v726_v7 }
 0xcda   : > { %5939 = vmatprep.subr.mxu1 %v741_v24 }
 0xcdb   : > { %5940 = vmatpush3.msra.mxu1 %v725_v58 }
 0xd99   : > { %v5334_v25 = vpop.f32.mrf.mxu0 }
 0xd9a   : > { %v5335_v47 = vadd.f32 %v5334_v25, %v5261_v62 }
 0xd9b   : > { %v5336_v20 = vpop.f32.mrf.mxu0 }
 0xd9c   : > { %v5345_v9 = vand.u32 2147483647, %v5335_v47  ;;  %v5337_v18 = vadd.f32 %v5336_v20, %v5265_v42  ;;  %v5339_v16 = vmax.f32 %v5335_v47, 0.0  ;;  %vm5341_vm12 = vcmp.ne.f32.partialorder %v5335_v47, %v5335_v47 }
 0xd9e   : > { %v5347_v1 = vsub.f32 0.0, %v5345_v9  ;;  %v5346_v35 = vand.u32 2147483647, %v5337_v18  ;;  %v5340_v50 = vmax.f32 %v5337_v18, 0.0  ;;  %vm5342_vm1 = vcmp.ne.f32.partialorder %v5337_v18, %v5337_v18 }
 0xda0   : > { %v5349_v10 = vmul.f32 1.442695, %v5347_v1  ;;  %v5348_v63 = vsub.f32 0.0, %v5346_v35 }
 0xda2   : > { %7020 = vpow2.f32 %v5349_v10  ;;  %v5351_v0 = vmul.f32 1.442695, %v5348_v63 }
 0xda4   : > { %7022 = vpow2.f32 %v5351_v0 }
 0xdaf   : > { %v7021_v52 = vpop.eup %7020 }
 0xdb0   : > { %v5353_v60 = vadd.f32 1.0, %v7021_v52  ;;  %v5356_v32 = vmul.f32 -0.5, %v7021_v52  ;;  %v5359_v37 = vand.u32 2147483647, %v7021_v52 }
 0xdb1   : > { %v7023_v17 = vpop.eup %7022 }
 0xdb2   : > { %7024 = vlog2.f32 %v5353_v60  ;;  %v5362_v15 = vadd.f32 1.0, %v7023_v17  ;;  %v5365_v28 = vmul.f32 -0.5, %v7023_v17  ;;  %v5357_v56 = vadd.f32 1.0, %v5356_v32 }
 0xdb3   : > { %v5368_v48 = vand.u32 2147483647, %v7023_v17  ;;  %vm5360_vm6 = vcmp.lt.f32.partialorder %v5359_v37, 0.0004427343 }
 0xdb4   : > { %7026 = vlog2.f32 %v5362_v15  ;;  %v5366_v30 = vadd.f32 1.0, %v5365_v28  ;;  %v5358_v45 = vmul.f32 %v7021_v52, %v5357_v56 }
 0xdb5   : > { %vm5369_vm14 = vcmp.lt.f32.partialorder %v5368_v48, 0.0004427343 }
 0xdb6   : > { %v5367_v55 = vmul.f32 %v7023_v17, %v5366_v30 }
 0xdbf   : > { %v7025_v26 = vpop.eup %7024 }
 0xdc0   : > { %v5355_v33 = vmul.f32 0.6931472, %v7025_v26 }
 0xdc1   : > { %v7027_v19 = vpop.eup %7026 }
 0xdc2   : > { %v5361_v57 = vsel %vm5360_vm6, %v5358_v45, %v5355_v33  ;;  %v5364_v29 = vmul.f32 0.6931472, %v7027_v19 }
 0xdc3   : > { %v5371_v14 = vadd.f32 %v5361_v57, %v5339_v16 }
 0xdc4   : > { %v5370_v11 = vsel %vm5369_vm14, %v5367_v55, %v5364_v29 }
 0xdc5   : > { %v5373_v43 = vsel %vm5341_vm12, %v5335_v47, %v5371_v14  ;;  %v5372_v23 = vadd.f32 %v5370_v11, %v5340_v50 }
 0xdc6   : > { %7028 = vtanh.f32 %v5373_v43 }
 0xdc7   : > { %v5374_v54 = vsel %vm5342_vm1, %v5337_v18, %v5372_v23 }
 0xdc8   : > { %7030 = vtanh.f32 %v5374_v54 }
 0xdd3   : > { %v7029_v5 = vpop.eup %7028 }
 0xdd4   : > { %v5377_v41 = vmul.f32 %v7029_v5, %v5335_v47 }
 0xdd5   : > { %v7031_v2 = vpop.eup %7030 }
 0xdd6   : > { %v5378_v59 = vmul.f32 %v7031_v2, %v5337_v18 }
 0xdd8   : > { %5449 = vmatprep.mubr.f32.mxu1 %v5378_v59 }
 0xdd9   : > { %5450 = vmatmul.mubr.f32.vlgmr.msra.gmra.mxu1 %v5377_v41 }
 0xe99   : > { %v5941_v51 = vpop.f32.mrf.mxu1 }
 0xe9b   : > { %v5942_v13 = vpop.f32.mrf.mxu1 }
 0xe9c   : > { %v5943_v40 = vadd.f32 %v5942_v13, %v5941_v51 }
 0xe9e   : > { %v5452_v36 = vadd.f32 %v5943_v40, %v5655_v53 }
 0xea0   : > { %5456 = vst.msk [vmem:[%s637_s0] sm:$0xff] %vm5455_vm13, %v5452_v36 }
 0xea1 PF: > { %s10693_s29 = sld [smem:[#allocation10_spill]]  ;;  %s10696_s26 = smov %s7116_s27 }
 0xea2   : > { %s10694_s23 = sld [smem:[#allocation9_spill]] }
 0xea3   : > { %s10695_s28 = sld [smem:[#allocation11_spill]] }
 0xea7   : > { %p30_p1 = scmp.ge.s32.totalorder %s10693_s29, 4  }
 0xea8   : > { %s10697_s27 = smov %s10694_s23 }
 0xea9   :  { %32 = sbr.rel (!%p30_p1) target bundleno = 11 (0xb), region = 141 }
 0xeae   :  { %5476 = vsyncpa [#allocation4], 1 }
 0xeaf   :  { %5478 = vsyncpa [#allocation4 + $0x1], 1 }
 0xeb0   :  { %5479 = vsyncpa [#allocation6], 1 }

</bundles_post_ra>
